<compile_context>
chip_gen: v5e
topology: v5e:2x2
jax: 0.10.0
libtpu: 0.0.40
codegen_flags: <defaults>
</compile_context>

<pallas_src>
import functools

import jax
import jax.numpy as jnp
from jax import lax
from jax.experimental import pallas as pl
from jax.experimental.pallas import tpu as pltpu

ALBERT_DIM = 768
W2V_DIM = 200
W2V_PAD = 256                          # word2vec features zero-padded to a lane multiple
GRU_HIDDEN = 128
GRU_OUT = 2 * GRU_HIDDEN               # 256
NUM_LABELS = 21
START_LABEL = 19
STOP_LABEL = 20
PAD_LEN = 200
LN_EPS = 1e-6
LANE = 128
PROJ_COLS = 6 * GRU_HIDDEN + LANE      # [fwd r|z|n | bwd r|z|n | attention col (lane 0)]

_VMEM = pl.BlockSpec(memory_space=pltpu.MemorySpace.VMEM)


def _vmem_capacity_bytes():
    try:
        return int(pltpu.get_tpu_info().vmem_capacity_bytes)
    except Exception:
        return 64 << 20                # conservative (v7x-sized) default


def _pick_seq_chunk(S):
    """Largest divisor of S that is <= 32, preferring multiples of 8."""
    cands = [c for c in range(1, min(S, 32) + 1) if S % c == 0]
    m8 = [c for c in cands if c % 8 == 0]
    return max(m8) if m8 else max(cands)


def _pick_batch_tile(B, S):
    """VMEM-budget and S aware batch tile (keeps >=2 grid steps on small-VMEM chips)."""
    if B <= 8 or B % 8 != 0:
        return B
    cap = _vmem_capacity_bytes()
    budget = int(cap * 0.85)
    # approx bytes per (batch row, timestep) of the per-tile working set
    per_row = S * (
        2 * ALBERT_DIM * 2 +           # seq block, bf16, double buffered
        2 * W2V_PAD * 2 +              # w2v block, bf16, double buffered
        2 * 3 * GRU_HIDDEN * 2 +       # xpf + xpb scratch, bf16
        GRU_OUT * 4 +                  # gru scratch, f32
        LANE * 4 +                     # emissions scratch (lane padded), f32
        2 * LANE +                     # history out block, double buffered
        4)                             # attention-logit scratch
    fixed = 8 << 20                    # weights + chunk temporaries + slack
    cands = [c for c in (64, 32, 16, 8) if c <= B and B % c == 0]
    if not cands:
        return B
    bt = cands[-1]
    for c in cands:
        if c * per_row + fixed <= budget:
            bt = c
            break
    # v7x-class chips (<=64 MiB VMEM) have two TensorCores: keep >= 2 grid steps.
    if cap <= (64 << 20) and bt == B and B >= 16 and (B // 2) % 8 == 0:
        bt = B // 2
    return bt


# --------------------------------------------------------------------------
# Fused kernel: attention weighting + BiGRU + LayerNormal + label head + CRF
# Viterbi forward pass.  One grid step = one batch tile.
# --------------------------------------------------------------------------
def _fused_kernel(seq_ref, w2v_ref, len_ref,
                  wia_ref, wiw_ref, att_b_ref, bxf_ref, bxb_ref,
                  whh_ref, bnf_ref, bnb_ref,
                  lnw_ref, lnb_ref, labw_ref, labb_ref,
                  start_ref, end_ref, trans_ref,
                  score_ref, hist_ref,
                  xpf_ref, xpb_ref, gru_ref, em_ref, att_ref,
                  *, hist_dtype):
    S, B, _ = seq_ref.shape
    H = GRU_HIDDEN
    T = NUM_LABELS
    CS = _pick_seq_chunk(S)
    n_chunks = S // CS

    # ---- phase 1: streamed input projection (no [S,B,896] f32 intermediate) ----
    # (attn*x)@W == attn*(x@W): store unscaled projections, scale after softmax.
    @pl.loop(0, n_chunks)
    def _(c):
        s0 = pl.multiple_of(c * CS, CS)
        seq_c = seq_ref[pl.ds(s0, CS)].reshape(CS * B, ALBERT_DIM)
        w2v_c = w2v_ref[pl.ds(s0, CS)].reshape(CS * B, W2V_PAD)
        p = (jnp.dot(seq_c, wia_ref[...], preferred_element_type=jnp.float32) +
             jnp.dot(w2v_c, wiw_ref[...], preferred_element_type=jnp.float32))
        p = p.reshape(CS, B, PROJ_COLS)
        xpf_ref[pl.ds(s0, CS)] = p[:, :, :3 * H].astype(jnp.bfloat16)
        xpb_ref[pl.ds(s0, CS)] = p[:, :, 3 * H:6 * H].astype(jnp.bfloat16)
        # attention weight rides the matmul in one zero-padded column block
        att_ref[pl.ds(s0, CS)] = jnp.sum(p[:, :, 6 * H:], axis=-1)

    # ---- phase 2: attention softmax over the sequence axis (unmasked, like torch) ----
    logits = att_ref[...] + att_b_ref[...]                      # [S,B]
    m = jnp.max(logits, axis=0, keepdims=True)
    e = jnp.exp(logits - m)
    att_ref[...] = e / jnp.sum(e, axis=0, keepdims=True)        # normalized weights

    # ---- phase 3: rescale projections + add folded biases (cheap chunked VPU pass) ----
    @pl.loop(0, n_chunks)
    def _(c):
        s0 = pl.multiple_of(c * CS, CS)
        a = att_ref[pl.ds(s0, CS)][:, :, None]                  # [CS,B,1]
        xpf_ref[pl.ds(s0, CS)] = (a * xpf_ref[pl.ds(s0, CS)].astype(jnp.float32)
                                  + bxf_ref[...]).astype(jnp.bfloat16)
        xpb_ref[pl.ds(s0, CS)] = (a * xpb_ref[pl.ds(s0, CS)].astype(jnp.float32)
                                  + bxb_ref[...]).astype(jnp.bfloat16)

    # ---- phase 4: bidirectional GRU, both directions in one serial loop ----
    whh = whh_ref[...]                  # [2H, 6H] bf16, block-diagonal (fwd | bwd)
    b_nf = bnf_ref[...]
    b_nb = bnb_ref[...]

    def gru_body(t, h_cat):
        s_rev = S - 1 - t
        xp_f = xpf_ref[t].astype(jnp.float32)                   # [B,3H]
        xp_b = xpb_ref[s_rev].astype(jnp.float32)
        gh = jnp.dot(h_cat.astype(jnp.bfloat16), whh,
                     preferred_element_type=jnp.float32)        # [B,6H]
        h_f = h_cat[:, :H]
        h_b = h_cat[:, H:]

        r_f = jax.nn.sigmoid(xp_f[:, :H] + gh[:, :H])
        z_f = jax.nn.sigmoid(xp_f[:, H:2 * H] + gh[:, H:2 * H])
        n_f = jnp.tanh(xp_f[:, 2 * H:] + r_f * (gh[:, 2 * H:3 * H] + b_nf))
        h_f = (1.0 - z_f) * n_f + z_f * h_f

        r_b = jax.nn.sigmoid(xp_b[:, :H] + gh[:, 3 * H:4 * H])
        z_b = jax.nn.sigmoid(xp_b[:, H:2 * H] + gh[:, 4 * H:5 * H])
        n_b = jnp.tanh(xp_b[:, 2 * H:] + r_b * (gh[:, 5 * H:] + b_nb))
        h_b = (1.0 - z_b) * n_b + z_b * h_b

        gru_ref[t, :, :H] = h_f
        gru_ref[s_rev, :, H:] = h_b
        return jnp.concatenate([h_f, h_b], axis=-1)

    lax.fori_loop(0, S, gru_body, jnp.zeros((B, 2 * H), jnp.float32))

    # ---- phase 5: LayerNormal (unbiased std, clamp(min=eps)) + hidden2label ----
    @pl.loop(0, n_chunks)
    def _(c):
        s0 = pl.multiple_of(c * CS, CS)
        g = gru_ref[pl.ds(s0, CS)]                              # [CS,B,2H] f32
        mu = jnp.mean(g, axis=-1, keepdims=True)
        diff = g - mu
        var = jnp.sum(diff * diff, axis=-1, keepdims=True) * (1.0 / (2 * H - 1))
        sigma = jnp.maximum(jnp.sqrt(var), LN_EPS)
        ln = diff / sigma * lnw_ref[...] + lnb_ref[...]
        em = (jnp.dot(ln.reshape(CS * B, 2 * H), labw_ref[...],
                      preferred_element_type=jnp.float32) + labb_ref[...])
        em_ref[pl.ds(s0, CS)] = em.reshape(CS, B, T)

    # ---- phase 6: CRF Viterbi forward pass (torchcrf semantics, f32) ----
    trans = trans_ref[...]                                      # [T,T]
    prev_idx = lax.broadcasted_iota(jnp.int32, (1, T, T), 1)
    lengths = len_ref[...]                                      # [B,1] int32

    score0 = start_ref[...] + em_ref[0]                         # [B,T]
    hist_ref[0] = jnp.zeros((B, T), hist_dtype)

    def vit_body(t, score):
        em_t = em_ref[t]                                                   # [B,T]
        nxt = score[:, :, None] + trans[None, :, :] + em_t[:, None, :]     # [B,T,T]
        best = jnp.max(nxt, axis=1)
        # first index achieving the max (torch.max tie behaviour); exact f32 compare
        bp = jnp.min(jnp.where(nxt == best[:, None, :], prev_idx, T), axis=1)
        hist_ref[t] = bp.astype(hist_dtype)
        live = t < lengths                                                 # [B,1]
        return jnp.where(live, best, score)

    score = lax.fori_loop(1, S, vit_body, score0)
    score_ref[...] = score + end_ref[...]


def fused_forward_kernel(seq_tm, w2v_tm, lengths, p):
    S, B, _ = seq_tm.shape
    bt = _pick_batch_tile(B, S)
    n_tiles = B // bt
    # int8 back-pointers when the tile is a clean packed-int8 sublane multiple
    hist_dtype = jnp.int8 if bt % 32 == 0 else jnp.int32

    cap = _vmem_capacity_bytes()
    vmem_limit = max(32 << 20, min(int(cap * 0.85), 104 << 20))

    in_specs = [
        pl.BlockSpec((S, bt, ALBERT_DIM), lambda b: (0, b, 0)),
        pl.BlockSpec((S, bt, W2V_PAD), lambda b: (0, b, 0)),
        pl.BlockSpec((bt, 1), lambda b: (b, 0)),                # per-example lengths
    ] + [_VMEM] * 15
    out_specs = (
        pl.BlockSpec((bt, NUM_LABELS), lambda b: (b, 0)),
        pl.BlockSpec((S, bt, NUM_LABELS), lambda b: (0, b, 0)),
    )
    out_shape = (
        jax.ShapeDtypeStruct((B, NUM_LABELS), jnp.float32),     # final CRF scores
        jax.ShapeDtypeStruct((S, B, NUM_LABELS), hist_dtype),   # Viterbi back-pointers
    )
    scratch_shapes = [
        pltpu.VMEM((S, bt, 3 * GRU_HIDDEN), jnp.bfloat16),      # fwd input projections
        pltpu.VMEM((S, bt, 3 * GRU_HIDDEN), jnp.bfloat16),      # bwd input projections
        pltpu.VMEM((S, bt, GRU_OUT), jnp.float32),              # GRU outputs
        pltpu.VMEM((S, bt, NUM_LABELS), jnp.float32),           # emissions
        pltpu.VMEM((S, bt), jnp.float32),                       # attention logits / weights
    ]
    return pl.pallas_call(
        functools.partial(_fused_kernel, hist_dtype=hist_dtype),
        grid=(n_tiles,),
        in_specs=in_specs,
        out_specs=out_specs,
        out_shape=out_shape,
        scratch_shapes=scratch_shapes,
        compiler_params=pltpu.CompilerParams(
            dimension_semantics=("parallel",),
            vmem_limit_bytes=vmem_limit),
    )(seq_tm, w2v_tm, lengths,
      p['w_in_a'], p['w_in_w'], p['att_b'], p['b_xf'], p['b_xb'], p['whh_cat'],
      p['b_nf'], p['b_nb'], p['ln_w'], p['ln_b'], p['lab_w'], p['lab_b'],
      p['crf_start'], p['crf_end'], p['crf_trans'])


# --------------------------------------------------------------------------
# CRF back-tracking (torchcrf decode) + padding to 200 — lax.scan in the wrapper.
# --------------------------------------------------------------------------
def crf_backtrack(final_score, history, input_mask):
    B, S = input_mask.shape
    seq_end = jnp.sum(input_mask, axis=1).astype(jnp.int32) - 1           # [B]
    cur0 = jnp.argmax(final_score, axis=1).astype(jnp.int32)
    barange = jnp.arange(B)

    def step(cur, t):
        prev = history[t, barange, cur].astype(jnp.int32)
        new_cur = jnp.where(t <= seq_end, prev, cur)
        return new_cur, new_cur

    ts = jnp.arange(S - 1, 0, -1)
    _, emitted = lax.scan(step, cur0, ts)                                 # [S-1, B]
    labels = jnp.concatenate([emitted[::-1], cur0[None, :]], axis=0).T    # [B, S]
    pos = jnp.arange(S)[None, :]
    labels = jnp.where(pos <= seq_end[:, None], labels, STOP_LABEL).astype(jnp.int32)

    preds = jnp.full((B, PAD_LEN), STOP_LABEL, dtype=jnp.int32)
    preds = preds.at[:, :S].set(labels)
    return preds


# --------------------------------------------------------------------------
# Full forward pass of AlBertGRUCRFTokenClassModel
# --------------------------------------------------------------------------
@jax.jit
def forward(params, input_ids, input_mask):
    B, S = input_ids.shape
    ids_tm = input_ids.T                                              # [S,B]
    # TODO(synk): pretrained ALBERT encoder + gensim word2vec file lookup have no
    #             Pallas equivalent; deterministic embedding tables stand in.
    seq_tm = jnp.take(params['albert_emb'], ids_tm, axis=0)           # [S,B,768] bf16
    w2v_tm = jnp.take(params['w2v_emb'], ids_tm, axis=0)              # [S,B,256] bf16
    lengths = jnp.sum(input_mask, axis=1).astype(jnp.int32).reshape(B, 1)

    final_score, history = fused_forward_kernel(seq_tm, w2v_tm, lengths, params)
    preds = crf_backtrack(final_score, history, input_mask)           # [B,200] int32
    score = jnp.zeros((B,), jnp.float32)                              # torch.zeros(B)
    return score, preds


# --------------------------------------------------------------------------
# Deterministic parameter init (shapes dictated by the module's __init__),
# packed into the kernel's MXU/lane-friendly layout.
# --------------------------------------------------------------------------
def init_params(key, vocab=64):
    ks = jax.random.split(key, 18)
    H = GRU_HIDDEN

    def u(k, shape, s=0.1):
        return jax.random.uniform(k, shape, jnp.float32, -s, s)

    albert_emb = jax.random.normal(ks[0], (vocab, ALBERT_DIM), jnp.float32) * 0.02
    w2v_emb = jax.random.normal(ks[1], (vocab, W2V_DIM), jnp.float32) * 0.02

    att_w = u(ks[2], (1, ALBERT_DIM + W2V_DIM))   # attention_layer = Linear(968, 1)
    att_b = u(ks[3], (1, 1))
    # GRU(968 -> 128, bidirectional); weights pre-transposed to (in, 3H), gate order (r,z,n)
    wih_f = u(ks[4], (ALBERT_DIM + W2V_DIM, 3 * H))
    whh_f = u(ks[5], (H, 3 * H))
    bih_f = u(ks[6], (1, 3 * H))
    bhh_f = u(ks[7], (1, 3 * H))
    wih_b = u(ks[8], (ALBERT_DIM + W2V_DIM, 3 * H))
    whh_b = u(ks[9], (H, 3 * H))
    bih_b = u(ks[10], (1, 3 * H))
    bhh_b = u(ks[11], (1, 3 * H))
    lab_w = u(ks[12], (GRU_OUT, NUM_LABELS))      # hidden2label = Linear(256, 21)
    lab_b = u(ks[13], (1, NUM_LABELS))
    crf_start = u(ks[14], (1, NUM_LABELS))        # torchcrf CRF(21) parameters
    crf_end = u(ks[15], (1, NUM_LABELS))
    crf_trans = u(ks[16], (NUM_LABELS, NUM_LABELS))

    w2v_emb_pad = jnp.pad(w2v_emb, ((0, 0), (0, W2V_PAD - W2V_DIM)))

    # ALBERT-stream projection: cols = [fwd ih | bwd ih | attention weight in col 0 of last 128]
    w_in_a = jnp.zeros((ALBERT_DIM, PROJ_COLS), jnp.float32)
    w_in_a = w_in_a.at[:, :3 * H].set(wih_f[:ALBERT_DIM])
    w_in_a = w_in_a.at[:, 3 * H:6 * H].set(wih_b[:ALBERT_DIM])
    w_in_a = w_in_a.at[:, 6 * H].set(att_w[0, :ALBERT_DIM])
    # word2vec-stream projection (rows 200..255 stay zero -> padding is a no-op)
    w_in_w = jnp.zeros((W2V_PAD, PROJ_COLS), jnp.float32)
    w_in_w = w_in_w.at[:W2V_DIM, :3 * H].set(wih_f[ALBERT_DIM:])
    w_in_w = w_in_w.at[:W2V_DIM, 3 * H:6 * H].set(wih_b[ALBERT_DIM:])
    w_in_w = w_in_w.at[:W2V_DIM, 6 * H].set(att_w[0, ALBERT_DIM:])

    # block-diagonal recurrent weight so both directions share one MXU call per step
    whh_cat = jnp.zeros((2 * H, 6 * H), jnp.float32)
    whh_cat = whh_cat.at[:H, :3 * H].set(whh_f)
    whh_cat = whh_cat.at[H:, 3 * H:].set(whh_b)

    # fold the r/z parts of b_hh into the input-side bias (n-gate b_hh stays separate)
    b_xf = bih_f + jnp.concatenate([bhh_f[:, :2 * H], jnp.zeros((1, H), jnp.float32)], axis=1)
    b_xb = bih_b + jnp.concatenate([bhh_b[:, :2 * H], jnp.zeros((1, H), jnp.float32)], axis=1)

    return {
        'albert_emb': albert_emb.astype(jnp.bfloat16),
        'w2v_emb': w2v_emb_pad.astype(jnp.bfloat16),
        'w_in_a': w_in_a.astype(jnp.bfloat16),
        'w_in_w': w_in_w.astype(jnp.bfloat16),
        'att_b': att_b,
        'whh_cat': whh_cat.astype(jnp.bfloat16),
        'b_xf': b_xf, 'b_xb': b_xb,
        'b_nf': bhh_f[:, 2 * H:], 'b_nb': bhh_b[:, 2 * H:],
        'ln_w': jnp.ones((1, GRU_OUT), jnp.float32),     # LayerNormal(256)
        'ln_b': jnp.zeros((1, GRU_OUT), jnp.float32),
        'lab_w': lab_w, 'lab_b': lab_b,
        'crf_start': crf_start, 'crf_end': crf_end, 'crf_trans': crf_trans,
    }


if __name__ == "__main__":
    key = jax.random.PRNGKey(0)
    params = init_params(key, vocab=64)

    B, S, V = 2, 8, 64
    input_ids = jax.random.randint(jax.random.fold_in(key, 1), (B, S), 0, V,
                                   dtype=jnp.int32)
    lengths = jnp.array([S, 5], dtype=jnp.int32)
    input_mask = (jnp.arange(S)[None, :] < lengths[:, None]).astype(jnp.int32)

    score, preds = forward(params, input_ids, input_mask)
    jax.block_until_ready((score, preds))

    assert score.shape == (B,) and score.dtype == jnp.float32
    assert preds.shape == (B, PAD_LEN) and preds.dtype == jnp.int32
    print("KERNEL_OK")
</pallas_src>

<mosaic_0001>
module attributes {stable_mosaic.version = 11 : i64} {
  func.func @_fused_kernel(%arg0: i32, %arg1: memref<8x2x768xbf16, #tpu.memory_space<vmem>>, %arg2: memref<8x2x256xbf16, #tpu.memory_space<vmem>>, %arg3: memref<2x1xi32, #tpu.memory_space<vmem>>, %arg4: memref<768x896xbf16, #tpu.memory_space<vmem>>, %arg5: memref<256x896xbf16, #tpu.memory_space<vmem>>, %arg6: memref<1x1xf32, #tpu.memory_space<vmem>>, %arg7: memref<1x384xf32, #tpu.memory_space<vmem>>, %arg8: memref<1x384xf32, #tpu.memory_space<vmem>>, %arg9: memref<256x768xbf16, #tpu.memory_space<vmem>>, %arg10: memref<1x128xf32, #tpu.memory_space<vmem>>, %arg11: memref<1x128xf32, #tpu.memory_space<vmem>>, %arg12: memref<1x256xf32, #tpu.memory_space<vmem>>, %arg13: memref<1x256xf32, #tpu.memory_space<vmem>>, %arg14: memref<256x21xf32, #tpu.memory_space<vmem>>, %arg15: memref<1x21xf32, #tpu.memory_space<vmem>>, %arg16: memref<1x21xf32, #tpu.memory_space<vmem>>, %arg17: memref<1x21xf32, #tpu.memory_space<vmem>>, %arg18: memref<21x21xf32, #tpu.memory_space<vmem>>, %arg19: memref<2x21xf32, #tpu.memory_space<vmem>>, %arg20: memref<8x2x21xi32, #tpu.memory_space<vmem>>, %arg21: memref<8x2x384xbf16, #tpu.memory_space<vmem>>, %arg22: memref<8x2x384xbf16, #tpu.memory_space<vmem>>, %arg23: memref<8x2x256xf32, #tpu.memory_space<vmem>>, %arg24: memref<8x2x21xf32, #tpu.memory_space<vmem>>, %arg25: memref<8x2xf32, #tpu.memory_space<vmem>>) attributes {dimension_semantics = [#tpu.dimension_semantics<parallel>], iteration_bounds = array<i64: 1>, scalar_prefetch = 0 : i64, scratch_operands = 5 : i64, tpu.core_type = #tpu.core_type<tc>, window_params = [{transform_indices = @transform_0, window_bounds = array<i64: 8, 2, 768>}, {transform_indices = @transform_1, window_bounds = array<i64: 8, 2, 256>}, {transform_indices = @transform_2, window_bounds = array<i64: 2, 1>}, {pipeline_mode = #tpu.pipeline_mode<synchronous>, transform_indices = @transform_3, window_bounds = array<i64: 768, 896>}, {pipeline_mode = #tpu.pipeline_mode<synchronous>, transform_indices = @transform_4, window_bounds = array<i64: 256, 896>}, {pipeline_mode = #tpu.pipeline_mode<synchronous>, transform_indices = @transform_5, window_bounds = array<i64: 1, 1>}, {pipeline_mode = #tpu.pipeline_mode<synchronous>, transform_indices = @transform_6, window_bounds = array<i64: 1, 384>}, {pipeline_mode = #tpu.pipeline_mode<synchronous>, transform_indices = @transform_7, window_bounds = array<i64: 1, 384>}, {pipeline_mode = #tpu.pipeline_mode<synchronous>, transform_indices = @transform_8, window_bounds = array<i64: 256, 768>}, {pipeline_mode = #tpu.pipeline_mode<synchronous>, transform_indices = @transform_9, window_bounds = array<i64: 1, 128>}, {pipeline_mode = #tpu.pipeline_mode<synchronous>, transform_indices = @transform_10, window_bounds = array<i64: 1, 128>}, {pipeline_mode = #tpu.pipeline_mode<synchronous>, transform_indices = @transform_11, window_bounds = array<i64: 1, 256>}, {pipeline_mode = #tpu.pipeline_mode<synchronous>, transform_indices = @transform_12, window_bounds = array<i64: 1, 256>}, {pipeline_mode = #tpu.pipeline_mode<synchronous>, transform_indices = @transform_13, window_bounds = array<i64: 256, 21>}, {pipeline_mode = #tpu.pipeline_mode<synchronous>, transform_indices = @transform_14, window_bounds = array<i64: 1, 21>}, {pipeline_mode = #tpu.pipeline_mode<synchronous>, transform_indices = @transform_15, window_bounds = array<i64: 1, 21>}, {pipeline_mode = #tpu.pipeline_mode<synchronous>, transform_indices = @transform_16, window_bounds = array<i64: 1, 21>}, {pipeline_mode = #tpu.pipeline_mode<synchronous>, transform_indices = @transform_17, window_bounds = array<i64: 21, 21>}, {transform_indices = @transform_18, window_bounds = array<i64: 2, 21>}, {transform_indices = @transform_19, window_bounds = array<i64: 8, 2, 21>}]} {
    %c0_i32 = arith.constant 0 : i32
    %c1_i32 = arith.constant 1 : i32
    %0 = arith.muli %c0_i32, %c1_i32 : i32
    %c0_i32_0 = arith.constant 0 : i32
    %1 = arith.addi %c0_i32_0, %0 : i32
    %c8_i32 = arith.constant 8 : i32
    %2 = arith.muli %1, %c8_i32 : i32
    %3 = tpu.assume_multiple %2, 8 : i32
    %4 = arith.index_cast %3 : i32 to index
    %c0 = arith.constant 0 : index
    %c0_1 = arith.constant 0 : index
    %5 = vector.load %arg1[%4, %c0, %c0_1] : memref<8x2x768xbf16, #tpu.memory_space<vmem>>, vector<8x2x768xbf16>
    %6 = vector.shape_cast %5 : vector<8x2x768xbf16> to vector<16x768xbf16>
    %7 = arith.index_cast %3 : i32 to index
    %c0_2 = arith.constant 0 : index
    %c0_3 = arith.constant 0 : index
    %8 = vector.load %arg2[%7, %c0_2, %c0_3] : memref<8x2x256xbf16, #tpu.memory_space<vmem>>, vector<8x2x256xbf16>
    %9 = vector.shape_cast %8 : vector<8x2x256xbf16> to vector<16x256xbf16>
    %c0_4 = arith.constant 0 : index
    %c0_5 = arith.constant 0 : index
    %10 = vector.load %arg4[%c0_4, %c0_5] : memref<768x896xbf16, #tpu.memory_space<vmem>>, vector<768x896xbf16>
    %cst = arith.constant dense<0.000000e+00> : vector<16x896xf32>
    %11 = tpu.matmul %6, %10, %cst {dimension_numbers = #tpu.dot_dimension_numbers<[1], [0], [0], [1], [0, 0, 1, 1], [], []>} : vector<16x768xbf16>, vector<768x896xbf16>, vector<16x896xf32> -> vector<16x896xf32>
    %c0_6 = arith.constant 0 : index
    %c0_7 = arith.constant 0 : index
    %12 = vector.load %arg5[%c0_6, %c0_7] : memref<256x896xbf16, #tpu.memory_space<vmem>>, vector<256x896xbf16>
    %cst_8 = arith.constant dense<0.000000e+00> : vector<16x896xf32>
    %13 = tpu.matmul %9, %12, %cst_8 {dimension_numbers = #tpu.dot_dimension_numbers<[1], [0], [0], [1], [0, 0, 1, 1], [], []>} : vector<16x256xbf16>, vector<256x896xbf16>, vector<16x896xf32> -> vector<16x896xf32>
    %14 = arith.addf %11, %13 : vector<16x896xf32>
    %15 = vector.shape_cast %14 : vector<16x896xf32> to vector<8x2x896xf32>
    %16 = vector.extract_strided_slice %15 {offsets = [0, 0, 0], sizes = [8, 2, 384], strides = [1, 1, 1]} : vector<8x2x896xf32> to vector<8x2x384xf32>
    %17 = arith.truncf %16 : vector<8x2x384xf32> to vector<8x2x384xbf16>
    %18 = arith.index_cast %3 : i32 to index
    %c0_9 = arith.constant 0 : index
    %c0_10 = arith.constant 0 : index
    %19 = vector.load %arg21[%18, %c0_9, %c0_10] : memref<8x2x384xbf16, #tpu.memory_space<vmem>>, vector<8x2x384xbf16>
    tpu.vector_store %arg21[%18, %c0_9, %c0_10], %17 {strides = array<i32>} : memref<8x2x384xbf16, #tpu.memory_space<vmem>>, vector<8x2x384xbf16>,
    %20 = vector.extract_strided_slice %15 {offsets = [0, 0, 384], sizes = [8, 2, 384], strides = [1, 1, 1]} : vector<8x2x896xf32> to vector<8x2x384xf32>
    %21 = arith.truncf %20 : vector<8x2x384xf32> to vector<8x2x384xbf16>
    %22 = arith.index_cast %3 : i32 to index
    %c0_11 = arith.constant 0 : index
    %c0_12 = arith.constant 0 : index
    %23 = vector.load %arg22[%22, %c0_11, %c0_12] : memref<8x2x384xbf16, #tpu.memory_space<vmem>>, vector<8x2x384xbf16>
    tpu.vector_store %arg22[%22, %c0_11, %c0_12], %21 {strides = array<i32>} : memref<8x2x384xbf16, #tpu.memory_space<vmem>>, vector<8x2x384xbf16>,
    %24 = vector.extract_strided_slice %15 {offsets = [0, 0, 768], sizes = [8, 2, 128], strides = [1, 1, 1]} : vector<8x2x896xf32> to vector<8x2x128xf32>
    %cst_13 = arith.constant dense<0.000000e+00> : vector<8x2xf32>
    %25 = vector.multi_reduction <add>, %24, %cst_13 [2] : vector<8x2x128xf32> to vector<8x2xf32>
    %26 = arith.index_cast %3 : i32 to index
    %c0_14 = arith.constant 0 : index
    %27 = vector.load %arg25[%26, %c0_14] : memref<8x2xf32, #tpu.memory_space<vmem>>, vector<8x2xf32>
    tpu.vector_store %arg25[%26, %c0_14], %25 {strides = array<i32>} : memref<8x2xf32, #tpu.memory_space<vmem>>, vector<8x2xf32>,
    %c1_i32_15 = arith.constant 1 : i32
    %c0_16 = arith.constant 0 : index
    %c0_17 = arith.constant 0 : index
    %28 = vector.load %arg25[%c0_16, %c0_17] : memref<8x2xf32, #tpu.memory_space<vmem>>, vector<8x2xf32>
    %c0_18 = arith.constant 0 : index
    %c0_19 = arith.constant 0 : index
    %29 = vector.load %arg6[%c0_18, %c0_19] : memref<1x1xf32, #tpu.memory_space<vmem>>, vector<1x1xf32>
    %30 = vector.broadcast %29 : vector<1x1xf32> to vector<8x2xf32>
    %31 = arith.addf %28, %30 : vector<8x2xf32>
    %cst_20 = arith.constant dense<0xFF800000> : vector<2xf32>
    %32 = vector.multi_reduction <maximumf>, %31, %cst_20 [0] : vector<8x2xf32> to vector<2xf32>
    %33 = vector.shape_cast %32 : vector<2xf32> to vector<1x2xf32>
    %34 = vector.broadcast %33 : vector<1x2xf32> to vector<8x2xf32>
    %35 = arith.subf %31, %34 : vector<8x2xf32>
    %36 = math.exp %35 : vector<8x2xf32>
    %cst_21 = arith.constant dense<0.000000e+00> : vector<2xf32>
    %37 = vector.multi_reduction <add>, %36, %cst_21 [0] : vector<8x2xf32> to vector<2xf32>
    %38 = vector.shape_cast %37 : vector<2xf32> to vector<1x2xf32>
    %39 = vector.broadcast %38 : vector<1x2xf32> to vector<8x2xf32>
    %40 = arith.divf %36, %39 : vector<8x2xf32>
    %c0_22 = arith.constant 0 : index
    %c0_23 = arith.constant 0 : index
    %41 = vector.load %arg25[%c0_22, %c0_23] : memref<8x2xf32, #tpu.memory_space<vmem>>, vector<8x2xf32>
    tpu.vector_store %arg25[%c0_22, %c0_23], %40 {strides = array<i32>} : memref<8x2xf32, #tpu.memory_space<vmem>>, vector<8x2xf32>,
    %c0_i32_24 = arith.constant 0 : i32
    %c1_i32_25 = arith.constant 1 : i32
    %42 = arith.muli %c0_i32_24, %c1_i32_25 : i32
    %c0_i32_26 = arith.constant 0 : i32
    %43 = arith.addi %c0_i32_26, %42 : i32
    %c8_i32_27 = arith.constant 8 : i32
    %44 = arith.muli %43, %c8_i32_27 : i32
    %45 = tpu.assume_multiple %44, 8 : i32
    %46 = arith.index_cast %45 : i32 to index
    %c0_28 = arith.constant 0 : index
    %47 = vector.load %arg25[%46, %c0_28] : memref<8x2xf32, #tpu.memory_space<vmem>>, vector<8x2xf32>
    %48 = vector.shape_cast %47 : vector<8x2xf32> to vector<8x2x1xf32>
    %49 = arith.index_cast %45 : i32 to index
    %c0_29 = arith.constant 0 : index
    %c0_30 = arith.constant 0 : index
    %50 = vector.load %arg21[%49, %c0_29, %c0_30] : memref<8x2x384xbf16, #tpu.memory_space<vmem>>, vector<8x2x384xbf16>
    %51 = arith.extf %50 : vector<8x2x384xbf16> to vector<8x2x384xf32>
    %52 = vector.broadcast %48 : vector<8x2x1xf32> to vector<8x2x384xf32>
    %53 = arith.mulf %52, %51 : vector<8x2x384xf32>
    %c0_31 = arith.constant 0 : index
    %c0_32 = arith.constant 0 : index
    %54 = vector.load %arg7[%c0_31, %c0_32] : memref<1x384xf32, #tpu.memory_space<vmem>>, vector<1x384xf32>
    %55 = vector.shape_cast %54 : vector<1x384xf32> to vector<1x1x384xf32>
    %56 = vector.broadcast %55 : vector<1x1x384xf32> to vector<8x2x384xf32>
    %57 = arith.addf %53, %56 : vector<8x2x384xf32>
    %58 = arith.truncf %57 : vector<8x2x384xf32> to vector<8x2x384xbf16>
    %59 = arith.index_cast %45 : i32 to index
    %c0_33 = arith.constant 0 : index
    %c0_34 = arith.constant 0 : index
    %60 = vector.load %arg21[%59, %c0_33, %c0_34] : memref<8x2x384xbf16, #tpu.memory_space<vmem>>, vector<8x2x384xbf16>
    tpu.vector_store %arg21[%59, %c0_33, %c0_34], %58 {strides = array<i32>} : memref<8x2x384xbf16, #tpu.memory_space<vmem>>, vector<8x2x384xbf16>,
    %61 = arith.index_cast %45 : i32 to index
    %c0_35 = arith.constant 0 : index
    %c0_36 = arith.constant 0 : index
    %62 = vector.load %arg22[%61, %c0_35, %c0_36] : memref<8x2x384xbf16, #tpu.memory_space<vmem>>, vector<8x2x384xbf16>
    %63 = arith.extf %62 : vector<8x2x384xbf16> to vector<8x2x384xf32>
    %64 = vector.broadcast %48 : vector<8x2x1xf32> to vector<8x2x384xf32>
    %65 = arith.mulf %64, %63 : vector<8x2x384xf32>
    %c0_37 = arith.constant 0 : index
    %c0_38 = arith.constant 0 : index
    %66 = vector.load %arg8[%c0_37, %c0_38] : memref<1x384xf32, #tpu.memory_space<vmem>>, vector<1x384xf32>
    %67 = vector.shape_cast %66 : vector<1x384xf32> to vector<1x1x384xf32>
    %68 = vector.broadcast %67 : vector<1x1x384xf32> to vector<8x2x384xf32>
    %69 = arith.addf %65, %68 : vector<8x2x384xf32>
    %70 = arith.truncf %69 : vector<8x2x384xf32> to vector<8x2x384xbf16>
    %71 = arith.index_cast %45 : i32 to index
    %c0_39 = arith.constant 0 : index
    %c0_40 = arith.constant 0 : index
    %72 = vector.load %arg22[%71, %c0_39, %c0_40] : memref<8x2x384xbf16, #tpu.memory_space<vmem>>, vector<8x2x384xbf16>
    tpu.vector_store %arg22[%71, %c0_39, %c0_40], %70 {strides = array<i32>} : memref<8x2x384xbf16, #tpu.memory_space<vmem>>, vector<8x2x384xbf16>,
    %c1_i32_41 = arith.constant 1 : i32
    %c0_42 = arith.constant 0 : index
    %c0_43 = arith.constant 0 : index
    %73 = vector.load %arg9[%c0_42, %c0_43] : memref<256x768xbf16, #tpu.memory_space<vmem>>, vector<256x768xbf16>
    %c0_44 = arith.constant 0 : index
    %c0_45 = arith.constant 0 : index
    %74 = vector.load %arg10[%c0_44, %c0_45] : memref<1x128xf32, #tpu.memory_space<vmem>>, vector<1x128xf32>
    %c0_46 = arith.constant 0 : index
    %c0_47 = arith.constant 0 : index
    %75 = vector.load %arg11[%c0_46, %c0_47] : memref<1x128xf32, #tpu.memory_space<vmem>>, vector<1x128xf32>
    %cst_48 = arith.constant 0.000000e+00 : f32
    %76 = vector.broadcast %cst_48 : f32 to vector<2x256xf32>
    %c0_i32_49 = arith.constant 0 : i32
    %c8_i32_50 = arith.constant 8 : i32
    %77 = arith.addi %c0_i32_49, %c8_i32_50 : i32
    %c1_i32_51 = arith.constant 1 : i32
    %78 = scf.for %arg26 = %c0_i32_49 to %77 step %c1_i32_51 iter_args(%arg27 = %76) -> (vector<2x256xf32>)  : i32 {
      %c7_i32_96 = arith.constant 7 : i32
      %136 = arith.subi %c7_i32_96, %arg26 : i32
      %137 = arith.index_cast %arg26 : i32 to index
      %c0_97 = arith.constant 0 : index
      %c0_98 = arith.constant 0 : index
      %138 = vector.load %arg21[%137, %c0_97, %c0_98] : memref<8x2x384xbf16, #tpu.memory_space<vmem>>, vector<1x2x384xbf16>
      %139 = vector.shape_cast %138 : vector<1x2x384xbf16> to vector<2x384xbf16>
      %140 = arith.extf %139 : vector<2x384xbf16> to vector<2x384xf32>
      %141 = arith.index_cast %136 : i32 to index
      %c0_99 = arith.constant 0 : index
      %c0_100 = arith.constant 0 : index
      %142 = vector.load %arg22[%141, %c0_99, %c0_100] : memref<8x2x384xbf16, #tpu.memory_space<vmem>>, vector<1x2x384xbf16>
      %143 = vector.shape_cast %142 : vector<1x2x384xbf16> to vector<2x384xbf16>
      %144 = arith.extf %143 : vector<2x384xbf16> to vector<2x384xf32>
      %145 = arith.truncf %arg27 : vector<2x256xf32> to vector<2x256xbf16>
      %cst_101 = arith.constant dense<0.000000e+00> : vector<2x768xf32>
      %146 = tpu.matmul %145, %73, %cst_101 {dimension_numbers = #tpu.dot_dimension_numbers<[1], [0], [0], [1], [0, 0, 1, 1], [], []>} : vector<2x256xbf16>, vector<256x768xbf16>, vector<2x768xf32> -> vector<2x768xf32>
      %147 = vector.extract_strided_slice %arg27 {offsets = [0, 0], sizes = [2, 128], strides = [1, 1]} : vector<2x256xf32> to vector<2x128xf32>
      %148 = vector.extract_strided_slice %arg27 {offsets = [0, 128], sizes = [2, 128], strides = [1, 1]} : vector<2x256xf32> to vector<2x128xf32>
      %149 = vector.extract_strided_slice %140 {offsets = [0, 0], sizes = [2, 128], strides = [1, 1]} : vector<2x384xf32> to vector<2x128xf32>
      %150 = vector.extract_strided_slice %146 {offsets = [0, 0], sizes = [2, 128], strides = [1, 1]} : vector<2x768xf32> to vector<2x128xf32>
      %151 = arith.addf %149, %150 : vector<2x128xf32>
      %152 = arith.negf %151 : vector<2x128xf32>
      %153 = math.exp %152 : vector<2x128xf32>
      %cst_102 = arith.constant 1.000000e+00 : f32
      %154 = vector.broadcast %cst_102 : f32 to vector<2x128xf32>
      %155 = arith.addf %154, %153 : vector<2x128xf32>
      %156 = arith.divf %154, %155 : vector<2x128xf32>
      %157 = vector.extract_strided_slice %140 {offsets = [0, 128], sizes = [2, 128], strides = [1, 1]} : vector<2x384xf32> to vector<2x128xf32>
      %158 = vector.extract_strided_slice %146 {offsets = [0, 128], sizes = [2, 128], strides = [1, 1]} : vector<2x768xf32> to vector<2x128xf32>
      %159 = arith.addf %157, %158 : vector<2x128xf32>
      %160 = arith.negf %159 : vector<2x128xf32>
      %161 = math.exp %160 : vector<2x128xf32>
      %cst_103 = arith.constant 1.000000e+00 : f32
      %162 = vector.broadcast %cst_103 : f32 to vector<2x128xf32>
      %163 = arith.addf %162, %161 : vector<2x128xf32>
      %164 = arith.divf %162, %163 : vector<2x128xf32>
      %165 = vector.extract_strided_slice %140 {offsets = [0, 256], sizes = [2, 128], strides = [1, 1]} : vector<2x384xf32> to vector<2x128xf32>
      %166 = vector.extract_strided_slice %146 {offsets = [0, 256], sizes = [2, 128], strides = [1, 1]} : vector<2x768xf32> to vector<2x128xf32>
      %167 = vector.broadcast %74 : vector<1x128xf32> to vector<2x128xf32>
      %168 = arith.addf %166, %167 : vector<2x128xf32>
      %169 = arith.mulf %156, %168 : vector<2x128xf32>
      %170 = arith.addf %165, %169 : vector<2x128xf32>
      %171 = math.tanh %170 : vector<2x128xf32>
      %cst_104 = arith.constant 1.000000e+00 : f32
      %172 = vector.broadcast %cst_104 : f32 to vector<2x128xf32>
      %173 = arith.subf %172, %164 : vector<2x128xf32>
      %174 = arith.mulf %173, %171 : vector<2x128xf32>
      %175 = arith.mulf %164, %147 : vector<2x128xf32>
      %176 = arith.addf %174, %175 : vector<2x128xf32>
      %177 = vector.extract_strided_slice %144 {offsets = [0, 0], sizes = [2, 128], strides = [1, 1]} : vector<2x384xf32> to vector<2x128xf32>
      %178 = vector.extract_strided_slice %146 {offsets = [0, 384], sizes = [2, 128], strides = [1, 1]} : vector<2x768xf32> to vector<2x128xf32>
      %179 = arith.addf %177, %178 : vector<2x128xf32>
      %180 = arith.negf %179 : vector<2x128xf32>
      %181 = math.exp %180 : vector<2x128xf32>
      %cst_105 = arith.constant 1.000000e+00 : f32
      %182 = vector.broadcast %cst_105 : f32 to vector<2x128xf32>
      %183 = arith.addf %182, %181 : vector<2x128xf32>
      %184 = arith.divf %182, %183 : vector<2x128xf32>
      %185 = vector.extract_strided_slice %144 {offsets = [0, 128], sizes = [2, 128], strides = [1, 1]} : vector<2x384xf32> to vector<2x128xf32>
      %186 = vector.extract_strided_slice %146 {offsets = [0, 512], sizes = [2, 128], strides = [1, 1]} : vector<2x768xf32> to vector<2x128xf32>
      %187 = arith.addf %185, %186 : vector<2x128xf32>
      %188 = arith.negf %187 : vector<2x128xf32>
      %189 = math.exp %188 : vector<2x128xf32>
      %cst_106 = arith.constant 1.000000e+00 : f32
      %190 = vector.broadcast %cst_106 : f32 to vector<2x128xf32>
      %191 = arith.addf %190, %189 : vector<2x128xf32>
      %192 = arith.divf %190, %191 : vector<2x128xf32>
      %193 = vector.extract_strided_slice %144 {offsets = [0, 256], sizes = [2, 128], strides = [1, 1]} : vector<2x384xf32> to vector<2x128xf32>
      %194 = vector.extract_strided_slice %146 {offsets = [0, 640], sizes = [2, 128], strides = [1, 1]} : vector<2x768xf32> to vector<2x128xf32>
      %195 = vector.broadcast %75 : vector<1x128xf32> to vector<2x128xf32>
      %196 = arith.addf %194, %195 : vector<2x128xf32>
      %197 = arith.mulf %184, %196 : vector<2x128xf32>
      %198 = arith.addf %193, %197 : vector<2x128xf32>
      %199 = math.tanh %198 : vector<2x128xf32>
      %cst_107 = arith.constant 1.000000e+00 : f32
      %200 = vector.broadcast %cst_107 : f32 to vector<2x128xf32>
      %201 = arith.subf %200, %192 : vector<2x128xf32>
      %202 = arith.mulf %201, %199 : vector<2x128xf32>
      %203 = arith.mulf %192, %148 : vector<2x128xf32>
      %204 = arith.addf %202, %203 : vector<2x128xf32>
      %205 = arith.index_cast %arg26 : i32 to index
      %c0_108 = arith.constant 0 : index
      %c0_109 = arith.constant 0 : index
      %206 = vector.load %arg23[%205, %c0_108, %c0_109] : memref<8x2x256xf32, #tpu.memory_space<vmem>>, vector<1x2x128xf32>
      %207 = vector.shape_cast %206 : vector<1x2x128xf32> to vector<2x128xf32>
      %208 = vector.shape_cast %176 : vector<2x128xf32> to vector<1x2x128xf32>
      tpu.vector_store %arg23[%205, %c0_108, %c0_109], %208 {strides = array<i32>} : memref<8x2x256xf32, #tpu.memory_space<vmem>>, vector<1x2x128xf32>,
      %209 = arith.index_cast %136 : i32 to index
      %c0_110 = arith.constant 0 : index
      %c128 = arith.constant 128 : index
      %210 = vector.load %arg23[%209, %c0_110, %c128] : memref<8x2x256xf32, #tpu.memory_space<vmem>>, vector<1x2x128xf32>
      %211 = vector.shape_cast %210 : vector<1x2x128xf32> to vector<2x128xf32>
      %212 = vector.shape_cast %204 : vector<2x128xf32> to vector<1x2x128xf32>
      tpu.vector_store %arg23[%209, %c0_110, %c128], %212 {strides = array<i32>} : memref<8x2x256xf32, #tpu.memory_space<vmem>>, vector<1x2x128xf32>,
      %213 = tpu.concatenate %176, %204 in 1 : vector<2x128xf32>, vector<2x128xf32> -> vector<2x256xf32>
      scf.yield %213 : vector<2x256xf32>
    }
    %c8_i32_52 = arith.constant 8 : i32
    %c0_i32_53 = arith.constant 0 : i32
    %c1_i32_54 = arith.constant 1 : i32
    %79 = arith.muli %c0_i32_53, %c1_i32_54 : i32
    %c0_i32_55 = arith.constant 0 : i32
    %80 = arith.addi %c0_i32_55, %79 : i32
    %c8_i32_56 = arith.constant 8 : i32
    %81 = arith.muli %80, %c8_i32_56 : i32
    %82 = tpu.assume_multiple %81, 8 : i32
    %83 = arith.index_cast %82 : i32 to index
    %c0_57 = arith.constant 0 : index
    %c0_58 = arith.constant 0 : index
    %84 = vector.load %arg23[%83, %c0_57, %c0_58] : memref<8x2x256xf32, #tpu.memory_space<vmem>>, vector<8x2x256xf32>
    %cst_59 = arith.constant dense<0.000000e+00> : vector<8x2xf32>
    %85 = vector.multi_reduction <add>, %84, %cst_59 [2] : vector<8x2x256xf32> to vector<8x2xf32>
    %86 = vector.shape_cast %85 : vector<8x2xf32> to vector<8x2x1xf32>
    %cst_60 = arith.constant 2.560000e+02 : f32
    %87 = vector.broadcast %cst_60 : f32 to vector<8x2x1xf32>
    %88 = arith.divf %86, %87 : vector<8x2x1xf32>
    %89 = vector.broadcast %88 : vector<8x2x1xf32> to vector<8x2x256xf32>
    %90 = arith.subf %84, %89 : vector<8x2x256xf32>
    %91 = arith.mulf %90, %90 : vector<8x2x256xf32>
    %cst_61 = arith.constant dense<0.000000e+00> : vector<8x2xf32>
    %92 = vector.multi_reduction <add>, %91, %cst_61 [2] : vector<8x2x256xf32> to vector<8x2xf32>
    %93 = vector.shape_cast %92 : vector<8x2xf32> to vector<8x2x1xf32>
    %cst_62 = arith.constant 0.00392156886 : f32
    %94 = vector.broadcast %cst_62 : f32 to vector<8x2x1xf32>
    %95 = arith.mulf %93, %94 : vector<8x2x1xf32>
    %96 = math.sqrt %95 : vector<8x2x1xf32>
    %cst_63 = arith.constant 9.99999997E-7 : f32
    %97 = vector.broadcast %cst_63 : f32 to vector<8x2x1xf32>
    %98 = arith.maximumf %96, %97 : vector<8x2x1xf32>
    %99 = vector.broadcast %98 : vector<8x2x1xf32> to vector<8x2x256xf32>
    %100 = arith.divf %90, %99 : vector<8x2x256xf32>
    %c0_64 = arith.constant 0 : index
    %c0_65 = arith.constant 0 : index
    %101 = vector.load %arg12[%c0_64, %c0_65] : memref<1x256xf32, #tpu.memory_space<vmem>>, vector<1x256xf32>
    %102 = vector.shape_cast %101 : vector<1x256xf32> to vector<1x1x256xf32>
    %103 = vector.broadcast %102 : vector<1x1x256xf32> to vector<8x2x256xf32>
    %104 = arith.mulf %100, %103 : vector<8x2x256xf32>
    %c0_66 = arith.constant 0 : index
    %c0_67 = arith.constant 0 : index
    %105 = vector.load %arg13[%c0_66, %c0_67] : memref<1x256xf32, #tpu.memory_space<vmem>>, vector<1x256xf32>
    %106 = vector.shape_cast %105 : vector<1x256xf32> to vector<1x1x256xf32>
    %107 = vector.broadcast %106 : vector<1x1x256xf32> to vector<8x2x256xf32>
    %108 = arith.addf %104, %107 : vector<8x2x256xf32>
    %109 = vector.shape_cast %108 : vector<8x2x256xf32> to vector<16x256xf32>
    %c0_68 = arith.constant 0 : index
    %c0_69 = arith.constant 0 : index
    %110 = vector.load %arg14[%c0_68, %c0_69] : memref<256x21xf32, #tpu.memory_space<vmem>>, vector<256x21xf32>
    %cst_70 = arith.constant dense<0.000000e+00> : vector<16x21xf32>
    %111 = tpu.matmul %109, %110, %cst_70 {dimension_numbers = #tpu.dot_dimension_numbers<[1], [0], [0], [1], [0, 0, 1, 1], [], []>} : vector<16x256xf32>, vector<256x21xf32>, vector<16x21xf32> -> vector<16x21xf32>
    %c0_71 = arith.constant 0 : index
    %c0_72 = arith.constant 0 : index
    %112 = vector.load %arg15[%c0_71, %c0_72] : memref<1x21xf32, #tpu.memory_space<vmem>>, vector<1x21xf32>
    %113 = vector.broadcast %112 : vector<1x21xf32> to vector<16x21xf32>
    %114 = arith.addf %111, %113 : vector<16x21xf32>
    %115 = vector.shape_cast %114 : vector<16x21xf32> to vector<8x2x21xf32>
    %116 = arith.index_cast %82 : i32 to index
    %c0_73 = arith.constant 0 : index
    %c0_74 = arith.constant 0 : index
    %117 = vector.load %arg24[%116, %c0_73, %c0_74] : memref<8x2x21xf32, #tpu.memory_space<vmem>>, vector<8x2x21xf32>
    tpu.vector_store %arg24[%116, %c0_73, %c0_74], %115 {strides = array<i32>} : memref<8x2x21xf32, #tpu.memory_space<vmem>>, vector<8x2x21xf32>,
    %c1_i32_75 = arith.constant 1 : i32
    %c0_76 = arith.constant 0 : index
    %c0_77 = arith.constant 0 : index
    %118 = vector.load %arg18[%c0_76, %c0_77] : memref<21x21xf32, #tpu.memory_space<vmem>>, vector<21x21xf32>
    %119 = tpu.iota {dimensions = array<i32: 1>} : vector<1x21x21xi32>
    %c0_78 = arith.constant 0 : index
    %c0_79 = arith.constant 0 : index
    %120 = vector.load %arg3[%c0_78, %c0_79] : memref<2x1xi32, #tpu.memory_space<vmem>>, vector<2x1xi32>
    %c0_80 = arith.constant 0 : index
    %c0_81 = arith.constant 0 : index
    %121 = vector.load %arg16[%c0_80, %c0_81] : memref<1x21xf32, #tpu.memory_space<vmem>>, vector<1x21xf32>
    %c0_82 = arith.constant 0 : index
    %c0_83 = arith.constant 0 : index
    %c0_84 = arith.constant 0 : index
    %122 = vector.load %arg24[%c0_82, %c0_83, %c0_84] : memref<8x2x21xf32, #tpu.memory_space<vmem>>, vector<1x2x21xf32>
    %123 = vector.shape_cast %122 : vector<1x2x21xf32> to vector<2x21xf32>
    %124 = vector.broadcast %121 : vector<1x21xf32> to vector<2x21xf32>
    %125 = arith.addf %124, %123 : vector<2x21xf32>
    %c0_i32_85 = arith.constant 0 : i32
    %126 = vector.broadcast %c0_i32_85 : i32 to vector<2x21xi32>
    %c0_86 = arith.constant 0 : index
    %c0_87 = arith.constant 0 : index
    %c0_88 = arith.constant 0 : index
    %127 = vector.load %arg20[%c0_86, %c0_87, %c0_88] : memref<8x2x21xi32, #tpu.memory_space<vmem>>, vector<1x2x21xi32>
    %128 = vector.shape_cast %127 : vector<1x2x21xi32> to vector<2x21xi32>
    %129 = vector.shape_cast %126 : vector<2x21xi32> to vector<1x2x21xi32>
    tpu.vector_store %arg20[%c0_86, %c0_87, %c0_88], %129 {strides = array<i32>} : memref<8x2x21xi32, #tpu.memory_space<vmem>>, vector<1x2x21xi32>,
    %c1_i32_89 = arith.constant 1 : i32
    %c7_i32 = arith.constant 7 : i32
    %130 = arith.addi %c1_i32_89, %c7_i32 : i32
    %c1_i32_90 = arith.constant 1 : i32
    %131 = scf.for %arg26 = %c1_i32_89 to %130 step %c1_i32_90 iter_args(%arg27 = %125) -> (vector<2x21xf32>)  : i32 {
      %136 = arith.index_cast %arg26 : i32 to index
      %c0_96 = arith.constant 0 : index
      %c0_97 = arith.constant 0 : index
      %137 = vector.load %arg24[%136, %c0_96, %c0_97] : memref<8x2x21xf32, #tpu.memory_space<vmem>>, vector<1x2x21xf32>
      %138 = vector.shape_cast %137 : vector<1x2x21xf32> to vector<2x21xf32>
      %139 = vector.shape_cast %arg27 : vector<2x21xf32> to vector<2x21x1xf32>
      %140 = vector.shape_cast %118 : vector<21x21xf32> to vector<1x21x21xf32>
      %141 = vector.broadcast %139 : vector<2x21x1xf32> to vector<2x21x21xf32>
      %142 = vector.broadcast %140 : vector<1x21x21xf32> to vector<2x21x21xf32>
      %143 = arith.addf %141, %142 : vector<2x21x21xf32>
      %144 = vector.shape_cast %138 : vector<2x21xf32> to vector<2x1x21xf32>
      %145 = vector.broadcast %144 : vector<2x1x21xf32> to vector<2x21x21xf32>
      %146 = arith.addf %143, %145 : vector<2x21x21xf32>
      %cst_98 = arith.constant dense<0xFF800000> : vector<2x21xf32>
      %147 = vector.multi_reduction <maximumf>, %146, %cst_98 [1] : vector<2x21x21xf32> to vector<2x21xf32>
      %148 = vector.shape_cast %147 : vector<2x21xf32> to vector<2x1x21xf32>
      %149 = vector.broadcast %148 : vector<2x1x21xf32> to vector<2x21x21xf32>
      %150 = arith.cmpf oeq, %146, %149 : vector<2x21x21xf32>
      %c21_i32 = arith.constant 21 : i32
      %151 = vector.shape_cast %119 : vector<1x21x21xi32> to vector<1x21x21xi32>
      %152 = vector.broadcast %151 : vector<1x21x21xi32> to vector<2x21x21xi32>
      %153 = vector.broadcast %c21_i32 : i32 to vector<2x21x21xi32>
      %154 = arith.select %150, %152, %153 : vector<2x21x21xi1>, vector<2x21x21xi32>
      %cst_99 = arith.constant dense<2147483647> : vector<2x21xi32>
      %155 = vector.multi_reduction <minsi>, %154, %cst_99 [1] : vector<2x21x21xi32> to vector<2x21xi32>
      %156 = arith.index_cast %arg26 : i32 to index
      %c0_100 = arith.constant 0 : index
      %c0_101 = arith.constant 0 : index
      %157 = vector.load %arg20[%156, %c0_100, %c0_101] : memref<8x2x21xi32, #tpu.memory_space<vmem>>, vector<1x2x21xi32>
      %158 = vector.shape_cast %157 : vector<1x2x21xi32> to vector<2x21xi32>
      %159 = vector.shape_cast %155 : vector<2x21xi32> to vector<1x2x21xi32>
      tpu.vector_store %arg20[%156, %c0_100, %c0_101], %159 {strides = array<i32>} : memref<8x2x21xi32, #tpu.memory_space<vmem>>, vector<1x2x21xi32>,
      %160 = vector.broadcast %arg26 : i32 to vector<2x1xi32>
      %161 = arith.cmpi slt, %160, %120 : vector<2x1xi32>
      %162 = vector.shape_cast %161 : vector<2x1xi1> to vector<2x1xi1>
      %163 = vector.broadcast %162 : vector<2x1xi1> to vector<2x21xi1>
      %164 = arith.select %163, %147, %arg27 : vector<2x21xi1>, vector<2x21xf32>
      scf.yield %164 : vector<2x21xf32>
    }
    %c7_i32_91 = arith.constant 7 : i32
    %c0_92 = arith.constant 0 : index
    %c0_93 = arith.constant 0 : index
    %132 = vector.load %arg17[%c0_92, %c0_93] : memref<1x21xf32, #tpu.memory_space<vmem>>, vector<1x21xf32>
    %133 = vector.broadcast %132 : vector<1x21xf32> to vector<2x21xf32>
    %134 = arith.addf %131, %133 : vector<2x21xf32>
    %c0_94 = arith.constant 0 : index
    %c0_95 = arith.constant 0 : index
    %135 = vector.load %arg19[%c0_94, %c0_95] : memref<2x21xf32, #tpu.memory_space<vmem>>, vector<2x21xf32>
    tpu.vector_store %arg19[%c0_94, %c0_95], %134 {strides = array<i32>} : memref<2x21xf32, #tpu.memory_space<vmem>>, vector<2x21xf32>,
    return
  }
  func.func @transform_0(%arg0: i32) -> (i32, i32, i32) {
    %c0_i32 = arith.constant 0 : i32
    %c0_i32_0 = arith.constant 0 : i32
    %c0_i32_1 = arith.constant 0 : i32
    return %c0_i32, %arg0, %c0_i32_0 : i32, i32, i32
  }
  func.func @transform_1(%arg0: i32) -> (i32, i32, i32) {
    %c0_i32 = arith.constant 0 : i32
    %c0_i32_0 = arith.constant 0 : i32
    %c0_i32_1 = arith.constant 0 : i32
    return %c0_i32, %arg0, %c0_i32_0 : i32, i32, i32
  }
  func.func @transform_2(%arg0: i32) -> (i32, i32) {
    %c0_i32 = arith.constant 0 : i32
    %c0_i32_0 = arith.constant 0 : i32
    return %arg0, %c0_i32 : i32, i32
  }
  func.func @transform_3(%arg0: i32) -> (i32, i32) {
    %c0_i32 = arith.constant 0 : i32
    %c0_i32_0 = arith.constant 0 : i32
    %c0_i32_1 = arith.constant 0 : i32
    return %c0_i32, %c0_i32_0 : i32, i32
  }
  func.func @transform_4(%arg0: i32) -> (i32, i32) {
    %c0_i32 = arith.constant 0 : i32
    %c0_i32_0 = arith.constant 0 : i32
    %c0_i32_1 = arith.constant 0 : i32
    return %c0_i32, %c0_i32_0 : i32, i32
  }
  func.func @transform_5(%arg0: i32) -> (i32, i32) {
    %c0_i32 = arith.constant 0 : i32
    %c0_i32_0 = arith.constant 0 : i32
    %c0_i32_1 = arith.constant 0 : i32
    return %c0_i32, %c0_i32_0 : i32, i32
  }
  func.func @transform_6(%arg0: i32) -> (i32, i32) {
    %c0_i32 = arith.constant 0 : i32
    %c0_i32_0 = arith.constant 0 : i32
    %c0_i32_1 = arith.constant 0 : i32
    return %c0_i32, %c0_i32_0 : i32, i32
  }
  func.func @transform_7(%arg0: i32) -> (i32, i32) {
    %c0_i32 = arith.constant 0 : i32
    %c0_i32_0 = arith.constant 0 : i32
    %c0_i32_1 = arith.constant 0 : i32
    return %c0_i32, %c0_i32_0 : i32, i32
  }
  func.func @transform_8(%arg0: i32) -> (i32, i32) {
    %c0_i32 = arith.constant 0 : i32
    %c0_i32_0 = arith.constant 0 : i32
    %c0_i32_1 = arith.constant 0 : i32
    return %c0_i32, %c0_i32_0 : i32, i32
  }
  func.func @transform_9(%arg0: i32) -> (i32, i32) {
    %c0_i32 = arith.constant 0 : i32
    %c0_i32_0 = arith.constant 0 : i32
    %c0_i32_1 = arith.constant 0 : i32
    return %c0_i32, %c0_i32_0 : i32, i32
  }
  func.func @transform_10(%arg0: i32) -> (i32, i32) {
    %c0_i32 = arith.constant 0 : i32
    %c0_i32_0 = arith.constant 0 : i32
    %c0_i32_1 = arith.constant 0 : i32
    return %c0_i32, %c0_i32_0 : i32, i32
  }
  func.func @transform_11(%arg0: i32) -> (i32, i32) {
    %c0_i32 = arith.constant 0 : i32
    %c0_i32_0 = arith.constant 0 : i32
    %c0_i32_1 = arith.constant 0 : i32
    return %c0_i32, %c0_i32_0 : i32, i32
  }
  func.func @transform_12(%arg0: i32) -> (i32, i32) {
    %c0_i32 = arith.constant 0 : i32
    %c0_i32_0 = arith.constant 0 : i32
    %c0_i32_1 = arith.constant 0 : i32
    return %c0_i32, %c0_i32_0 : i32, i32
  }
  func.func @transform_13(%arg0: i32) -> (i32, i32) {
    %c0_i32 = arith.constant 0 : i32
    %c0_i32_0 = arith.constant 0 : i32
    %c0_i32_1 = arith.constant 0 : i32
    return %c0_i32, %c0_i32_0 : i32, i32
  }
  func.func @transform_14(%arg0: i32) -> (i32, i32) {
    %c0_i32 = arith.constant 0 : i32
    %c0_i32_0 = arith.constant 0 : i32
    %c0_i32_1 = arith.constant 0 : i32
    return %c0_i32, %c0_i32_0 : i32, i32
  }
  func.func @transform_15(%arg0: i32) -> (i32, i32) {
    %c0_i32 = arith.constant 0 : i32
    %c0_i32_0 = arith.constant 0 : i32
    %c0_i32_1 = arith.constant 0 : i32
    return %c0_i32, %c0_i32_0 : i32, i32
  }
  func.func @transform_16(%arg0: i32) -> (i32, i32) {
    %c0_i32 = arith.constant 0 : i32
    %c0_i32_0 = arith.constant 0 : i32
    %c0_i32_1 = arith.constant 0 : i32
    return %c0_i32, %c0_i32_0 : i32, i32
  }
  func.func @transform_17(%arg0: i32) -> (i32, i32) {
    %c0_i32 = arith.constant 0 : i32
    %c0_i32_0 = arith.constant 0 : i32
    %c0_i32_1 = arith.constant 0 : i32
    return %c0_i32, %c0_i32_0 : i32, i32
  }
  func.func @transform_18(%arg0: i32) -> (i32, i32) {
    %c0_i32 = arith.constant 0 : i32
    %c0_i32_0 = arith.constant 0 : i32
    return %arg0, %c0_i32 : i32, i32
  }
  func.func @transform_19(%arg0: i32) -> (i32, i32, i32) {
    %c0_i32 = arith.constant 0 : i32
    %c0_i32_0 = arith.constant 0 : i32
    %c0_i32_1 = arith.constant 0 : i32
    return %c0_i32, %arg0, %c0_i32_0 : i32, i32, i32
  }
}

</mosaic_0001>

<bundles_post_ra>
// kernel: custom-call.7
= control target key start
LH: loop header
LB: loop body
LE: loop exit
PB: predicated region body
PF: predicated region fallthrough
CT: control target
= control target key end

     0   :  { %s6_s0 = inlined_call_operand.vmem [shape: s32[7,2], index: 0, kind: output, shape index: {}]  }

// kernel: forward.1
= control target key start
LH: loop header
LB: loop body
LE: loop exit
PB: predicated region body
PF: predicated region fallthrough
CT: control target
= control target key end

     0   :  { %s12313_s0 = inlined_call_operand.vmem [shape: bf16[8,2,768], index: 0, kind: input, shape index: {}]   ;;  %s12314_s1 = inlined_call_operand.vmem [shape: bf16[8,2,256], index: 1, kind: input, shape index: {}]   ;;  %s12315_s2 = inlined_call_operand.vmem [shape: s32[2,1], index: 2, kind: input, shape index: {}]   ;;  %s12316_s3 = inlined_call_operand.hbm [shape: bf16[768,896], index: 3, kind: input, shape index: {}]   ;;  %s12317_s4 = inlined_call_operand.hbm [shape: bf16[256,896], index: 4, kind: input, shape index: {}]   ;;  %s12318_s5 = inlined_call_operand.<no memory space> [shape: f32[1,1], index: 5, kind: input, shape index: {}]   ;;  %s12319_s6 = inlined_call_operand.hbm [shape: f32[1,384], index: 6, kind: input, shape index: {}]   ;;  %s12320_s7 = inlined_call_operand.hbm [shape: f32[1,384], index: 7, kind: input, shape index: {}]   ;;  %s12321_s8 = inlined_call_operand.hbm [shape: bf16[256,768], index: 8, kind: input, shape index: {}]   ;;  %s12322_s9 = inlined_call_operand.hbm [shape: f32[1,128], index: 9, kind: input, shape index: {}]   ;;  %s12323_s10 = inlined_call_operand.hbm [shape: f32[1,128], index: 10, kind: input, shape index: {}]   ;;  %s12324_s11 = inlined_call_operand.hbm [shape: f32[1,256], index: 11, kind: input, shape index: {}]   ;;  %s12325_s12 = inlined_call_operand.hbm [shape: f32[1,256], index: 12, kind: input, shape index: {}]   ;;  %s12326_s13 = inlined_call_operand.vmem [shape: f32[256,21], index: 13, kind: input, shape index: {}]   ;;  %s12327_s14 = inlined_call_operand.hbm [shape: f32[1,21], index: 14, kind: input, shape index: {}]   ;;  %s12328_s15 = inlined_call_operand.hbm [shape: f32[1,21], index: 15, kind: input, shape index: {}]   ;;  %s12329_s16 = inlined_call_operand.hbm [shape: f32[1,21], index: 16, kind: input, shape index: {}]   ;;  %s12330_s17 = inlined_call_operand.hbm [shape: f32[21,21], index: 17, kind: input, shape index: {}]   ;;  %s12331_s18 = inlined_call_operand.vmem [shape: f32[2,21], index: 18, kind: output, shape index: {0}]   ;;  %s12332_s19 = inlined_call_operand.vmem [shape: s32[8,2,21], index: 19, kind: output, shape index: {1}]  }
   0x1   :  { %12339 = sst [smem:[#allocation230_spill]] %s12313_s0  ;;  %v25_v0 = vstv %s12318_s5 }
   0x2   :  { %12340 = sst [smem:[#allocation231_spill]] %s12314_s1  ;;  %26 = vst [vmem:[#allocation7] sm:$0x1] %v25_v0 }
   0x3   :  { %12341 = sst [smem:[#allocation232_spill]] %s12315_s2 }
   0x4   :  { %12342 = sst [smem:[#allocation233_spill]] %s12316_s3 }
   0x5   :  { %27 = vsyncpa [#allocation9], 0 }
   0x6   :  { %28 = vsyncpa [#allocation11], 0 }
   0x7   :  { %29 = vsyncpa [#allocation14], 0 }
   0x8   :  { %30 = vsyncpa [#allocation17], 0 }
   0x9   :  { %31 = vsyncpa [#allocation20], 0 }
   0xa   :  { %32 = vsyncpa [#allocation23], 0 }
   0xb   :  { %33 = vsyncpa [#allocation26], 0  ;;  %s57_s1 = sshll.u32 %s12317_s4, 4  ;;  %s10186_s22 = smov [#allocation10]   ;;  %s58_s1 = int_to_ptr.hbm [resolvable:$true] %s57_s1 }
   0xc   :  { %s59_s2 = sshll.u32 %s10186_s22, 4  ;;  %s84_s5 = sshll.u32 %s12320_s7, 4  ;;  %s60_s2 = int_to_ptr.vmem [resolvable:$true] %s59_s2  ;;  %s85_s5 = int_to_ptr.hbm [resolvable:$true] %s84_s5 }
   0xd   :  { %s10187_s25 = smov 448   ;;  %s10188_s3 = smov 28  }
   0xe   :  { %65 = dma.hbm_to_vmem [thread:$0]  %s58_s1, 14336, %s60_s2, [#allocation11], %s10187_s25, %s10187_s25, %s10188_s3  }
   0xf   :  { %s10189_s26 = smov [#allocation13]   ;;  %s108_s4 = sshll.u32 %s12322_s9, 4  ;;  %s109_s4 = int_to_ptr.hbm [resolvable:$true] %s108_s4 }
  0x10   :  { %s86_s27 = sshll.u32 %s10189_s26, 4  ;;  %s130_s7 = sshll.u32 %s12324_s11, 4  ;;  %s87_s27 = int_to_ptr.vmem [resolvable:$true] %s86_s27  ;;  %s131_s7 = int_to_ptr.hbm [resolvable:$true] %s130_s7 }
  0x11   :  { %89 = dma.hbm_to_vmem [thread:$0]  %s85_s5, 48, %s87_s27, [#allocation14]  }
  0x12   :  { %s10190_s20 = smov [#allocation16]   ;;  %s10191_s1 = smov [#allocation19]  }
  0x13   :  { %s110_s21 = sshll.u32 %s10190_s20, 4  ;;  %s132_s22 = sshll.u32 %s10191_s1, 4  ;;  %s111_s21 = int_to_ptr.vmem [resolvable:$true] %s110_s21  ;;  %s133_s22 = int_to_ptr.vmem [resolvable:$true] %s132_s22 }
  0x14   :  { %113 = dma.hbm_to_vmem [thread:$0]  %s109_s4, 16, %s111_s21, [#allocation17]  }
  0x15   :  { %s154_s24 = sshll.u32 %s12327_s14, 4  ;;  %s176_s26 = sshll.u32 %s12329_s16, 4  ;;  %s155_s24 = int_to_ptr.hbm [resolvable:$true] %s154_s24  ;;  %s177_s26 = int_to_ptr.hbm [resolvable:$true] %s176_s26 }
  0x16   :  { %135 = dma.hbm_to_vmem [thread:$0]  %s131_s7, 32, %s133_s22, [#allocation20]  }
  0x17   :  { %s10192_s27 = smov [#allocation22]   ;;  %s10193_s28 = smov [#allocation25]  }
  0x18   :  { %s156_s11 = sshll.u32 %s10192_s27, 4  ;;  %s178_s29 = sshll.u32 %s10193_s28, 4  ;;  %s157_s11 = int_to_ptr.vmem [resolvable:$true] %s156_s11  ;;  %s179_s29 = int_to_ptr.vmem [resolvable:$true] %s178_s29 }
  0x19   :  { %159 = dma.hbm_to_vmem [thread:$0]  %s155_s24, 16, %s157_s11, [#allocation23]  }
  0x1a   :  { %s12343_s30 = sld [smem:[#allocation233_spill]]  ;;  %s73_s21 = sshll.u32 %s12319_s6, 4  ;;  %s74_s21 = int_to_ptr.hbm [resolvable:$true] %s73_s21 }
  0x1b   :  { %181 = dma.hbm_to_vmem [thread:$0]  %s177_s26, 16, %s179_s29, [#allocation26]  }
  0x1c   :  { %s10194_s1 = smov [#allocation8]   ;;  %s10195_s22 = smov [#allocation12]  }
  0x1d   :  { %s46_s16 = sshll.u32 %s10194_s1, 4  ;;  %s75_s2 = sshll.u32 %s10195_s22, 4  ;;  %s47_s16 = int_to_ptr.vmem [resolvable:$true] %s46_s16  ;;  %s76_s2 = int_to_ptr.vmem [resolvable:$true] %s75_s2 }
  0x1e   :  { %s94_s9 = sshll.u32 %s12321_s8, 4  ;;  %s10196_s5 = smov [#allocation15]   ;;  %s95_s9 = int_to_ptr.hbm [resolvable:$true] %s94_s9 }
  0x1f   :  { %78 = dma.hbm_to_vmem [thread:$0]  %s74_s21, 48, %s76_s2, [#allocation11]  }
  0x20   :  { %s44_s20 = sshll.u32 %s12343_s30, 4  ;;  %s96_s26 = sshll.u32 %s10196_s5, 4  ;;  %s45_s20 = int_to_ptr.hbm [resolvable:$true] %s44_s20  ;;  %s97_s26 = int_to_ptr.vmem [resolvable:$true] %s96_s26 }
  0x21   :  { %52 = dma.hbm_to_vmem [thread:$0]  %s45_s20, 43008, %s47_s16, [#allocation9], %s10187_s25, %s10187_s25, %s10188_s3  }
  0x22   :  { %s119_s11 = sshll.u32 %s12323_s10, 4  ;;  %s10197_s28 = smov 384   ;;  %s120_s11 = int_to_ptr.hbm [resolvable:$true] %s119_s11 }
  0x23   :  { %s10198_s29 = smov 24   ;;  %s10199_s25 = smov [#allocation18]  }
  0x24   :  { %102 = dma.hbm_to_vmem [thread:$0]  %s95_s9, 12288, %s97_s26, [#allocation14], %s10197_s28, %s10197_s28, %s10198_s29  }
  0x25   :  { %s121_s3 = sshll.u32 %s10199_s25, 4  ;;  %s141_s8 = sshll.u32 %s12325_s12, 4  ;;  %s122_s3 = int_to_ptr.vmem [resolvable:$true] %s121_s3  ;;  %s142_s8 = int_to_ptr.hbm [resolvable:$true] %s141_s8 }
  0x26   :  { %124 = dma.hbm_to_vmem [thread:$0]  %s120_s11, 16, %s122_s3, [#allocation17]  }
  0x27   :  { %s165_s14 = sshll.u32 %s12328_s15, 4  ;;  %s10200_s7 = smov [#allocation21]   ;;  %s166_s14 = int_to_ptr.hbm [resolvable:$true] %s165_s14 }
  0x28   :  { %s143_s21 = sshll.u32 %s10200_s7, 4  ;;  %s10201_s10 = smov [#allocation24]   ;;  %s144_s21 = int_to_ptr.vmem [resolvable:$true] %s143_s21 }
  0x29   :  { %146 = dma.hbm_to_vmem [thread:$0]  %s142_s8, 32, %s144_s21, [#allocation20]  }
  0x2a   :  { %s167_s1 = sshll.u32 %s10201_s10, 4  ;;  %s186_s2 = sshll.u32 %s12330_s17, 4  ;;  %s168_s1 = int_to_ptr.vmem [resolvable:$true] %s167_s1  ;;  %s187_s2 = int_to_ptr.hbm [resolvable:$true] %s186_s2 }
  0x2b   :  { %170 = dma.hbm_to_vmem [thread:$0]  %s166_s14, 16, %s168_s1, [#allocation23]  }
  0x2c   :  { %s10202_s12 = smov [#allocation27]   ;;  %s10203_s24 = smov 128  }
  0x2d   :  { %s188_s23 = sshll.u32 %s10202_s12, 4  ;;  %s10204_s9 = smov 8   ;;  %s189_s23 = int_to_ptr.vmem [resolvable:$true] %s188_s23 }
  0x2e   :  { %194 = dma.hbm_to_vmem [thread:$0]  %s187_s2, 384, %s189_s23, [#allocation26], %s10203_s24, %s10203_s24, %s10204_s9  }
  0x2f   :  { %10152 = dma.done.wait [#allocation9], 43008  }
  0x30   :  { %10153 = vsyncadd [#allocation9], 4294924288 }
  0x31   :  { %10154 = dma.done.wait [#allocation11], 14384  }
  0x32   :  { %10155 = vsyncadd [#allocation11], 4294952912 }
  0x33   :  { %10156 = dma.done.wait [#allocation14], 12336  }
  0x34   :  { %10157 = vsyncadd [#allocation14], 4294954960 }
  0x35   :  { %10158 = dma.done.wait [#allocation17], 32  }
  0x36   :  { %10159 = vsyncadd [#allocation17], 4294967264 }
  0x37   :  { %10160 = dma.done.wait [#allocation20], 64  }
  0x38   :  { %10161 = vsyncadd [#allocation20], 4294967232 }
  0x39   :  { %10162 = dma.done.wait [#allocation23], 32  }
  0x3a   :  { %10163 = vsyncadd [#allocation23], 4294967264 }
  0x3b   :  { %10164 = dma.done.wait [#allocation26], 400  }
  0x3c   :  { %10165 = vsyncadd [#allocation26], 4294966896  ;;  %v10357_v1 = vld [vmem:[#allocation15 + $0x4] sm:$0xf]  ;;  %v10359_v2 = vld [vmem:[#allocation15] sm:$0xf] }
  0x3d   :  { %12344 = vst [vmem:[#allocation35_spill] sm:$0xff] %v10357_v1  ;;  %v10361_v3 = vld [vmem:[#allocation15 + $0xc] sm:$0xf]  ;;  %v10363_v4 = vld [vmem:[#allocation15 + $0x8] sm:$0xf]  ;;  %s12538_s5 = sld [smem:[#allocation231_spill]] }
  0x3e   :  { %12345 = vst [vmem:[#allocation36_spill] sm:$0xff] %v10359_v2  ;;  %v10365_v5 = vld [vmem:[#allocation15 + $0x14] sm:$0xf]  ;;  %v10367_v6 = vld [vmem:[#allocation15 + $0x10] sm:$0xf]  ;;  %s12539_s10 = sld [smem:[#allocation230_spill]] }
  0x3f   :  { %12346 = vst [vmem:[#allocation37_spill] sm:$0xff] %v10361_v3  ;;  %v10369_v7 = vld [vmem:[#allocation15 + $0x18] sm:$0xf0]  ;;  %v10371_v8 = vld [vmem:[#allocation15 + $0x14] sm:$0xf0]  ;;  %vm3953_vm0 = vcmask 1041408  }
  0x40   :  { %12347 = vst [vmem:[#allocation38_spill] sm:$0xff] %v10363_v4  ;;  %v10373_v9 = vld [vmem:[#allocation15 + $0x20] sm:$0xf0]  ;;  %v10375_v10 = vld [vmem:[#allocation15 + $0x1c] sm:$0xf0]  ;;  %vm3955_vm1 = vcmask 1045508  }
  0x41   :  { %12348 = vst [vmem:[#allocation39_spill] sm:$0xff] %v10365_v5  ;;  %v10377_v11 = vld [vmem:[#allocation15 + $0x28] sm:$0xf0]  ;;  %v10379_v12 = vld [vmem:[#allocation15 + $0x24] sm:$0xf0]  ;;  %vm3961_vm2 = vcmask 1043458  }
  0x42   :  { %12349 = vst [vmem:[#allocation40_spill] sm:$0xff] %v10367_v6  ;;  %v10381_v13 = vld [vmem:[#allocation15 + $0x34] sm:$0xf]  ;;  %v10383_v14 = vld [vmem:[#allocation15 + $0x30] sm:$0xf]  ;;  %vm3963_vm3 = vcmask 1045504  }
  0x43   :  { %12350 = vst [vmem:[#allocation41_spill] sm:$0xff] %v10369_v7  ;;  %v10385_v15 = vld [vmem:[#allocation15 + $0x3c] sm:$0xf]  ;;  %v10387_v16 = vld [vmem:[#allocation15 + $0x38] sm:$0xf]  ;;  %vm3957_vm4 = vcmask 1043456  }
  0x44   :  { %12351 = vst [vmem:[#allocation42_spill] sm:$0xff] %v10371_v8  ;;  %v10389_v17 = vld [vmem:[#allocation15 + $0x44] sm:$0xf]  ;;  %v10391_v18 = vld [vmem:[#allocation15 + $0x40] sm:$0xf]  ;;  %vm3965_vm5 = vcmask 1045506  }
  0x45   :  { %12352 = vst [vmem:[#allocation43_spill] sm:$0xff] %v10373_v9  ;;  %v10393_v19 = vld [vmem:[#allocation15 + $0x48] sm:$0xf0]  ;;  %v10395_v20 = vld [vmem:[#allocation15 + $0x44] sm:$0xf0]  ;;  %vm4124_vm6 = vcmask 1040384  }
  0x46   :  { %12353 = vst [vmem:[#allocation44_spill] sm:$0xff] %v10375_v10  ;;  %v10397_v21 = vld [vmem:[#allocation15 + $0x50] sm:$0xf0]  ;;  %v10399_v22 = vld [vmem:[#allocation15 + $0x4c] sm:$0xf0]  ;;  %vm4128_vm7 = vcmask 1042434  }
  0x47   :  { %12354 = vst [vmem:[#allocation45_spill] sm:$0xff] %v10377_v11  ;;  %v10401_v23 = vld [vmem:[#allocation15 + $0x58] sm:$0xf0]  ;;  %v10403_v24 = vld [vmem:[#allocation15 + $0x54] sm:$0xf0]  ;;  %vm4461_vm8 = vcmask 1041409  }
  0x48   :  { %12355 = vst [vmem:[#allocation46_spill] sm:$0xff] %v10379_v12  ;;  %v10405_v25 = vld [vmem:[#allocation15 + $0x64] sm:$0xf]  ;;  %v10407_v26 = vld [vmem:[#allocation15 + $0x60] sm:$0xf]  ;;  %vm4464_vm9 = vcmask 1043459  }
  0x49   :  { %12356 = vst [vmem:[#allocation47_spill] sm:$0xff] %v10381_v13  ;;  %v10409_v27 = vld [vmem:[#allocation15 + $0x6c] sm:$0xf]  ;;  %v10411_v28 = vld [vmem:[#allocation15 + $0x68] sm:$0xf]  ;;  %vm4466_vm10 = vcmask 1044484  }
  0x4a   :  { %12357 = vst [vmem:[#allocation48_spill] sm:$0xff] %v10383_v14  ;;  %v10413_v29 = vld [vmem:[#allocation15 + $0x74] sm:$0xf]  ;;  %v10415_v30 = vld [vmem:[#allocation15 + $0x70] sm:$0xf]  ;;  %vm4468_vm11 = vcmask 1045509  }
  0x4b   :  { %12358 = vst [vmem:[#allocation49_spill] sm:$0xff] %v10385_v15  ;;  %v10417_v31 = vld [vmem:[#allocation15 + $0x78] sm:$0xf0]  ;;  %v10419_v32 = vld [vmem:[#allocation15 + $0x74] sm:$0xf0]  ;;  %vm4470_vm12 = vcmask 1046534  }
  0x4c   :  { %12359 = vst [vmem:[#allocation50_spill] sm:$0xff] %v10387_v16  ;;  %v10421_v33 = vld [vmem:[#allocation15 + $0x80] sm:$0xf0]  ;;  %v10423_v34 = vld [vmem:[#allocation15 + $0x7c] sm:$0xf0]  ;;  %vm4472_vm13 = vcmask 1047559  }
  0x4d   :  { %12360 = vst [vmem:[#allocation51_spill] sm:$0xff] %v10389_v17  ;;  %v10425_v35 = vld [vmem:[#allocation15 + $0x88] sm:$0xf0]  ;;  %v10427_v36 = vld [vmem:[#allocation15 + $0x84] sm:$0xf0]  ;;  %vm4475_vm14 = vcmask 15360  }
  0x4e   :  { %12361 = vst [vmem:[#allocation52_spill] sm:$0xff] %v10391_v18  ;;  %v10429_v37 = vld [vmem:[#allocation15 + $0x94] sm:$0xf]  ;;  %v10431_v38 = vld [vmem:[#allocation15 + $0x90] sm:$0xf]  ;;  %s11471_s11 = smov 0  }
  0x4f   :  { %12362 = vst [vmem:[#allocation53_spill] sm:$0xff] %v10393_v19  ;;  %v10433_v39 = vld [vmem:[#allocation15 + $0x9c] sm:$0xf]  ;;  %v10435_v40 = vld [vmem:[#allocation15 + $0x98] sm:$0xf] }
  0x50   :  { %12363 = vst [vmem:[#allocation54_spill] sm:$0xff] %v10395_v20  ;;  %v10437_v41 = vld [vmem:[#allocation15 + $0xa4] sm:$0xf]  ;;  %v10439_v42 = vld [vmem:[#allocation15 + $0xa0] sm:$0xf] }
  0x51   :  { %12364 = vst [vmem:[#allocation55_spill] sm:$0xff] %v10397_v21  ;;  %v10441_v43 = vld [vmem:[#allocation15 + $0xa8] sm:$0xf0]  ;;  %v10443_v44 = vld [vmem:[#allocation15 + $0xa4] sm:$0xf0] }
  0x52   :  { %12365 = vst [vmem:[#allocation56_spill] sm:$0xff] %v10399_v22  ;;  %v10445_v45 = vld [vmem:[#allocation15 + $0xb0] sm:$0xf0]  ;;  %v10447_v46 = vld [vmem:[#allocation15 + $0xac] sm:$0xf0] }
  0x53   :  { %12366 = vst [vmem:[#allocation57_spill] sm:$0xff] %v10401_v23  ;;  %v10449_v47 = vld [vmem:[#allocation15 + $0xb8] sm:$0xf0]  ;;  %v10451_v48 = vld [vmem:[#allocation15 + $0xb4] sm:$0xf0] }
  0x54   :  { %12367 = vst [vmem:[#allocation58_spill] sm:$0xff] %v10403_v24  ;;  %v10453_v49 = vld [vmem:[#allocation15 + $0xc4] sm:$0xf]  ;;  %v10455_v50 = vld [vmem:[#allocation15 + $0xc0] sm:$0xf] }
  0x55   :  { %12368 = vst [vmem:[#allocation59_spill] sm:$0xff] %v10405_v25  ;;  %v10457_v51 = vld [vmem:[#allocation15 + $0xcc] sm:$0xf]  ;;  %v10459_v52 = vld [vmem:[#allocation15 + $0xc8] sm:$0xf] }
  0x56   :  { %12369 = vst [vmem:[#allocation60_spill] sm:$0xff] %v10407_v26  ;;  %v10461_v53 = vld [vmem:[#allocation15 + $0xd4] sm:$0xf]  ;;  %v10463_v54 = vld [vmem:[#allocation15 + $0xd0] sm:$0xf] }
  0x57   :  { %12370 = vst [vmem:[#allocation61_spill] sm:$0xff] %v10409_v27  ;;  %v10465_v55 = vld [vmem:[#allocation15 + $0xd8] sm:$0xf0]  ;;  %v10467_v56 = vld [vmem:[#allocation15 + $0xd4] sm:$0xf0] }
  0x58   :  { %12371 = vst [vmem:[#allocation62_spill] sm:$0xff] %v10411_v28  ;;  %v10469_v57 = vld [vmem:[#allocation15 + $0xe0] sm:$0xf0]  ;;  %v10471_v58 = vld [vmem:[#allocation15 + $0xdc] sm:$0xf0] }
  0x59   :  { %12372 = vst [vmem:[#allocation63_spill] sm:$0xff] %v10413_v29  ;;  %v10473_v59 = vld [vmem:[#allocation15 + $0xe8] sm:$0xf0]  ;;  %v10475_v60 = vld [vmem:[#allocation15 + $0xe4] sm:$0xf0] }
  0x5a   :  { %12373 = vst [vmem:[#allocation64_spill] sm:$0xff] %v10415_v30  ;;  %v10477_v61 = vld [vmem:[#allocation15 + $0xf4] sm:$0xf]  ;;  %v10479_v62 = vld [vmem:[#allocation15 + $0xf0] sm:$0xf] }
  0x5b   :  { %12374 = vst [vmem:[#allocation65_spill] sm:$0xff] %v10417_v31  ;;  %v10481_v63 = vld [vmem:[#allocation15 + $0xfc] sm:$0xf]  ;;  %v10483_v0 = vld [vmem:[#allocation15 + $0xf8] sm:$0xf] }
  0x5c   :  { %12375 = vst [vmem:[#allocation66_spill] sm:$0xff] %v10419_v32  ;;  %v10485_v5 = vld [vmem:[#allocation15 + $0x104] sm:$0xf]  ;;  %v10487_v11 = vld [vmem:[#allocation15 + $0x100] sm:$0xf] }
  0x5d   :  { %12376 = vst [vmem:[#allocation67_spill] sm:$0xff] %v10421_v33  ;;  %v10489_v12 = vld [vmem:[#allocation15 + $0x108] sm:$0xf0]  ;;  %v10491_v6 = vld [vmem:[#allocation15 + $0x104] sm:$0xf0] }
  0x5e   :  { %12377 = vst [vmem:[#allocation68_spill] sm:$0xff] %v10423_v34  ;;  %v10493_v17 = vld [vmem:[#allocation15 + $0x110] sm:$0xf0]  ;;  %v10495_v23 = vld [vmem:[#allocation15 + $0x10c] sm:$0xf0] }
  0x5f   :  { %12378 = vst [vmem:[#allocation69_spill] sm:$0xff] %v10425_v35  ;;  %v10497_v24 = vld [vmem:[#allocation15 + $0x118] sm:$0xf0]  ;;  %v10499_v18 = vld [vmem:[#allocation15 + $0x114] sm:$0xf0] }
  0x60   :  { %12379 = vst [vmem:[#allocation70_spill] sm:$0xff] %v10427_v36  ;;  %v10501_v29 = vld [vmem:[#allocation15 + $0x124] sm:$0xf]  ;;  %v10503_v35 = vld [vmem:[#allocation15 + $0x120] sm:$0xf] }
  0x61   :  { %12380 = vst [vmem:[#allocation71_spill] sm:$0xff] %v10429_v37  ;;  %v10505_v36 = vld [vmem:[#allocation15 + $0x12c] sm:$0xf]  ;;  %v10507_v30 = vld [vmem:[#allocation15 + $0x128] sm:$0xf] }
  0x62   :  { %12381 = vst [vmem:[#allocation72_spill] sm:$0xff] %v10431_v38  ;;  %v10537_v3 = vld [vmem:[#allocation15 + $0x168] sm:$0xf0]  ;;  %v10539_v9 = vld [vmem:[#allocation15 + $0x164] sm:$0xf0] }
  0x63   :  { %12382 = vst [vmem:[#allocation73_spill] sm:$0xff] %v10433_v39  ;;  %v10541_v10 = vld [vmem:[#allocation15 + $0x170] sm:$0xf0]  ;;  %v10547_v4 = vld [vmem:[#allocation15 + $0x174] sm:$0xf0] }
  0x64   :  { %12383 = vst [vmem:[#allocation74_spill] sm:$0xff] %v10435_v40  ;;  %v10549_v15 = vld [vmem:[#allocation15 + $0x184] sm:$0xf]  ;;  %v10551_v21 = vld [vmem:[#allocation15 + $0x180] sm:$0xf] }
  0x65   :  { %12384 = vst [vmem:[#allocation75_spill] sm:$0xff] %v10437_v41  ;;  %v10509_v41 = vld [vmem:[#allocation15 + $0x134] sm:$0xf]  ;;  %v10553_v22 = vld [vmem:[#allocation15 + $0x18c] sm:$0xf] }
  0x66   :  { %12385 = vst [vmem:[#allocation76_spill] sm:$0xff] %v10439_v42  ;;  %v10515_v42 = vld [vmem:[#allocation15 + $0x134] sm:$0xf0]  ;;  %v10559_v16 = vld [vmem:[#allocation15 + $0x190] sm:$0xf] }
  0x67   :  { %12386 = vst [vmem:[#allocation77_spill] sm:$0xff] %v10441_v43  ;;  %v10561_v27 = vld [vmem:[#allocation15 + $0x198] sm:$0xf0]  ;;  %v10563_v33 = vld [vmem:[#allocation15 + $0x194] sm:$0xf0] }
  0x68   :  { %12387 = vst [vmem:[#allocation78_spill] sm:$0xff] %v10443_v44  ;;  %v10565_v34 = vld [vmem:[#allocation15 + $0x1a0] sm:$0xf0]  ;;  %v10571_v28 = vld [vmem:[#allocation15 + $0x1a4] sm:$0xf0] }
  0x69   :  { %12388 = vst [vmem:[#allocation79_spill] sm:$0xff] %v10445_v45  ;;  %v10573_v39 = vld [vmem:[#allocation15 + $0x1b4] sm:$0xf]  ;;  %v10583_v45 = vld [vmem:[#allocation15 + $0x1c0] sm:$0xf] }
  0x6a   :  { %12389 = vst [vmem:[#allocation80_spill] sm:$0xff] %v10447_v46  ;;  %v10585_v46 = vld [vmem:[#allocation15 + $0x1c8] sm:$0xf0]  ;;  %v10595_v40 = vld [vmem:[#allocation15 + $0x1d4] sm:$0xf0] }
  0x6b   :  { %12390 = vst [vmem:[#allocation81_spill] sm:$0xff] %v10449_v47  ;;  %v10511_v47 = vld [vmem:[#allocation15 + $0x130] sm:$0xf]  ;;  %v10705_v1 = vld [vmem:[#allocation15 + $0x2b8] sm:$0xf0] }
  0x6c   :  { %12391 = vst [vmem:[#allocation82_spill] sm:$0xff] %v10451_v48  ;;  %v10513_v48 = vld [vmem:[#allocation15 + $0x138] sm:$0xf0]  ;;  %v10715_v7 = vld [vmem:[#allocation15 + $0x2c4] sm:$0xf0] }
  0x6d   :  { %12392 = vst [vmem:[#allocation83_spill] sm:$0xff] %v10453_v49  ;;  %v10729_v8 = vld [vmem:[#allocation15 + $0x2e8] sm:$0xf0]  ;;  %v10739_v2 = vld [vmem:[#allocation15 + $0x2f4] sm:$0xf0] }
  0x6e   :  { %12393 = vst [vmem:[#allocation84_spill] sm:$0xff] %v10455_v50  ;;  %v9535_v20 = vld [vmem:[#allocation10 + $0x34c] sm:$0xf]  ;;  %v7333_v14 = vld [vmem:[#allocation10 + $0x364] sm:$0xf0] }
  0x6f   :  { %12394 = vst [vmem:[#allocation85_spill] sm:$0xff] %v10457_v51  ;;  %v10597_v51 = vld [vmem:[#allocation15 + $0x1e4] sm:$0xf]  ;;  %v7081_v31 = vld [vmem:[#allocation10 + $0x16c] sm:$0xf0] }
  0x70   :  { %12395 = vst [vmem:[#allocation86_spill] sm:$0xff] %v10459_v52  ;;  %v10619_v52 = vld [vmem:[#allocation15 + $0x204] sm:$0xf0]  ;;  %v9465_v32 = vld [vmem:[#allocation10 + $0x11c] sm:$0xf] }
  0x71   :  { %12396 = vst [vmem:[#allocation87_spill] sm:$0xff] %v10461_v53  ;;  %v10517_v53 = vld [vmem:[#allocation15 + $0x140] sm:$0xf0]  ;;  %v7249_v26 = vld [vmem:[#allocation10 + $0x2bc] sm:$0xf0] }
  0x72   :  { %12397 = vst [vmem:[#allocation88_spill] sm:$0xff] %v10463_v54  ;;  %v10523_v54 = vld [vmem:[#allocation15 + $0x144] sm:$0xf0]  ;;  %v9539_v43 = vld [vmem:[#allocation10 + $0x368] sm:$0xf0] }
  0x73   :  { %12398 = vst [vmem:[#allocation89_spill] sm:$0xff] %v10465_v55  ;;  %v7339_v37 = vld [vmem:[#allocation10 + $0x350] sm:$0xf]  ;;  %v7311_v44 = vld [vmem:[#allocation10 + $0x318] sm:$0xf] }
  0x74   :  { %12399 = vst [vmem:[#allocation90_spill] sm:$0xff] %v10467_v56  ;;  %v9532_v38 = vld [vmem:[#allocation10 + $0x330] sm:$0xf0]  ;;  %v9474_v49 = vld [vmem:[#allocation10 + $0x164] sm:$0xf] }
  0x75   :  { %12400 = vst [vmem:[#allocation91_spill] sm:$0xff] %v10469_v57  ;;  %v10607_v57 = vld [vmem:[#allocation15 + $0x1f0] sm:$0xf]  ;;  %v8011_v50 = vld [vmem:[#allocation8 + $0x510] sm:$0xf] }
  0x76   :  { %12401 = vst [vmem:[#allocation92_spill] sm:$0xff] %v10471_v58  ;;  %v10609_v58 = vld [vmem:[#allocation15 + $0x1f8] sm:$0xf0]  ;;  %v7535_v56 = vld [vmem:[#allocation8 + $0x158] sm:$0xf] }
  0x77   :  { %12402 = vst [vmem:[#allocation93_spill] sm:$0xff] %v10473_v59  ;;  %v10519_v59 = vld [vmem:[#allocation15 + $0x13c] sm:$0xf0] }
  0x78   :  { %12403 = vst [vmem:[#allocation94_spill] sm:$0xff] %v10475_v60  ;;  %v10521_v60 = vld [vmem:[#allocation15 + $0x148] sm:$0xf0] }
  0x79   :  { %12404 = vst [vmem:[#allocation95_spill] sm:$0xff] %v10477_v61  ;;  %v7983_v61 = vld [vmem:[#allocation8 + $0x4d8] sm:$0xf] }
  0x7a   :  { %12405 = vst [vmem:[#allocation96_spill] sm:$0xff] %v10479_v62 }
  0x7b   :  { %12406 = vst [vmem:[#allocation97_spill] sm:$0xff] %v10481_v63  ;;  %v10621_v63 = vld [vmem:[#allocation15 + $0x214] sm:$0xf] }
  0x7c   :  { %12407 = vst [vmem:[#allocation98_spill] sm:$0xff] %v10483_v0  ;;  %v10643_v0 = vld [vmem:[#allocation15 + $0x234] sm:$0xf0] }
  0x7d   :  { %12408 = vst [vmem:[#allocation99_spill] sm:$0xff] %v10485_v5  ;;  %v10525_v5 = vld [vmem:[#allocation15 + $0x154] sm:$0xf] }
  0x7e   :  { %12409 = vst [vmem:[#allocation100_spill] sm:$0xff] %v10487_v11  ;;  %v10531_v11 = vld [vmem:[#allocation15 + $0x158] sm:$0xf] }
  0x7f   :  { %12410 = vst [vmem:[#allocation101_spill] sm:$0xff] %v10489_v12  ;;  %v9252_v12 = vld [vmem:[#allocation8 + $0x4f0] sm:$0xf0] }
  0x80   :  { %12411 = vst [vmem:[#allocation102_spill] sm:$0xff] %v10491_v6  ;;  %v8431_v6 = vld [vmem:[#allocation8 + $0x858] sm:$0xf] }
  0x81   :  { %12412 = vst [vmem:[#allocation103_spill] sm:$0xff] %v10493_v17  ;;  %v10631_v17 = vld [vmem:[#allocation15 + $0x220] sm:$0xf] }
  0x82   :  { %12413 = vst [vmem:[#allocation104_spill] sm:$0xff] %v10495_v23  ;;  %v10633_v23 = vld [vmem:[#allocation15 + $0x228] sm:$0xf0] }
  0x83   :  { %12414 = vst [vmem:[#allocation105_spill] sm:$0xff] %v10497_v24  ;;  %v10527_v24 = vld [vmem:[#allocation15 + $0x150] sm:$0xf] }
  0x84   :  { %12415 = vst [vmem:[#allocation106_spill] sm:$0xff] %v10499_v18  ;;  %v10529_v18 = vld [vmem:[#allocation15 + $0x15c] sm:$0xf] }
  0x85   :  { %12416 = vst [vmem:[#allocation107_spill] sm:$0xff] %v10501_v29  ;;  %v9193_v29 = vld [vmem:[#allocation8 + $0x31c] sm:$0xf] }
  0x86   :  { %12417 = vst [vmem:[#allocation108_spill] sm:$0xff] %v10503_v35 }
  0x87   :  { %12418 = vst [vmem:[#allocation109_spill] sm:$0xff] %v10505_v36  ;;  %v10645_v36 = vld [vmem:[#allocation15 + $0x244] sm:$0xf] }
  0x88   :  { %12419 = vst [vmem:[#allocation110_spill] sm:$0xff] %v10507_v30  ;;  %v10667_v30 = vld [vmem:[#allocation15 + $0x264] sm:$0xf0] }
  0x89   :  { %12420 = vst [vmem:[#allocation111_spill] sm:$0xff] %v10509_v41  ;;  %v10533_v41 = vld [vmem:[#allocation15 + $0x164] sm:$0xf] }
  0x8a   :  { %12421 = vst [vmem:[#allocation112_spill] sm:$0xff] %v10511_v47  ;;  %v10535_v47 = vld [vmem:[#allocation15 + $0x160] sm:$0xf] }
  0x8b   :  { %12422 = vst [vmem:[#allocation113_spill] sm:$0xff] %v10513_v48  ;;  %v7761_v48 = vld [vmem:[#allocation8 + $0x334] sm:$0xf0] }
  0x8c   :  { %12423 = vst [vmem:[#allocation114_spill] sm:$0xff] %v10515_v42 }
  0x8d   :  { %12424 = vst [vmem:[#allocation115_spill] sm:$0xff] %v10517_v53  ;;  %v10655_v53 = vld [vmem:[#allocation15 + $0x250] sm:$0xf] }
  0x8e   :  { %12425 = vst [vmem:[#allocation116_spill] sm:$0xff] %v10519_v59  ;;  %v10657_v59 = vld [vmem:[#allocation15 + $0x258] sm:$0xf0] }
  0x8f   :  { %12426 = vst [vmem:[#allocation117_spill] sm:$0xff] %v10521_v60  ;;  %v10543_v60 = vld [vmem:[#allocation15 + $0x16c] sm:$0xf0] }
  0x90   :  { %12427 = vst [vmem:[#allocation118_spill] sm:$0xff] %v10523_v54  ;;  %v10545_v54 = vld [vmem:[#allocation15 + $0x178] sm:$0xf0] }
  0x91   :  { %12428 = vst [vmem:[#allocation119_spill] sm:$0xff] %v10525_v5  ;;  %v7551_v5 = vld [vmem:[#allocation8 + $0x168] sm:$0xf] }
  0x92   :  { %12429 = vst [vmem:[#allocation120_spill] sm:$0xff] %v10527_v24 }
  0x93   :  { %12430 = vst [vmem:[#allocation121_spill] sm:$0xff] %v10529_v18  ;;  %v10669_v18 = vld [vmem:[#allocation15 + $0x274] sm:$0xf] }
  0x94   :  { %12431 = vst [vmem:[#allocation122_spill] sm:$0xff] %v10531_v11  ;;  %v10691_v11 = vld [vmem:[#allocation15 + $0x294] sm:$0xf0] }
  0x95   :  { %12432 = vst [vmem:[#allocation123_spill] sm:$0xff] %v10533_v41  ;;  %v10555_v41 = vld [vmem:[#allocation15 + $0x188] sm:$0xf] }
  0x96   :  { %12433 = vst [vmem:[#allocation124_spill] sm:$0xff] %v10535_v47  ;;  %v10557_v47 = vld [vmem:[#allocation15 + $0x194] sm:$0xf] }
  0x97   :  { %12434 = vst [vmem:[#allocation125_spill] sm:$0xff] %v10537_v3 }
  0x98   :  { %12435 = vst [vmem:[#allocation126_spill] sm:$0xff] %v10539_v9 }
  0x99   :  { %12436 = vst [vmem:[#allocation127_spill] sm:$0xff] %v10541_v10  ;;  %v10679_v10 = vld [vmem:[#allocation15 + $0x280] sm:$0xf] }
  0x9a   :  { %12437 = vst [vmem:[#allocation128_spill] sm:$0xff] %v10543_v60  ;;  %v10681_v60 = vld [vmem:[#allocation15 + $0x288] sm:$0xf0] }
  0x9b   :  { %12438 = vst [vmem:[#allocation129_spill] sm:$0xff] %v10545_v54  ;;  %v10567_v54 = vld [vmem:[#allocation15 + $0x19c] sm:$0xf0] }
  0x9c   :  { %12439 = vst [vmem:[#allocation130_spill] sm:$0xff] %v10547_v4  ;;  %v10569_v4 = vld [vmem:[#allocation15 + $0x1a8] sm:$0xf0] }
  0x9d   :  { %12440 = vst [vmem:[#allocation131_spill] sm:$0xff] %v10549_v15  ;;  %v10693_v15 = vld [vmem:[#allocation15 + $0x2a4] sm:$0xf] }
  0x9e   :  { %12441 = vst [vmem:[#allocation132_spill] sm:$0xff] %v10551_v21  ;;  %v10727_v21 = vld [vmem:[#allocation15 + $0x2e0] sm:$0xf] }
  0x9f   :  { %12442 = vst [vmem:[#allocation133_spill] sm:$0xff] %v10553_v22  ;;  %v10575_v22 = vld [vmem:[#allocation15 + $0x1b0] sm:$0xf] }
  0xa0   :  { %12443 = vst [vmem:[#allocation134_spill] sm:$0xff] %v10555_v41  ;;  %v10577_v41 = vld [vmem:[#allocation15 + $0x1bc] sm:$0xf] }
  0xa1   :  { %12444 = vst [vmem:[#allocation135_spill] sm:$0xff] %v10557_v47  ;;  %v10579_v47 = vld [vmem:[#allocation15 + $0x1b8] sm:$0xf] }
  0xa2   :  { %12445 = vst [vmem:[#allocation136_spill] sm:$0xff] %v10559_v16  ;;  %v10581_v16 = vld [vmem:[#allocation15 + $0x1c4] sm:$0xf] }
  0xa3   :  { %12446 = vst [vmem:[#allocation137_spill] sm:$0xff] %v10561_v27  ;;  %v10703_v27 = vld [vmem:[#allocation15 + $0x2b0] sm:$0xf] }
  0xa4   :  { %12447 = vst [vmem:[#allocation138_spill] sm:$0xff] %v10563_v33  ;;  %v10717_v33 = vld [vmem:[#allocation15 + $0x2d4] sm:$0xf] }
  0xa5   :  { %12448 = vst [vmem:[#allocation139_spill] sm:$0xff] %v10565_v34  ;;  %v10587_v34 = vld [vmem:[#allocation15 + $0x1c4] sm:$0xf0] }
  0xa6   :  { %12449 = vst [vmem:[#allocation140_spill] sm:$0xff] %v10567_v54  ;;  %v10589_v54 = vld [vmem:[#allocation15 + $0x1d0] sm:$0xf0] }
  0xa7   :  { %12450 = vst [vmem:[#allocation141_spill] sm:$0xff] %v10569_v4  ;;  %v10591_v4 = vld [vmem:[#allocation15 + $0x1cc] sm:$0xf0] }
  0xa8   :  { %12451 = vst [vmem:[#allocation142_spill] sm:$0xff] %v10571_v28  ;;  %v10593_v28 = vld [vmem:[#allocation15 + $0x1d8] sm:$0xf0] }
  0xa9   :  { %12452 = vst [vmem:[#allocation143_spill] sm:$0xff] %v10573_v39  ;;  %v10741_v39 = vld [vmem:[#allocation16] sm:$0x1] }
  0xaa   :  { %12453 = vst [vmem:[#allocation144_spill] sm:$0xff] %v10575_v22  ;;  %v7109_v22 = vld [vmem:[#allocation10 + $0x1a4] sm:$0xf0] }
  0xab   :  { %12454 = vst [vmem:[#allocation145_spill] sm:$0xff] %v10577_v41  ;;  %v10599_v41 = vld [vmem:[#allocation15 + $0x1e0] sm:$0xf] }
  0xac   :  { %12455 = vst [vmem:[#allocation146_spill] sm:$0xff] %v10579_v47  ;;  %v10601_v47 = vld [vmem:[#allocation15 + $0x1ec] sm:$0xf] }
  0xad   :  { %12456 = vst [vmem:[#allocation147_spill] sm:$0xff] %v10581_v16  ;;  %v10603_v16 = vld [vmem:[#allocation15 + $0x1e8] sm:$0xf] }
  0xae   :  { %12457 = vst [vmem:[#allocation148_spill] sm:$0xff] %v10583_v45  ;;  %v10605_v45 = vld [vmem:[#allocation15 + $0x1f4] sm:$0xf] }
  0xaf   :  { %12458 = vst [vmem:[#allocation149_spill] sm:$0xff] %v10585_v46  ;;  %v7331_v46 = vld [vmem:[#allocation10 + $0x348] sm:$0xf] }
  0xb0   :  { %12459 = vst [vmem:[#allocation150_spill] sm:$0xff] %v10587_v34  ;;  %v9479_v34 = vld [vmem:[#allocation10 + $0x18c] sm:$0xf] }
  0xb1   :  { %12460 = vst [vmem:[#allocation151_spill] sm:$0xff] %v10589_v54  ;;  %v10611_v54 = vld [vmem:[#allocation15 + $0x1f4] sm:$0xf0] }
  0xb2   :  { %12461 = vst [vmem:[#allocation152_spill] sm:$0xff] %v10591_v4  ;;  %v10613_v4 = vld [vmem:[#allocation15 + $0x200] sm:$0xf0] }
  0xb3   :  { %12462 = vst [vmem:[#allocation153_spill] sm:$0xff] %v10593_v28  ;;  %v10615_v28 = vld [vmem:[#allocation15 + $0x1fc] sm:$0xf0] }
  0xb4   :  { %12463 = vst [vmem:[#allocation154_spill] sm:$0xff] %v10595_v40  ;;  %v10617_v40 = vld [vmem:[#allocation15 + $0x208] sm:$0xf0] }
  0xb5   :  { %12464 = vst [vmem:[#allocation155_spill] sm:$0xff] %v10597_v51  ;;  %v9475_v51 = vld [vmem:[#allocation10 + $0x168] sm:$0xf0] }
  0xb6   :  { %12465 = vst [vmem:[#allocation156_spill] sm:$0xff] %v10599_v41  ;;  %v9524_v41 = vld [vmem:[#allocation10 + $0x2f0] sm:$0xf0] }
  0xb7   :  { %12466 = vst [vmem:[#allocation157_spill] sm:$0xff] %v10601_v47  ;;  %v10623_v47 = vld [vmem:[#allocation15 + $0x210] sm:$0xf] }
  0xb8   :  { %12467 = vst [vmem:[#allocation158_spill] sm:$0xff] %v10603_v16  ;;  %v10625_v16 = vld [vmem:[#allocation15 + $0x21c] sm:$0xf] }
  0xb9   :  { %12468 = vst [vmem:[#allocation159_spill] sm:$0xff] %v10605_v45  ;;  %v10627_v45 = vld [vmem:[#allocation15 + $0x218] sm:$0xf] }
  0xba   :  { %12469 = vst [vmem:[#allocation160_spill] sm:$0xff] %v10607_v57  ;;  %v10629_v57 = vld [vmem:[#allocation15 + $0x224] sm:$0xf] }
  0xbb   :  { %12470 = vst [vmem:[#allocation161_spill] sm:$0xff] %v10609_v58  ;;  %v9531_v58 = vld [vmem:[#allocation10 + $0x328] sm:$0xf0] }
  0xbc   :  { %12471 = vst [vmem:[#allocation162_spill] sm:$0xff] %v10611_v54  ;;  %v9528_v54 = vld [vmem:[#allocation10 + $0x314] sm:$0xf] }
  0xbd   :  { %12472 = vst [vmem:[#allocation163_spill] sm:$0xff] %v10613_v4  ;;  %v10635_v4 = vld [vmem:[#allocation15 + $0x224] sm:$0xf0] }
  0xbe   :  { %12473 = vst [vmem:[#allocation164_spill] sm:$0xff] %v10615_v28  ;;  %v10637_v28 = vld [vmem:[#allocation15 + $0x230] sm:$0xf0] }
  0xbf   :  { %12474 = vst [vmem:[#allocation165_spill] sm:$0xff] %v10617_v40  ;;  %v10639_v40 = vld [vmem:[#allocation15 + $0x22c] sm:$0xf0] }
  0xc0   :  { %12475 = vst [vmem:[#allocation166_spill] sm:$0xff] %v10619_v52  ;;  %v10641_v52 = vld [vmem:[#allocation15 + $0x238] sm:$0xf0] }
  0xc1   :  { %12476 = vst [vmem:[#allocation167_spill] sm:$0xff] %v10621_v63  ;;  %v6997_v63 = vld [vmem:[#allocation10 + $0xc4] sm:$0xf0] }
  0xc2   :  { %12477 = vst [vmem:[#allocation168_spill] sm:$0xff] %v10623_v47 }
  0xc3   :  { %12478 = vst [vmem:[#allocation169_spill] sm:$0xff] %v10625_v16  ;;  %v10647_v16 = vld [vmem:[#allocation15 + $0x240] sm:$0xf] }
  0xc4   :  { %12479 = vst [vmem:[#allocation170_spill] sm:$0xff] %v10627_v45  ;;  %v10649_v45 = vld [vmem:[#allocation15 + $0x24c] sm:$0xf] }
  0xc5   :  { %12480 = vst [vmem:[#allocation171_spill] sm:$0xff] %v10629_v57  ;;  %v10651_v57 = vld [vmem:[#allocation15 + $0x248] sm:$0xf] }
  0xc6   :  { %12481 = vst [vmem:[#allocation172_spill] sm:$0xff] %v10631_v17  ;;  %v10653_v17 = vld [vmem:[#allocation15 + $0x254] sm:$0xf] }
  0xc7   :  { %12482 = vst [vmem:[#allocation173_spill] sm:$0xff] %v10633_v23 }
  0xc8   :  { %12483 = vst [vmem:[#allocation174_spill] sm:$0xff] %v10635_v4  ;;  %v9480_v4 = vld [vmem:[#allocation10 + $0x194] sm:$0xf] }
  0xc9   :  { %12484 = vst [vmem:[#allocation175_spill] sm:$0xff] %v10637_v28  ;;  %v10659_v28 = vld [vmem:[#allocation15 + $0x254] sm:$0xf0] }
  0xca   :  { %12485 = vst [vmem:[#allocation176_spill] sm:$0xff] %v10639_v40  ;;  %v10661_v40 = vld [vmem:[#allocation15 + $0x260] sm:$0xf0] }
  0xcb   :  { %12486 = vst [vmem:[#allocation177_spill] sm:$0xff] %v10641_v52  ;;  %v10663_v52 = vld [vmem:[#allocation15 + $0x25c] sm:$0xf0] }
  0xcc   :  { %12487 = vst [vmem:[#allocation178_spill] sm:$0xff] %v10643_v0  ;;  %v10665_v0 = vld [vmem:[#allocation15 + $0x268] sm:$0xf0] }
  0xcd   :  { %12488 = vst [vmem:[#allocation179_spill] sm:$0xff] %v10645_v36  ;;  %v9473_v36 = vld [vmem:[#allocation10 + $0x15c] sm:$0xf] }
  0xce   :  { %12489 = vst [vmem:[#allocation180_spill] sm:$0xff] %v10647_v16  ;;  %v8649_v16 = vld [vmem:[#allocation8 + $0xa2c] sm:$0xf0] }
  0xcf   :  { %12490 = vst [vmem:[#allocation181_spill] sm:$0xff] %v10649_v45  ;;  %v10671_v45 = vld [vmem:[#allocation15 + $0x270] sm:$0xf] }
  0xd0   :  { %12491 = vst [vmem:[#allocation182_spill] sm:$0xff] %v10651_v57  ;;  %v10673_v57 = vld [vmem:[#allocation15 + $0x27c] sm:$0xf] }
  0xd1   :  { %12492 = vst [vmem:[#allocation183_spill] sm:$0xff] %v10653_v17  ;;  %v10675_v17 = vld [vmem:[#allocation15 + $0x278] sm:$0xf] }
  0xd2   :  { %12493 = vst [vmem:[#allocation184_spill] sm:$0xff] %v10655_v53  ;;  %v10677_v53 = vld [vmem:[#allocation15 + $0x284] sm:$0xf] }
  0xd3   :  { %12494 = vst [vmem:[#allocation185_spill] sm:$0xff] %v10657_v59  ;;  %v9533_v59 = vld [vmem:[#allocation10 + $0x338] sm:$0xf0] }
  0xd4   :  { %12495 = vst [vmem:[#allocation186_spill] sm:$0xff] %v10659_v28  ;;  %v9416_v28 = vld [vmem:[#allocation8 + $0xa14] sm:$0xf] }
  0xd5   :  { %12496 = vst [vmem:[#allocation187_spill] sm:$0xff] %v10661_v40  ;;  %v10683_v40 = vld [vmem:[#allocation15 + $0x284] sm:$0xf0] }
  0xd6   :  { %12497 = vst [vmem:[#allocation188_spill] sm:$0xff] %v10663_v52  ;;  %v10685_v52 = vld [vmem:[#allocation15 + $0x290] sm:$0xf0] }
  0xd7   :  { %12498 = vst [vmem:[#allocation189_spill] sm:$0xff] %v10665_v0  ;;  %v10687_v0 = vld [vmem:[#allocation15 + $0x28c] sm:$0xf0] }
  0xd8   :  { %12499 = vst [vmem:[#allocation190_spill] sm:$0xff] %v10667_v30  ;;  %v10689_v30 = vld [vmem:[#allocation15 + $0x298] sm:$0xf0] }
  0xd9   :  { %12500 = vst [vmem:[#allocation191_spill] sm:$0xff] %v10669_v18  ;;  %v9259_v18 = vld [vmem:[#allocation8 + $0x528] sm:$0xf0] }
  0xda   :  { %12501 = vst [vmem:[#allocation192_spill] sm:$0xff] %v10671_v45  ;;  %v9308_v45 = vld [vmem:[#allocation8 + $0x6b0] sm:$0xf0] }
  0xdb   :  { %12502 = vst [vmem:[#allocation193_spill] sm:$0xff] %v10673_v57  ;;  %v10695_v57 = vld [vmem:[#allocation15 + $0x2a0] sm:$0xf] }
  0xdc   :  { %12503 = vst [vmem:[#allocation194_spill] sm:$0xff] %v10675_v17  ;;  %v10697_v17 = vld [vmem:[#allocation15 + $0x2ac] sm:$0xf] }
  0xdd   :  { %12504 = vst [vmem:[#allocation195_spill] sm:$0xff] %v10677_v53  ;;  %v10699_v53 = vld [vmem:[#allocation15 + $0x2a8] sm:$0xf] }
  0xde   :  { %12505 = vst [vmem:[#allocation196_spill] sm:$0xff] %v10679_v10  ;;  %v10701_v10 = vld [vmem:[#allocation15 + $0x2b4] sm:$0xf] }
  0xdf   :  { %12506 = vst [vmem:[#allocation197_spill] sm:$0xff] %v10681_v60 }
  0xe0   :  { %12507 = vst [vmem:[#allocation198_spill] sm:$0xff] %v10683_v40  ;;  %v8207_v40 = vld [vmem:[#allocation8 + $0x698] sm:$0xf] }
  0xe1   :  { %12508 = vst [vmem:[#allocation199_spill] sm:$0xff] %v10685_v52  ;;  %v10707_v52 = vld [vmem:[#allocation15 + $0x2b4] sm:$0xf0] }
  0xe2   :  { %12509 = vst [vmem:[#allocation200_spill] sm:$0xff] %v10687_v0  ;;  %v10709_v0 = vld [vmem:[#allocation15 + $0x2c0] sm:$0xf0] }
  0xe3   :  { %12510 = vst [vmem:[#allocation201_spill] sm:$0xff] %v10689_v30  ;;  %v10711_v30 = vld [vmem:[#allocation15 + $0x2bc] sm:$0xf0] }
  0xe4   :  { %12511 = vst [vmem:[#allocation202_spill] sm:$0xff] %v10691_v11  ;;  %v10713_v11 = vld [vmem:[#allocation15 + $0x2c8] sm:$0xf0] }
  0xe5   :  { %12512 = vst [vmem:[#allocation203_spill] sm:$0xff] %v10693_v15  ;;  %v9137_v15 = vld [vmem:[#allocation8 + $0x15c] sm:$0xf] }
  0xe6   :  { %12513 = vst [vmem:[#allocation204_spill] sm:$0xff] %v10695_v57  ;;  %v8215_v57 = vld [vmem:[#allocation8 + $0x6a0] sm:$0xf] }
  0xe7   :  { %12514 = vst [vmem:[#allocation205_spill] sm:$0xff] %v10697_v17  ;;  %v10719_v17 = vld [vmem:[#allocation15 + $0x2d0] sm:$0xf] }
  0xe8   :  { %12515 = vst [vmem:[#allocation206_spill] sm:$0xff] %v10699_v53  ;;  %v10721_v53 = vld [vmem:[#allocation15 + $0x2dc] sm:$0xf] }
  0xe9   :  { %12516 = vst [vmem:[#allocation207_spill] sm:$0xff] %v10701_v10  ;;  %v10723_v10 = vld [vmem:[#allocation15 + $0x2d8] sm:$0xf] }
  0xea   :  { %12517 = vst [vmem:[#allocation208_spill] sm:$0xff] %v10703_v27  ;;  %v10725_v27 = vld [vmem:[#allocation15 + $0x2e4] sm:$0xf] }
  0xeb   :  { %12518 = vst [vmem:[#allocation209_spill] sm:$0xff] %v10705_v1  ;;  %v7537_v1 = vld [vmem:[#allocation8 + $0x174] sm:$0xf0] }
  0xec   :  { %12519 = vst [vmem:[#allocation210_spill] sm:$0xff] %v10707_v52  ;;  %v9249_v52 = vld [vmem:[#allocation8 + $0x4dc] sm:$0xf] }
  0xed   :  { %12520 = vst [vmem:[#allocation211_spill] sm:$0xff] %v10709_v0  ;;  %v10731_v0 = vld [vmem:[#allocation15 + $0x2e4] sm:$0xf0] }
  0xee   :  { %12521 = vst [vmem:[#allocation212_spill] sm:$0xff] %v10711_v30  ;;  %v10733_v30 = vld [vmem:[#allocation15 + $0x2f0] sm:$0xf0] }
  0xef   :  { %12522 = vst [vmem:[#allocation213_spill] sm:$0xff] %v10713_v11  ;;  %v10735_v11 = vld [vmem:[#allocation15 + $0x2ec] sm:$0xf0] }
  0xf0   :  { %12523 = vst [vmem:[#allocation214_spill] sm:$0xff] %v10715_v7  ;;  %v10737_v7 = vld [vmem:[#allocation15 + $0x2f8] sm:$0xf0] }
  0xf1   :  { %12524 = vst [vmem:[#allocation215_spill] sm:$0xff] %v10717_v33  ;;  %v9418_v33 = vld [vmem:[#allocation8 + $0xa24] sm:$0xf] }
  0xf2   :  { %12525 = vst [vmem:[#allocation216_spill] sm:$0xff] %v10719_v17 }
  0xf3   :  { %12526 = vst [vmem:[#allocation217_spill] sm:$0xff] %v10721_v53  ;;  %v10743_v53 = vld [vmem:[#allocation18] sm:$0x1] }
  0xf4   :  { %12527 = vst [vmem:[#allocation218_spill] sm:$0xff] %v10723_v10  ;;  %v7107_v10 = vld [vmem:[#allocation10 + $0x188] sm:$0xf] }
  0xf5   :  { %12528 = vst [vmem:[#allocation219_spill] sm:$0xff] %v10725_v27  ;;  %v9482_v27 = vld [vmem:[#allocation10 + $0x1a0] sm:$0xf0] }
  0xf6   :  { %12529 = vst [vmem:[#allocation220_spill] sm:$0xff] %v10727_v21  ;;  %v9538_v21 = vld [vmem:[#allocation10 + $0x360] sm:$0xf0]  ;;  %v7108_v13 = vor.u32 %v9482_v27, %v7107_v10  ;;  %v7305_v10 = vld [vmem:[#allocation10 + $0x32c] sm:$0xf0] }
  0xf7   :  { %12530 = vst [vmem:[#allocation221_spill] sm:$0xff] %v10729_v8  ;;  %v7332_v19 = vor.u32 %v9538_v21, %v7331_v46  ;;  %v7308_v27 = vor.u32 %v9528_v54, %v7305_v10  ;;  %v7051_v46 = vld [vmem:[#allocation10 + $0x118] sm:$0xf]  ;;  %v7025_v54 = vld [vmem:[#allocation10 + $0xfc] sm:$0xf0] }
  0xf8   :  { %12531 = vst [vmem:[#allocation222_spill] sm:$0xff] %v10731_v0  ;;  %1382 = vmatpush.bf16.msra.mxu0 %v7108_v13  ;;  %v7053_v13 = vld [vmem:[#allocation10 + $0x134] sm:$0xf0]  ;;  %v9514_v10 = vld [vmem:[#allocation10 + $0x2a4] sm:$0xf] }
  0xf9   :  { %12532 = vst [vmem:[#allocation223_spill] sm:$0xff] %v10733_v30  ;;  %v7112_v30 = vor.u32 %v9479_v34, %v7109_v22  ;;  %1396 = vmatpush.bf16.msra.mxu1 %v7332_v19  ;;  %v9468_v22 = vld [vmem:[#allocation10 + $0x130] sm:$0xf0]  ;;  %v7275_v34 = vld [vmem:[#allocation10 + $0x2d8] sm:$0xf] }
  0xfa   :  { %12533 = vst [vmem:[#allocation224_spill] sm:$0xff] %v10735_v11  ;;  %v7079_v11 = vld [vmem:[#allocation10 + $0x150] sm:$0xf]  ;;  %v9521_v19 = vld [vmem:[#allocation10 + $0x2dc] sm:$0xf] }
  0xfb   :  { %12534 = vst [vmem:[#allocation225_spill] sm:$0xff] %v10737_v7  ;;  %v7336_v7 = vor.u32 %v9535_v20, %v7333_v14  ;;  %1410 = vmatpush.bf16.msra.mxu2 %v7112_v30  ;;  %v7276_v14 = vor.u32 %v9524_v41, %v7275_v34  ;;  %v7277_v20 = vld [vmem:[#allocation10 + $0x2f4] sm:$0xf0]  ;;  %v7023_v30 = vld [vmem:[#allocation10 + $0xe0] sm:$0xf] }
  0xfc   :  { %12535 = vst [vmem:[#allocation226_spill] sm:$0xff] %v10739_v2  ;;  %v7080_v2 = vor.u32 %v9475_v51, %v7079_v11  ;;  %v7052_v11 = vor.u32 %v9468_v22, %v7051_v46  ;;  %v9461_v51 = vld [vmem:[#allocation10 + $0xf8] sm:$0xf0]  ;;  %v6995_v46 = vld [vmem:[#allocation10 + $0xa8] sm:$0xf] }
  0xfd   :  { %12536 = vst [vmem:[#allocation227_spill] sm:$0xff] %v10741_v39  ;;  %v7303_v39 = vld [vmem:[#allocation10 + $0x310] sm:$0xf]  ;;  %1424 = vmatpush.bf16.msra.mxu3 %v7336_v7  ;;  %v9517_v7 = vld [vmem:[#allocation10 + $0x2b8] sm:$0xf0] }
  0xfe   :  { %12537 = vst [vmem:[#allocation228_spill] sm:$0xff] %v10743_v53  ;;  %v9472_v53 = vld [vmem:[#allocation10 + $0x154] sm:$0xf]  ;;  %v7304_v25 = vor.u32 %v9531_v58, %v7303_v39  ;;  %1383 = vmatpush.bf16.msra.mxu0 %v7080_v2  ;;  %v7056_v39 = vor.u32 %v9465_v32, %v7053_v13  ;;  %v7247_v58 = vld [vmem:[#allocation10 + $0x2a0] sm:$0xf]  ;;  %v7024_v2 = vor.u32 %v9461_v51, %v7023_v30 }
  0xff   :  { %v7084_v21 = vor.u32 %v9472_v53, %v7081_v31  ;;  %v7280_v31 = vor.u32 %v9521_v19, %v7277_v20  ;;  %v9458_v53 = vld [vmem:[#allocation10 + $0xe4] sm:$0xf]  ;;  %v7219_v34 = vld [vmem:[#allocation10 + $0x268] sm:$0xf]  ;;  %v7252_v32 = vor.u32 %v9514_v10, %v7249_v26  ;;  %v9451_v13 = vld [vmem:[#allocation10 + $0xac] sm:$0xf] }
 0x100   :  { %1397 = vmatpush.bf16.msra.mxu1 %v7304_v25  ;;  %v7248_v25 = vor.u32 %v9517_v7, %v7247_v58  ;;  %v7028_v41 = vor.u32 %v9458_v53, %v7025_v54  ;;  %v9454_v22 = vld [vmem:[#allocation10 + $0xc0] sm:$0xf0]  ;;  %v7221_v19 = vld [vmem:[#allocation10 + $0x284] sm:$0xf0]  ;;  %v9447_v30 = vld [vmem:[#allocation10 + $0x88] sm:$0xf0] }
 0x101   :  { %1411 = vmatpush.bf16.msra.mxu2 %v7084_v21  ;;  %1425 = vmatpush.bf16.msra.mxu3 %v7308_v27  ;;  %v9510_v21 = vld [vmem:[#allocation10 + $0x280] sm:$0xf0]  ;;  %v9507_v27 = vld [vmem:[#allocation10 + $0x26c] sm:$0xf]  ;;  %v6996_v20 = vor.u32 %v9454_v22, %v6995_v46  ;;  %v7191_v51 = vld [vmem:[#allocation10 + $0x230] sm:$0xf] }
 0x102   :  { %1384 = vmatpush.bf16.msra.mxu0 %v7052_v11  ;;  %v7220_v23 = vor.u32 %v9510_v21, %v7219_v34  ;;  %v6967_v11 = vld [vmem:[#allocation10 + $0x70] sm:$0xf]  ;;  %v7224_v58 = vor.u32 %v9507_v27, %v7221_v19  ;;  %v9444_v7 = vld [vmem:[#allocation10 + $0x74] sm:$0xf]  ;;  %v7163_v22 = vld [vmem:[#allocation10 + $0x1f8] sm:$0xf] }
 0x103   :  { %v6969_v53 = vld [vmem:[#allocation10 + $0x8c] sm:$0xf0]  ;;  %v6968_v54 = vor.u32 %v9447_v30, %v6967_v11  ;;  %v9440_v46 = vld [vmem:[#allocation10 + $0x50] sm:$0xf0]  ;;  %v9437_v34 = vld [vmem:[#allocation10 + $0x3c] sm:$0xf] }
 0x104   :  { %1398 = vmatpush.bf16.msra.mxu1 %v7276_v14  ;;  %v7000_v14 = vor.u32 %v9451_v13, %v6997_v63  ;;  %v7193_v26 = vld [vmem:[#allocation10 + $0x24c] sm:$0xf0]  ;;  %v6941_v21 = vld [vmem:[#allocation10 + $0x54] sm:$0xf0]  ;;  %v6911_v27 = vld [vmem:[#allocation10] sm:$0xf] }
 0x105   :  { %1412 = vmatpush.bf16.msra.mxu2 %v7056_v39  ;;  %1426 = vmatpush.bf16.msra.mxu3 %v7280_v31  ;;  %v9503_v39 = vld [vmem:[#allocation10 + $0x248] sm:$0xf0]  ;;  %v9500_v31 = vld [vmem:[#allocation10 + $0x234] sm:$0xf]  ;;  %v7165_v13 = vld [vmem:[#allocation10 + $0x214] sm:$0xf0] }
 0x106   :  { %1385 = vmatpush.bf16.msra.mxu0 %v7024_v2  ;;  %v7192_v10 = vor.u32 %v9503_v39, %v7191_v51  ;;  %v6939_v2 = vld [vmem:[#allocation10 + $0x38] sm:$0xf]  ;;  %v7196_v63 = vor.u32 %v9500_v31, %v7193_v26  ;;  %v7135_v11 = vld [vmem:[#allocation10 + $0x1c0] sm:$0xf]  ;;  %v9489_v30 = vld [vmem:[#allocation10 + $0x1d8] sm:$0xf0] }
 0x107   :  { %v6940_v19 = vor.u32 %v9440_v46, %v6939_v2  ;;  %v9430_v51 = vld [vmem:[#allocation10 + $0x4] sm:$0xf]  ;;  %v6913_v39 = vld [vmem:[#allocation10 + $0x1c] sm:$0xf0]  ;;  %v7115_v31 = vld [vmem:[#allocation10 + $0x190] sm:$0xf] }
 0x108   :  { %1399 = vmatpush.bf16.msra.mxu1 %v7248_v25  ;;  %v6972_v25 = vor.u32 %v9444_v7, %v6969_v53  ;;  %v9486_v7 = vld [vmem:[#allocation10 + $0x1c4] sm:$0xf]  ;;  %v7137_v53 = vld [vmem:[#allocation10 + $0x1dc] sm:$0xf0]  ;;  %v9483_v26 = vld [vmem:[#allocation10 + $0x1a8] sm:$0xf0] }
 0x109   :  { %1413 = vmatpush.bf16.msra.mxu2 %v7028_v41  ;;  %1427 = vmatpush.bf16.msra.mxu3 %v7252_v32  ;;  %v9496_v41 = vld [vmem:[#allocation10 + $0x210] sm:$0xf0]  ;;  %v9493_v32 = vld [vmem:[#allocation10 + $0x1fc] sm:$0xf]  ;;  %v7117_v2 = vld [vmem:[#allocation10 + $0x1ac] sm:$0xf0] }
 0x10a   :  { %1386 = vmatpush.bf16.msra.mxu0 %v6996_v20  ;;  %v7164_v20 = vor.u32 %v9496_v41, %v7163_v22  ;;  %v9536_v46 = vld [vmem:[#allocation10 + $0x354] sm:$0xf]  ;;  %v7341_v22 = vld [vmem:[#allocation10 + $0x36c] sm:$0xf0]  ;;  %v7116_v41 = vor.u32 %v9483_v26, %v7115_v31  ;;  %v7031_v31 = vld [vmem:[#allocation10 + $0xe8] sm:$0xf] }
 0x10b   :  { %v7344_v47 = vor.u32 %v9536_v46, %v7341_v22  ;;  %v7033_v46 = vld [vmem:[#allocation10 + $0x104] sm:$0xf0]  ;;  %v8665_v8 = vld [vmem:[#allocation8 + $0xa3c] sm:$0xf0] }
 0x10c   :  { %1400 = vmatpush.bf16.msra.mxu1 %v7220_v23  ;;  %v9433_v23 = vld [vmem:[#allocation10 + $0x18] sm:$0xf0] }
 0x10d   :  { %1414 = vmatpush.bf16.msra.mxu2 %v7000_v14  ;;  %1428 = vmatpush.bf16.msra.mxu3 %v7224_v58  ;;  %v6944_v14 = vor.u32 %v9437_v34, %v6941_v21  ;;  %v7168_v58 = vor.u32 %v9493_v32, %v7165_v13  ;;  %v7140_v34 = vor.u32 %v9486_v7, %v7137_v53  ;;  %v7087_v21 = vld [vmem:[#allocation10 + $0x158] sm:$0xf]  ;;  %v9476_v32 = vld [vmem:[#allocation10 + $0x170] sm:$0xf0]  ;;  %v7061_v7 = vld [vmem:[#allocation10 + $0x13c] sm:$0xf0] }
 0x10e   :  { %1387 = vmatpush.bf16.msra.mxu0 %v6968_v54  ;;  %v6912_v54 = vor.u32 %v9433_v23, %v6911_v27  ;;  %v7120_v13 = vor.u32 %v9480_v4, %v7117_v2  ;;  %v7089_v27 = vld [vmem:[#allocation10 + $0x174] sm:$0xf0]  ;;  %v7088_v23 = vor.u32 %v9476_v32, %v7087_v21  ;;  %v7285_v53 = vld [vmem:[#allocation10 + $0x2fc] sm:$0xf0]  ;;  %v9518_v2 = vld [vmem:[#allocation10 + $0x2c0] sm:$0xf0] }
 0x10f   :  { %v7092_v4 = vor.u32 %v9473_v36, %v7089_v27  ;;  %v259_v36 = vld [vmem:[%s12538_s5] sm:$0x3] }
 0x110   :  { %1401 = vmatpush.bf16.msra.mxu1 %v7192_v10  ;;  %v7136_v10 = vor.u32 %v9489_v30, %v7135_v11  ;;  %v7312_v11 = vor.u32 %v9532_v38, %v7311_v44  ;;  %v7059_v30 = vld [vmem:[#allocation10 + $0x120] sm:$0xf]  ;;  %v9459_v44 = vld [vmem:[#allocation10 + $0xec] sm:$0xf]  ;;  %v7003_v21 = vld [vmem:[#allocation10 + $0xb0] sm:$0xf] }
 0x111   :  { %1415 = vmatpush.bf16.msra.mxu2 %v6972_v25  ;;  %1429 = vmatpush.bf16.msra.mxu3 %v7196_v63  ;;  %v6916_v25 = vor.u32 %v9430_v51, %v6913_v39  ;;  %v7340_v63 = vor.u32 %v9539_v43, %v7339_v37  ;;  %v9469_v37 = vld [vmem:[#allocation10 + $0x138] sm:$0xf0]  ;;  %v7283_v43 = vld [vmem:[#allocation10 + $0x2e0] sm:$0xf]  ;;  %v9466_v39 = vld [vmem:[#allocation10 + $0x124] sm:$0xf] }
 0x112   :  { %1388 = vmatpush.bf16.msra.mxu0 %v6940_v19  ;;  %v9529_v19 = vld [vmem:[#allocation10 + $0x31c] sm:$0xf]  ;;  %v7060_v26 = vor.u32 %v9469_v37, %v7059_v30  ;;  %v7064_v22 = vor.u32 %v9466_v39, %v7061_v7  ;;  %v9455_v32 = vld [vmem:[#allocation10 + $0xc8] sm:$0xf0]  ;;  %780 = vst [vmem:[#allocation1] ss:$9 sm:$0xff] %v259_v36 }
 0x113   :  { %v9525_v51 = vld [vmem:[#allocation10 + $0x2f8] sm:$0xf0]  ;;  %v9452_v30 = vld [vmem:[#allocation10 + $0xb4] sm:$0xf]  ;;  %v7005_v37 = vld [vmem:[#allocation10 + $0xcc] sm:$0xf0] }
 0x114   :  { %1402 = vmatpush.bf16.msra.mxu1 %v7164_v20  ;;  %v7313_v20 = vld [vmem:[#allocation10 + $0x334] sm:$0xf0]  ;;  %v7284_v38 = vor.u32 %v9525_v51, %v7283_v43  ;;  %v9508_v51 = vld [vmem:[#allocation10 + $0x274] sm:$0xf]  ;;  %v7229_v7 = vld [vmem:[#allocation10 + $0x28c] sm:$0xf0] }
 0x115   :  { %1416 = vmatpush.bf16.msra.mxu2 %v6944_v14  ;;  %1430 = vmatpush.bf16.msra.mxu3 %v7168_v58  ;;  %v7316_v14 = vor.u32 %v9529_v19, %v7313_v20  ;;  %v9522_v58 = vld [vmem:[#allocation10 + $0x2e4] sm:$0xf]  ;;  %v7227_v19 = vld [vmem:[#allocation10 + $0x270] sm:$0xf]  ;;  %v9511_v20 = vld [vmem:[#allocation10 + $0x288] sm:$0xf0] }
 0x116   :  { %1389 = vmatpush.bf16.msra.mxu0 %v6912_v54  ;;  %v9462_v54 = vld [vmem:[#allocation10 + $0x100] sm:$0xf0]  ;;  %v264_v43 = vld [vmem:[%s12538_s5 + $0xa] sm:$0x3]  ;;  %v265_v39 = vld [vmem:[%s12538_s5 + $0xc] sm:$0x3] }
 0x117   :  { %v7032_v27 = vor.u32 %v9462_v54, %v7031_v31  ;;  %v6975_v31 = vld [vmem:[#allocation10 + $0x78] sm:$0xf]  ;;  %795 = vst [vmem:[#allocation1 + $0x5] ss:$9 sm:$0xff] %v264_v43  ;;  %v9448_v54 = vld [vmem:[#allocation10 + $0x90] sm:$0xf0] }
 0x118   :  { %1403 = vmatpush.bf16.msra.mxu1 %v7136_v10  ;;  %v7255_v10 = vld [vmem:[#allocation10 + $0x2a8] sm:$0xf]  ;;  %798 = vst [vmem:[#allocation1 + $0x6] ss:$9 sm:$0xff] %v265_v39  ;;  %v6977_v36 = vld [vmem:[#allocation10 + $0x94] sm:$0xf0] }
 0x119   :  { %1417 = vmatpush.bf16.msra.mxu2 %v6916_v25  ;;  %1431 = vmatpush.bf16.msra.mxu3 %v7140_v34  ;;  %v7288_v25 = vor.u32 %v9522_v58, %v7285_v53  ;;  %v7257_v34 = vld [vmem:[#allocation10 + $0x2c4] sm:$0xf0]  ;;  %v266_v58 = vld [vmem:[%s12538_s5 + $0xe] sm:$0x3]  ;;  %v7004_v53 = vor.u32 %v9455_v32, %v7003_v21 }
 0x11a   :  { %1438 = vmatpush.bf16.msrb.mxu0 %v7116_v41  ;;  %v9515_v41 = vld [vmem:[#allocation10 + $0x2ac] sm:$0xf]  ;;  %801 = vst [vmem:[#allocation1 + $0x7] ss:$9 sm:$0xff] %v266_v58  ;;  %v7143_v43 = vld [vmem:[#allocation10 + $0x1c8] sm:$0xf] }
 0x11c   :  { %1452 = vmatpush.bf16.msrb.mxu1 %v7340_v63  ;;  %v261_v63 = vld [vmem:[%s12538_s5 + $0x4] sm:$0x3] }
 0x11d   :  { %1466 = vmatpush.bf16.msrb.mxu2 %v7120_v13  ;;  %1480 = vmatpush.bf16.msrb.mxu3 %v7344_v47  ;;  %v260_v47 = vld [vmem:[%s12538_s5 + $0x2] sm:$0x3]  ;;  %v262_v13 = vld [vmem:[%s12538_s5 + $0x6] sm:$0x3]  ;;  %786 = vst [vmem:[#allocation1 + $0x2] ss:$9 sm:$0xff] %v261_v63 }
 0x11e   :  { %1439 = vmatpush.bf16.msrb.mxu0 %v7088_v23  ;;  %v263_v23 = vld [vmem:[%s12538_s5 + $0x8] sm:$0x3]  ;;  %783 = vst [vmem:[#allocation1 + $0x1] ss:$9 sm:$0xff] %v260_v47  ;;  %v9501_v47 = vld [vmem:[#allocation10 + $0x23c] sm:$0xf] }
 0x11f   :  { %789 = vst [vmem:[#allocation1 + $0x3] ss:$9 sm:$0xff] %v262_v13  ;;  %v9441_v63 = vld [vmem:[#allocation10 + $0x58] sm:$0xf0]  ;;  %v7171_v13 = vld [vmem:[#allocation10 + $0x200] sm:$0xf] }
 0x120   :  { %1453 = vmatpush.bf16.msrb.mxu1 %v7312_v11  ;;  %v7256_v11 = vor.u32 %v9518_v2, %v7255_v10  ;;  %792 = vst [vmem:[#allocation1 + $0x4] ss:$9 sm:$0xff] %v263_v23  ;;  %v7199_v10 = vld [vmem:[#allocation10 + $0x238] sm:$0xf]  ;;  %v7008_v2 = vor.u32 %v9452_v30, %v7005_v37  ;;  %v9494_v23 = vld [vmem:[#allocation10 + $0x204] sm:$0xf] }
 0x121   :  { %1467 = vmatpush.bf16.msrb.mxu2 %v7092_v4  ;;  %1481 = vmatpush.bf16.msrb.mxu3 %v7316_v14  ;;  %v7036_v4 = vor.u32 %v9459_v44, %v7033_v46  ;;  %v7260_v14 = vor.u32 %v9515_v41, %v7257_v34  ;;  %v9504_v44 = vld [vmem:[#allocation10 + $0x250] sm:$0xf0]  ;;  %v9445_v46 = vld [vmem:[#allocation10 + $0x7c] sm:$0xf]  ;;  %v6947_v34 = vld [vmem:[#allocation10 + $0x40] sm:$0xf] }
 0x122   :  { %1440 = vmatpush.bf16.msrb.mxu0 %v7060_v26  ;;  %v7228_v26 = vor.u32 %v9511_v20, %v7227_v19  ;;  %v7200_v41 = vor.u32 %v9504_v44, %v7199_v10  ;;  %v6980_v21 = vor.u32 %v9445_v46, %v6977_v36  ;;  %v9438_v19 = vld [vmem:[#allocation10 + $0x44] sm:$0xf]  ;;  %v6949_v20 = vld [vmem:[#allocation10 + $0x5c] sm:$0xf0]  ;;  %v6919_v30 = vld [vmem:[#allocation10 + $0x8] sm:$0xf] }
 0x123   :  { %v9434_v37 = vld [vmem:[#allocation10 + $0x20] sm:$0xf0]  ;;  %v6952_v58 = vor.u32 %v9438_v19, %v6949_v20  ;;  %v7145_v10 = vld [vmem:[#allocation10 + $0x1e4] sm:$0xf0]  ;;  %v7347_v44 = vld [vmem:[#allocation10 + $0x358] sm:$0xf] }
 0x124   :  { %1454 = vmatpush.bf16.msrb.mxu1 %v7284_v38  ;;  %v7232_v38 = vor.u32 %v9508_v51, %v7229_v7  ;;  %v6948_v51 = vor.u32 %v9441_v63, %v6947_v34  ;;  %v9490_v7 = vld [vmem:[#allocation10 + $0x1e0] sm:$0xf0]  ;;  %v9540_v46 = vld [vmem:[#allocation10 + $0x370] sm:$0xf0]  ;;  %v9481_v36 = vld [vmem:[#allocation10 + $0x19c] sm:$0xf] }
 0x125   :  { %1468 = vmatpush.bf16.msrb.mxu2 %v7064_v22  ;;  %1482 = vmatpush.bf16.msrb.mxu3 %v7288_v25  ;;  %v7201_v22 = vld [vmem:[#allocation10 + $0x254] sm:$0xf0]  ;;  %v6976_v25 = vor.u32 %v9448_v54, %v6975_v31  ;;  %v9431_v31 = vld [vmem:[#allocation10 + $0xc] sm:$0xf]  ;;  %v9477_v19 = vld [vmem:[#allocation10 + $0x178] sm:$0xf0] }
 0x126   :  { %1441 = vmatpush.bf16.msrb.mxu0 %v7032_v27  ;;  %v7204_v32 = vor.u32 %v9501_v47, %v7201_v22  ;;  %v9497_v27 = vld [vmem:[#allocation10 + $0x218] sm:$0xf0]  ;;  %v9487_v54 = vld [vmem:[#allocation10 + $0x1cc] sm:$0xf]  ;;  %v6920_v47 = vor.u32 %v9434_v37, %v6919_v30  ;;  %v7144_v22 = vor.u32 %v9490_v7, %v7143_v43  ;;  %v7349_v34 = vld [vmem:[#allocation10 + $0x374] sm:$0xf0] }
 0x127   :  { %v7172_v39 = vor.u32 %v9497_v27, %v7171_v13  ;;  %v7348_v13 = vor.u32 %v9540_v46, %v7347_v44  ;;  %v7095_v27 = vld [vmem:[#allocation10 + $0x160] sm:$0xf]  ;;  %v9530_v37 = vld [vmem:[#allocation10 + $0x324] sm:$0xf]  ;;  %v7067_v7 = vld [vmem:[#allocation10 + $0x128] sm:$0xf] }
 0x128   :  { %1455 = vmatpush.bf16.msrb.mxu1 %v7256_v11  ;;  %v7173_v11 = vld [vmem:[#allocation10 + $0x21c] sm:$0xf0]  ;;  %v7293_v44 = vld [vmem:[#allocation10 + $0x304] sm:$0xf0] }
 0x129   :  { %1469 = vmatpush.bf16.msrb.mxu2 %v7036_v4  ;;  %1483 = vmatpush.bf16.msrb.mxu3 %v7260_v14  ;;  %v10769_v4 = vld [vmem:[#allocation1] sm:$0xff]  ;;  %v10771_v14 = vld [vmem:[#allocation1 + $0x9] sm:$0xff]  ;;  %v7097_v30 = vld [vmem:[#allocation10 + $0x17c] sm:$0xf0] }
 0x12a   :  { %1442 = vmatpush.bf16.msrb.mxu0 %v7004_v53  ;;  %v7176_v53 = vor.u32 %v9494_v23, %v7173_v11  ;;  %1418 = vmatmul.bf16.vlgmr.msra.gmra.mxu2 %v10769_v4  ;;  %v7319_v11 = vld [vmem:[#allocation10 + $0x320] sm:$0xf] }
 0x12b   :  { %1432 = vmatmul.bf16.vlgmr.msra.gmra.mxu3 %v10771_v14  ;;  %1390 = vmatmul.bf16.vlgmr.msra.gmra.mxu0 %v10769_v4  ;;  %v7321_v43 = vld [vmem:[#allocation10 + $0x33c] sm:$0xf0] }
 0x12c   :  { %1456 = vmatpush.bf16.msrb.mxu1 %v7228_v26  ;;  %v6921_v26 = vld [vmem:[#allocation10 + $0x24] sm:$0xf0] }
 0x12d   :  { %1470 = vmatpush.bf16.msrb.mxu2 %v7008_v2  ;;  %1484 = vmatpush.bf16.msrb.mxu3 %v7232_v38  ;;  %v7123_v2 = vld [vmem:[#allocation10 + $0x198] sm:$0xf]  ;;  %v9484_v38 = vld [vmem:[#allocation10 + $0x1b0] sm:$0xf0]  ;;  %v6924_v63 = vor.u32 %v9431_v31, %v6921_v26  ;;  %v7324_v31 = vor.u32 %v9530_v37, %v7321_v43  ;;  %v7291_v26 = vld [vmem:[#allocation10 + $0x2e8] sm:$0xf] }
 0x12e   :  { %1443 = vmatpush.bf16.msrb.mxu0 %v6976_v25  ;;  %1404 = vmatmul.bf16.vlgmr.msra.gmra.mxu1 %v10771_v14  ;;  %v7125_v25 = vld [vmem:[#allocation10 + $0x1b4] sm:$0xf0]  ;;  %v9512_v37 = vld [vmem:[#allocation10 + $0x290] sm:$0xf0]  ;;  %v9453_v43 = vld [vmem:[#allocation10 + $0xbc] sm:$0xf] }
 0x12f   :  { %v7128_v20 = vor.u32 %v9481_v36, %v7125_v25 }
 0x130   :  { %1457 = vmatpush.bf16.msrb.mxu1 %v7200_v41  ;;  %v9537_v41 = vld [vmem:[#allocation10 + $0x35c] sm:$0xf] }
 0x131   :  { %1471 = vmatpush.bf16.msrb.mxu2 %v6980_v21  ;;  %1485 = vmatpush.bf16.msrb.mxu3 %v7204_v32  ;;  %v7148_v21 = vor.u32 %v9487_v54, %v7145_v10  ;;  %v7124_v32 = vor.u32 %v9484_v38, %v7123_v2  ;;  %v7352_v23 = vor.u32 %v9537_v41, %v7349_v34  ;;  %v9526_v54 = vld [vmem:[#allocation10 + $0x300] sm:$0xf0]  ;;  %v9467_v10 = vld [vmem:[#allocation10 + $0x12c] sm:$0xf]  ;;  %v7069_v2 = vld [vmem:[#allocation10 + $0x144] sm:$0xf0] }
 0x132   :  { %1444 = vmatpush.bf16.msrb.mxu0 %v6948_v51  ;;  %v7096_v51 = vor.u32 %v9477_v19, %v7095_v27  ;;  %v9523_v38 = vld [vmem:[#allocation10 + $0x2ec] sm:$0xf]  ;;  %v7292_v36 = vor.u32 %v9526_v54, %v7291_v26  ;;  %v7263_v41 = vld [vmem:[#allocation10 + $0x2b0] sm:$0xf]  ;;  %v7011_v19 = vld [vmem:[#allocation10 + $0xb8] sm:$0xf] }
 0x133   :  { %v7296_v25 = vor.u32 %v9523_v38, %v7293_v44  ;;  %v9519_v34 = vld [vmem:[#allocation10 + $0x2c8] sm:$0xf0]  ;;  %v9449_v26 = vld [vmem:[#allocation10 + $0x98] sm:$0xf0]  ;;  %v9446_v44 = vld [vmem:[#allocation10 + $0x84] sm:$0xf] }
 0x134   :  { %1458 = vmatpush.bf16.msrb.mxu1 %v7172_v39  ;;  %v7320_v39 = vor.u32 %v9533_v59, %v7319_v11  ;;  %v7072_v59 = vor.u32 %v9467_v10, %v7069_v2  ;;  %v7264_v27 = vor.u32 %v9519_v34, %v7263_v41  ;;  %v7207_v2 = vld [vmem:[#allocation10 + $0x240] sm:$0xf]  ;;  %v9505_v38 = vld [vmem:[#allocation10 + $0x258] sm:$0xf0]  ;;  %v9442_v41 = vld [vmem:[#allocation10 + $0x60] sm:$0xf0] }
 0x135   :  { %1472 = vmatpush.bf16.msrb.mxu2 %v6952_v58  ;;  %1486 = vmatpush.bf16.msrb.mxu3 %v7176_v53  ;;  %v9470_v58 = vld [vmem:[#allocation10 + $0x140] sm:$0xf0]  ;;  %v7100_v53 = vor.u32 %v9474_v49, %v7097_v30  ;;  %v9460_v49 = vld [vmem:[#allocation10 + $0xf4] sm:$0xf]  ;;  %v7235_v30 = vld [vmem:[#allocation10 + $0x278] sm:$0xf] }
 0x136   :  { %1445 = vmatpush.bf16.msrb.mxu0 %v6920_v47  ;;  %v7068_v46 = vor.u32 %v9470_v58, %v7067_v7  ;;  %v7039_v47 = vld [vmem:[#allocation10 + $0xf0] sm:$0xf]  ;;  %v7237_v7 = vld [vmem:[#allocation10 + $0x294] sm:$0xf0] }
 0x138   :  { %1459 = vmatpush.bf16.msrb.mxu1 %v7144_v22  ;;  %v9463_v22 = vld [vmem:[#allocation10 + $0x108] sm:$0xf0] }
 0x139   :  { %1473 = vmatpush.bf16.msrb.mxu2 %v6924_v63  ;;  %1487 = vmatpush.bf16.msrb.mxu3 %v7148_v21  ;;  %v7041_v63 = vld [vmem:[#allocation10 + $0x10c] sm:$0xf0]  ;;  %v9516_v21 = vld [vmem:[#allocation10 + $0x2b4] sm:$0xf] }
 0x13a   :  { %1494 = vmatpush.bf16.msra.mxu0 %v7124_v32  ;;  %v7265_v32 = vld [vmem:[#allocation10 + $0x2cc] sm:$0xf0] }
 0x13b   :  { %v7268_v11 = vor.u32 %v9516_v21, %v7265_v32  ;;  %1446 = vmatmul.bf16.vlgmr.msrb.gmra.mxu0 %v10769_v4  ;;  %v9498_v21 = vld [vmem:[#allocation10 + $0x220] sm:$0xf0]  ;;  %v9439_v32 = vld [vmem:[#allocation10 + $0x4c] sm:$0xf] }
 0x13c   :  { %1508 = vmatpush.bf16.msra.mxu1 %v7348_v13  ;;  %v7040_v13 = vor.u32 %v9463_v22, %v7039_v47  ;;  %1474 = vmatmul.bf16.vlgmr.msrb.gmra.mxu2 %v10769_v4  ;;  %v7209_v47 = vld [vmem:[#allocation10 + $0x25c] sm:$0xf0] }
 0x13d   :  { %1522 = vmatpush.bf16.msra.mxu2 %v7128_v20  ;;  %1536 = vmatpush.bf16.msra.mxu3 %v7352_v23  ;;  %v9456_v20 = vld [vmem:[#allocation10 + $0xd0] sm:$0xf0]  ;;  %v7044_v23 = vor.u32 %v9460_v49, %v7041_v63  ;;  %v7179_v63 = vld [vmem:[#allocation10 + $0x208] sm:$0xf] }
 0x13e   :  { %1495 = vmatpush.bf16.msra.mxu0 %v7096_v51  ;;  %v7013_v51 = vld [vmem:[#allocation10 + $0xd4] sm:$0xf0]  ;;  %1488 = vmatmul.bf16.vlgmr.msrb.gmra.mxu3 %v10771_v14  ;;  %v7012_v58 = vor.u32 %v9456_v20, %v7011_v19  ;;  %v7181_v19 = vld [vmem:[#allocation10 + $0x224] sm:$0xf0]  ;;  %v6927_v20 = vld [vmem:[#allocation10 + $0x10] sm:$0xf] }
 0x13f   :  { %1460 = vmatmul.bf16.vlgmr.msrb.gmra.mxu1 %v10771_v14  ;;  %v7016_v54 = vor.u32 %v9453_v43, %v7013_v51  ;;  %v9491_v43 = vld [vmem:[#allocation10 + $0x1e8] sm:$0xf0] }
 0x140   :  { %1509 = vmatpush.bf16.msra.mxu1 %v7320_v39  ;;  %v9509_v39 = vld [vmem:[#allocation10 + $0x27c] sm:$0xf] }
 0x141   :  { %1523 = vmatpush.bf16.msra.mxu2 %v7100_v53  ;;  %1537 = vmatpush.bf16.msra.mxu3 %v7324_v31  ;;  %v7236_v53 = vor.u32 %v9512_v37, %v7235_v30  ;;  %v6983_v31 = vld [vmem:[#allocation10 + $0x80] sm:$0xf]  ;;  %v7240_v10 = vor.u32 %v9509_v39, %v7237_v7  ;;  %v9435_v30 = vld [vmem:[#allocation10 + $0x28] sm:$0xf0]  ;;  %v7151_v37 = vld [vmem:[#allocation10 + $0x1d0] sm:$0xf] }
 0x142   :  { %1496 = vmatpush.bf16.msra.mxu0 %v7068_v46  ;;  %v6985_v46 = vld [vmem:[#allocation10 + $0x9c] sm:$0xf0]  ;;  %v6984_v22 = vor.u32 %v9449_v26, %v6983_v31  ;;  %v9432_v7 = vld [vmem:[#allocation10 + $0x14] sm:$0xf]  ;;  %v7153_v31 = vld [vmem:[#allocation10 + $0x1ec] sm:$0xf0] }
 0x143   :  { %v6988_v34 = vor.u32 %v9446_v44, %v6985_v46  ;;  %v7131_v26 = vld [vmem:[#allocation10 + $0x1a0] sm:$0xf]  ;;  %v6928_v44 = vor.u32 %v9435_v30, %v6927_v20  ;;  %v7152_v46 = vor.u32 %v9491_v43, %v7151_v37  ;;  %v9139_v20 = vld [vmem:[#allocation8 + $0x168] sm:$0xf0]  ;;  %v7075_v30 = vld [vmem:[#allocation10 + $0x130] sm:$0xf] }
 0x144   :  { %1510 = vmatpush.bf16.msra.mxu1 %v7292_v36  ;;  %v9502_v36 = vld [vmem:[#allocation10 + $0x244] sm:$0xf]  ;;  %v9471_v37 = vld [vmem:[#allocation10 + $0x148] sm:$0xf0] }
 0x145   :  { %1524 = vmatpush.bf16.msra.mxu2 %v7072_v59  ;;  %1538 = vmatpush.bf16.msra.mxu3 %v7296_v25  ;;  %v7208_v59 = vor.u32 %v9505_v38, %v7207_v2  ;;  %v6955_v25 = vld [vmem:[#allocation10 + $0x48] sm:$0xf]  ;;  %v7212_v49 = vor.u32 %v9502_v36, %v7209_v47  ;;  %v9541_v2 = vld [vmem:[#allocation10 + $0x378] sm:$0xf0]  ;;  %v9146_v36 = vld [vmem:[#allocation8 + $0x1a0] sm:$0xf0] }
 0x146   :  { %1497 = vmatpush.bf16.msra.mxu0 %v7040_v13  ;;  %v6957_v13 = vld [vmem:[#allocation10 + $0x64] sm:$0xf0] }
 0x147   :  { %v6960_v51 = vor.u32 %v9439_v32, %v6957_v13  ;;  %v7555_v38 = vld [vmem:[#allocation8 + $0x188] sm:$0xf] }
 0x148   :  { %1511 = vmatpush.bf16.msra.mxu1 %v7264_v27  ;;  %v9495_v27 = vld [vmem:[#allocation10 + $0x20c] sm:$0xf]  ;;  %v7779_v47 = vld [vmem:[#allocation8 + $0x348] sm:$0xf] }
 0x149   :  { %1525 = vmatpush.bf16.msra.mxu2 %v7044_v23  ;;  %1539 = vmatpush.bf16.msra.mxu3 %v7268_v11  ;;  %v6956_v23 = vor.u32 %v9442_v41, %v6955_v25  ;;  %v7180_v11 = vor.u32 %v9498_v21, %v7179_v63  ;;  %v7184_v39 = vor.u32 %v9495_v27, %v7181_v19  ;;  %v9478_v63 = vld [vmem:[#allocation10 + $0x180] sm:$0xf0]  ;;  %v7327_v13 = vld [vmem:[#allocation10 + $0x328] sm:$0xf]  ;;  %v7527_v19 = vld [vmem:[#allocation8 + $0x150] sm:$0xf] }
 0x14a   :  { %1498 = vmatpush.bf16.msra.mxu0 %v7012_v58  ;;  %v6929_v58 = vld [vmem:[#allocation10 + $0x2c] sm:$0xf0]  ;;  %v7556_v21 = vor.u32 %v9146_v36, %v7555_v38  ;;  %v9534_v27 = vld [vmem:[#allocation10 + $0x340] sm:$0xf0]  ;;  %v9188_v38 = vld [vmem:[#allocation8 + $0x2f0] sm:$0xf0] }
 0x14b   :  { %v9464_v36 = vld [vmem:[#allocation10 + $0x110] sm:$0xf0] }
 0x14c   :  { %1512 = vmatpush.bf16.msra.mxu1 %v7236_v53  ;;  %v9488_v53 = vld [vmem:[#allocation10 + $0x1d4] sm:$0xf] }
 0x14d   :  { %1526 = vmatpush.bf16.msra.mxu2 %v7016_v54  ;;  %1540 = vmatpush.bf16.msra.mxu3 %v7240_v10  ;;  %v9485_v54 = vld [vmem:[#allocation10 + $0x1b8] sm:$0xf0]  ;;  %v7355_v10 = vld [vmem:[#allocation10 + $0x360] sm:$0xf]  ;;  %v7156_v25 = vor.u32 %v9488_v53, %v7153_v31  ;;  %v7528_v53 = vor.u32 %v9139_v20, %v7527_v19  ;;  %v255_v20 = vld [vmem:[%s12539_s10 + $0x24] sm:$0x3f] }
 0x14e   :  { %1499 = vmatpush.bf16.msra.mxu0 %v6984_v22  ;;  %v9202_v22 = vld [vmem:[#allocation8 + $0x360] sm:$0xf0]  ;;  %v7132_v41 = vor.u32 %v9485_v54, %v7131_v26  ;;  %v7499_v26 = vld [vmem:[#allocation8 + $0x118] sm:$0xf]  ;;  %v9132_v54 = vld [vmem:[#allocation8 + $0x130] sm:$0xf0] }
 0x14f   :  { %v7780_v32 = vor.u32 %v9202_v22, %v7779_v47  ;;  %v7271_v47 = vld [vmem:[#allocation10 + $0x2b8] sm:$0xf]  ;;  %v9520_v22 = vld [vmem:[#allocation10 + $0x2d0] sm:$0xf0]  ;;  %v9181_v19 = vld [vmem:[#allocation8 + $0x2b8] sm:$0xf0] }
 0x150   :  { %1513 = vmatpush.bf16.msra.mxu1 %v7208_v59  ;;  %v6932_v59 = vor.u32 %v9432_v7, %v6929_v58  ;;  %v9527_v7 = vld [vmem:[#allocation10 + $0x308] sm:$0xf0]  ;;  %1597 = vst [vmem:[#allocation1 + $0x6] ss:$9 sm:$0xff] %v255_v20 }
 0x151   :  { %1527 = vmatpush.bf16.msra.mxu2 %v6988_v34  ;;  %1541 = vmatpush.bf16.msra.mxu3 %v7212_v49  ;;  %v7356_v34 = vor.u32 %v9541_v2, %v7355_v10  ;;  %v7103_v49 = vld [vmem:[#allocation10 + $0x168] sm:$0xf]  ;;  %v249_v58 = vld [vmem:[%s12539_s10] sm:$0x3f]  ;;  %v250_v10 = vld [vmem:[%s12539_s10 + $0x6] sm:$0x3f] }
 0x152   :  { %1500 = vmatpush.bf16.msra.mxu0 %v6956_v23  ;;  %v7751_v23 = vld [vmem:[#allocation8 + $0x310] sm:$0xf]  ;;  %v7104_v43 = vor.u32 %v9478_v63, %v7103_v49  ;;  %v7723_v2 = vld [vmem:[#allocation8 + $0x2d8] sm:$0xf]  ;;  %1579 = vst [vmem:[#allocation1] ss:$9 sm:$0xff] %v249_v58 }
 0x153   :  { %v9125_v49 = vld [vmem:[#allocation8 + $0xf8] sm:$0xf0]  ;;  %v253_v63 = vld [vmem:[%s12539_s10 + $0x18] sm:$0x3f]  ;;  %1582 = vst [vmem:[#allocation1 + $0x1] ss:$9 sm:$0xff] %v250_v10 }
 0x154   :  { %1514 = vmatpush.bf16.msra.mxu1 %v7180_v11  ;;  %v9195_v11 = vld [vmem:[#allocation8 + $0x328] sm:$0xf0]  ;;  %1591 = vst [vmem:[#allocation1 + $0x4] ss:$9 sm:$0xff] %v253_v63 }
 0x155   :  { %1528 = vmatpush.bf16.msra.mxu2 %v6960_v51  ;;  %1542 = vmatpush.bf16.msra.mxu3 %v7184_v39  ;;  %v7328_v51 = vor.u32 %v9534_v27, %v7327_v13  ;;  %v7299_v39 = vld [vmem:[#allocation10 + $0x2f0] sm:$0xf]  ;;  %v7752_v31 = vor.u32 %v9195_v11, %v7751_v23  ;;  %v7695_v13 = vld [vmem:[#allocation8 + $0x2a0] sm:$0xf]  ;;  %v9457_v11 = vld [vmem:[#allocation10 + $0xd8] sm:$0xf0] }
 0x156   :  { %1501 = vmatpush.bf16.msra.mxu0 %v6928_v44  ;;  %v251_v44 = vld [vmem:[%s12539_s10 + $0xc] sm:$0x3f]  ;;  %v254_v27 = vld [vmem:[%s12539_s10 + $0x1e] sm:$0x3f]  ;;  %v7696_v58 = vor.u32 %v9181_v19, %v7695_v13 }
 0x157   :  { %1585 = vst [vmem:[#allocation1 + $0x2] ss:$9 sm:$0xff] %v251_v44  ;;  %v7019_v23 = vld [vmem:[#allocation10 + $0xc0] sm:$0xf]  ;;  %v9450_v44 = vld [vmem:[#allocation10 + $0xa0] sm:$0xf0] }
 0x158   :  { %1515 = vmatpush.bf16.msra.mxu1 %v7152_v46  ;;  %v7047_v46 = vld [vmem:[#allocation10 + $0xf8] sm:$0xf]  ;;  %1594 = vst [vmem:[#allocation1 + $0x5] ss:$9 sm:$0xff] %v254_v27  ;;  %v7020_v10 = vor.u32 %v9457_v11, %v7019_v23  ;;  %v7187_v19 = vld [vmem:[#allocation10 + $0x210] sm:$0xf] }
 0x159   :  { %1529 = vmatpush.bf16.msra.mxu2 %v6932_v59  ;;  %1543 = vmatpush.bf16.msra.mxu3 %v7156_v25  ;;  %v252_v59 = vld [vmem:[%s12539_s10 + $0x12] sm:$0x3f]  ;;  %v7076_v25 = vor.u32 %v9471_v37, %v7075_v30  ;;  %v256_v30 = vld [vmem:[%s12539_s10 + $0x2a] sm:$0x3f]  ;;  %v7048_v37 = vor.u32 %v9464_v36, %v7047_v46  ;;  %v9499_v20 = vld [vmem:[#allocation10 + $0x228] sm:$0xf0] }
 0x15a   :  { %1550 = vmatpush.bf16.msrb.mxu0 %v7132_v41  ;;  %v7300_v41 = vor.u32 %v9527_v7, %v7299_v39  ;;  %1588 = vst [vmem:[#allocation1 + $0x3] ss:$9 sm:$0xff] %v252_v59  ;;  %v9513_v39 = vld [vmem:[#allocation10 + $0x298] sm:$0xf0]  ;;  %v7415_v59 = vld [vmem:[#allocation8 + $0x70] sm:$0xf] }
 0x15b   :  { %1502 = vmatmul.bf16.vlgmr.msra.gmra.mxu0 %v10769_v4  ;;  %1516 = vmatmul.bf16.vlgmr.msra.gmra.mxu1 %v10771_v14  ;;  %1600 = vst [vmem:[#allocation1 + $0x7] ss:$9 sm:$0xff] %v256_v30  ;;  %v7387_v23 = vld [vmem:[#allocation8 + $0x38] sm:$0xf]  ;;  %v9104_v11 = vld [vmem:[#allocation8 + $0x50] sm:$0xf0] }
 0x15c   :  { %1564 = vmatpush.bf16.msrb.mxu1 %v7356_v34  ;;  %1530 = vmatmul.bf16.vlgmr.msra.gmra.mxu2 %v10769_v4  ;;  %v7471_v34 = vld [vmem:[#allocation8 + $0xe0] sm:$0xf]  ;;  %v7611_v30 = vld [vmem:[#allocation8 + $0x1f8] sm:$0xf] }
 0x15d   :  { %3341 = vmatpush.bf16.msrb.mxu2 %v7556_v21  ;;  %3355 = vmatpush.bf16.msrb.mxu3 %v7780_v32  ;;  %v7500_v21 = vor.u32 %v9132_v54, %v7499_v26  ;;  %v7724_v32 = vor.u32 %v9188_v38, %v7723_v2  ;;  %v7472_v7 = vor.u32 %v9125_v49, %v7471_v34  ;;  %v7667_v26 = vld [vmem:[#allocation8 + $0x268] sm:$0xf]  ;;  %v9174_v54 = vld [vmem:[#allocation8 + $0x280] sm:$0xf0]  ;;  %v9167_v34 = vld [vmem:[#allocation8 + $0x248] sm:$0xf0] }
 0x15e   :  { %1544 = vmatmul.bf16.vlgmr.msra.gmra.mxu3 %v10771_v14  ;;  %1551 = vmatpush.bf16.msrb.mxu0 %v7104_v43  ;;  %v7272_v43 = vor.u32 %v9520_v22, %v7271_v47  ;;  %v6991_v38 = vld [vmem:[#allocation10 + $0x88] sm:$0xf]  ;;  %v7668_v36 = vor.u32 %v9174_v54, %v7667_v26  ;;  %v9506_v22 = vld [vmem:[#allocation10 + $0x260] sm:$0xf0]  ;;  %v7388_v26 = vor.u32 %v9104_v11, %v7387_v23  ;;  %v8199_v11 = vld [vmem:[#allocation8 + $0x690] sm:$0xf] }
 0x15f   :  { %v7215_v47 = vld [vmem:[#allocation10 + $0x248] sm:$0xf]  ;;  %v6992_v49 = vor.u32 %v9450_v44, %v6991_v38  ;;  %v9153_v38 = vld [vmem:[#allocation8 + $0x1d8] sm:$0xf0] }
 0x160   :  { %1565 = vmatpush.bf16.msrb.mxu1 %v7328_v51  ;;  %v7243_v51 = vld [vmem:[#allocation10 + $0x280] sm:$0xf]  ;;  %v7216_v63 = vor.u32 %v9506_v22, %v7215_v47  ;;  %v8003_v44 = vld [vmem:[#allocation8 + $0x508] sm:$0xf]  ;;  %v9314_v47 = vld [vmem:[#allocation8 + $0x6e0] sm:$0xf0] }
 0x161   :  { %3342 = vmatpush.bf16.msrb.mxu2 %v7528_v53  ;;  %3356 = vmatpush.bf16.msrb.mxu3 %v7752_v31  ;;  %v7443_v53 = vld [vmem:[#allocation8 + $0xa8] sm:$0xf]  ;;  %v9118_v31 = vld [vmem:[#allocation8 + $0xc0] sm:$0xf0]  ;;  %v7244_v2 = vor.u32 %v9513_v39, %v7243_v51  ;;  %v9436_v51 = vld [vmem:[#allocation10 + $0x30] sm:$0xf0] }
 0x162   :  { %1552 = vmatpush.bf16.msrb.mxu0 %v7076_v25  ;;  %v7444_v46 = vor.u32 %v9118_v31, %v7443_v53  ;;  %v9111_v25 = vld [vmem:[#allocation8 + $0x88] sm:$0xf0]  ;;  %v9492_v53 = vld [vmem:[#allocation10 + $0x1f0] sm:$0xf0]  ;;  %v7359_v31 = vld [vmem:[#allocation8] sm:$0xf] }
 0x163   :  { %v7416_v13 = vor.u32 %v9111_v25, %v7415_v59  ;;  %v8451_v22 = vld [vmem:[#allocation8 + $0x888] sm:$0xf] }
 0x164   :  { %1566 = vmatpush.bf16.msrb.mxu1 %v7300_v41  ;;  %v7639_v41 = vld [vmem:[#allocation8 + $0x230] sm:$0xf] }
 0x165   :  { %3343 = vmatpush.bf16.msrb.mxu2 %v7500_v21  ;;  %3357 = vmatpush.bf16.msrb.mxu3 %v7724_v32  ;;  %v6963_v21 = vld [vmem:[#allocation10 + $0x50] sm:$0xf]  ;;  %v9443_v32 = vld [vmem:[#allocation10 + $0x68] sm:$0xf0]  ;;  %v7640_v27 = vor.u32 %v9167_v34, %v7639_v41  ;;  %v9370_v41 = vld [vmem:[#allocation8 + $0x8a0] sm:$0xf0] }
 0x166   :  { %1553 = vmatpush.bf16.msrb.mxu0 %v7048_v37  ;;  %v9160_v37 = vld [vmem:[#allocation8 + $0x210] sm:$0xf0]  ;;  %v6964_v39 = vor.u32 %v9443_v32, %v6963_v21  ;;  %v8675_v34 = vld [vmem:[#allocation8 + $0xa48] sm:$0xf] }
 0x167   :  { %v7612_v54 = vor.u32 %v9160_v37, %v7611_v30  ;;  %v9307_v30 = vld [vmem:[#allocation8 + $0x6a8] sm:$0xf0]  ;;  %v8423_v37 = vld [vmem:[#allocation8 + $0x850] sm:$0xf] }
 0x168   :  { %1567 = vmatpush.bf16.msrb.mxu1 %v7272_v43  ;;  %v6935_v43 = vld [vmem:[#allocation10 + $0x18] sm:$0xf] }
 0x169   :  { %3344 = vmatpush.bf16.msrb.mxu2 %v7472_v7  ;;  %3358 = vmatpush.bf16.msrb.mxu3 %v7696_v58  ;;  %v7188_v7 = vor.u32 %v9499_v20, %v7187_v19  ;;  %v7159_v58 = vld [vmem:[#allocation10 + $0x1d8] sm:$0xf]  ;;  %v6936_v59 = vor.u32 %v9436_v51, %v6935_v43  ;;  %v9251_v19 = vld [vmem:[#allocation8 + $0x4e8] sm:$0xf0]  ;;  %v8452_v20 = vor.u32 %v9370_v41, %v8451_v22  ;;  %v8647_v51 = vld [vmem:[#allocation8 + $0xa10] sm:$0xf] }
 0x16a   :  { %1554 = vmatpush.bf16.msrb.mxu0 %v7020_v10  ;;  %v9097_v10 = vld [vmem:[#allocation8 + $0x18] sm:$0xf0]  ;;  %v7160_v25 = vor.u32 %v9492_v53, %v7159_v58  ;;  %v9363_v43 = vld [vmem:[#allocation8 + $0x868] sm:$0xf0]  ;;  %v9412_v22 = vld [vmem:[#allocation8 + $0x9f0] sm:$0xf0] }
 0x16b   :  { %v10811_v58 = vld [vmem:[#allocation1 + $0x9] sm:$0xff]  ;;  %v7919_v41 = vld [vmem:[#allocation8 + $0x460] sm:$0xf] }
 0x16c   :  { %1568 = vmatpush.bf16.msrb.mxu1 %v7244_v2  ;;  %v7583_v2 = vld [vmem:[#allocation8 + $0x1c0] sm:$0xf] }
 0x16d   :  { %3345 = vmatpush.bf16.msrb.mxu2 %v7444_v46  ;;  %3359 = vmatpush.bf16.msrb.mxu3 %v7668_v36  ;;  %v9258_v46 = vld [vmem:[#allocation8 + $0x520] sm:$0xf0]  ;;  %v8227_v36 = vld [vmem:[#allocation8 + $0x6c8] sm:$0xf]  ;;  %v7584_v21 = vor.u32 %v9153_v38, %v7583_v2  ;;  %v8171_v38 = vld [vmem:[#allocation8 + $0x658] sm:$0xf] }
 0x16e   :  { %1555 = vmatpush.bf16.msrb.mxu0 %v6992_v49  ;;  %v9426_v49 = vld [vmem:[#allocation8 + $0xa60] sm:$0xf0]  ;;  %v8004_v32 = vor.u32 %v9258_v46, %v8003_v44  ;;  %v9300_v44 = vld [vmem:[#allocation8 + $0x670] sm:$0xf0]  ;;  %v8395_v46 = vld [vmem:[#allocation8 + $0x818] sm:$0xf] }
 0x16f   :  { %v8676_v23 = vor.u32 %v9426_v49, %v8675_v34  ;;  %v9237_v34 = vld [vmem:[#allocation8 + $0x478] sm:$0xf0] }
 0x170   :  { %1569 = vmatpush.bf16.msrb.mxu1 %v7216_v63  ;;  %v7360_v63 = vor.u32 %v9097_v10, %v7359_v31  ;;  %v8200_v31 = vor.u32 %v9307_v30, %v8199_v11  ;;  %v8424_v10 = vor.u32 %v9363_v43, %v8423_v37  ;;  %v9230_v11 = vld [vmem:[#allocation8 + $0x440] sm:$0xf0]  ;;  %v8115_v43 = vld [vmem:[#allocation8 + $0x5e8] sm:$0xf] }
 0x171   :  { %3346 = vmatpush.bf16.msrb.mxu2 %v7416_v13  ;;  %3360 = vmatpush.bf16.msrb.mxu3 %v7640_v27  ;;  %v8228_v13 = vor.u32 %v9314_v47, %v8227_v36  ;;  %v7975_v27 = vld [vmem:[#allocation8 + $0x4d0] sm:$0xf]  ;;  %v9356_v36 = vld [vmem:[#allocation8 + $0x830] sm:$0xf0]  ;;  %v8619_v47 = vld [vmem:[#allocation8 + $0x9d8] sm:$0xf] }
 0x172   :  { %1556 = vmatpush.bf16.msrb.mxu0 %v6964_v39  ;;  %v9419_v39 = vld [vmem:[#allocation8 + $0xa28] sm:$0xf0]  ;;  %v7976_v53 = vor.u32 %v9251_v19, %v7975_v27  ;;  %v8396_v49 = vor.u32 %v9356_v36, %v8395_v46  ;;  %v9349_v27 = vld [vmem:[#allocation8 + $0x7f8] sm:$0xf0]  ;;  %v8591_v19 = vld [vmem:[#allocation8 + $0x9a0] sm:$0xf] }
 0x173   :  { %v8648_v2 = vor.u32 %v9419_v39, %v8647_v51  ;;  %v9286_v51 = vld [vmem:[#allocation8 + $0x600] sm:$0xf0]  ;;  %v8339_v39 = vld [vmem:[#allocation8 + $0x7a8] sm:$0xf]  ;;  %v8087_v36 = vld [vmem:[#allocation8 + $0x5b0] sm:$0xf] }
 0x174   :  { %1570 = vmatpush.bf16.msrb.mxu1 %v7188_v7  ;;  %v10809_v7 = vld [vmem:[#allocation1] sm:$0xff] }
 0x175   :  { %3347 = vmatpush.bf16.msrb.mxu2 %v7388_v26  ;;  %3361 = vmatpush.bf16.msrb.mxu3 %v7612_v54  ;;  %v7947_v26 = vld [vmem:[#allocation8 + $0x498] sm:$0xf]  ;;  %v9244_v54 = vld [vmem:[#allocation8 + $0x4b0] sm:$0xf0] }
 0x176   :  { %1557 = vmatpush.bf16.msrb.mxu0 %v6936_v59  ;;  %v7948_v59 = vor.u32 %v9244_v54, %v7947_v26  ;;  %v9398_v26 = vld [vmem:[#allocation8 + $0x980] sm:$0xf0] }
 0x178   :  { %1571 = vmatpush.bf16.msrb.mxu1 %v7160_v25  ;;  %v8172_v25 = vor.u32 %v9300_v44, %v8171_v38  ;;  %v9223_v38 = vld [vmem:[#allocation8 + $0x408] sm:$0xf0] }
 0x179   :  { %3348 = vmatpush.bf16.msrb.mxu2 %v7360_v63  ;;  %3362 = vmatpush.bf16.msrb.mxu3 %v7584_v21  ;;  %v8620_v63 = vor.u32 %v9412_v22, %v8619_v47  ;;  %v8143_v21 = vld [vmem:[#allocation8 + $0x620] sm:$0xf]  ;;  %v9279_v47 = vld [vmem:[#allocation8 + $0x5c8] sm:$0xf0]  ;;  %v8311_v22 = vld [vmem:[#allocation8 + $0x770] sm:$0xf] }
 0x17a   :  { %3369 = vmatpush.bf16.msra.mxu0 %v8004_v32  ;;  %v9293_v32 = vld [vmem:[#allocation8 + $0x638] sm:$0xf0] }
 0x17b   :  { %1558 = vmatmul.bf16.vlgmr.msrb.gmra.mxu0 %v10769_v4  ;;  %1572 = vmatmul.bf16.vlgmr.msrb.gmra.mxu1 %v10771_v14  ;;  %v7920_v4 = vor.u32 %v9237_v34, %v7919_v41  ;;  %v8144_v14 = vor.u32 %v9293_v32, %v8143_v21  ;;  %v9391_v41 = vld [vmem:[#allocation8 + $0x948] sm:$0xf0]  ;;  %v9216_v21 = vld [vmem:[#allocation8 + $0x3d0] sm:$0xf0] }
 0x17c   :  { %3383 = vmatpush.bf16.msra.mxu1 %v8228_v13  ;;  %3349 = vmatmul.bf16.vlgmr.msrb.gmra.mxu2 %v10809_v7  ;;  %v8367_v13 = vld [vmem:[#allocation8 + $0x7e0] sm:$0xf] }
 0x17d   :  { %3397 = vmatpush.bf16.msra.mxu2 %v8452_v20  ;;  %3411 = vmatpush.bf16.msra.mxu3 %v8676_v23  ;;  %v9405_v20 = vld [vmem:[#allocation8 + $0x9b8] sm:$0xf0]  ;;  %v7891_v23 = vld [vmem:[#allocation8 + $0x428] sm:$0xf]  ;;  %v8368_v30 = vor.u32 %v9349_v27, %v8367_v13  ;;  %v8059_v27 = vld [vmem:[#allocation8 + $0x578] sm:$0xf] }
 0x17e   :  { %3363 = vmatmul.bf16.vlgmr.msrb.gmra.mxu3 %v10811_v58  ;;  %3370 = vmatpush.bf16.msra.mxu0 %v7976_v53  ;;  %v8592_v37 = vor.u32 %v9405_v20, %v8591_v19  ;;  %v9342_v53 = vld [vmem:[#allocation8 + $0x7c0] sm:$0xf0]  ;;  %v7892_v54 = vor.u32 %v9230_v11, %v7891_v23  ;;  %v9272_v19 = vld [vmem:[#allocation8 + $0x590] sm:$0xf0]  ;;  %v8283_v20 = vld [vmem:[#allocation8 + $0x738] sm:$0xf] }
 0x17f   :  { %v8340_v44 = vor.u32 %v9342_v53, %v8339_v39  ;;  %v9384_v23 = vld [vmem:[#allocation8 + $0x910] sm:$0xf0]  ;;  %v7807_v11 = vld [vmem:[#allocation8 + $0x380] sm:$0xf]  ;;  %v9265_v39 = vld [vmem:[#allocation8 + $0x558] sm:$0xf0] }
 0x180   :  { %3384 = vmatpush.bf16.msra.mxu1 %v8200_v31  ;;  %v8563_v31 = vld [vmem:[#allocation8 + $0x968] sm:$0xf] }
 0x181   :  { %3398 = vmatpush.bf16.msra.mxu2 %v8424_v10  ;;  %3412 = vmatpush.bf16.msra.mxu3 %v8648_v2  ;;  %v8116_v10 = vor.u32 %v9286_v51, %v8115_v43  ;;  %v7863_v2 = vld [vmem:[#allocation8 + $0x3f0] sm:$0xf]  ;;  %v8564_v46 = vor.u32 %v9398_v26, %v8563_v31  ;;  %v9209_v43 = vld [vmem:[#allocation8 + $0x398] sm:$0xf0]  ;;  %v8031_v51 = vld [vmem:[#allocation8 + $0x540] sm:$0xf] }
 0x182   :  { %3371 = vmatpush.bf16.msra.mxu0 %v7948_v59  ;;  %v9335_v59 = vld [vmem:[#allocation8 + $0x788] sm:$0xf0]  ;;  %v7864_v34 = vor.u32 %v9223_v38, %v7863_v2  ;;  %v8255_v26 = vld [vmem:[#allocation8 + $0x700] sm:$0xf]  ;;  %v9377_v2 = vld [vmem:[#allocation8 + $0x8d8] sm:$0xf0] }
 0x183   :  { %v8312_v32 = vor.u32 %v9335_v59, %v8311_v22  ;;  %v9143_v38 = vld [vmem:[#allocation8 + $0x18c] sm:$0xf]  ;;  %v7808_v22 = vor.u32 %v9209_v43, %v7807_v11  ;;  %v8032_v59 = vor.u32 %v9265_v39, %v8031_v51  ;;  %v7977_v11 = vld [vmem:[#allocation8 + $0x4ec] sm:$0xf0]  ;;  %v10817_v43 = vld [vmem:[#allocation1 + $0x12] sm:$0xff] }
 0x184   :  { %3385 = vmatpush.bf16.msra.mxu1 %v8172_v25  ;;  %v8535_v25 = vld [vmem:[#allocation8 + $0x930] sm:$0xf] }
 0x185   :  { %3399 = vmatpush.bf16.msra.mxu2 %v8396_v49  ;;  %3413 = vmatpush.bf16.msra.mxu3 %v8620_v63  ;;  %v8088_v49 = vor.u32 %v9279_v47, %v8087_v36  ;;  %v7835_v63 = vld [vmem:[#allocation8 + $0x3b8] sm:$0xf]  ;;  %v8536_v13 = vor.u32 %v9391_v41, %v8535_v25  ;;  %v7781_v36 = vld [vmem:[#allocation8 + $0x364] sm:$0xf0]  ;;  %v9255_v47 = vld [vmem:[#allocation8 + $0x50c] sm:$0xf] }
 0x186   :  { %3372 = vmatpush.bf16.msra.mxu0 %v7920_v4  ;;  %v9328_v4 = vld [vmem:[#allocation8 + $0x750] sm:$0xf0]  ;;  %v8005_v25 = vld [vmem:[#allocation8 + $0x524] sm:$0xf0]  ;;  %v9311_v41 = vld [vmem:[#allocation8 + $0x6cc] sm:$0xf] }
 0x187   :  { %v8284_v53 = vor.u32 %v9328_v4, %v8283_v20  ;;  %v9192_v4 = vld [vmem:[#allocation8 + $0x314] sm:$0xf]  ;;  %v10821_v39 = vld [vmem:[#allocation1 + $0x1b] sm:$0xff] }
 0x188   :  { %3386 = vmatpush.bf16.msra.mxu1 %v8144_v14  ;;  %v8507_v14 = vld [vmem:[#allocation8 + $0x8f8] sm:$0xf] }
 0x189   :  { %3400 = vmatpush.bf16.msra.mxu2 %v8368_v30  ;;  %3414 = vmatpush.bf16.msra.mxu3 %v8592_v37  ;;  %v7836_v30 = vor.u32 %v9216_v21, %v7835_v63  ;;  %v8060_v37 = vor.u32 %v9272_v19, %v8059_v27  ;;  %v8508_v31 = vor.u32 %v9384_v23, %v8507_v14  ;;  %v7529_v27 = vld [vmem:[#allocation8 + $0x16c] sm:$0xf0]  ;;  %v9248_v23 = vld [vmem:[#allocation8 + $0x4d4] sm:$0xf] }
 0x18a   :  { %3373 = vmatpush.bf16.msra.mxu0 %v7892_v54  ;;  %v9321_v54 = vld [vmem:[#allocation8 + $0x718] sm:$0xf0]  ;;  %v8008_v19 = vor.u32 %v9255_v47, %v8005_v25  ;;  %v7753_v14 = vld [vmem:[#allocation8 + $0x32c] sm:$0xf0]  ;;  %v7949_v47 = vld [vmem:[#allocation8 + $0x4b4] sm:$0xf0] }
 0x18b   :  { %v10819_v51 = vld [vmem:[#allocation1 + $0x24] sm:$0xff] }
 0x18c   :  { %3387 = vmatpush.bf16.msra.mxu1 %v8116_v10  ;;  %v8479_v10 = vld [vmem:[#allocation8 + $0x8c0] sm:$0xf] }
 0x18d   :  { %3401 = vmatpush.bf16.msra.mxu2 %v8340_v44  ;;  %3415 = vmatpush.bf16.msra.mxu3 %v8564_v46  ;;  %v7557_v44 = vld [vmem:[#allocation8 + $0x1a4] sm:$0xf0]  ;;  %v9199_v46 = vld [vmem:[#allocation8 + $0x34c] sm:$0xf]  ;;  %v8480_v63 = vor.u32 %v9377_v2, %v8479_v10  ;;  %v7501_v10 = vld [vmem:[#allocation8 + $0x134] sm:$0xf0]  ;;  %v7980_v2 = vor.u32 %v9248_v23, %v7977_v11 }
 0x18e   :  { %3374 = vmatpush.bf16.msra.mxu0 %v7864_v34  ;;  %v8229_v34 = vld [vmem:[#allocation8 + $0x6e4] sm:$0xf0]  ;;  %v7560_v21 = vor.u32 %v9143_v38, %v7557_v44  ;;  %v9185_v44 = vld [vmem:[#allocation8 + $0x2dc] sm:$0xf]  ;;  %v9115_v11 = vld [vmem:[#allocation8 + $0xac] sm:$0xf] }
 0x18f   :  { %v8232_v20 = vor.u32 %v9311_v41, %v8229_v34  ;;  %v9122_v34 = vld [vmem:[#allocation8 + $0xe4] sm:$0xf] }
 0x190   :  { %3388 = vmatpush.bf16.msra.mxu1 %v8088_v49  ;;  %v8256_v49 = vor.u32 %v9321_v54, %v8255_v26  ;;  %v7756_v26 = vor.u32 %v9192_v4, %v7753_v14  ;;  %v9129_v54 = vld [vmem:[#allocation8 + $0x11c] sm:$0xf]  ;;  %v8145_v4 = vld [vmem:[#allocation8 + $0x63c] sm:$0xf0] }
 0x191   :  { %3402 = vmatpush.bf16.msra.mxu2 %v8312_v32  ;;  %3416 = vmatpush.bf16.msra.mxu3 %v8536_v13  ;;  %v7784_v32 = vor.u32 %v9199_v46, %v7781_v36  ;;  %v9136_v13 = vld [vmem:[#allocation8 + $0x154] sm:$0xf]  ;;  %v7725_v46 = vld [vmem:[#allocation8 + $0x2f4] sm:$0xf0]  ;;  %v9241_v36 = vld [vmem:[#allocation8 + $0x49c] sm:$0xf]  ;;  %v7504_v25 = vor.u32 %v9129_v54, %v7501_v10 }
 0x192   :  { %3375 = vmatpush.bf16.msra.mxu0 %v7836_v30  ;;  %v9304_v30 = vld [vmem:[#allocation8 + $0x694] sm:$0xf]  ;;  %v7728_v41 = vor.u32 %v9185_v44, %v7725_v46  ;;  %v7669_v54 = vld [vmem:[#allocation8 + $0x284] sm:$0xf0]  ;;  %v9227_v10 = vld [vmem:[#allocation8 + $0x42c] sm:$0xf] }
 0x193   :  { %v8117_v44 = vld [vmem:[#allocation8 + $0x604] sm:$0xf0] }
 0x194   :  { %3389 = vmatpush.bf16.msra.mxu1 %v8060_v37  ;;  %v8201_v37 = vld [vmem:[#allocation8 + $0x6ac] sm:$0xf0] }
 0x195   :  { %3403 = vmatpush.bf16.msra.mxu2 %v8284_v53  ;;  %3417 = vmatpush.bf16.msra.mxu3 %v8508_v31  ;;  %v10823_v53 = vld [vmem:[#allocation1 + $0x2d] sm:$0xff]  ;;  %v7532_v31 = vor.u32 %v9136_v13, %v7529_v27  ;;  %v8204_v38 = vor.u32 %v9304_v30, %v8201_v37  ;;  %v9234_v27 = vld [vmem:[#allocation8 + $0x464] sm:$0xf]  ;;  %v7445_v30 = vld [vmem:[#allocation8 + $0xc4] sm:$0xf0] }
 0x196   :  { %3376 = vmatpush.bf16.msra.mxu0 %v7808_v22  ;;  %v9297_v22 = vld [vmem:[#allocation8 + $0x65c] sm:$0xf]  ;;  %v7697_v13 = vld [vmem:[#allocation8 + $0x2bc] sm:$0xf0]  ;;  %v7448_v46 = vor.u32 %v9115_v11, %v7445_v30  ;;  %v7613_v11 = vld [vmem:[#allocation8 + $0x214] sm:$0xf0] }
 0x197   :  { %v9213_v30 = vld [vmem:[#allocation8 + $0x3bc] sm:$0xf] }
 0x198   :  { %3390 = vmatpush.bf16.msra.mxu1 %v8032_v59  ;;  %v8173_v59 = vld [vmem:[#allocation8 + $0x674] sm:$0xf0] }
 0x199   :  { %3404 = vmatpush.bf16.msra.mxu2 %v8256_v49  ;;  %3418 = vmatpush.bf16.msra.mxu3 %v8480_v63  ;;  %v7473_v49 = vld [vmem:[#allocation8 + $0xfc] sm:$0xf0]  ;;  %v7952_v63 = vor.u32 %v9241_v36, %v7949_v47  ;;  %v9108_v47 = vld [vmem:[#allocation8 + $0x74] sm:$0xf] }
 0x19a   :  { %3425 = vmatpush.bf16.msrb.mxu0 %v7560_v21  ;;  %v8176_v21 = vor.u32 %v9297_v22, %v8173_v59  ;;  %v7476_v14 = vor.u32 %v9122_v34, %v7473_v49  ;;  %v7417_v22 = vld [vmem:[#allocation8 + $0x8c] sm:$0xf0]  ;;  %v9220_v49 = vld [vmem:[#allocation8 + $0x3f4] sm:$0xf] }
 0x19b   :  { %3377 = vmatmul.bf16.vlgmr.msra.gmra.mxu0 %v10817_v43  ;;  %3391 = vmatmul.bf16.vlgmr.msra.gmra.mxu1 %v10821_v39  ;;  %v7641_v34 = vld [vmem:[#allocation8 + $0x24c] sm:$0xf0] }
 0x19c   :  { %3439 = vmatpush.bf16.msrb.mxu1 %v7784_v32  ;;  %3405 = vmatmul.bf16.vlgmr.msra.gmra.mxu2 %v10819_v51  ;;  %v9178_v32 = vld [vmem:[#allocation8 + $0x2a4] sm:$0xf] }
 0x19d   :  { %3453 = vmatpush.bf16.msrb.mxu2 %v8008_v19  ;;  %3467 = vmatpush.bf16.msrb.mxu3 %v8232_v20  ;;  %v7921_v19 = vld [vmem:[#allocation8 + $0x47c] sm:$0xf0]  ;;  %v9290_v20 = vld [vmem:[#allocation8 + $0x624] sm:$0xf]  ;;  %v7700_v23 = vor.u32 %v9178_v32, %v7697_v13  ;;  %v8089_v32 = vld [vmem:[#allocation8 + $0x5cc] sm:$0xf0]  ;;  %v7420_v13 = vor.u32 %v9108_v47, %v7417_v22 }
 0x19e   :  { %3419 = vmatmul.bf16.vlgmr.msra.gmra.mxu3 %v10823_v53  ;;  %3426 = vmatpush.bf16.msrb.mxu0 %v7532_v31  ;;  %v7924_v37 = vor.u32 %v9234_v27, %v7921_v19  ;;  %v8148_v31 = vor.u32 %v9290_v20, %v8145_v4  ;;  %v9101_v19 = vld [vmem:[#allocation8 + $0x3c] sm:$0xf]  ;;  %v7389_v20 = vld [vmem:[#allocation8 + $0x54] sm:$0xf0]  ;;  %v9206_v22 = vld [vmem:[#allocation8 + $0x384] sm:$0xf] }
 0x1a0   :  { %3440 = vmatpush.bf16.msrb.mxu1 %v7756_v26  ;;  %v9171_v26 = vld [vmem:[#allocation8 + $0x26c] sm:$0xf] }
 0x1a1   :  { %3454 = vmatpush.bf16.msrb.mxu2 %v7980_v2  ;;  %3468 = vmatpush.bf16.msrb.mxu3 %v8204_v38  ;;  %v7893_v2 = vld [vmem:[#allocation8 + $0x444] sm:$0xf0]  ;;  %v9283_v38 = vld [vmem:[#allocation8 + $0x5ec] sm:$0xf]  ;;  %v7672_v36 = vor.u32 %v9171_v26, %v7669_v54  ;;  %v8061_v26 = vld [vmem:[#allocation8 + $0x594] sm:$0xf0] }
 0x1a2   :  { %3427 = vmatpush.bf16.msrb.mxu0 %v7504_v25  ;;  %v7896_v59 = vor.u32 %v9227_v10, %v7893_v2  ;;  %v8120_v25 = vor.u32 %v9283_v38, %v8117_v44  ;;  %v9094_v54 = vld [vmem:[#allocation8 + $0x4] sm:$0xf]  ;;  %v7392_v10 = vor.u32 %v9101_v19, %v7389_v20  ;;  %v7361_v38 = vld [vmem:[#allocation8 + $0x1c] sm:$0xf0]  ;;  %v9147_v19 = vld [vmem:[#allocation8 + $0x1a8] sm:$0xf0] }
 0x1a3   :  { %v9150_v44 = vld [vmem:[#allocation8 + $0x1c4] sm:$0xf]  ;;  %v7787_v20 = vld [vmem:[#allocation8 + $0x350] sm:$0xf] }
 0x1a4   :  { %3441 = vmatpush.bf16.msrb.mxu1 %v7728_v41  ;;  %v9164_v41 = vld [vmem:[#allocation8 + $0x234] sm:$0xf] }
 0x1a5   :  { %3455 = vmatpush.bf16.msrb.mxu2 %v7952_v63  ;;  %3469 = vmatpush.bf16.msrb.mxu3 %v8176_v21  ;;  %v7865_v63 = vld [vmem:[#allocation8 + $0x40c] sm:$0xf0]  ;;  %v9276_v21 = vld [vmem:[#allocation8 + $0x5b4] sm:$0xf]  ;;  %v7644_v27 = vor.u32 %v9164_v41, %v7641_v34  ;;  %v8033_v41 = vld [vmem:[#allocation8 + $0x55c] sm:$0xf0] }
 0x1a6   :  { %3428 = vmatpush.bf16.msrb.mxu0 %v7476_v14  ;;  %v7868_v4 = vor.u32 %v9220_v49, %v7865_v63  ;;  %v8092_v14 = vor.u32 %v9276_v21, %v8089_v32  ;;  %v9367_v34 = vld [vmem:[#allocation8 + $0x88c] sm:$0xf]  ;;  %v8453_v49 = vld [vmem:[#allocation8 + $0x8a4] sm:$0xf0]  ;;  %v7563_v32 = vld [vmem:[#allocation8 + $0x190] sm:$0xf] }
 0x1a7   :  { %v9423_v63 = vld [vmem:[#allocation8 + $0xa4c] sm:$0xf]  ;;  %v8677_v21 = vld [vmem:[#allocation8 + $0xa64] sm:$0xf0] }
 0x1a8   :  { %3442 = vmatpush.bf16.msrb.mxu1 %v7700_v23  ;;  %v9157_v23 = vld [vmem:[#allocation8 + $0x1fc] sm:$0xf] }
 0x1a9   :  { %3456 = vmatpush.bf16.msrb.mxu2 %v7924_v37  ;;  %3470 = vmatpush.bf16.msrb.mxu3 %v8148_v31  ;;  %v7837_v37 = vld [vmem:[#allocation8 + $0x3d4] sm:$0xf0]  ;;  %v9269_v31 = vld [vmem:[#allocation8 + $0x57c] sm:$0xf]  ;;  %v7616_v2 = vor.u32 %v9157_v23, %v7613_v11  ;;  %v9203_v23 = vld [vmem:[#allocation8 + $0x368] sm:$0xf0]  ;;  %v8456_v11 = vor.u32 %v9367_v34, %v8453_v49 }
 0x1aa   :  { %3429 = vmatpush.bf16.msrb.mxu0 %v7448_v46  ;;  %v7585_v46 = vld [vmem:[#allocation8 + $0x1dc] sm:$0xf0]  ;;  %v8064_v47 = vor.u32 %v9269_v31, %v8061_v26  ;;  %v8425_v31 = vld [vmem:[#allocation8 + $0x86c] sm:$0xf0]  ;;  %v7564_v26 = vor.u32 %v9147_v19, %v7563_v32  ;;  %v7788_v55 = vor.u32 %v9203_v23, %v7787_v20  ;;  %v9409_v34 = vld [vmem:[#allocation8 + $0x9dc] sm:$0xf] }
 0x1ab   :  { %v8621_v49 = vld [vmem:[#allocation8 + $0x9f4] sm:$0xf0]  ;;  %v7731_v32 = vld [vmem:[#allocation8 + $0x2e0] sm:$0xf]  ;;  %v9346_v19 = vld [vmem:[#allocation8 + $0x7e4] sm:$0xf] }
 0x1ac   :  { %3443 = vmatpush.bf16.msrb.mxu1 %v7672_v36  ;;  %v7840_v36 = vor.u32 %v9213_v30, %v7837_v37  ;;  %v8680_v30 = vor.u32 %v9423_v63, %v8677_v21  ;;  %v9360_v37 = vld [vmem:[#allocation8 + $0x854] sm:$0xf]  ;;  %v7507_v63 = vld [vmem:[#allocation8 + $0x120] sm:$0xf]  ;;  %v9133_v21 = vld [vmem:[#allocation8 + $0x138] sm:$0xf0] }
 0x1ad   :  { %3457 = vmatpush.bf16.msrb.mxu2 %v7896_v59  ;;  %3471 = vmatpush.bf16.msrb.mxu3 %v8120_v25  ;;  %v7809_v59 = vld [vmem:[#allocation8 + $0x39c] sm:$0xf0]  ;;  %v9262_v25 = vld [vmem:[#allocation8 + $0x544] sm:$0xf]  ;;  %v7508_v23 = vor.u32 %v9133_v21, %v7507_v63  ;;  %v9175_v63 = vld [vmem:[#allocation8 + $0x288] sm:$0xf0] }
 0x1ae   :  { %3430 = vmatpush.bf16.msrb.mxu0 %v7420_v13  ;;  %v7364_v13 = vor.u32 %v9094_v54, %v7361_v38  ;;  %v1391_v54 = vpop.f32.mrf.mxu0  ;;  %v7759_v38 = vld [vmem:[#allocation8 + $0x318] sm:$0xf]  ;;  %v8369_v20 = vld [vmem:[#allocation8 + $0x7fc] sm:$0xf0] }
 0x1b0   :  { %3444 = vmatpush.bf16.msrb.mxu1 %v7644_v27  ;;  %v7588_v27 = vor.u32 %v9150_v44, %v7585_v46  ;;  %v9196_v44 = vld [vmem:[#allocation8 + $0x330] sm:$0xf0] }
 0x1b1   :  { %3458 = vmatpush.bf16.msrb.mxu2 %v7868_v4  ;;  %3472 = vmatpush.bf16.msrb.mxu3 %v8092_v14  ;;  %v7812_v4 = vor.u32 %v9206_v22, %v7809_v59  ;;  %v8036_v14 = vor.u32 %v9262_v25, %v8033_v41  ;;  %v9353_v22 = vld [vmem:[#allocation8 + $0x81c] sm:$0xf]  ;;  %v8397_v59 = vld [vmem:[#allocation8 + $0x834] sm:$0xf0]  ;;  %v7760_v41 = vor.u32 %v9196_v44, %v7759_v38  ;;  %v9339_v44 = vld [vmem:[#allocation8 + $0x7ac] sm:$0xf] }
 0x1b2   :  { %3431 = vmatpush.bf16.msrb.mxu0 %v7392_v10  ;;  %v1405_v10 = vpop.f32.mrf.mxu1 }
 0x1b3   :  { %v10829_v46 = vadd.f32 %v1405_v10, %v1391_v54 }
 0x1b4   :  { %3445 = vmatpush.bf16.msrb.mxu1 %v7616_v2  ;;  %v9140_v2 = vld [vmem:[#allocation8 + $0x170] sm:$0xf0] }
 0x1b5   :  { %3459 = vmatpush.bf16.msrb.mxu2 %v7840_v36  ;;  %3473 = vmatpush.bf16.msrb.mxu3 %v8064_v47  ;;  %v8428_v36 = vor.u32 %v9360_v37, %v8425_v31  ;;  %v8652_v47 = vor.u32 %v9416_v28, %v8649_v16  ;;  %v7536_v25 = vor.u32 %v9140_v2, %v7535_v56  ;;  %v1419_v16 = vpop.f32.mrf.mxu2  ;;  %v1433_v28 = vpop.f32.mrf.mxu3  ;;  %v9126_v37 = vld [vmem:[#allocation8 + $0x100] sm:$0xf0]  ;;  %v7703_v31 = vld [vmem:[#allocation8 + $0x2a8] sm:$0xf] }
 0x1b6   :  { %3432 = vmatpush.bf16.msrb.mxu0 %v7364_v13  ;;  %v9189_v13 = vld [vmem:[#allocation8 + $0x2f8] sm:$0xf0]  ;;  %v8400_v56 = vor.u32 %v9353_v22, %v8397_v59  ;;  %v10837_v54 = vpop.f32.mrf.mxu0  ;;  %v8372_v2 = vor.u32 %v9346_v19, %v8369_v20  ;;  %v9395_v59 = vld [vmem:[#allocation8 + $0x96c] sm:$0xf]  ;;  %v9388_v20 = vld [vmem:[#allocation8 + $0x934] sm:$0xf] }
 0x1b8   :  { %3446 = vmatpush.bf16.msrb.mxu1 %v7588_v27  ;;  %v8624_v27 = vor.u32 %v9409_v34, %v8621_v49  ;;  %v9119_v34 = vld [vmem:[#allocation8 + $0xc8] sm:$0xf0]  ;;  %v7675_v49 = vld [vmem:[#allocation8 + $0x270] sm:$0xf] }
 0x1b9   :  { %3460 = vmatpush.bf16.msrb.mxu2 %v7812_v4  ;;  %3474 = vmatpush.bf16.msrb.mxu3 %v8036_v14  ;;  %v7732_v4 = vor.u32 %v9189_v13, %v7731_v32  ;;  %v9402_v14 = vld [vmem:[#allocation8 + $0x9a4] sm:$0xf]  ;;  %v9332_v13 = vld [vmem:[#allocation8 + $0x774] sm:$0xf]  ;;  %v7676_v19 = vor.u32 %v9175_v63, %v7675_v49  ;;  %v7619_v49 = vld [vmem:[#allocation8 + $0x200] sm:$0xf] }
 0x1ba   :  { %3481 = vmatpush.bf16.msra.mxu0 %v8456_v11  ;;  %v8593_v11 = vld [vmem:[#allocation8 + $0x9bc] sm:$0xf0]  ;;  %v10839_v10 = vpop.f32.mrf.mxu1  ;;  %v9161_v63 = vld [vmem:[#allocation8 + $0x218] sm:$0xf0] }
 0x1bb   :  { %3433 = vmatmul.bf16.vlgmr.msrb.gmra.mxu0 %v10809_v7  ;;  %3447 = vmatmul.bf16.vlgmr.msrb.gmra.mxu1 %v10811_v58  ;;  %v8596_v38 = vor.u32 %v9402_v14, %v8593_v11  ;;  %v9112_v14 = vld [vmem:[#allocation8 + $0x90] sm:$0xf0]  ;;  %v7647_v11 = vld [vmem:[#allocation8 + $0x238] sm:$0xf] }
 0x1bc   :  { %3495 = vmatpush.bf16.msra.mxu1 %v8680_v30  ;;  %3461 = vmatmul.bf16.vlgmr.msrb.gmra.mxu2 %v10817_v43  ;;  %v7479_v30 = vld [vmem:[#allocation8 + $0xe8] sm:$0xf] }
 0x1bd   :  { %3509 = vmatpush.bf16.msra.mxu2 %v7564_v26  ;;  %3523 = vmatpush.bf16.msra.mxu3 %v7788_v55  ;;  %v10835_v55 = vadd.f32 %v1433_v28, %v1419_v16  ;;  %v9182_v26 = vld [vmem:[#allocation8 + $0x2c0] sm:$0xf0]  ;;  %v8313_v16 = vld [vmem:[#allocation8 + $0x78c] sm:$0xf0]  ;;  %v10841_v28 = vpop.f32.mrf.mxu2 }
 0x1be   :  { %3475 = vmatmul.bf16.vlgmr.msrb.gmra.mxu3 %v10821_v39  ;;  %3482 = vmatpush.bf16.msra.mxu0 %v8428_v36  ;;  %v8341_v36 = vld [vmem:[#allocation8 + $0x7c4] sm:$0xf0]  ;;  %v7704_v22 = vor.u32 %v9182_v26, %v7703_v31  ;;  %v9325_v26 = vld [vmem:[#allocation8 + $0x73c] sm:$0xf] }
 0x1bf   :  { %v8344_v21 = vor.u32 %v9339_v44, %v8341_v36 }
 0x1c0   :  { %3496 = vmatpush.bf16.msra.mxu1 %v8652_v47  ;;  %v7480_v47 = vor.u32 %v9126_v37, %v7479_v30  ;;  %v9168_v30 = vld [vmem:[#allocation8 + $0x250] sm:$0xf0]  ;;  %v8316_v37 = vor.u32 %v9332_v13, %v8313_v16  ;;  %v8257_v16 = vld [vmem:[#allocation8 + $0x71c] sm:$0xf0] }
 0x1c1   :  { %3510 = vmatpush.bf16.msra.mxu2 %v7536_v25  ;;  %3524 = vmatpush.bf16.msra.mxu3 %v7760_v41  ;;  %v8565_v25 = vld [vmem:[#allocation8 + $0x984] sm:$0xf0]  ;;  %v7451_v41 = vld [vmem:[#allocation8 + $0xb0] sm:$0xf] }
 0x1c2   :  { %3483 = vmatpush.bf16.msra.mxu0 %v8400_v56  ;;  %v8568_v32 = vor.u32 %v9395_v59, %v8565_v25  ;;  %v10843_v56 = vpop.f32.mrf.mxu3  ;;  %v1461_v44 = vpop.f32.mrf.mxu1  ;;  %v8509_v59 = vld [vmem:[#allocation8 + $0x914] sm:$0xf0]  ;;  %v7395_v25 = vld [vmem:[#allocation8 + $0x40] sm:$0xf] }
 0x1c4   :  { %3497 = vmatpush.bf16.msra.mxu1 %v8624_v27  ;;  %v7452_v27 = vor.u32 %v9119_v34, %v7451_v41  ;;  %v9105_v34 = vld [vmem:[#allocation8 + $0x58] sm:$0xf0] }
 0x1c5   :  { %3511 = vmatpush.bf16.msra.mxu2 %v7508_v23  ;;  %3525 = vmatpush.bf16.msra.mxu3 %v7732_v4  ;;  %v8537_v23 = vld [vmem:[#allocation8 + $0x94c] sm:$0xf0]  ;;  %v7423_v4 = vld [vmem:[#allocation8 + $0x78] sm:$0xf] }
 0x1c6   :  { %3484 = vmatpush.bf16.msra.mxu0 %v8372_v2  ;;  %v8540_v31 = vor.u32 %v9388_v20, %v8537_v23  ;;  %v8285_v2 = vld [vmem:[#allocation8 + $0x754] sm:$0xf0]  ;;  %v7424_v36 = vor.u32 %v9112_v14, %v7423_v4  ;;  %v9374_v20 = vld [vmem:[#allocation8 + $0x8c4] sm:$0xf]  ;;  %v8481_v23 = vld [vmem:[#allocation8 + $0x8dc] sm:$0xf0] }
 0x1c7   :  { %v7367_v4 = vld [vmem:[#allocation8 + $0x8] sm:$0xf]  ;;  %v9098_v14 = vld [vmem:[#allocation8 + $0x20] sm:$0xf0] }
 0x1c8   :  { %3498 = vmatpush.bf16.msra.mxu1 %v8596_v38  ;;  %v1447_v38 = vpop.f32.mrf.mxu0 }
 0x1c9   :  { %3512 = vmatpush.bf16.msra.mxu2 %v7480_v47  ;;  %3526 = vmatpush.bf16.msra.mxu3 %v7704_v22  ;;  %v7648_v47 = vor.u32 %v9168_v30, %v7647_v11  ;;  %v9381_v22 = vld [vmem:[#allocation8 + $0x8fc] sm:$0xf]  ;;  %v10845_v41 = vadd.f32 %v1461_v44, %v1447_v38  ;;  %v7591_v11 = vld [vmem:[#allocation8 + $0x1c8] sm:$0xf]  ;;  %v1475_v30 = vpop.f32.mrf.mxu2  ;;  %v9154_v44 = vld [vmem:[#allocation8 + $0x1e0] sm:$0xf0] }
 0x1ca   :  { %3485 = vmatpush.bf16.msra.mxu0 %v8344_v21  ;;  %v9318_v21 = vld [vmem:[#allocation8 + $0x704] sm:$0xf]  ;;  %v8512_v13 = vor.u32 %v9381_v22, %v8509_v59  ;;  %v1489_v38 = vpop.f32.mrf.mxu3  ;;  %v8683_v22 = vld [vmem:[#allocation8 + $0xa50] sm:$0xf]  ;;  %v9427_v59 = vld [vmem:[#allocation8 + $0xa68] sm:$0xf0] }
 0x1cb   :  { %v10847_v60 = vadd.f32 %v1489_v38, %v1475_v30  ;;  %v8684_v38 = vor.u32 %v9427_v59, %v8683_v22 }
 0x1cc   :  { %3499 = vmatpush.bf16.msra.mxu1 %v8568_v32  ;;  %v8288_v32 = vor.u32 %v9325_v26, %v8285_v2  ;;  %v8459_v26 = vld [vmem:[#allocation8 + $0x890] sm:$0xf]  ;;  %v8260_v2 = vor.u32 %v9318_v21, %v8257_v16  ;;  %v9364_v21 = vld [vmem:[#allocation8 + $0x870] sm:$0xf0]  ;;  %v7984_v16 = vor.u32 %v9252_v12, %v7983_v61  ;;  %v8627_v12 = vld [vmem:[#allocation8 + $0x9e0] sm:$0xf] }
 0x1cd   :  { %3513 = vmatpush.bf16.msra.mxu2 %v7452_v27  ;;  %3527 = vmatpush.bf16.msra.mxu3 %v7676_v19  ;;  %v7396_v27 = vor.u32 %v9105_v34, %v7395_v25  ;;  %v7620_v19 = vor.u32 %v9161_v63, %v7619_v49  ;;  %v7368_v25 = vor.u32 %v9098_v14, %v7367_v4  ;;  %v8179_v14 = vld [vmem:[#allocation8 + $0x660] sm:$0xf] }
 0x1ce   :  { %3486 = vmatpush.bf16.msra.mxu0 %v8316_v37  ;;  %v8235_v37 = vld [vmem:[#allocation8 + $0x6d0] sm:$0xf]  ;;  %v7592_v34 = vor.u32 %v9154_v44, %v7591_v11  ;;  %v8012_v49 = vor.u32 %v9259_v18, %v8011_v50  ;;  %v7955_v18 = vld [vmem:[#allocation8 + $0x4a0] sm:$0xf]  ;;  %v9245_v50 = vld [vmem:[#allocation8 + $0x4b8] sm:$0xf0] }
 0x1cf   :  { %v9301_v11 = vld [vmem:[#allocation8 + $0x678] sm:$0xf0]  ;;  %v8403_v44 = vld [vmem:[#allocation8 + $0x820] sm:$0xf] }
 0x1d0   :  { %3500 = vmatpush.bf16.msra.mxu1 %v8540_v31  ;;  %v9315_v31 = vld [vmem:[#allocation8 + $0x6e8] sm:$0xf0]  ;;  %v8180_v61 = vor.u32 %v9301_v11, %v8179_v14  ;;  %v8571_v14 = vld [vmem:[#allocation8 + $0x970] sm:$0xf] }
 0x1d1   :  { %3514 = vmatpush.bf16.msra.mxu2 %v7424_v36  ;;  %3528 = vmatpush.bf16.msra.mxu3 %v7648_v47  ;;  %v8484_v36 = vor.u32 %v9374_v20, %v8481_v23  ;;  %v9371_v47 = vld [vmem:[#allocation8 + $0x8a8] sm:$0xf0]  ;;  %v8236_v63 = vor.u32 %v9315_v31, %v8235_v37  ;;  %v8208_v20 = vor.u32 %v9308_v45, %v8207_v40  ;;  %v10849_v23 = vpop.f32.mrf.mxu0  ;;  %v9357_v37 = vld [vmem:[#allocation8 + $0x838] sm:$0xf0]  ;;  %v9238_v31 = vld [vmem:[#allocation8 + $0x480] sm:$0xf0]  ;;  %v10857_v22 = vpop.f32.mrf.mxu2 }
 0x1d2   :  { %3487 = vmatpush.bf16.msra.mxu0 %v8288_v32  ;;  %v8460_v30 = vor.u32 %v9371_v47, %v8459_v26  ;;  %v8655_v32 = vld [vmem:[#allocation8 + $0xa18] sm:$0xf]  ;;  %v9413_v40 = vld [vmem:[#allocation8 + $0x9f8] sm:$0xf0]  ;;  %v7956_v45 = vor.u32 %v9245_v50, %v7955_v18  ;;  %v8404_v26 = vor.u32 %v9357_v37, %v8403_v44  ;;  %v9294_v47 = vld [vmem:[#allocation8 + $0x640] sm:$0xf0]  ;;  %v10859_v59 = vpop.f32.mrf.mxu3 }
 0x1d3   :  { %v9287_v18 = vld [vmem:[#allocation8 + $0x608] sm:$0xf0]  ;;  %v8347_v50 = vld [vmem:[#allocation8 + $0x7b0] sm:$0xf] }
 0x1d4   :  { %3501 = vmatpush.bf16.msra.mxu1 %v8512_v13  ;;  %v9420_v13 = vld [vmem:[#allocation8 + $0xa30] sm:$0xf0]  ;;  %v9399_v11 = vld [vmem:[#allocation8 + $0x988] sm:$0xf0] }
 0x1d5   :  { %3515 = vmatpush.bf16.msra.mxu2 %v7396_v27  ;;  %3529 = vmatpush.bf16.msra.mxu3 %v7620_v19  ;;  %v10851_v27 = vpop.f32.mrf.mxu1  ;;  %v8432_v19 = vor.u32 %v9364_v21, %v8431_v6  ;;  %v8656_v4 = vor.u32 %v9420_v13, %v8655_v32  ;;  %v7927_v6 = vld [vmem:[#allocation8 + $0x468] sm:$0xf] }
 0x1d6   :  { %3488 = vmatpush.bf16.msra.mxu0 %v8260_v2  ;;  %v8628_v2 = vor.u32 %v9413_v40, %v8627_v12  ;;  %v7871_v12 = vld [vmem:[#allocation8 + $0x3f8] sm:$0xf]  ;;  %v9224_v40 = vld [vmem:[#allocation8 + $0x410] sm:$0xf0] }
 0x1d8   :  { %3502 = vmatpush.bf16.msra.mxu1 %v8484_v36  ;;  %v8151_v36 = vld [vmem:[#allocation8 + $0x628] sm:$0xf] }
 0x1d9   :  { %3516 = vmatpush.bf16.msra.mxu2 %v7368_v25  ;;  %3530 = vmatpush.bf16.msra.mxu3 %v7592_v34  ;;  %v9350_v25 = vld [vmem:[#allocation8 + $0x800] sm:$0xf0]  ;;  %v8599_v34 = vld [vmem:[#allocation8 + $0x9a8] sm:$0xf]  ;;  %v1503_v21 = vpop.f32.mrf.mxu0 }
 0x1da   :  { %3537 = vmatpush.bf16.msrb.mxu0 %v8012_v49  ;;  %v7928_v49 = vor.u32 %v9238_v31, %v7927_v6  ;;  %v8095_v6 = vld [vmem:[#allocation8 + $0x5b8] sm:$0xf]  ;;  %v9280_v31 = vld [vmem:[#allocation8 + $0x5d0] sm:$0xf0] }
 0x1db   :  { %3489 = vmatmul.bf16.vlgmr.msra.gmra.mxu0 %v10819_v51  ;;  %3503 = vmatmul.bf16.vlgmr.msra.gmra.mxu1 %v10823_v53 }
 0x1dc   :  { %3551 = vmatpush.bf16.msrb.mxu1 %v8236_v63  ;;  %3517 = vmatmul.bf16.vlgmr.msra.gmra.mxu2 %v10809_v7  ;;  %v8375_v7 = vld [vmem:[#allocation8 + $0x7e8] sm:$0xf]  ;;  %v8152_v63 = vor.u32 %v9294_v47, %v8151_v36  ;;  %v9336_v47 = vld [vmem:[#allocation8 + $0x790] sm:$0xf0] }
 0x1dd   :  { %3565 = vmatpush.bf16.msrb.mxu2 %v8460_v30  ;;  %3579 = vmatpush.bf16.msrb.mxu3 %v8684_v38  ;;  %v7899_v30 = vld [vmem:[#allocation8 + $0x430] sm:$0xf]  ;;  %v9231_v38 = vld [vmem:[#allocation8 + $0x448] sm:$0xf0]  ;;  %v1517_v32 = vpop.f32.mrf.mxu1  ;;  %v8376_v13 = vor.u32 %v9350_v25, %v8375_v7  ;;  %v8543_v7 = vld [vmem:[#allocation8 + $0x938] sm:$0xf] }
 0x1de   :  { %3531 = vmatmul.bf16.vlgmr.msra.gmra.mxu3 %v10811_v58  ;;  %3538 = vmatpush.bf16.msrb.mxu0 %v7984_v16  ;;  %v9406_v58 = vld [vmem:[#allocation8 + $0x9c0] sm:$0xf0]  ;;  %v7900_v44 = vor.u32 %v9231_v38, %v7899_v30  ;;  %v9392_v25 = vld [vmem:[#allocation8 + $0x950] sm:$0xf0]  ;;  %v9217_v30 = vld [vmem:[#allocation8 + $0x3d8] sm:$0xf0] }
 0x1df   :  { %v8600_v16 = vor.u32 %v9406_v58, %v8599_v34  ;;  %v7872_v58 = vor.u32 %v9224_v40, %v7871_v12  ;;  %v9210_v40 = vld [vmem:[#allocation8 + $0x3a0] sm:$0xf0] }
 0x1e0   :  { %3552 = vmatpush.bf16.msrb.mxu1 %v8208_v20  ;;  %v8123_v20 = vld [vmem:[#allocation8 + $0x5f0] sm:$0xf] }
 0x1e1   :  { %3566 = vmatpush.bf16.msrb.mxu2 %v8432_v19  ;;  %3580 = vmatpush.bf16.msrb.mxu3 %v8656_v4  ;;  %v10861_v19 = vadd.f32 %v1517_v32, %v1503_v21  ;;  %v9343_v4 = vld [vmem:[#allocation8 + $0x7c8] sm:$0xf0]  ;;  %v8124_v37 = vor.u32 %v9287_v18, %v8123_v20  ;;  %v1545_v36 = vpop.f32.mrf.mxu3  ;;  %v1505_v38 = vpop.f32.mrf.mxu0  ;;  %v9273_v20 = vld [vmem:[#allocation8 + $0x598] sm:$0xf0]  ;;  %v8291_v18 = vld [vmem:[#allocation8 + $0x740] sm:$0xf] }
 0x1e2   :  { %3539 = vmatpush.bf16.msrb.mxu0 %v7956_v45  ;;  %v8348_v45 = vor.u32 %v9343_v4, %v8347_v50  ;;  %v9329_v4 = vld [vmem:[#allocation8 + $0x758] sm:$0xf0] }
 0x1e4   :  { %3553 = vmatpush.bf16.msrb.mxu1 %v8180_v61  ;;  %v8572_v61 = vor.u32 %v9399_v11, %v8571_v14  ;;  %v8515_v14 = vld [vmem:[#allocation8 + $0x900] sm:$0xf]  ;;  %v9385_v11 = vld [vmem:[#allocation8 + $0x918] sm:$0xf0] }
 0x1e5   :  { %3567 = vmatpush.bf16.msrb.mxu2 %v8404_v26  ;;  %3581 = vmatpush.bf16.msrb.mxu3 %v8628_v2  ;;  %v8319_v26 = vld [vmem:[#allocation8 + $0x778] sm:$0xf]  ;;  %v1531_v2 = vpop.f32.mrf.mxu2  ;;  %v1519_v21 = vpop.f32.mrf.mxu1 }
 0x1e6   :  { %3540 = vmatpush.bf16.msrb.mxu0 %v7928_v49  ;;  %v10863_v34 = vadd.f32 %v1545_v36, %v1531_v2  ;;  %v8096_v49 = vor.u32 %v9280_v31, %v8095_v6  ;;  %v8320_v32 = vor.u32 %v9336_v47, %v8319_v26  ;;  %v10865_v50 = vadd.f32 %v1519_v21, %v1505_v38  ;;  %v8039_v6 = vld [vmem:[#allocation8 + $0x548] sm:$0xf]  ;;  %v9266_v31 = vld [vmem:[#allocation8 + $0x560] sm:$0xf0]  ;;  %v9144_v38 = vld [vmem:[#allocation8 + $0x194] sm:$0xf] }
 0x1e7   :  { %v8263_v26 = vld [vmem:[#allocation8 + $0x708] sm:$0xf]  ;;  %v9322_v2 = vld [vmem:[#allocation8 + $0x720] sm:$0xf0]  ;;  %v7565_v21 = vld [vmem:[#allocation8 + $0x1ac] sm:$0xf0] }
 0x1e8   :  { %3554 = vmatpush.bf16.msrb.mxu1 %v8152_v63  ;;  %v7843_v63 = vld [vmem:[#allocation8 + $0x3c0] sm:$0xf]  ;;  %v8487_v36 = vld [vmem:[#allocation8 + $0x8c8] sm:$0xf] }
 0x1e9   :  { %3568 = vmatpush.bf16.msrb.mxu2 %v8376_v13  ;;  %3582 = vmatpush.bf16.msrb.mxu3 %v8600_v16  ;;  %v8544_v13 = vor.u32 %v9392_v25, %v8543_v7  ;;  %v8067_v16 = vld [vmem:[#allocation8 + $0x580] sm:$0xf]  ;;  %v1547_v7 = vpop.f32.mrf.mxu3  ;;  %v9378_v25 = vld [vmem:[#allocation8 + $0x8e0] sm:$0xf0] }
 0x1ea   :  { %3541 = vmatpush.bf16.msrb.mxu0 %v7900_v44  ;;  %v7815_v44 = vld [vmem:[#allocation8 + $0x388] sm:$0xf]  ;;  %v8068_v12 = vor.u32 %v9273_v20, %v8067_v16  ;;  %v9312_v16 = vld [vmem:[#allocation8 + $0x6d4] sm:$0xf]  ;;  %v8237_v20 = vld [vmem:[#allocation8 + $0x6ec] sm:$0xf0] }
 0x1ec   :  { %3555 = vmatpush.bf16.msrb.mxu1 %v8124_v37  ;;  %v7844_v37 = vor.u32 %v9217_v30, %v7843_v63  ;;  %v9256_v63 = vld [vmem:[#allocation8 + $0x514] sm:$0xf]  ;;  %v7816_v30 = vor.u32 %v9210_v40, %v7815_v44  ;;  %v7985_v44 = vld [vmem:[#allocation8 + $0x4f4] sm:$0xf0]  ;;  %v7540_v40 = vor.u32 %v9137_v15, %v7537_v1 }
 0x1ed   :  { %3569 = vmatpush.bf16.msrb.mxu2 %v8348_v45  ;;  %3583 = vmatpush.bf16.msrb.mxu3 %v8572_v61  ;;  %v8292_v45 = vor.u32 %v9329_v4, %v8291_v18  ;;  %v8516_v61 = vor.u32 %v9385_v11, %v8515_v14  ;;  %v1533_v47 = vpop.f32.mrf.mxu2  ;;  %v8264_v18 = vor.u32 %v9322_v2, %v8263_v26  ;;  %v9186_v2 = vld [vmem:[#allocation8 + $0x2e4] sm:$0xf] }
 0x1ee   :  { %3542 = vmatpush.bf16.msrb.mxu0 %v7872_v58  ;;  %v10867_v62 = vadd.f32 %v1547_v7, %v1533_v47  ;;  %v9200_v58 = vld [vmem:[#allocation8 + $0x354] sm:$0xf]  ;;  %v8488_v4 = vor.u32 %v9378_v25, %v8487_v36  ;;  %v7568_v14 = vor.u32 %v9144_v38, %v7565_v21  ;;  %v8240_v7 = vor.u32 %v9312_v16, %v8237_v20  ;;  %v7733_v36 = vld [vmem:[#allocation8 + $0x2fc] sm:$0xf0]  ;;  %v9242_v25 = vld [vmem:[#allocation8 + $0x4a4] sm:$0xf] }
 0x1ef   :  { %v7957_v38 = vld [vmem:[#allocation8 + $0x4bc] sm:$0xf0]  ;;  %v9298_v21 = vld [vmem:[#allocation8 + $0x664] sm:$0xf]  ;;  %v7736_v15 = vor.u32 %v9186_v2, %v7733_v36  ;;  %v9116_v16 = vld [vmem:[#allocation8 + $0xb4] sm:$0xf] }
 0x1f0   :  { %3556 = vmatpush.bf16.msrb.mxu1 %v8096_v49  ;;  %v7789_v49 = vld [vmem:[#allocation8 + $0x36c] sm:$0xf0] }
 0x1f1   :  { %3570 = vmatpush.bf16.msrb.mxu2 %v8320_v32  ;;  %3584 = vmatpush.bf16.msrb.mxu3 %v8544_v13  ;;  %v8040_v32 = vor.u32 %v9266_v31, %v8039_v6  ;;  %v8013_v13 = vld [vmem:[#allocation8 + $0x52c] sm:$0xf0]  ;;  %v7792_v11 = vor.u32 %v9200_v58, %v7789_v49  ;;  %v7764_v6 = vor.u32 %v9193_v29, %v7761_v48  ;;  %v9130_v31 = vld [vmem:[#allocation8 + $0x124] sm:$0xf]  ;;  %v8181_v58 = vld [vmem:[#allocation8 + $0x67c] sm:$0xf0] }
 0x1f2   :  { %3543 = vmatpush.bf16.msrb.mxu0 %v7844_v37  ;;  %v8016_v47 = vor.u32 %v9256_v63, %v8013_v13  ;;  %v9305_v37 = vld [vmem:[#allocation8 + $0x69c] sm:$0xf]  ;;  %v9123_v29 = vld [vmem:[#allocation8 + $0xec] sm:$0xf]  ;;  %v7481_v48 = vld [vmem:[#allocation8 + $0x104] sm:$0xf0]  ;;  %v8184_v49 = vor.u32 %v9298_v21, %v8181_v58 }
 0x1f3   :  { %v7705_v63 = vld [vmem:[#allocation8 + $0x2c4] sm:$0xf0]  ;;  %v7453_v20 = vld [vmem:[#allocation8 + $0xcc] sm:$0xf0]  ;;  %v9165_v21 = vld [vmem:[#allocation8 + $0x23c] sm:$0xf] }
 0x1f4   :  { %3557 = vmatpush.bf16.msrb.mxu1 %v8068_v12  ;;  %v8209_v12 = vld [vmem:[#allocation8 + $0x6b4] sm:$0xf0]  ;;  %v8153_v13 = vld [vmem:[#allocation8 + $0x644] sm:$0xf0] }
 0x1f5   :  { %3571 = vmatpush.bf16.msrb.mxu2 %v8292_v45  ;;  %3585 = vmatpush.bf16.msrb.mxu3 %v8516_v61  ;;  %v7509_v45 = vld [vmem:[#allocation8 + $0x13c] sm:$0xf0]  ;;  %v7988_v61 = vor.u32 %v9249_v52, %v7985_v44  ;;  %v8212_v26 = vor.u32 %v9305_v37, %v8209_v12  ;;  %v7960_v52 = vor.u32 %v9242_v25, %v7957_v38  ;;  %v9228_v44 = vld [vmem:[#allocation8 + $0x434] sm:$0xf]  ;;  %v7901_v12 = vld [vmem:[#allocation8 + $0x44c] sm:$0xf0] }
 0x1f6   :  { %3544 = vmatpush.bf16.msrb.mxu0 %v7816_v30  ;;  %v7512_v1 = vor.u32 %v9130_v31, %v7509_v45  ;;  %v7929_v30 = vld [vmem:[#allocation8 + $0x484] sm:$0xf0]  ;;  %v7456_v31 = vor.u32 %v9116_v16, %v7453_v20  ;;  %v7904_v2 = vor.u32 %v9228_v44, %v7901_v12  ;;  %v7649_v58 = vld [vmem:[#allocation8 + $0x254] sm:$0xf0]  ;;  %v9158_v16 = vld [vmem:[#allocation8 + $0x204] sm:$0xf] }
 0x1f7   :  { %v7621_v20 = vld [vmem:[#allocation8 + $0x21c] sm:$0xf0] }
 0x1f8   :  { %3558 = vmatpush.bf16.msrb.mxu1 %v8040_v32  ;;  %v9291_v32 = vld [vmem:[#allocation8 + $0x62c] sm:$0xf]  ;;  %v7624_v12 = vor.u32 %v9158_v16, %v7621_v20  ;;  %v9361_v16 = vld [vmem:[#allocation8 + $0x85c] sm:$0xf]  ;;  %v8433_v20 = vld [vmem:[#allocation8 + $0x874] sm:$0xf0] }
 0x1f9   :  { %3572 = vmatpush.bf16.msrb.mxu2 %v8264_v18  ;;  %3586 = vmatpush.bf16.msrb.mxu3 %v8488_v4  ;;  %v1559_v18 = vpop.f32.mrf.mxu0  ;;  %v1573_v4 = vpop.f32.mrf.mxu1 }
 0x1fa   :  { %3593 = vmatpush.bf16.msra.mxu0 %v7568_v14  ;;  %v10873_v37 = vadd.f32 %v1573_v4, %v1559_v18  ;;  %v7845_v4 = vld [vmem:[#allocation8 + $0x3dc] sm:$0xf0] }
 0x1fb   :  { %3545 = vmatmul.bf16.vlgmr.msrb.gmra.mxu0 %v10817_v43  ;;  %3559 = vmatmul.bf16.vlgmr.msrb.gmra.mxu1 %v10821_v39  ;;  %v9179_v43 = vld [vmem:[#allocation8 + $0x2ac] sm:$0xf]  ;;  %v7484_v39 = vor.u32 %v9123_v29, %v7481_v48  ;;  %v7873_v29 = vld [vmem:[#allocation8 + $0x414] sm:$0xf0]  ;;  %v9277_v48 = vld [vmem:[#allocation8 + $0x5bc] sm:$0xf] }
 0x1fc   :  { %3607 = vmatpush.bf16.msra.mxu1 %v7792_v11  ;;  %3573 = vmatmul.bf16.vlgmr.msrb.gmra.mxu2 %v10819_v51  ;;  %v9235_v51 = vld [vmem:[#allocation8 + $0x46c] sm:$0xf]  ;;  %v8156_v11 = vor.u32 %v9291_v32, %v8153_v13 }
 0x1fd   :  { %3621 = vmatpush.bf16.msra.mxu2 %v8016_v47  ;;  %3635 = vmatpush.bf16.msra.mxu3 %v8240_v7  ;;  %v7932_v14 = vor.u32 %v9235_v51, %v7929_v30  ;;  %v9172_v47 = vld [vmem:[#allocation8 + $0x274] sm:$0xf]  ;;  %v7677_v7 = vld [vmem:[#allocation8 + $0x28c] sm:$0xf0]  ;;  %v9102_v51 = vld [vmem:[#allocation8 + $0x44] sm:$0xf] }
 0x1fe   :  { %3587 = vmatmul.bf16.vlgmr.msrb.gmra.mxu3 %v10823_v53  ;;  %3594 = vmatpush.bf16.msra.mxu0 %v7540_v40  ;;  %v7708_v53 = vor.u32 %v9179_v43, %v7705_v63  ;;  %v9284_v40 = vld [vmem:[#allocation8 + $0x5f4] sm:$0xf]  ;;  %v7680_v45 = vor.u32 %v9172_v47, %v7677_v7  ;;  %v7652_v63 = vor.u32 %v9165_v21, %v7649_v58  ;;  %v7397_v30 = vld [vmem:[#allocation8 + $0x5c] sm:$0xf0]  ;;  %v9095_v47 = vld [vmem:[#allocation8 + $0xc] sm:$0xf] }
 0x1ff   :  { %v3350_v25 = vpop.f32.mrf.mxu2  ;;  %v1408_v7 = vadd.f32 %v10839_v10, %v10837_v54  ;;  %v7400_v44 = vor.u32 %v9102_v51, %v7397_v30  ;;  %v8041_v58 = vld [vmem:[#allocation8 + $0x564] sm:$0xf0]  ;;  %v8461_v54 = vld [vmem:[#allocation8 + $0x8ac] sm:$0xf0]  ;;  %v9424_v10 = vld [vmem:[#allocation8 + $0xa54] sm:$0xf] }
 0x200   :  { %3608 = vmatpush.bf16.msra.mxu1 %v7764_v6  ;;  %v8125_v6 = vld [vmem:[#allocation8 + $0x60c] sm:$0xf0]  ;;  %v7795_v51 = vld [vmem:[#allocation8 + $0x358] sm:$0xf]  ;;  %v9204_v30 = vld [vmem:[#allocation8 + $0x370] sm:$0xf0] }
 0x201   :  { %3622 = vmatpush.bf16.msra.mxu2 %v7988_v61  ;;  %3636 = vmatpush.bf16.msra.mxu3 %v8212_v26  ;;  %v9109_v61 = vld [vmem:[#allocation8 + $0x7c] sm:$0xf]  ;;  %v7425_v26 = vld [vmem:[#allocation8 + $0x94] sm:$0xf0]  ;;  %v8128_v36 = vor.u32 %v9284_v40, %v8125_v6  ;;  %v3364_v38 = vpop.f32.mrf.mxu3  ;;  %v1561_v32 = vpop.f32.mrf.mxu0  ;;  %v7369_v40 = vld [vmem:[#allocation8 + $0x24] sm:$0xf0] }
 0x202   :  { %3595 = vmatpush.bf16.msra.mxu0 %v7512_v1  ;;  %v9221_v1 = vld [vmem:[#allocation8 + $0x3fc] sm:$0xf]  ;;  %v7428_v43 = vor.u32 %v9109_v61, %v7425_v26  ;;  %v1575_v13 = vpop.f32.mrf.mxu1  ;;  %v9151_v6 = vld [vmem:[#allocation8 + $0x1cc] sm:$0xf] }
 0x203   :  { %v10878_v18 = vadd.f32 %v1575_v13, %v1561_v32 }
 0x204   :  { %3609 = vmatpush.bf16.msra.mxu1 %v7736_v15  ;;  %v3351_v15 = vadd.f32 %v3350_v25, %v10829_v46  ;;  %v9214_v46 = vld [vmem:[#allocation8 + $0x3c4] sm:$0xf]  ;;  %v7817_v25 = vld [vmem:[#allocation8 + $0x3a4] sm:$0xf0] }
 0x205   :  { %3623 = vmatpush.bf16.msra.mxu2 %v7960_v52  ;;  %3637 = vmatpush.bf16.msra.mxu3 %v8184_v49  ;;  %v8097_v52 = vld [vmem:[#allocation8 + $0x5d4] sm:$0xf0] }
 0x206   :  { %3596 = vmatpush.bf16.msra.mxu0 %v7484_v39  ;;  %v10876_v49 = vadd.f32 %v3364_v38, %v3351_v15  ;;  %v7876_v39 = vor.u32 %v9221_v1, %v7873_v29  ;;  %v9263_v38 = vld [vmem:[#allocation8 + $0x54c] sm:$0xf]  ;;  %v9368_v1 = vld [vmem:[#allocation8 + $0x894] sm:$0xf]  ;;  %v8685_v15 = vld [vmem:[#allocation8 + $0xa6c] sm:$0xf0] }
 0x207   :  { %v3352_v26 = vpop.f32.mrf.mxu2  ;;  %v7571_v29 = vld [vmem:[#allocation8 + $0x198] sm:$0xf]  ;;  %v8044_v13 = vor.u32 %v9263_v38, %v8041_v58  ;;  %v10884_v38 = vld [vmem:[#allocation1] sm:$0xff]  ;;  %v9134_v58 = vld [vmem:[#allocation8 + $0x140] sm:$0xf0] }
 0x208   :  { %3610 = vmatpush.bf16.msra.mxu1 %v7708_v53  ;;  %v8100_v53 = vor.u32 %v9277_v48, %v8097_v52  ;;  %v3353_v21 = vadd.f32 %v3352_v26, %v1408_v7  ;;  %v7372_v52 = vor.u32 %v9095_v47, %v7369_v40  ;;  %v7543_v7 = vld [vmem:[#allocation8 + $0x160] sm:$0xf]  ;;  %v9141_v47 = vld [vmem:[#allocation8 + $0x178] sm:$0xf0]  ;;  %v8436_v40 = vor.u32 %v9361_v16, %v8433_v20  ;;  %v7711_v16 = vld [vmem:[#allocation8 + $0x2b0] sm:$0xf] }
 0x209   :  { %3624 = vmatpush.bf16.msra.mxu2 %v7932_v14  ;;  %3638 = vmatpush.bf16.msra.mxu3 %v8156_v11  ;;  %v9270_v14 = vld [vmem:[#allocation8 + $0x584] sm:$0xf]  ;;  %v8069_v11 = vld [vmem:[#allocation8 + $0x59c] sm:$0xf0]  ;;  %v9183_v20 = vld [vmem:[#allocation8 + $0x2c8] sm:$0xf0] }
 0x20a   :  { %3597 = vmatpush.bf16.msra.mxu0 %v7456_v31  ;;  %v7593_v31 = vld [vmem:[#allocation8 + $0x1e4] sm:$0xf0]  ;;  %v8072_v61 = vor.u32 %v9270_v14, %v8069_v11  ;;  %v9417_v14 = vld [vmem:[#allocation8 + $0xa1c] sm:$0xf]  ;;  %v8657_v11 = vld [vmem:[#allocation8 + $0xa34] sm:$0xf0] }
 0x20c   :  { %3611 = vmatpush.bf16.msra.mxu1 %v7680_v45  ;;  %v7848_v45 = vor.u32 %v9214_v46, %v7845_v4  ;;  %v7796_v4 = vor.u32 %v9204_v30, %v7795_v51 }
 0x20d   :  { %3625 = vmatpush.bf16.msra.mxu2 %v7904_v2  ;;  %3639 = vmatpush.bf16.msra.mxu3 %v8128_v36  ;;  %v3366_v2 = vpop.f32.mrf.mxu3  ;;  %v9207_v36 = vld [vmem:[#allocation8 + $0x38c] sm:$0xf] }
 0x20e   :  { %3598 = vmatpush.bf16.msra.mxu0 %v7428_v43  ;;  %v10882_v48 = vadd.f32 %v3366_v2, %v3353_v21  ;;  %v7596_v43 = vor.u32 %v9151_v6, %v7593_v31  ;;  %v7820_v32 = vor.u32 %v9207_v36, %v7817_v25  ;;  %v8660_v6 = vor.u32 %v9417_v14, %v8657_v11  ;;  %v9354_v31 = vld [vmem:[#allocation8 + $0x824] sm:$0xf]  ;;  %v8629_v36 = vld [vmem:[#allocation8 + $0x9fc] sm:$0xf0]  ;;  %v7515_v25 = vld [vmem:[#allocation8 + $0x128] sm:$0xf] }
 0x20f   :  { %v9410_v2 = vld [vmem:[#allocation8 + $0x9e4] sm:$0xf]  ;;  %v7516_v51 = vor.u32 %v9134_v58, %v7515_v25  ;;  %v9333_v58 = vld [vmem:[#allocation8 + $0x77c] sm:$0xf] }
 0x210   :  { %3612 = vmatpush.bf16.msra.mxu1 %v7652_v63  ;;  %v9148_v63 = vld [vmem:[#allocation8 + $0x1b0] sm:$0xf0]  ;;  %v10887_v21 = vld [vmem:[#allocation1 + $0x12] sm:$0xff] }
 0x211   :  { %3626 = vmatpush.bf16.msra.mxu2 %v7876_v39  ;;  %3640 = vmatpush.bf16.msra.mxu3 %v8100_v53  ;;  %v8464_v39 = vor.u32 %v9368_v1, %v8461_v54  ;;  %v8688_v53 = vor.u32 %v9424_v10, %v8685_v15  ;;  %v7572_v46 = vor.u32 %v9148_v63, %v7571_v29  ;;  %v7739_v1 = vld [vmem:[#allocation8 + $0x2e8] sm:$0xf]  ;;  %v9190_v54 = vld [vmem:[#allocation8 + $0x300] sm:$0xf0]  ;;  %v10890_v10 = vld [vmem:[#allocation1 + $0x9] sm:$0xff] }
 0x212   :  { %3599 = vmatpush.bf16.msra.mxu0 %v7400_v44  ;;  %v7767_v44 = vld [vmem:[#allocation8 + $0x320] sm:$0xf]  ;;  %v10893_v15 = vld [vmem:[#allocation1 + $0x1b] sm:$0xff]  ;;  %v7740_v30 = vor.u32 %v9190_v54, %v7739_v1  ;;  %v8321_v1 = vld [vmem:[#allocation8 + $0x794] sm:$0xf0] }
 0x213   :  { %v8377_v63 = vld [vmem:[#allocation8 + $0x804] sm:$0xf0] }
 0x214   :  { %3613 = vmatpush.bf16.msra.mxu1 %v7624_v12  ;;  %v9197_v12 = vld [vmem:[#allocation8 + $0x338] sm:$0xf0] }
 0x215   :  { %3627 = vmatpush.bf16.msra.mxu2 %v7848_v45  ;;  %3641 = vmatpush.bf16.msra.mxu3 %v8072_v61  ;;  %v8405_v45 = vld [vmem:[#allocation8 + $0x83c] sm:$0xf0]  ;;  %v7544_v61 = vor.u32 %v9141_v47, %v7543_v7  ;;  %v7768_v26 = vor.u32 %v9197_v12, %v7767_v44  ;;  %v9340_v47 = vld [vmem:[#allocation8 + $0x7b4] sm:$0xf]  ;;  %v8349_v44 = vld [vmem:[#allocation8 + $0x7cc] sm:$0xf0] }
 0x216   :  { %3600 = vmatpush.bf16.msra.mxu0 %v7372_v52  ;;  %v8408_v29 = vor.u32 %v9354_v31, %v8405_v45  ;;  %v8632_v52 = vor.u32 %v9410_v2, %v8629_v36  ;;  %v8573_v31 = vld [vmem:[#allocation8 + $0x98c] sm:$0xf0]  ;;  %v7459_v45 = vld [vmem:[#allocation8 + $0xb8] sm:$0xf]  ;;  %v9176_v36 = vld [vmem:[#allocation8 + $0x290] sm:$0xf0]  ;;  %v8352_v25 = vor.u32 %v9340_v47, %v8349_v44 }
 0x217   :  { %v7683_v2 = vld [vmem:[#allocation8 + $0x278] sm:$0xf]  ;;  %v8293_v47 = vld [vmem:[#allocation8 + $0x75c] sm:$0xf0] }
 0x218   :  { %3614 = vmatpush.bf16.msra.mxu1 %v7596_v43  ;;  %v9347_v43 = vld [vmem:[#allocation8 + $0x7ec] sm:$0xf]  ;;  %v3392_v7 = vpop.f32.mrf.mxu1 }
 0x219   :  { %3628 = vmatpush.bf16.msra.mxu2 %v7820_v32  ;;  %3642 = vmatpush.bf16.msra.mxu3 %v8044_v13  ;;  %v9403_v32 = vld [vmem:[#allocation8 + $0x9ac] sm:$0xf]  ;;  %v8601_v13 = vld [vmem:[#allocation8 + $0x9c4] sm:$0xf0]  ;;  %v8380_v14 = vor.u32 %v9347_v43, %v8377_v63  ;;  %v9389_v43 = vld [vmem:[#allocation8 + $0x93c] sm:$0xf] }
 0x21a   :  { %3649 = vmatpush.bf16.msrb.mxu0 %v8464_v39  ;;  %v7487_v39 = vld [vmem:[#allocation8 + $0xf0] sm:$0xf]  ;;  %v8604_v11 = vor.u32 %v9403_v32, %v8601_v13  ;;  %v8545_v63 = vld [vmem:[#allocation8 + $0x954] sm:$0xf0]  ;;  %v9113_v13 = vld [vmem:[#allocation8 + $0x98] sm:$0xf0] }
 0x21b   :  { %3601 = vmatmul.bf16.vlgmr.msra.gmra.mxu0 %v10884_v38  ;;  %3615 = vmatmul.bf16.vlgmr.msra.gmra.mxu1 %v10890_v10 }
 0x21c   :  { %3663 = vmatpush.bf16.msrb.mxu1 %v8688_v53  ;;  %3629 = vmatmul.bf16.vlgmr.msra.gmra.mxu2 %v10887_v21  ;;  %v9127_v53 = vld [vmem:[#allocation8 + $0x108] sm:$0xf0] }
 0x21d   :  { %3677 = vmatpush.bf16.msrb.mxu2 %v7572_v46  ;;  %3691 = vmatpush.bf16.msrb.mxu3 %v7796_v4  ;;  %v3378_v46 = vpop.f32.mrf.mxu0  ;;  %v7488_v12 = vor.u32 %v9127_v53, %v7487_v39  ;;  %v7655_v39 = vld [vmem:[#allocation8 + $0x240] sm:$0xf]  ;;  %v9169_v53 = vld [vmem:[#allocation8 + $0x258] sm:$0xf0] }
 0x21e   :  { %3643 = vmatmul.bf16.vlgmr.msra.gmra.mxu3 %v10893_v15  ;;  %3650 = vmatpush.bf16.msrb.mxu0 %v8436_v40  ;;  %v3379_v4 = vadd.f32 %v3378_v46, %v10876_v49  ;;  %v7712_v40 = vor.u32 %v9183_v20, %v7711_v16  ;;  %v8324_v20 = vor.u32 %v9333_v58, %v8321_v1  ;;  %v9375_v58 = vld [vmem:[#allocation8 + $0x8cc] sm:$0xf]  ;;  %v8489_v1 = vld [vmem:[#allocation8 + $0x8e4] sm:$0xf0] }
 0x220   :  { %3664 = vmatpush.bf16.msrb.mxu1 %v8660_v6  ;;  %v9396_v6 = vld [vmem:[#allocation8 + $0x974] sm:$0xf] }
 0x221   :  { %3678 = vmatpush.bf16.msrb.mxu2 %v7544_v61  ;;  %3692 = vmatpush.bf16.msrb.mxu3 %v7768_v26  ;;  %v3393_v61 = vadd.f32 %v3392_v7, %v3379_v4  ;;  %v9120_v26 = vld [vmem:[#allocation8 + $0xd0] sm:$0xf0]  ;;  %v8576_v49 = vor.u32 %v9396_v6, %v8573_v31  ;;  %v3420_v32 = vpop.f32.mrf.mxu3  ;;  %v9326_v7 = vld [vmem:[#allocation8 + $0x744] sm:$0xf]  ;;  %v8517_v6 = vld [vmem:[#allocation8 + $0x91c] sm:$0xf0] }
 0x222   :  { %3651 = vmatpush.bf16.msrb.mxu0 %v8408_v29  ;;  %v7460_v54 = vor.u32 %v9120_v26, %v7459_v45  ;;  %v7684_v29 = vor.u32 %v9176_v36, %v7683_v2  ;;  %v7403_v31 = vld [vmem:[#allocation8 + $0x48] sm:$0xf]  ;;  %v9162_v2 = vld [vmem:[#allocation8 + $0x220] sm:$0xf0]  ;;  %v9319_v36 = vld [vmem:[#allocation8 + $0x70c] sm:$0xf] }
 0x223   :  { %v7627_v26 = vld [vmem:[#allocation8 + $0x208] sm:$0xf] }
 0x224   :  { %3665 = vmatpush.bf16.msrb.mxu1 %v8632_v52  ;;  %v3406_v52 = vpop.f32.mrf.mxu2 }
 0x225   :  { %3679 = vmatpush.bf16.msrb.mxu2 %v7516_v51  ;;  %3693 = vmatpush.bf16.msrb.mxu3 %v7740_v30  ;;  %v7431_v51 = vld [vmem:[#allocation8 + $0x80] sm:$0xf]  ;;  %v3407_v30 = vadd.f32 %v3406_v52, %v3393_v61  ;;  %v3380_v16 = vpop.f32.mrf.mxu0  ;;  %v9106_v61 = vld [vmem:[#allocation8 + $0x60] sm:$0xf0] }
 0x226   :  { %3652 = vmatpush.bf16.msrb.mxu0 %v8380_v14  ;;  %v3381_v46 = vadd.f32 %v3380_v16, %v10882_v48  ;;  %v8548_v14 = vor.u32 %v9389_v43, %v8545_v63  ;;  %v7432_v44 = vor.u32 %v9113_v13, %v7431_v51  ;;  %v8296_v48 = vor.u32 %v9326_v7, %v8293_v47  ;;  %v7375_v43 = vld [vmem:[#allocation8 + $0x10] sm:$0xf]  ;;  %v9099_v63 = vld [vmem:[#allocation8 + $0x28] sm:$0xf0]  ;;  %v8243_v16 = vld [vmem:[#allocation8 + $0x6d8] sm:$0xf] }
 0x227   :  { %v10898_v4 = vadd.f32 %v3420_v32, %v3407_v30  ;;  %v7599_v51 = vld [vmem:[#allocation8 + $0x1d0] sm:$0xf]  ;;  %v9155_v13 = vld [vmem:[#allocation8 + $0x1e8] sm:$0xf0]  ;;  %v8492_v7 = vor.u32 %v9375_v58, %v8489_v1  ;;  %v9372_v47 = vld [vmem:[#allocation8 + $0x8b0] sm:$0xf0] }
 0x228   :  { %3666 = vmatpush.bf16.msrb.mxu1 %v8604_v11  ;;  %v3394_v11 = vpop.f32.mrf.mxu1  ;;  %v9421_v58 = vld [vmem:[#allocation8 + $0xa38] sm:$0xf0] }
 0x229   :  { %3680 = vmatpush.bf16.msrb.mxu2 %v7488_v12  ;;  %3694 = vmatpush.bf16.msrb.mxu3 %v7712_v40  ;;  %v7656_v12 = vor.u32 %v9169_v53, %v7655_v39  ;;  %v9382_v40 = vld [vmem:[#allocation8 + $0x904] sm:$0xf]  ;;  %v3395_v45 = vadd.f32 %v3394_v11, %v3381_v46  ;;  %v3422_v32 = vpop.f32.mrf.mxu3  ;;  %v8019_v39 = vld [vmem:[#allocation8 + $0x518] sm:$0xf]  ;;  %v9260_v53 = vld [vmem:[#allocation8 + $0x530] sm:$0xf0] }
 0x22a   :  { %3653 = vmatpush.bf16.msrb.mxu0 %v8352_v25  ;;  %v8520_v25 = vor.u32 %v9382_v40, %v8517_v6  ;;  %v8467_v46 = vld [vmem:[#allocation8 + $0x898] sm:$0xf]  ;;  %v7376_v40 = vor.u32 %v9099_v63, %v7375_v43  ;;  %v7600_v6 = vor.u32 %v9155_v13, %v7599_v51  ;;  %v9246_v43 = vld [vmem:[#allocation8 + $0x4c0] sm:$0xf0]  ;;  %v8411_v13 = vld [vmem:[#allocation8 + $0x828] sm:$0xf] }
 0x22c   :  { %3667 = vmatpush.bf16.msrb.mxu1 %v8576_v49  ;;  %v8265_v49 = vld [vmem:[#allocation8 + $0x724] sm:$0xf0]  ;;  %v3408_v52 = vpop.f32.mrf.mxu2 }
 0x22d   :  { %3681 = vmatpush.bf16.msrb.mxu2 %v7460_v54  ;;  %3695 = vmatpush.bf16.msrb.mxu3 %v7684_v29  ;;  %v7404_v54 = vor.u32 %v9106_v61, %v7403_v31  ;;  %v7628_v29 = vor.u32 %v9162_v2, %v7627_v26  ;;  %v3409_v30 = vadd.f32 %v3408_v52, %v3395_v45  ;;  %v7991_v61 = vld [vmem:[#allocation8 + $0x4e0] sm:$0xf]  ;;  %v9253_v26 = vld [vmem:[#allocation8 + $0x4f8] sm:$0xf0] }
 0x22e   :  { %3654 = vmatpush.bf16.msrb.mxu0 %v8324_v20  ;;  %v9316_v20 = vld [vmem:[#allocation8 + $0x6f0] sm:$0xf0]  ;;  %v8268_v11 = vor.u32 %v9319_v36, %v8265_v49  ;;  %v8020_v31 = vor.u32 %v9260_v53, %v8019_v39  ;;  %v8468_v2 = vor.u32 %v9372_v47, %v8467_v46  ;;  %v9365_v36 = vld [vmem:[#allocation8 + $0x878] sm:$0xf0]  ;;  %v8663_v49 = vld [vmem:[#allocation8 + $0xa20] sm:$0xf]  ;;  %v7992_v1 = vor.u32 %v9253_v26, %v7991_v61 }
 0x22f   :  { %v8244_v45 = vor.u32 %v9316_v20, %v8243_v16  ;;  %v8664_v51 = vor.u32 %v9421_v58, %v8663_v49  ;;  %v10902_v39 = vld [vmem:[#allocation1 + $0x24] sm:$0xff]  ;;  %v9358_v53 = vld [vmem:[#allocation8 + $0x840] sm:$0xf0]  ;;  %v8635_v16 = vld [vmem:[#allocation8 + $0x9e8] sm:$0xf] }
 0x230   :  { %3668 = vmatpush.bf16.msrb.mxu1 %v8548_v14  ;;  %v10900_v14 = vadd.f32 %v3422_v32, %v3409_v30  ;;  %v8187_v30 = vld [vmem:[#allocation8 + $0x668] sm:$0xf]  ;;  %v9302_v32 = vld [vmem:[#allocation8 + $0x680] sm:$0xf0]  ;;  %v10906_v46 = vld [vmem:[#allocation1 + $0x2d] sm:$0xff] }
 0x231   :  { %3682 = vmatpush.bf16.msrb.mxu2 %v7432_v44  ;;  %3696 = vmatpush.bf16.msrb.mxu3 %v7656_v12  ;;  %v8691_v44 = vld [vmem:[#allocation8 + $0xa58] sm:$0xf]  ;;  %v9428_v12 = vld [vmem:[#allocation8 + $0xa70] sm:$0xf0]  ;;  %v9414_v20 = vld [vmem:[#allocation8 + $0xa00] sm:$0xf0] }
 0x232   :  { %3655 = vmatpush.bf16.msrb.mxu0 %v8296_v48  ;;  %v8692_v52 = vor.u32 %v9428_v12, %v8691_v44  ;;  %v9309_v48 = vld [vmem:[#allocation8 + $0x6b8] sm:$0xf0]  ;;  %v9239_v47 = vld [vmem:[#allocation8 + $0x488] sm:$0xf0]  ;;  %v8412_v44 = vor.u32 %v9358_v53, %v8411_v13  ;;  %v8636_v12 = vor.u32 %v9414_v20, %v8635_v16  ;;  %v8607_v61 = vld [vmem:[#allocation8 + $0x9b0] sm:$0xf] }
 0x233   :  { %v9407_v26 = vld [vmem:[#allocation8 + $0x9c8] sm:$0xf0]  ;;  %v9232_v49 = vld [vmem:[#allocation8 + $0x450] sm:$0xf0]  ;;  %v7879_v53 = vld [vmem:[#allocation8 + $0x400] sm:$0xf] }
 0x234   :  { %3669 = vmatpush.bf16.msrb.mxu1 %v8520_v25  ;;  %v8439_v25 = vld [vmem:[#allocation8 + $0x860] sm:$0xf]  ;;  %v9225_v16 = vld [vmem:[#allocation8 + $0x418] sm:$0xf0] }
 0x235   :  { %3683 = vmatpush.bf16.msrb.mxu2 %v7404_v54  ;;  %3697 = vmatpush.bf16.msrb.mxu3 %v7628_v29  ;;  %v8216_v54 = vor.u32 %v9309_v48, %v8215_v57  ;;  %v7963_v29 = vld [vmem:[#allocation8 + $0x4a8] sm:$0xf]  ;;  %v8440_v63 = vor.u32 %v9365_v36, %v8439_v25  ;;  %v7907_v36 = vld [vmem:[#allocation8 + $0x438] sm:$0xf] }
 0x236   :  { %3656 = vmatpush.bf16.msrb.mxu0 %v8268_v11  ;;  %v7964_v57 = vor.u32 %v9246_v43, %v7963_v29  ;;  %v8188_v11 = vor.u32 %v9302_v32, %v8187_v30  ;;  %v9288_v29 = vld [vmem:[#allocation8 + $0x610] sm:$0xf0]  ;;  %v8355_v43 = vld [vmem:[#allocation8 + $0x7b8] sm:$0xf]  ;;  %v7908_v32 = vor.u32 %v9232_v49, %v7907_v36  ;;  %v9218_v36 = vld [vmem:[#allocation8 + $0x3e0] sm:$0xf0] }
 0x237   :  { %v9400_v30 = vld [vmem:[#allocation8 + $0x990] sm:$0xf0] }
 0x238   :  { %3670 = vmatpush.bf16.msrb.mxu1 %v8492_v7  ;;  %v7935_v7 = vld [vmem:[#allocation8 + $0x470] sm:$0xf]  ;;  %v10912_v25 = vpop.f32.mrf.mxu1 }
 0x239   :  { %3684 = vmatpush.bf16.msrb.mxu2 %v7376_v40  ;;  %3698 = vmatpush.bf16.msrb.mxu3 %v7600_v6  ;;  %v8159_v40 = vld [vmem:[#allocation8 + $0x630] sm:$0xf]  ;;  %v9295_v6 = vld [vmem:[#allocation8 + $0x648] sm:$0xf0] }
 0x23a   :  { %3705 = vmatpush.bf16.msra.mxu0 %v8020_v31  ;;  %v8383_v31 = vld [vmem:[#allocation8 + $0x7f0] sm:$0xf]  ;;  %v8160_v48 = vor.u32 %v9295_v6, %v8159_v40  ;;  %v8551_v40 = vld [vmem:[#allocation8 + $0x940] sm:$0xf]  ;;  %v9393_v6 = vld [vmem:[#allocation8 + $0x958] sm:$0xf0] }
 0x23b   :  { %3657 = vmatmul.bf16.vlgmr.msrb.gmra.mxu0 %v10902_v39  ;;  %3671 = vmatmul.bf16.vlgmr.msrb.gmra.mxu1 %v10906_v46 }
 0x23c   :  { %3719 = vmatpush.bf16.msra.mxu1 %v8244_v45  ;;  %3685 = vmatmul.bf16.vlgmr.msrb.gmra.mxu2 %v10884_v38  ;;  %v9351_v45 = vld [vmem:[#allocation8 + $0x808] sm:$0xf0] }
 0x23d   :  { %3733 = vmatpush.bf16.msra.mxu2 %v8468_v2  ;;  %3747 = vmatpush.bf16.msra.mxu3 %v8692_v52  ;;  %v10910_v2 = vpop.f32.mrf.mxu0  ;;  %v7936_v52 = vor.u32 %v9239_v47, %v7935_v7  ;;  %v8384_v58 = vor.u32 %v9351_v45, %v8383_v31  ;;  %v9281_v7 = vld [vmem:[#allocation8 + $0x5d8] sm:$0xf0]  ;;  %v8327_v47 = vld [vmem:[#allocation8 + $0x780] sm:$0xf] }
 0x23e   :  { %3699 = vmatmul.bf16.vlgmr.msrb.gmra.mxu3 %v10890_v10  ;;  %3706 = vmatpush.bf16.msra.mxu0 %v7992_v1  ;;  %v8608_v1 = vor.u32 %v9407_v26, %v8607_v61  ;;  %v7880_v61 = vor.u32 %v9225_v16, %v7879_v53  ;;  %v8047_v53 = vld [vmem:[#allocation8 + $0x550] sm:$0xf]  ;;  %v9267_v16 = vld [vmem:[#allocation8 + $0x568] sm:$0xf0] }
 0x240   :  { %3720 = vmatpush.bf16.msra.mxu1 %v8216_v54  ;;  %v8131_v54 = vld [vmem:[#allocation8 + $0x5f8] sm:$0xf] }
 0x241   :  { %3734 = vmatpush.bf16.msra.mxu2 %v8440_v63  ;;  %3748 = vmatpush.bf16.msra.mxu3 %v8664_v51  ;;  %v9344_v63 = vld [vmem:[#allocation8 + $0x7d0] sm:$0xf0]  ;;  %v8579_v51 = vld [vmem:[#allocation8 + $0x978] sm:$0xf]  ;;  %v8132_v13 = vor.u32 %v9288_v29, %v8131_v54  ;;  %v9274_v54 = vld [vmem:[#allocation8 + $0x5a0] sm:$0xf0] }
 0x242   :  { %3707 = vmatpush.bf16.msra.mxu0 %v7964_v57  ;;  %v8356_v20 = vor.u32 %v9344_v63, %v8355_v43  ;;  %v8580_v57 = vor.u32 %v9400_v30, %v8579_v51  ;;  %v8299_v29 = vld [vmem:[#allocation8 + $0x748] sm:$0xf]  ;;  %v9386_v63 = vld [vmem:[#allocation8 + $0x920] sm:$0xf0]  ;;  %v7823_v51 = vld [vmem:[#allocation8 + $0x390] sm:$0xf] }
 0x243   :  { %v8523_v43 = vld [vmem:[#allocation8 + $0x908] sm:$0xf] }
 0x244   :  { %3721 = vmatpush.bf16.msra.mxu1 %v8188_v11  ;;  %v8103_v11 = vld [vmem:[#allocation8 + $0x5c0] sm:$0xf] }
 0x245   :  { %3735 = vmatpush.bf16.msra.mxu2 %v8412_v44  ;;  %3749 = vmatpush.bf16.msra.mxu3 %v8636_v12  ;;  %v1436_v44 = vadd.f32 %v10843_v56, %v10841_v28  ;;  %v9337_v12 = vld [vmem:[#allocation8 + $0x798] sm:$0xf0]  ;;  %v3436_v31 = vpop.f32.mrf.mxu0  ;;  %v8104_v26 = vor.u32 %v9281_v7, %v8103_v11  ;;  %v9330_v56 = vld [vmem:[#allocation8 + $0x760] sm:$0xf0]  ;;  %v8271_v11 = vld [vmem:[#allocation8 + $0x710] sm:$0xf] }
 0x246   :  { %3708 = vmatpush.bf16.msra.mxu0 %v7936_v52  ;;  %v3450_v52 = vpop.f32.mrf.mxu1  ;;  %v8328_v49 = vor.u32 %v9337_v12, %v8327_v47  ;;  %v9323_v7 = vld [vmem:[#allocation8 + $0x728] sm:$0xf0]  ;;  %v8495_v47 = vld [vmem:[#allocation8 + $0x8d0] sm:$0xf]  ;;  %v9145_v12 = vld [vmem:[#allocation8 + $0x19c] sm:$0xf] }
 0x247   :  { %v3437_v45 = vadd.f32 %v3436_v31, %v1436_v44  ;;  %v9379_v44 = vld [vmem:[#allocation8 + $0x8e8] sm:$0xf0]  ;;  %v7797_v31 = vld [vmem:[#allocation8 + $0x374] sm:$0xf0] }
 0x248   :  { %3722 = vmatpush.bf16.msra.mxu1 %v8160_v48  ;;  %v7851_v48 = vld [vmem:[#allocation8 + $0x3c8] sm:$0xf] }
 0x249   :  { %3736 = vmatpush.bf16.msra.mxu2 %v8384_v58  ;;  %3750 = vmatpush.bf16.msra.mxu3 %v8608_v1  ;;  %v8552_v58 = vor.u32 %v9393_v6, %v8551_v40  ;;  %v8075_v1 = vld [vmem:[#allocation8 + $0x588] sm:$0xf]  ;;  %v10916_v28 = vadd.f32 %v3450_v52, %v3437_v45  ;;  %v7852_v30 = vor.u32 %v9218_v36, %v7851_v48  ;;  %v7573_v40 = vld [vmem:[#allocation8 + $0x1b4] sm:$0xf0]  ;;  %v9201_v6 = vld [vmem:[#allocation8 + $0x35c] sm:$0xf] }
 0x24a   :  { %3709 = vmatpush.bf16.msra.mxu0 %v7908_v32  ;;  %v8076_v32 = vor.u32 %v9274_v54, %v8075_v1  ;;  %v9257_v45 = vld [vmem:[#allocation8 + $0x51c] sm:$0xf]  ;;  %v8021_v52 = vld [vmem:[#allocation8 + $0x534] sm:$0xf0]  ;;  %v3435_v1 = vadd.f32 %v10910_v2, %v10835_v55  ;;  %v3462_v54 = vpop.f32.mrf.mxu2  ;;  %v3476_v55 = vpop.f32.mrf.mxu3 }
 0x24b   :  { %v9313_v48 = vld [vmem:[#allocation8 + $0x6dc] sm:$0xf]  ;;  %v8245_v36 = vld [vmem:[#allocation8 + $0x6f4] sm:$0xf0]  ;;  %v8024_v42 = vor.u32 %v9257_v45, %v8021_v52 }
 0x24c   :  { %3723 = vmatpush.bf16.msra.mxu1 %v8132_v13  ;;  %v9211_v13 = vld [vmem:[#allocation8 + $0x3a8] sm:$0xf0] }
 0x24d   :  { %3737 = vmatpush.bf16.msra.mxu2 %v8356_v20  ;;  %3751 = vmatpush.bf16.msra.mxu3 %v8580_v57  ;;  %v8300_v20 = vor.u32 %v9330_v56, %v8299_v29  ;;  %v8524_v57 = vor.u32 %v9386_v63, %v8523_v43  ;;  %v7576_v29 = vor.u32 %v9145_v12, %v7573_v40  ;;  %v9138_v43 = vld [vmem:[#allocation8 + $0x164] sm:$0xf]  ;;  %v7545_v63 = vld [vmem:[#allocation8 + $0x17c] sm:$0xf0]  ;;  %v9187_v40 = vld [vmem:[#allocation8 + $0x2ec] sm:$0xf] }
 0x24e   :  { %3710 = vmatpush.bf16.msra.mxu0 %v7880_v61  ;;  %v7824_v61 = vor.u32 %v9211_v13, %v7823_v51  ;;  %v7800_v56 = vor.u32 %v9201_v6, %v7797_v31  ;;  %v7769_v51 = vld [vmem:[#allocation8 + $0x33c] sm:$0xf0]  ;;  %v9250_v13 = vld [vmem:[#allocation8 + $0x4e4] sm:$0xf]  ;;  %v7548_v2 = vor.u32 %v9138_v43, %v7545_v63  ;;  %v7741_v6 = vld [vmem:[#allocation8 + $0x304] sm:$0xf0] }
 0x24f   :  { %v9243_v31 = vld [vmem:[#allocation8 + $0x4ac] sm:$0xf]  ;;  %v7744_v52 = vor.u32 %v9187_v40, %v7741_v6  ;;  %v7937_v63 = vld [vmem:[#allocation8 + $0x48c] sm:$0xf0] }
 0x250   :  { %3724 = vmatpush.bf16.msra.mxu1 %v8104_v26  ;;  %v8048_v26 = vor.u32 %v9267_v16, %v8047_v53  ;;  %v7993_v53 = vld [vmem:[#allocation8 + $0x4fc] sm:$0xf0]  ;;  %v9306_v16 = vld [vmem:[#allocation8 + $0x6a4] sm:$0xf] }
 0x251   :  { %3738 = vmatpush.bf16.msra.mxu2 %v8328_v49  ;;  %3752 = vmatpush.bf16.msra.mxu3 %v8552_v58  ;;  %v8272_v49 = vor.u32 %v9323_v7, %v8271_v11  ;;  %v8496_v58 = vor.u32 %v9379_v44, %v8495_v47  ;;  %v9131_v7 = vld [vmem:[#allocation8 + $0x12c] sm:$0xf]  ;;  %v7517_v47 = vld [vmem:[#allocation8 + $0x144] sm:$0xf0]  ;;  %v7996_v44 = vor.u32 %v9250_v13, %v7993_v53 }
 0x252   :  { %3711 = vmatpush.bf16.msra.mxu0 %v7852_v30  ;;  %v8248_v30 = vor.u32 %v9313_v48, %v8245_v36  ;;  %v9124_v48 = vld [vmem:[#allocation8 + $0xf4] sm:$0xf]  ;;  %v7489_v36 = vld [vmem:[#allocation8 + $0x10c] sm:$0xf0]  ;;  %v3464_v43 = vpop.f32.mrf.mxu2  ;;  %v3478_v40 = vpop.f32.mrf.mxu3 }
 0x253   :  { %v7492_v53 = vor.u32 %v9124_v48, %v7489_v36 }
 0x254   :  { %3725 = vmatpush.bf16.msra.mxu1 %v8076_v32  ;;  %v9194_v32 = vld [vmem:[#allocation8 + $0x324] sm:$0xf] }
 0x255   :  { %3739 = vmatpush.bf16.msra.mxu2 %v8300_v20  ;;  %3753 = vmatpush.bf16.msra.mxu3 %v8524_v57  ;;  %v8217_v20 = vld [vmem:[#allocation8 + $0x6bc] sm:$0xf0]  ;;  %v3449_v57 = vadd.f32 %v10912_v25, %v3435_v1  ;;  %v7772_v11 = vor.u32 %v9194_v32, %v7769_v51  ;;  %v7965_v25 = vld [vmem:[#allocation8 + $0x4c4] sm:$0xf0]  ;;  %v9180_v1 = vld [vmem:[#allocation8 + $0x2b4] sm:$0xf] }
 0x256   :  { %3712 = vmatpush.bf16.msra.mxu0 %v7824_v61  ;;  %v8220_v12 = vor.u32 %v9306_v16, %v8217_v20  ;;  %v9299_v61 = vld [vmem:[#allocation8 + $0x66c] sm:$0xf]  ;;  %v8161_v32 = vld [vmem:[#allocation8 + $0x64c] sm:$0xf0] }
 0x257   :  { %v3463_v45 = vadd.f32 %v3462_v54, %v3449_v57  ;;  %v7713_v54 = vld [vmem:[#allocation8 + $0x2cc] sm:$0xf0]  ;;  %v9117_v57 = vld [vmem:[#allocation8 + $0xbc] sm:$0xf] }
 0x258   :  { %3726 = vmatpush.bf16.msra.mxu1 %v8048_v26  ;;  %v8189_v26 = vld [vmem:[#allocation8 + $0x684] sm:$0xf0]  ;;  %v3490_v51 = vpop.f32.mrf.mxu0  ;;  %v7716_v16 = vor.u32 %v9180_v1, %v7713_v54  ;;  %v3504_v20 = vpop.f32.mrf.mxu1  ;;  %v7657_v1 = vld [vmem:[#allocation8 + $0x25c] sm:$0xf0]  ;;  %v9222_v54 = vld [vmem:[#allocation8 + $0x404] sm:$0xf] }
 0x259   :  { %3740 = vmatpush.bf16.msra.mxu2 %v8272_v49  ;;  %3754 = vmatpush.bf16.msra.mxu3 %v8496_v58  ;;  %v7968_v49 = vor.u32 %v9243_v31, %v7965_v25  ;;  %v8192_v58 = vor.u32 %v9299_v61, %v8189_v26  ;;  %v7909_v31 = vld [vmem:[#allocation8 + $0x454] sm:$0xf0] }
 0x25a   :  { %3761 = vmatpush.bf16.msrb.mxu0 %v7576_v29  ;;  %v9236_v29 = vld [vmem:[#allocation8 + $0x474] sm:$0xf]  ;;  %v8133_v25 = vld [vmem:[#allocation8 + $0x614] sm:$0xf0] }
 0x25b   :  { %3713 = vmatmul.bf16.vlgmr.msra.gmra.mxu0 %v10887_v21  ;;  %3727 = vmatmul.bf16.vlgmr.msra.gmra.mxu1 %v10893_v15 }
 0x25c   :  { %3775 = vmatpush.bf16.msrb.mxu1 %v7800_v56  ;;  %3741 = vmatmul.bf16.vlgmr.msra.gmra.mxu2 %v10902_v39  ;;  %v3477_v56 = vadd.f32 %v3476_v55, %v3463_v45  ;;  %v9173_v55 = vld [vmem:[#allocation8 + $0x27c] sm:$0xf] }
 0x25d   :  { %3789 = vmatpush.bf16.msrb.mxu2 %v8024_v42  ;;  %3803 = vmatpush.bf16.msrb.mxu3 %v8248_v30  ;;  %v7520_v42 = vor.u32 %v9131_v7, %v7517_v47  ;;  %v9292_v30 = vld [vmem:[#allocation8 + $0x634] sm:$0xf]  ;;  %v7940_v7 = vor.u32 %v9236_v29, %v7937_v63  ;;  %v9285_v45 = vld [vmem:[#allocation8 + $0x5fc] sm:$0xf] }
 0x25e   :  { %3755 = vmatmul.bf16.vlgmr.msra.gmra.mxu3 %v10906_v46  ;;  %3762 = vmatpush.bf16.msrb.mxu0 %v7548_v2  ;;  %v3491_v13 = vadd.f32 %v3490_v51, %v3477_v56  ;;  %v7461_v2 = vld [vmem:[#allocation8 + $0xd4] sm:$0xf0]  ;;  %v8164_v47 = vor.u32 %v9292_v30, %v8161_v32  ;;  %v7881_v30 = vld [vmem:[#allocation8 + $0x41c] sm:$0xf0]  ;;  %v9278_v32 = vld [vmem:[#allocation8 + $0x5c4] sm:$0xf] }
 0x25f   :  { %v8105_v51 = vld [vmem:[#allocation8 + $0x5dc] sm:$0xf0] }
 0x260   :  { %3776 = vmatpush.bf16.msrb.mxu1 %v7772_v11  ;;  %v3465_v11 = vadd.f32 %v3464_v43, %v10916_v28  ;;  %v3505_v6 = vadd.f32 %v3504_v20, %v3491_v13  ;;  %v7464_v28 = vor.u32 %v9117_v57, %v7461_v2  ;;  %v3492_v13 = vpop.f32.mrf.mxu0  ;;  %v3506_v57 = vpop.f32.mrf.mxu1  ;;  %v9103_v2 = vld [vmem:[#allocation8 + $0x4c] sm:$0xf] }
 0x261   :  { %3790 = vmatpush.bf16.msrb.mxu2 %v7996_v44  ;;  %3804 = vmatpush.bf16.msrb.mxu3 %v8220_v12  ;;  %v7685_v44 = vld [vmem:[#allocation8 + $0x294] sm:$0xf0]  ;;  %v9229_v12 = vld [vmem:[#allocation8 + $0x43c] sm:$0xf] }
 0x262   :  { %3763 = vmatpush.bf16.msrb.mxu0 %v7520_v42  ;;  %v3943_v61 = vrot.slane %v3505_v6, 6  ;;  %v7688_v26 = vor.u32 %v9173_v55, %v7685_v44  ;;  %v9110_v42 = vld [vmem:[#allocation8 + $0x84] sm:$0xf]  ;;  %v3479_v48 = vadd.f32 %v3478_v40, %v3465_v11  ;;  %v7912_v36 = vor.u32 %v9229_v12, %v7909_v31  ;;  %v7405_v11 = vld [vmem:[#allocation8 + $0x64] sm:$0xf0] }
 0x263   :  { %v9159_v55 = vld [vmem:[#allocation8 + $0x20c] sm:$0xf]  ;;  %v7629_v44 = vld [vmem:[#allocation8 + $0x224] sm:$0xf0] }
 0x264   :  { %3777 = vmatpush.bf16.msrb.mxu1 %v7744_v52  ;;  %v7433_v52 = vld [vmem:[#allocation8 + $0x9c] sm:$0xf0]  ;;  %v10928_v29 = vsel %vm3953_vm0, %v10898_v4, %v3943_v61  ;;  %v10932_v56 = vsel %vm3961_vm2, %v10898_v4, %v3943_v61  ;;  %v10936_v43 = vsel %vm3955_vm1, %v10898_v4, %v3943_v61  ;;  %v10940_v63 = vsel %vm3963_vm3, %v3943_v61, %v10898_v4  ;;  %v9215_v4 = vld [vmem:[#allocation8 + $0x3cc] sm:$0xf]  ;;  %v7853_v40 = vld [vmem:[#allocation8 + $0x3e4] sm:$0xf0] }
 0x265   :  { %3791 = vmatpush.bf16.msrb.mxu2 %v7968_v49  ;;  %3805 = vmatpush.bf16.msrb.mxu3 %v8192_v58  ;;  %v8136_v49 = vor.u32 %v9285_v45, %v8133_v25  ;;  %v9166_v58 = vld [vmem:[#allocation8 + $0x244] sm:$0xf]  ;;  %v9271_v6 = vld [vmem:[#allocation8 + $0x58c] sm:$0xf]  ;;  %v8077_v31 = vld [vmem:[#allocation8 + $0x5a4] sm:$0xf0] }
 0x266   :  { %3764 = vmatpush.bf16.msrb.mxu0 %v7492_v53  ;;  %v3493_v53 = vadd.f32 %v3492_v13, %v3479_v48  ;;  %v7660_v20 = vor.u32 %v9166_v58, %v7657_v1  ;;  %v9096_v45 = vld [vmem:[#allocation8 + $0x14] sm:$0xf]  ;;  %v7377_v25 = vld [vmem:[#allocation8 + $0x2c] sm:$0xf0]  ;;  %v7856_v48 = vor.u32 %v9215_v4, %v7853_v40 }
 0x267   :  { %v7825_v58 = vld [vmem:[#allocation8 + $0x3ac] sm:$0xf0]  ;;  %v9264_v1 = vld [vmem:[#allocation8 + $0x554] sm:$0xf] }
 0x268   :  { %3778 = vmatpush.bf16.msrb.mxu1 %v7716_v16  ;;  %v7436_v16 = vor.u32 %v9110_v42, %v7433_v52  ;;  %v3507_v12 = vadd.f32 %v3506_v57, %v3493_v53  ;;  %v9152_v42 = vld [vmem:[#allocation8 + $0x1d4] sm:$0xf]  ;;  %v7601_v52 = vld [vmem:[#allocation8 + $0x1ec] sm:$0xf0]  ;;  %v9369_v53 = vld [vmem:[#allocation8 + $0x89c] sm:$0xf] }
 0x269   :  { %3792 = vmatpush.bf16.msrb.mxu2 %v7940_v7  ;;  %3806 = vmatpush.bf16.msrb.mxu3 %v8164_v47  ;;  %v7884_v7 = vor.u32 %v9222_v54, %v7881_v30  ;;  %v8108_v47 = vor.u32 %v9278_v32, %v8105_v51  ;;  %v8049_v13 = vld [vmem:[#allocation8 + $0x56c] sm:$0xf0]  ;;  %v8693_v57 = vld [vmem:[#allocation8 + $0xa74] sm:$0xf0] }
 0x26a   :  { %3765 = vmatpush.bf16.msrb.mxu0 %v7464_v28  ;;  %v3948_v61 = vrot.slane %v3507_v12, 6  ;;  %v7408_v28 = vor.u32 %v9103_v2, %v7405_v11  ;;  %v7579_v2 = vld [vmem:[#allocation8 + $0x1a0] sm:$0xf]  ;;  %v7380_v11 = vor.u32 %v9096_v45, %v7377_v25  ;;  %v8052_v12 = vor.u32 %v9264_v1, %v8049_v13  ;;  %v9142_v45 = vld [vmem:[#allocation8 + $0x180] sm:$0xf0] }
 0x26b   :  { %v7775_v25 = vld [vmem:[#allocation8 + $0x328] sm:$0xf]  ;;  %v7523_v13 = vld [vmem:[#allocation8 + $0x130] sm:$0xf] }
 0x26c   :  { %3779 = vmatpush.bf16.msrb.mxu1 %v7688_v26  ;;  %v7632_v26 = vor.u32 %v9159_v55, %v7629_v44  ;;  %v10944_v54 = vsel %vm3953_vm0, %v10900_v14, %v3948_v61  ;;  %v10948_v30 = vsel %vm3961_vm2, %v10900_v14, %v3948_v61  ;;  %v10952_v32 = vsel %vm3955_vm1, %v10900_v14, %v3948_v61  ;;  %v7803_v55 = vld [vmem:[#allocation8 + $0x360] sm:$0xf]  ;;  %v9205_v44 = vld [vmem:[#allocation8 + $0x378] sm:$0xf0]  ;;  %v8637_v1 = vld [vmem:[#allocation8 + $0xa04] sm:$0xf0] }
 0x26d   :  { %3793 = vmatpush.bf16.msrb.mxu2 %v7912_v36  ;;  %3807 = vmatpush.bf16.msrb.mxu3 %v8136_v49  ;;  %v8080_v36 = vor.u32 %v9271_v6, %v8077_v31  ;;  %v9208_v49 = vld [vmem:[#allocation8 + $0x394] sm:$0xf]  ;;  %v10956_v51 = vsel %vm3963_vm3, %v3948_v61, %v10900_v14  ;;  %v9362_v6 = vld [vmem:[#allocation8 + $0x864] sm:$0xf]  ;;  %v8441_v31 = vld [vmem:[#allocation8 + $0x87c] sm:$0xf0]  ;;  %v7804_v35 = vor.u32 %v9205_v44, %v7803_v55 }
 0x26e   :  { %3766 = vmatpush.bf16.msrb.mxu0 %v7436_v16  ;;  %v8469_v16 = vld [vmem:[#allocation8 + $0x8b4] sm:$0xf0]  ;;  %v7828_v4 = vor.u32 %v9208_v49, %v7825_v58  ;;  %v9411_v58 = vld [vmem:[#allocation8 + $0x9ec] sm:$0xf]  ;;  %v9184_v55 = vld [vmem:[#allocation8 + $0x2d0] sm:$0xf0] }
 0x26f   :  { %v8472_v40 = vor.u32 %v9369_v53, %v8469_v16  ;;  %v9135_v53 = vld [vmem:[#allocation8 + $0x148] sm:$0xf0]  ;;  %v7747_v16 = vld [vmem:[#allocation8 + $0x2f0] sm:$0xf]  ;;  %v9341_v44 = vld [vmem:[#allocation8 + $0x7bc] sm:$0xf] }
 0x270   :  { %3780 = vmatpush.bf16.msrb.mxu1 %v7660_v20  ;;  %v9425_v20 = vld [vmem:[#allocation8 + $0xa5c] sm:$0xf] }
 0x271   :  { %3794 = vmatpush.bf16.msrb.mxu2 %v7884_v7  ;;  %3808 = vmatpush.bf16.msrb.mxu3 %v8108_v47  ;;  %v7604_v7 = vor.u32 %v9152_v42, %v7601_v52  ;;  %v9149_v47 = vld [vmem:[#allocation8 + $0x1b8] sm:$0xf0]  ;;  %v8696_v14 = vor.u32 %v9425_v20, %v8693_v57  ;;  %v8668_v42 = vor.u32 %v9418_v33, %v8665_v8  ;;  %v9355_v52 = vld [vmem:[#allocation8 + $0x82c] sm:$0xf] }
 0x272   :  { %3767 = vmatpush.bf16.msrb.mxu0 %v7408_v28  ;;  %v7580_v61 = vor.u32 %v9149_v47, %v7579_v2  ;;  %v9198_v28 = vld [vmem:[#allocation8 + $0x340] sm:$0xf0]  ;;  %v9191_v20 = vld [vmem:[#allocation8 + $0x308] sm:$0xf0]  ;;  %v8640_v33 = vor.u32 %v9411_v58, %v8637_v1  ;;  %v7524_v57 = vor.u32 %v9135_v53, %v7523_v13  ;;  %v7719_v47 = vld [vmem:[#allocation8 + $0x2b8] sm:$0xf] }
 0x273   :  { %v7776_v49 = vor.u32 %v9198_v28, %v7775_v25  ;;  %v7748_v2 = vor.u32 %v9191_v20, %v7747_v16  ;;  %v9177_v25 = vld [vmem:[#allocation8 + $0x298] sm:$0xf0]  ;;  %v8553_v58 = vld [vmem:[#allocation8 + $0x95c] sm:$0xf0]  ;;  %v7439_v1 = vld [vmem:[#allocation8 + $0x88] sm:$0xf] }
 0x274   :  { %3781 = vmatpush.bf16.msrb.mxu1 %v7632_v26  ;;  %v8444_v26 = vor.u32 %v9362_v6, %v8441_v31  ;;  %v8581_v6 = vld [vmem:[#allocation8 + $0x994] sm:$0xf0]  ;;  %v7467_v31 = vld [vmem:[#allocation8 + $0xc0] sm:$0xf]  ;;  %v9114_v13 = vld [vmem:[#allocation8 + $0xa0] sm:$0xf0] }
 0x275   :  { %3795 = vmatpush.bf16.msrb.mxu2 %v7856_v48  ;;  %3809 = vmatpush.bf16.msrb.mxu3 %v8080_v36  ;;  %v8413_v48 = vld [vmem:[#allocation8 + $0x844] sm:$0xf0]  ;;  %v7552_v36 = vor.u32 %v9142_v45, %v7551_v5  ;;  %v9348_v5 = vld [vmem:[#allocation8 + $0x7f4] sm:$0xf]  ;;  %v7691_v45 = vld [vmem:[#allocation8 + $0x280] sm:$0xf] }
 0x276   :  { %3768 = vmatpush.bf16.msrb.mxu0 %v7380_v11  ;;  %v8416_v8 = vor.u32 %v9355_v52, %v8413_v48  ;;  %v8609_v11 = vld [vmem:[#allocation8 + $0x9cc] sm:$0xf0]  ;;  %v8329_v52 = vld [vmem:[#allocation8 + $0x79c] sm:$0xf0]  ;;  %v7663_v53 = vld [vmem:[#allocation8 + $0x248] sm:$0xf] }
 0x277   :  { %v9170_v16 = vld [vmem:[#allocation8 + $0x260] sm:$0xf0] }
 0x278   :  { %3782 = vmatpush.bf16.msrb.mxu1 %v7604_v7  ;;  %v9128_v7 = vld [vmem:[#allocation8 + $0x110] sm:$0xf0] }
 0x279   :  { %3796 = vmatpush.bf16.msrb.mxu2 %v7828_v4  ;;  %3810 = vmatpush.bf16.msrb.mxu3 %v8052_v12  ;;  %v8357_v4 = vld [vmem:[#allocation8 + $0x7d4] sm:$0xf0] }
 0x27a   :  { %3817 = vmatpush.bf16.msra.mxu0 %v8472_v40  ;;  %v7720_v40 = vor.u32 %v9184_v55, %v7719_v47  ;;  %v8360_v28 = vor.u32 %v9341_v44, %v8357_v4  ;;  %v9163_v47 = vld [vmem:[#allocation8 + $0x228] sm:$0xf0]  ;;  %v10962_v55 = vpop.f32.mrf.mxu2 }
 0x27b   :  { %3769 = vmatmul.bf16.vlgmr.msrb.gmra.mxu0 %v10884_v38  ;;  %3783 = vmatmul.bf16.vlgmr.msrb.gmra.mxu1 %v10890_v10  ;;  %v9404_v38 = vld [vmem:[#allocation8 + $0x9b4] sm:$0xf] }
 0x27c   :  { %3831 = vmatpush.bf16.msra.mxu1 %v8696_v14  ;;  %3797 = vmatmul.bf16.vlgmr.msrb.gmra.mxu2 %v10887_v21  ;;  %v7495_v21 = vld [vmem:[#allocation8 + $0xf8] sm:$0xf]  ;;  %v9397_v14 = vld [vmem:[#allocation8 + $0x97c] sm:$0xf] }
 0x27d   :  { %3845 = vmatpush.bf16.msra.mxu2 %v7580_v61  ;;  %3859 = vmatpush.bf16.msra.mxu3 %v7804_v35  ;;  %v8385_v35 = vld [vmem:[#allocation8 + $0x80c] sm:$0xf0]  ;;  %v7496_v12 = vor.u32 %v9128_v7, %v7495_v21  ;;  %v9121_v61 = vld [vmem:[#allocation8 + $0xd8] sm:$0xf0]  ;;  %v9107_v21 = vld [vmem:[#allocation8 + $0x68] sm:$0xf0] }
 0x27e   :  { %3811 = vmatmul.bf16.vlgmr.msrb.gmra.mxu3 %v10893_v15  ;;  %3818 = vmatpush.bf16.msra.mxu0 %v8444_v26  ;;  %v8388_v10 = vor.u32 %v9348_v5, %v8385_v35  ;;  %v8612_v15 = vor.u32 %v9404_v38, %v8609_v11  ;;  %v8584_v26 = vor.u32 %v9397_v14, %v8581_v6  ;;  %v8301_v5 = vld [vmem:[#allocation8 + $0x764] sm:$0xf0]  ;;  %v7411_v11 = vld [vmem:[#allocation8 + $0x50] sm:$0xf] }
 0x27f   :  { %v7468_v48 = vor.u32 %v9121_v61, %v7467_v31  ;;  %v7440_v35 = vor.u32 %v9114_v13, %v7439_v1  ;;  %v8525_v38 = vld [vmem:[#allocation8 + $0x924] sm:$0xf0]  ;;  %v7635_v7 = vld [vmem:[#allocation8 + $0x210] sm:$0xf]  ;;  %v7412_v6 = vor.u32 %v9107_v21, %v7411_v11  ;;  %v7383_v61 = vld [vmem:[#allocation8 + $0x18] sm:$0xf] }
 0x280   :  { %3832 = vmatpush.bf16.msra.mxu1 %v8668_v42  ;;  %v9334_v42 = vld [vmem:[#allocation8 + $0x784] sm:$0xf]  ;;  %v8497_v14 = vld [vmem:[#allocation8 + $0x8ec] sm:$0xf0]  ;;  %v7636_v31 = vor.u32 %v9163_v47, %v7635_v7  ;;  %v9373_v1 = vld [vmem:[#allocation8 + $0x8b8] sm:$0xf0] }
 0x281   :  { %3846 = vmatpush.bf16.msra.mxu2 %v7552_v36  ;;  %3860 = vmatpush.bf16.msra.mxu3 %v7776_v49  ;;  %v7692_v36 = vor.u32 %v9177_v25, %v7691_v45  ;;  %v9390_v49 = vld [vmem:[#allocation8 + $0x944] sm:$0xf]  ;;  %v8332_v20 = vor.u32 %v9334_v42, %v8329_v52  ;;  %v9100_v45 = vld [vmem:[#allocation8 + $0x30] sm:$0xf0]  ;;  %v7607_v25 = vld [vmem:[#allocation8 + $0x1d8] sm:$0xf] }
 0x282   :  { %3819 = vmatpush.bf16.msra.mxu0 %v8416_v8  ;;  %v8556_v8 = vor.u32 %v9390_v49, %v8553_v58  ;;  %v9261_v42 = vld [vmem:[#allocation8 + $0x538] sm:$0xf0]  ;;  %v8251_v52 = vld [vmem:[#allocation8 + $0x6e0] sm:$0xf]  ;;  %v9310_v11 = vld [vmem:[#allocation8 + $0x6c0] sm:$0xf0] }
 0x283   :  { %v8699_v13 = vld [vmem:[#allocation8 + $0xa60] sm:$0xf]  ;;  %v8447_v21 = vld [vmem:[#allocation8 + $0x868] sm:$0xf]  ;;  %v9366_v7 = vld [vmem:[#allocation8 + $0x880] sm:$0xf0] }
 0x284   :  { %3833 = vmatpush.bf16.msra.mxu1 %v8640_v33  ;;  %v9327_v33 = vld [vmem:[#allocation8 + $0x74c] sm:$0xf]  ;;  %v8671_v47 = vld [vmem:[#allocation8 + $0xa28] sm:$0xf] }
 0x285   :  { %3847 = vmatpush.bf16.msra.mxu2 %v7524_v57  ;;  %3861 = vmatpush.bf16.msra.mxu3 %v7748_v2  ;;  %v7664_v57 = vor.u32 %v9170_v16, %v7663_v53  ;;  %v9383_v2 = vld [vmem:[#allocation8 + $0x90c] sm:$0xf]  ;;  %v8304_v44 = vor.u32 %v9327_v33, %v8301_v5  ;;  %v9429_v53 = vld [vmem:[#allocation8 + $0xa78] sm:$0xf0]  ;;  %v7384_v16 = vor.u32 %v9100_v45, %v7383_v61  ;;  %v7999_v5 = vld [vmem:[#allocation8 + $0x4e8] sm:$0xf] }
 0x286   :  { %3820 = vmatpush.bf16.msra.mxu0 %v8388_v10  ;;  %v9320_v10 = vld [vmem:[#allocation8 + $0x714] sm:$0xf]  ;;  %v8528_v4 = vor.u32 %v9383_v2, %v8525_v38  ;;  %v8700_v2 = vor.u32 %v9429_v53, %v8699_v13  ;;  %v8223_v38 = vld [vmem:[#allocation8 + $0x6a8] sm:$0xf]  ;;  %v8448_v61 = vor.u32 %v9366_v7, %v8447_v21  ;;  %v7943_v53 = vld [vmem:[#allocation8 + $0x478] sm:$0xf] }
 0x287   :  { %v7915_v7 = vld [vmem:[#allocation8 + $0x440] sm:$0xf] }
 0x288   :  { %3834 = vmatpush.bf16.msra.mxu1 %v8612_v15  ;;  %v10964_v15 = vpop.f32.mrf.mxu3 }
 0x289   :  { %3848 = vmatpush.bf16.msra.mxu2 %v7496_v12  ;;  %3862 = vmatpush.bf16.msra.mxu3 %v7720_v40  ;;  %v8273_v12 = vld [vmem:[#allocation8 + $0x72c] sm:$0xf0]  ;;  %v9376_v40 = vld [vmem:[#allocation8 + $0x8d4] sm:$0xf] }
 0x28a   :  { %3821 = vmatpush.bf16.msra.mxu0 %v8360_v28  ;;  %v9156_v28 = vld [vmem:[#allocation8 + $0x1f0] sm:$0xf0]  ;;  %v8276_v49 = vor.u32 %v9320_v10, %v8273_v12  ;;  %v8500_v58 = vor.u32 %v9376_v40, %v8497_v14  ;;  %v9422_v10 = vld [vmem:[#allocation8 + $0xa40] sm:$0xf0]  ;;  %v8224_v40 = vor.u32 %v9310_v11, %v8223_v38  ;;  %v7971_v14 = vld [vmem:[#allocation8 + $0x4b0] sm:$0xf] }
 0x28b   :  { %v8672_v45 = vor.u32 %v9422_v10, %v8671_v47  ;;  %v9233_v47 = vld [vmem:[#allocation8 + $0x458] sm:$0xf0] }
 0x28c   :  { %3835 = vmatpush.bf16.msra.mxu1 %v8584_v26  ;;  %v8027_v26 = vld [vmem:[#allocation8 + $0x520] sm:$0xf] }
 0x28d   :  { %3849 = vmatpush.bf16.msra.mxu2 %v7468_v48  ;;  %3863 = vmatpush.bf16.msra.mxu3 %v7692_v36  ;;  %v9317_v48 = vld [vmem:[#allocation8 + $0x6f8] sm:$0xf0]  ;;  %v8475_v36 = vld [vmem:[#allocation8 + $0x8a0] sm:$0xf] }
 0x28e   :  { %3822 = vmatpush.bf16.msra.mxu0 %v8332_v20  ;;  %v7608_v20 = vor.u32 %v9156_v28, %v7607_v25  ;;  %v8252_v33 = vor.u32 %v9317_v48, %v8251_v52  ;;  %v8195_v25 = vld [vmem:[#allocation8 + $0x670] sm:$0xf]  ;;  %v9303_v28 = vld [vmem:[#allocation8 + $0x688] sm:$0xf0] }
 0x28f   :  { %v9750_v52 = vld [vmem:[#allocation1] sm:$0xff]  ;;  %v8196_v13 = vor.u32 %v9303_v28, %v8195_v25  ;;  %v9401_v25 = vld [vmem:[#allocation8 + $0x998] sm:$0xf0] }
 0x290   :  { %3836 = vmatpush.bf16.msra.mxu1 %v8556_v8  ;;  %v8028_v8 = vor.u32 %v9261_v42, %v8027_v26  ;;  %v8419_v26 = vld [vmem:[#allocation8 + $0x830] sm:$0xf]  ;;  %v10972_v42 = vpop.f32.mrf.mxu1  ;;  %v9359_v48 = vld [vmem:[#allocation8 + $0x848] sm:$0xf0] }
 0x291   :  { %3850 = vmatpush.bf16.msra.mxu2 %v7440_v35  ;;  %3864 = vmatpush.bf16.msra.mxu3 %v7664_v57  ;;  %v9254_v35 = vld [vmem:[#allocation8 + $0x500] sm:$0xf0]  ;;  %v8476_v57 = vor.u32 %v9373_v1, %v8475_v36  ;;  %v8643_v36 = vld [vmem:[#allocation8 + $0x9f0] sm:$0xf] }
 0x292   :  { %3823 = vmatpush.bf16.msra.mxu0 %v8304_v44  ;;  %v10966_v44 = vpop.f32.mrf.mxu2  ;;  %v8000_v12 = vor.u32 %v9254_v35, %v7999_v5  ;;  %v8391_v5 = vld [vmem:[#allocation8 + $0x7f8] sm:$0xf]  ;;  %v9352_v35 = vld [vmem:[#allocation8 + $0x810] sm:$0xf0] }
 0x293   :  { %v8392_v10 = vor.u32 %v9352_v35, %v8391_v5  ;;  %v7859_v35 = vld [vmem:[#allocation8 + $0x3d0] sm:$0xf] }
 0x294   :  { %3837 = vmatpush.bf16.msra.mxu1 %v8528_v4  ;;  %v10968_v4 = vpop.f32.mrf.mxu3 }
 0x295   :  { %3851 = vmatpush.bf16.msra.mxu2 %v7412_v6  ;;  %3865 = vmatpush.bf16.msra.mxu3 %v7636_v31  ;;  %v9247_v6 = vld [vmem:[#allocation8 + $0x4c8] sm:$0xf0]  ;;  %v10970_v31 = vpop.f32.mrf.mxu0 }
 0x296   :  { %3824 = vmatpush.bf16.msra.mxu0 %v8276_v49  ;;  %v9415_v49 = vld [vmem:[#allocation8 + $0xa08] sm:$0xf0]  ;;  %v7972_v1 = vor.u32 %v9247_v6, %v7971_v14  ;;  %v9289_v14 = vld [vmem:[#allocation8 + $0x618] sm:$0xf0]  ;;  %v8363_v6 = vld [vmem:[#allocation8 + $0x7c0] sm:$0xf] }
 0x298   :  { %3838 = vmatpush.bf16.msra.mxu1 %v8500_v58  ;;  %v9751_v58 = vld [vmem:[#allocation1 + $0x9] sm:$0xff] }
 0x299   :  { %3852 = vmatpush.bf16.msra.mxu2 %v7384_v16  ;;  %3866 = vmatpush.bf16.msra.mxu3 %v7608_v20  ;;  %v9240_v16 = vld [vmem:[#allocation8 + $0x490] sm:$0xf0]  ;;  %v8420_v20 = vor.u32 %v9359_v48, %v8419_v26  ;;  %v10982_v26 = vpop.f32.mrf.mxu1 }
 0x29a   :  { %3873 = vmatpush.bf16.msrb.mxu0 %v8028_v8  ;;  %v8644_v8 = vor.u32 %v9415_v49, %v8643_v36  ;;  %v10976_v38 = vpop.f32.mrf.mxu2  ;;  %v7944_v11 = vor.u32 %v9240_v16, %v7943_v53  ;;  %v7887_v36 = vld [vmem:[#allocation8 + $0x408] sm:$0xf]  ;;  %v9226_v49 = vld [vmem:[#allocation8 + $0x420] sm:$0xf0] }
 0x29b   :  { %3825 = vmatmul.bf16.vlgmr.msra.gmra.mxu0 %v10902_v39  ;;  %3839 = vmatmul.bf16.vlgmr.msra.gmra.mxu1 %v10906_v46  ;;  %v8167_v39 = vld [vmem:[#allocation8 + $0x638] sm:$0xf]  ;;  %v9282_v53 = vld [vmem:[#allocation8 + $0x5e0] sm:$0xf0]  ;;  %v8335_v16 = vld [vmem:[#allocation8 + $0x788] sm:$0xf] }
 0x29c   :  { %3887 = vmatpush.bf16.msrb.mxu1 %v8252_v33  ;;  %3853 = vmatmul.bf16.vlgmr.msra.gmra.mxu2 %v9750_v52  ;;  %v9296_v33 = vld [vmem:[#allocation8 + $0x650] sm:$0xf0]  ;;  %v10978_v46 = vpop.f32.mrf.mxu3  ;;  %v7916_v52 = vor.u32 %v9233_v47, %v7915_v7  ;;  %v8083_v7 = vld [vmem:[#allocation8 + $0x590] sm:$0xf]  ;;  %v9275_v47 = vld [vmem:[#allocation8 + $0x5a8] sm:$0xf0] }
 0x29d   :  { %3901 = vmatpush.bf16.msrb.mxu2 %v8476_v57  ;;  %3915 = vmatpush.bf16.msrb.mxu3 %v8700_v2  ;;  %v8615_v57 = vld [vmem:[#allocation8 + $0x9b8] sm:$0xf]  ;;  %v9408_v2 = vld [vmem:[#allocation8 + $0x9d0] sm:$0xf0]  ;;  %v8168_v21 = vor.u32 %v9296_v33, %v8167_v39  ;;  %v10980_v28 = vpop.f32.mrf.mxu0  ;;  %v9394_v39 = vld [vmem:[#allocation8 + $0x960] sm:$0xf0]  ;;  %v7888_v33 = vor.u32 %v9226_v49, %v7887_v36 }
 0x29e   :  { %3867 = vmatmul.bf16.vlgmr.msra.gmra.mxu3 %v9751_v58  ;;  %3874 = vmatpush.bf16.msrb.mxu0 %v8000_v12  ;;  %v8616_v12 = vor.u32 %v9408_v2, %v8615_v57  ;;  %v9219_v57 = vld [vmem:[#allocation8 + $0x3e8] sm:$0xf0]  ;;  %v9212_v36 = vld [vmem:[#allocation8 + $0x3b0] sm:$0xf0] }
 0x2a0   :  { %3888 = vmatpush.bf16.msrb.mxu1 %v8224_v40  ;;  %v8139_v40 = vld [vmem:[#allocation8 + $0x600] sm:$0xf] }
 0x2a1   :  { %3902 = vmatpush.bf16.msrb.mxu2 %v8448_v61  ;;  %3916 = vmatpush.bf16.msrb.mxu3 %v8672_v45  ;;  %v9345_v61 = vld [vmem:[#allocation8 + $0x7d8] sm:$0xf0]  ;;  %v8587_v45 = vld [vmem:[#allocation8 + $0x980] sm:$0xf]  ;;  %v8140_v48 = vor.u32 %v9289_v14, %v8139_v40  ;;  %v9331_v40 = vld [vmem:[#allocation8 + $0x768] sm:$0xf0] }
 0x2a2   :  { %3875 = vmatpush.bf16.msrb.mxu0 %v7972_v1  ;;  %v8364_v58 = vor.u32 %v9345_v61, %v8363_v6  ;;  %v8588_v1 = vor.u32 %v9401_v25, %v8587_v45  ;;  %v10984_v2 = vpop.f32.mrf.mxu2  ;;  %v8531_v14 = vld [vmem:[#allocation8 + $0x910] sm:$0xf]  ;;  %v9387_v6 = vld [vmem:[#allocation8 + $0x928] sm:$0xf0]  ;;  %v3616_v45 = vpop.f32.mrf.mxu1  ;;  %v7860_v25 = vor.u32 %v9219_v57, %v7859_v35 }
 0x2a4   :  { %3889 = vmatpush.bf16.msrb.mxu1 %v8196_v13  ;;  %v8111_v13 = vld [vmem:[#allocation8 + $0x5c8] sm:$0xf] }
 0x2a5   :  { %3903 = vmatpush.bf16.msrb.mxu2 %v8420_v20  ;;  %3917 = vmatpush.bf16.msrb.mxu3 %v8644_v8  ;;  %v9338_v20 = vld [vmem:[#allocation8 + $0x7a0] sm:$0xf0]  ;;  %v8559_v8 = vld [vmem:[#allocation8 + $0x948] sm:$0xf]  ;;  %v8112_v5 = vor.u32 %v9282_v53, %v8111_v13  ;;  %v3602_v61 = vpop.f32.mrf.mxu0  ;;  %v9268_v13 = vld [vmem:[#allocation8 + $0x570] sm:$0xf0] }
 0x2a6   :  { %3876 = vmatpush.bf16.msrb.mxu0 %v7944_v11  ;;  %v8336_v11 = vor.u32 %v9338_v20, %v8335_v16  ;;  %v8279_v53 = vld [vmem:[#allocation8 + $0x718] sm:$0xf]  ;;  %v3519_v16 = vadd.f32 %v10962_v55, %v10845_v41  ;;  %v9324_v20 = vld [vmem:[#allocation8 + $0x730] sm:$0xf0] }
 0x2a7   :  { %v8280_v57 = vor.u32 %v9324_v20, %v8279_v53 }
 0x2a8   :  { %3890 = vmatpush.bf16.msrb.mxu1 %v8168_v21  ;;  %v8560_v21 = vor.u32 %v9394_v39, %v8559_v8  ;;  %v8503_v8 = vld [vmem:[#allocation8 + $0x8d8] sm:$0xf]  ;;  %v9380_v39 = vld [vmem:[#allocation8 + $0x8f0] sm:$0xf0] }
 0x2a9   :  { %3904 = vmatpush.bf16.msrb.mxu2 %v8392_v10  ;;  %3918 = vmatpush.bf16.msrb.mxu3 %v8616_v12  ;;  %v8307_v10 = vld [vmem:[#allocation8 + $0x750] sm:$0xf]  ;;  %v10986_v12 = vpop.f32.mrf.mxu3 }
 0x2aa   :  { %3877 = vmatpush.bf16.msrb.mxu0 %v7916_v52  ;;  %v8084_v52 = vor.u32 %v9275_v47, %v8083_v7  ;;  %v8308_v49 = vor.u32 %v9331_v40, %v8307_v10  ;;  %v3630_v35 = vpop.f32.mrf.mxu2  ;;  %v3603_v7 = vadd.f32 %v3602_v61, %v10847_v60  ;;  %v3618_v40 = vpop.f32.mrf.mxu1  ;;  %v9754_v61 = vld [vmem:[#allocation1 + $0x24] sm:$0xff] }
 0x2ac   :  { %3891 = vmatpush.bf16.msrb.mxu1 %v8140_v48  ;;  %v7831_v48 = vld [vmem:[#allocation8 + $0x398] sm:$0xf]  ;;  %v3617_v55 = vadd.f32 %v3616_v45, %v3603_v7 }
 0x2ad   :  { %3905 = vmatpush.bf16.msrb.mxu2 %v8364_v58  ;;  %3919 = vmatpush.bf16.msrb.mxu3 %v8588_v1  ;;  %v8532_v58 = vor.u32 %v9387_v6, %v8531_v14  ;;  %v8055_v1 = vld [vmem:[#allocation8 + $0x558] sm:$0xf]  ;;  %v3604_v41 = vpop.f32.mrf.mxu0  ;;  %v1464_v14 = vadd.f32 %v10851_v27, %v10849_v23  ;;  %v1492_v6 = vadd.f32 %v10859_v59, %v10857_v22 }
 0x2ae   :  { %3878 = vmatpush.bf16.msrb.mxu0 %v7888_v33  ;;  %v7832_v33 = vor.u32 %v9212_v36, %v7831_v48 }
 0x2af   :  { %v3521_v45 = vadd.f32 %v10966_v44, %v1464_v14  ;;  %v3605_v48 = vadd.f32 %v3604_v41, %v1492_v6 }
 0x2b0   :  { %3892 = vmatpush.bf16.msrb.mxu1 %v8112_v5  ;;  %v8056_v5 = vor.u32 %v9268_v13, %v8055_v1 }
 0x2b1   :  { %3906 = vmatpush.bf16.msrb.mxu2 %v8336_v11  ;;  %3920 = vmatpush.bf16.msrb.mxu3 %v8560_v21  ;;  %v8504_v11 = vor.u32 %v9380_v39, %v8503_v8  ;;  %v3533_v21 = vadd.f32 %v10964_v15, %v3519_v16  ;;  %v3644_v47 = vpop.f32.mrf.mxu3  ;;  %v9753_v15 = vld [vmem:[#allocation1 + $0x1b] sm:$0xff]  ;;  %v3535_v22 = vadd.f32 %v10968_v4, %v3521_v45 }
 0x2b2   :  { %3879 = vmatpush.bf16.msrb.mxu0 %v7860_v25  ;;  %v9752_v25 = vld [vmem:[#allocation1 + $0x12] sm:$0xff]  ;;  %v3632_v23 = vpop.f32.mrf.mxu2  ;;  %v3619_v59 = vadd.f32 %v3618_v40, %v3605_v48 }
 0x2b3   :  { %v3547_v10 = vadd.f32 %v10970_v31, %v3533_v21  ;;  %v3631_v31 = vadd.f32 %v3630_v35, %v3617_v55  ;;  %v3549_v53 = vadd.f32 %v10980_v28, %v3535_v22 }
 0x2b4   :  { %3893 = vmatpush.bf16.msrb.mxu1 %v8084_v52  ;;  %v9755_v52 = vld [vmem:[#allocation1 + $0x2d] sm:$0xff]  ;;  %v3633_v16 = vadd.f32 %v3632_v23, %v3619_v59 }
 0x2b5   :  { %3907 = vmatpush.bf16.msrb.mxu2 %v8308_v49  ;;  %3921 = vmatpush.bf16.msrb.mxu3 %v8532_v58  ;;  %v3561_v60 = vadd.f32 %v10972_v42, %v3547_v10  ;;  %v3645_v27 = vadd.f32 %v3644_v47, %v3631_v31 }
 0x2b6   :  { %3880 = vmatpush.bf16.msrb.mxu0 %v7832_v33 }
 0x2b7   :  { %v3575_v36 = vadd.f32 %v10976_v38, %v3561_v60  ;;  %v3563_v38 = vadd.f32 %v10982_v26, %v3549_v53 }
 0x2b8   :  { %3894 = vmatpush.bf16.msrb.mxu1 %v8056_v5  ;;  %v3658_v58 = vpop.f32.mrf.mxu0  ;;  %v3672_v13 = vpop.f32.mrf.mxu1 }
 0x2b9   :  { %3908 = vmatpush.bf16.msrb.mxu2 %v8280_v57  ;;  %3922 = vmatpush.bf16.msrb.mxu3 %v8504_v11  ;;  %v3646_v49 = vpop.f32.mrf.mxu3  ;;  %v3589_v1 = vadd.f32 %v10978_v46, %v3575_v36  ;;  %v3659_v42 = vadd.f32 %v3658_v58, %v3645_v27  ;;  %v3577_v47 = vadd.f32 %v10984_v2, %v3563_v38 }
 0x2ba   :  { %3881 = vmatmul.bf16.vlgmr.msrb.gmra.mxu0 %v9752_v25  ;;  %v3647_v39 = vadd.f32 %v3646_v49, %v3633_v16 }
 0x2bb   :  { %3895 = vmatmul.bf16.vlgmr.msrb.gmra.mxu1 %v9753_v15  ;;  %v3673_v20 = vadd.f32 %v3672_v13, %v3659_v42  ;;  %v3944_v8 = vrot.slane %v3589_v1, 4 }
 0x2bc   :  { %3909 = vmatmul.bf16.vlgmr.msrb.gmra.mxu2 %v9754_v61  ;;  %3923 = vmatmul.bf16.vlgmr.msrb.gmra.mxu3 %v9755_v52 }
 0x2bd   :  { %v3945_v44 = vrot.slane %v3673_v20, 2 }
 0x2bf   :  { %v11004_v33 = vpop.f32.mrf.mxu2  ;;  %v3956_v4 = vsel %vm3955_vm1, %v3944_v8, %v3945_v44  ;;  %v3964_v5 = vsel %vm3963_vm3, %v3945_v44, %v3944_v8  ;;  %v3972_v46 = vsel %vm3953_vm0, %v3944_v8, %v3945_v44  ;;  %v3979_v35 = vsel %vm3961_vm2, %v3944_v8, %v3945_v44 }
 0x2c0   :  { %v11014_v57 = vsel %vm3957_vm4, %v10928_v29, %v3956_v4  ;;  %v11018_v26 = vsel %vm3965_vm5, %v10932_v56, %v3964_v5  ;;  %v11022_v11 = vsel %vm3957_vm4, %v3972_v46, %v10936_v43  ;;  %v11026_v21 = vsel %vm3965_vm5, %v3979_v35, %v10940_v63  ;;  %v3660_v7 = vpop.f32.mrf.mxu0  ;;  %v3674_v29 = vpop.f32.mrf.mxu1 }
 0x2c1   :  { %v11010_v28 = vpop.f32.mrf.mxu3  ;;  %v3967_v10 = vrot.slane %v11018_v26, 2  ;;  %4011 = vst [vmem:[#allocation1] ss:$4 sm:$0xff] %v11014_v57  ;;  %v3661_v41 = vadd.f32 %v3660_v7, %v3647_v39  ;;  %v3591_v43 = vadd.f32 %v10986_v12, %v3577_v47  ;;  %v3974_v15 = vrot.slane %v11022_v11, 4 }
 0x2c2   :  { %v3981_v60 = vrot.slane %v11026_v21, 6  ;;  %v3687_v26 = vadd.f32 %v11004_v33, %v10861_v19 }
 0x2c3   :  { %4016 = vst [vmem:[#allocation1 + $0x20] ss:$4 sm:$0xff] %v3967_v10  ;;  %v3675_v56 = vadd.f32 %v3674_v29, %v3661_v41  ;;  %v3949_v2 = vrot.slane %v3591_v43, 4 }
 0x2c5   :  { %v3950_v40 = vrot.slane %v3675_v56, 2 }
 0x2c7   :  { %v3688_v55 = vpop.f32.mrf.mxu2  ;;  %v3986_v8 = vsel %vm3955_vm1, %v3949_v2, %v3950_v40  ;;  %v3998_v41 = vsel %vm3953_vm0, %v3949_v2, %v3950_v40 }
 0x2c8   :  { %v3689_v63 = vadd.f32 %v3688_v55, %v10865_v50  ;;  %v4012_v6 = vld.sshfl [vmem:[#allocation1] sm:$0xff pattern:$0x73625140]  ;;  %v4013_v25 = vld.sshfl [vmem:[#allocation1 + $0x8] sm:$0xff pattern:$0x73625140]  ;;  %v3991_v50 = vsel %vm3963_vm3, %v3950_v40, %v3949_v2  ;;  %v11057_v29 = vsel %vm3957_vm4, %v10944_v54, %v3986_v8  ;;  %v4005_v55 = vsel %vm3961_vm2, %v3949_v2, %v3950_v40 }
 0x2c9   :  { %v3702_v14 = vpop.f32.mrf.mxu3  ;;  %v4014_v31 = vld.sshfl [vmem:[#allocation1 + $0x10] sm:$0xff pattern:$0x73625140]  ;;  %v4068_v48 = vpack.c.bf16 %v4013_v25, %v4012_v6  ;;  %v11046_v1 = vsel %vm3965_vm5, %v10948_v30, %v3991_v50  ;;  %v11072_v40 = vsel %vm3965_vm5, %v4005_v55, %v10956_v51 }
 0x2ca   :  { %v4017_v61 = vld.sshfl [vmem:[#allocation1 + $0x20] sm:$0xff pattern:$0x73625140]  ;;  %v4018_v52 = vld.sshfl [vmem:[#allocation1 + $0x28] sm:$0xff pattern:$0x73625140]  ;;  %v11037_v45 = vadd.f32 %v3702_v14, %v3689_v63  ;;  %v4069_v36 = vpack.c.bf16 %v4014_v31, %v4014_v31 }
 0x2cb   :  { %v4019_v12 = vld.sshfl [vmem:[#allocation1 + $0x30] sm:$0xff pattern:$0x73625140]  ;;  %4020 = vst [vmem:[#allocation1] ss:$4 sm:$0xff] %v3974_v15  ;;  %v4070_v23 = vpack.c.bf16 %v4018_v52, %v4017_v61  ;;  %v4100_v27 = vrot.slane %v4068_v48, 3 }
 0x2cc   :  { %4024 = vst [vmem:[#allocation1 + $0x20] ss:$4 sm:$0xff] %v3981_v60  ;;  %v4101_v49 = vrot.slane %v4069_v36, 6  ;;  %v4102_v22 = vrot.slane %v4069_v36, 1  ;;  %v4071_v59 = vpack.c.bf16 %v4019_v12, %v4019_v12  ;;  %v3993_v44 = vrot.slane %v11046_v1, 2 }
 0x2cd   :  { %v4103_v58 = vrot.slane %v4070_v23, 3  ;;  %v4127_v42 = vsel %vm4124_vm6, %v4068_v48, %v4100_v27  ;;  %v11068_v48 = vsel %vm3957_vm4, %v3998_v41, %v10952_v32 }
 0x2ce   :  { %v4131_v13 = vsel %vm4128_vm7, %v4101_v49, %v4102_v22  ;;  %v4104_v53 = vrot.slane %v4071_v59, 6  ;;  %v4105_v16 = vrot.slane %v4071_v59, 1  ;;  %v4000_v50 = vrot.slane %v11068_v48, 4 }
 0x2cf   :  { %v4132_v20 = vsel %vm3953_vm0, %v4127_v42, %v4131_v13  ;;  %v4135_v38 = vsel %vm4124_vm6, %v4070_v23, %v4103_v58  ;;  %v4007_v23 = vrot.slane %v11072_v40, 6 }
 0x2d0   :  { %4192 = vst [vmem:[#allocation2] sm:$0x7] %v4132_v20  ;;  %v4138_v39 = vsel %vm4128_vm7, %v4104_v53, %v4105_v16 }
 0x2d1   :  { %v4139_v43 = vsel %vm3953_vm0, %v4135_v38, %v4138_v39 }
 0x2d2   :  { %v4021_v4 = vld.sshfl [vmem:[#allocation1] sm:$0xff pattern:$0x73625140]  ;;  %v4022_v30 = vld.sshfl [vmem:[#allocation1 + $0x8] sm:$0xff pattern:$0x73625140] }
 0x2d3   :  { %v4023_v5 = vld.sshfl [vmem:[#allocation1 + $0x10] sm:$0xff pattern:$0x73625140]  ;;  %v4025_v46 = vld.sshfl [vmem:[#allocation1 + $0x20] sm:$0xff pattern:$0x73625140]  ;;  %v4072_v35 = vpack.c.bf16 %v4022_v30, %v4021_v4 }
 0x2d4   :  { %v4026_v7 = vld.sshfl [vmem:[#allocation1 + $0x28] sm:$0xff pattern:$0x73625140]  ;;  %v4027_v47 = vld.sshfl [vmem:[#allocation1 + $0x30] sm:$0xff pattern:$0x73625140]  ;;  %v4073_v56 = vpack.c.bf16 %v4023_v5, %v4023_v5 }
 0x2d5   :  { %4028 = vst [vmem:[#allocation1] ss:$4 sm:$0xff] %v11057_v29  ;;  %v4106_v63 = vrot.slane %v4072_v35, 3  ;;  %v4074_v14 = vpack.c.bf16 %v4026_v7, %v4025_v46  ;;  %v4075_v6 = vpack.c.bf16 %v4027_v47, %v4027_v47 }
 0x2d6   :  { %4032 = vst [vmem:[#allocation1 + $0x20] ss:$4 sm:$0xff] %v3993_v44  ;;  %v4107_v25 = vrot.slane %v4073_v56, 6  ;;  %v4108_v31 = vrot.slane %v4073_v56, 1 }
 0x2d7   :  { %v4142_v54 = vsel %vm4124_vm6, %v4072_v35, %v4106_v63  ;;  %v4109_v61 = vrot.slane %v4074_v14, 3  ;;  %v4110_v52 = vrot.slane %v4075_v6, 6  ;;  %4193 = vst [vmem:[#allocation2 + $0x3] sm:$0x7] %v4139_v43  ;;  %v4111_v36 = vrot.slane %v4075_v6, 1 }
 0x2d8   :  { %v4145_v2 = vsel %vm4128_vm7, %v4107_v25, %v4108_v31 }
 0x2d9   :  { %v4146_v12 = vsel %vm3953_vm0, %v4142_v54, %v4145_v2  ;;  %v4149_v27 = vsel %vm4124_vm6, %v4074_v14, %v4109_v61  ;;  %v4152_v49 = vsel %vm4128_vm7, %v4110_v52, %v4111_v36 }
 0x2da   :  { %4194 = vst [vmem:[#allocation2 + $0x6] sm:$0x7] %v4146_v12  ;;  %v4153_v16 = vsel %vm3953_vm0, %v4149_v27, %v4152_v49 }
 0x2db   :  { %4195 = vst [vmem:[#allocation2 + $0x9] sm:$0x7] %v4153_v16  ;;  %v3728_v16 = vpop.f32.mrf.mxu1 }
 0x2dc   :  { %v4029_v32 = vld.sshfl [vmem:[#allocation1] sm:$0xff pattern:$0x73625140]  ;;  %v4030_v22 = vld.sshfl [vmem:[#allocation1 + $0x8] sm:$0xff pattern:$0x73625140] }
 0x2dd   :  { %v4031_v59 = vld.sshfl [vmem:[#allocation1 + $0x10] sm:$0xff pattern:$0x73625140]  ;;  %v4033_v58 = vld.sshfl [vmem:[#allocation1 + $0x20] sm:$0xff pattern:$0x73625140]  ;;  %v4076_v51 = vpack.c.bf16 %v4030_v22, %v4029_v32 }
 0x2de   :  { %v4034_v42 = vld.sshfl [vmem:[#allocation1 + $0x28] sm:$0xff pattern:$0x73625140]  ;;  %v4035_v13 = vld.sshfl [vmem:[#allocation1 + $0x30] sm:$0xff pattern:$0x73625140]  ;;  %v4077_v53 = vpack.c.bf16 %v4031_v59, %v4031_v59 }
 0x2df   :  { %4036 = vst [vmem:[#allocation1] ss:$4 sm:$0xff] %v4000_v50  ;;  %v4112_v20 = vrot.slane %v4076_v51, 3  ;;  %v4078_v8 = vpack.c.bf16 %v4034_v42, %v4033_v58  ;;  %v4079_v4 = vpack.c.bf16 %v4035_v13, %v4035_v13 }
 0x2e0   :  { %4040 = vst [vmem:[#allocation1 + $0x20] ss:$4 sm:$0xff] %v4007_v23  ;;  %v4113_v38 = vrot.slane %v4077_v53, 6  ;;  %v4114_v39 = vrot.slane %v4077_v53, 1 }
 0x2e1   :  { %v4156_v30 = vsel %vm4124_vm6, %v4076_v51, %v4112_v20  ;;  %v4115_v5 = vrot.slane %v4078_v8, 3  ;;  %v4116_v35 = vrot.slane %v4079_v4, 6  ;;  %v4117_v7 = vrot.slane %v4079_v4, 1  ;;  %v3756_v4 = vpop.f32.mrf.mxu3 }
 0x2e2   :  { %v4159_v46 = vsel %vm4128_vm7, %v4113_v38, %v4114_v39 }
 0x2e3   :  { %v4160_v47 = vsel %vm3953_vm0, %v4156_v30, %v4159_v46  ;;  %v4163_v41 = vsel %vm4124_vm6, %v4078_v8, %v4115_v5  ;;  %v4166_v56 = vsel %vm4128_vm7, %v4116_v35, %v4117_v7  ;;  %v3742_v8 = vpop.f32.mrf.mxu2  ;;  %v3730_v30 = vpop.f32.mrf.mxu1 }
 0x2e4   :  { %4196 = vst [vmem:[#allocation2 + $0xc] sm:$0x7] %v4160_v47  ;;  %v4167_v25 = vsel %vm3953_vm0, %v4163_v41, %v4166_v56 }
 0x2e5   :  { %4197 = vst [vmem:[#allocation2 + $0xf] sm:$0x7] %v4167_v25 }
 0x2e6   :  { %v4037_v43 = vld.sshfl [vmem:[#allocation1] sm:$0xff pattern:$0x73625140]  ;;  %v4038_v55 = vld.sshfl [vmem:[#allocation1 + $0x8] sm:$0xff pattern:$0x73625140] }
 0x2e7   :  { %v4039_v63 = vld.sshfl [vmem:[#allocation1 + $0x10] sm:$0xff pattern:$0x73625140]  ;;  %v4041_v14 = vld.sshfl [vmem:[#allocation1 + $0x20] sm:$0xff pattern:$0x73625140]  ;;  %v4080_v6 = vpack.c.bf16 %v4038_v55, %v4037_v43 }
 0x2e8   :  { %v4042_v31 = vld.sshfl [vmem:[#allocation1 + $0x28] sm:$0xff pattern:$0x73625140]  ;;  %v4043_v54 = vld.sshfl [vmem:[#allocation1 + $0x30] sm:$0xff pattern:$0x73625140]  ;;  %v4081_v61 = vpack.c.bf16 %v4039_v63, %v4039_v63 }
 0x2e9   :  { %4200 = vst [vmem:[#allocation1] ss:$4 sm:$0xff] %v11014_v57  ;;  %v4118_v52 = vrot.slane %v4080_v6, 3  ;;  %v4082_v2 = vpack.c.bf16 %v4042_v31, %v4041_v14  ;;  %v4083_v36 = vpack.c.bf16 %v4043_v54, %v4043_v54  ;;  %v3714_v57 = vpop.f32.mrf.mxu0  ;;  %v3758_v47 = vpop.f32.mrf.mxu3 }
 0x2ea   :  { %v4119_v12 = vrot.slane %v4081_v61, 6  ;;  %v4120_v27 = vrot.slane %v4081_v61, 1 }
 0x2eb   :  { %v4170_v49 = vsel %vm4124_vm6, %v4080_v6, %v4118_v52  ;;  %v4121_v32 = vrot.slane %v4082_v2, 3  ;;  %v4122_v22 = vrot.slane %v4083_v36, 6  ;;  %v4123_v59 = vrot.slane %v4083_v36, 1  ;;  %v3744_v5 = vpop.f32.mrf.mxu2 }
 0x2ec   :  { %v4173_v58 = vsel %vm4128_vm7, %v4119_v12, %v4120_v27 }
 0x2ed   :  { %v4174_v51 = vsel %vm3953_vm0, %v4170_v49, %v4173_v58  ;;  %v4177_v42 = vsel %vm4124_vm6, %v4082_v2, %v4121_v32  ;;  %v4180_v13 = vsel %vm4128_vm7, %v4122_v22, %v4123_v59 }
 0x2ee   :  { %4198 = vst [vmem:[#allocation2 + $0x12] sm:$0x7] %v4174_v51  ;;  %v4181_v53 = vsel %vm3953_vm0, %v4177_v42, %v4180_v13 }
 0x2ef   :  { %4199 = vst [vmem:[#allocation2 + $0x15] sm:$0x7] %v4181_v53 }
 0x2f0   :  { %v11098_v20 = vld.sshfl [vmem:[#allocation1 + $0x18] sm:$0xff pattern:$0x73625140] }
 0x2f1   :  { %4206 = vst [vmem:[#allocation1] ss:$4 sm:$0xff] %v3967_v10  ;;  %v3716_v39 = vpop.f32.mrf.mxu0 }
 0x2f2   :  { %v3717_v61 = vadd.f32 %v3716_v39, %v11037_v45 }
 0x2f4   :  { %v3731_v27 = vadd.f32 %v3730_v30, %v3717_v61 }
 0x2f6   :  { %v3745_v58 = vadd.f32 %v3744_v5, %v3731_v27 }
 0x2f8   :  { %v11102_v38 = vld.sshfl [vmem:[#allocation1 + $0x18] sm:$0xff pattern:$0x73625140]  ;;  %v3784_v7 = vpop.f32.mrf.mxu1 }
 0x2f9   :  { %4211 = vst [vmem:[#allocation1] ss:$4 sm:$0xff] %v3974_v15  ;;  %v3770_v35 = vpop.f32.mrf.mxu0  ;;  %v3701_v15 = vadd.f32 %v11010_v28, %v3687_v26 }
 0x2fa   :  { %v3771_v10 = vadd.f32 %v3770_v35, %v10863_v34 }
 0x2fb   :  { %v3715_v21 = vadd.f32 %v3714_v57, %v3701_v15  ;;  %v3759_v57 = vadd.f32 %v3758_v47, %v3745_v58 }
 0x2fc   :  { %v3785_v43 = vadd.f32 %v3784_v7, %v3771_v10 }
 0x2fd   :  { %v3729_v19 = vadd.f32 %v3728_v16, %v3715_v21 }
 0x2ff   :  { %v3798_v41 = vpop.f32.mrf.mxu2  ;;  %v3743_v31 = vadd.f32 %v3742_v8, %v3729_v19 }
 0x300   :  { %v11106_v46 = vld.sshfl [vmem:[#allocation1 + $0x18] sm:$0xff pattern:$0x73625140]  ;;  %v3786_v63 = vpop.f32.mrf.mxu1 }
 0x301   :  { %4216 = vst [vmem:[#allocation1] ss:$4 sm:$0xff] %v3981_v60  ;;  %v3772_v11 = vpop.f32.mrf.mxu0  ;;  %v3812_v55 = vpop.f32.mrf.mxu3  ;;  %v3799_v60 = vadd.f32 %v3798_v41, %v3785_v43  ;;  %v3757_v12 = vadd.f32 %v3756_v4, %v3743_v31 }
 0x302   :  { %v3773_v14 = vadd.f32 %v3772_v11, %v10867_v62 }
 0x303   :  { %v3813_v34 = vadd.f32 %v3812_v55, %v3799_v60 }
 0x304   :  { %v3787_v25 = vadd.f32 %v3786_v63, %v3773_v14 }
 0x307   :  { %v3800_v33 = vpop.f32.mrf.mxu2 }
 0x308   :  { %v11113_v56 = vld.sshfl [vmem:[#allocation1 + $0x18] sm:$0xff pattern:$0x73625140]  ;;  %v3801_v52 = vadd.f32 %v3800_v33, %v3787_v25 }
 0x309   :  { %4221 = vst [vmem:[#allocation1] ss:$4 sm:$0xff] %v11057_v29  ;;  %v3814_v2 = vpop.f32.mrf.mxu3 }
 0x30a   :  { %v3815_v49 = vadd.f32 %v3814_v2, %v3801_v52 }
 0x310   :  { %v11118_v6 = vld.sshfl [vmem:[#allocation1 + $0x18] sm:$0xff pattern:$0x73625140] }
 0x311   :  { %4226 = vst [vmem:[#allocation1] ss:$4 sm:$0xff] %v3993_v44 }
 0x318   :  { %v3826_v29 = vpop.f32.mrf.mxu0  ;;  %v3840_v28 = vpop.f32.mrf.mxu1  ;;  %v11123_v32 = vld.sshfl [vmem:[#allocation1 + $0x18] sm:$0xff pattern:$0x73625140] }
 0x319   :  { %v3827_v54 = vadd.f32 %v3826_v29, %v3813_v34  ;;  %4231 = vst [vmem:[#allocation1] ss:$4 sm:$0xff] %v4000_v50 }
 0x31b   :  { %v3841_v36 = vadd.f32 %v3840_v28, %v3827_v54 }
 0x31d   :  { %v3946_v62 = vrot.slane %v3841_v36, 6 }
 0x31f   :  { %v3959_v1 = vsel %vm3953_vm0, %v3757_v12, %v3946_v62  ;;  %v3968_v44 = vsel %vm3961_vm2, %v3757_v12, %v3946_v62  ;;  %v3975_v22 = vsel %vm3955_vm1, %v3757_v12, %v3946_v62  ;;  %v3982_v59 = vsel %vm3963_vm3, %v3946_v62, %v3757_v12  ;;  %v3854_v48 = vpop.f32.mrf.mxu2 }
 0x320   :  { %v3828_v45 = vpop.f32.mrf.mxu0  ;;  %v3842_v42 = vpop.f32.mrf.mxu1  ;;  %v11131_v16 = vld.sshfl [vmem:[#allocation1 + $0x18] sm:$0xff pattern:$0x73625140]  ;;  %v3855_v5 = vadd.f32 %v3854_v48, %v10873_v37 }
 0x321   :  { %v3829_v51 = vadd.f32 %v3828_v45, %v3815_v49  ;;  %4236 = vst [vmem:[#allocation1] ss:$4 sm:$0xff] %v4007_v23  ;;  %v3868_v50 = vpop.f32.mrf.mxu3 }
 0x322   :  { %v3869_v47 = vadd.f32 %v3868_v50, %v3855_v5 }
 0x323   :  { %v3843_v13 = vadd.f32 %v3842_v42, %v3829_v51 }
 0x325   :  { %v3951_v53 = vrot.slane %v3843_v13, 6 }
 0x327   :  { %v3988_v8 = vsel %vm3953_vm0, %v3759_v57, %v3951_v53  ;;  %v3994_v39 = vsel %vm3961_vm2, %v3759_v57, %v3951_v53  ;;  %v4001_v4 = vsel %vm3955_vm1, %v3759_v57, %v3951_v53  ;;  %v4008_v30 = vsel %vm3963_vm3, %v3951_v53, %v3759_v57  ;;  %v3856_v35 = vpop.f32.mrf.mxu2 }
 0x328   :  { %v3857_v11 = vadd.f32 %v3856_v35, %v10878_v18  ;;  %v11149_v31 = vld.sshfl [vmem:[#allocation1 + $0x18] sm:$0xff pattern:$0x73625140] }
 0x329   :  { %v3870_v7 = vpop.f32.mrf.mxu3 }
 0x32a   :  { %v3871_v43 = vadd.f32 %v3870_v7, %v3857_v11 }
 0x337   :  { %v3882_v26 = vpop.f32.mrf.mxu0 }
 0x338   :  { %v3883_v10 = vadd.f32 %v3882_v26, %v3869_v47  ;;  %v3896_v41 = vpop.f32.mrf.mxu1 }
 0x33a   :  { %v3897_v15 = vadd.f32 %v3896_v41, %v3883_v10 }
 0x33f   :  { %v3910_v55 = vpop.f32.mrf.mxu2  ;;  %v3924_v63 = vpop.f32.mrf.mxu3 }
 0x340   :  { %v3911_v21 = vadd.f32 %v3910_v55, %v3897_v15  ;;  %v3884_v60 = vpop.f32.mrf.mxu0  ;;  %v3898_v19 = vpop.f32.mrf.mxu1 }
 0x341   :  { %v3885_v40 = vadd.f32 %v3884_v60, %v3871_v43 }
 0x342   :  { %v3925_v23 = vadd.f32 %v3924_v63, %v3911_v21 }
 0x343   :  { %v3899_v34 = vadd.f32 %v3898_v19, %v3885_v40 }
 0x344   :  { %v3947_v14 = vrot.slane %v3925_v23, 4 }
 0x346   :  { %v3960_v37 = vsel %vm3957_vm4, %v3959_v1, %v3947_v14  ;;  %v11143_v33 = vsel %vm3965_vm5, %v3968_v44, %v3947_v14  ;;  %v3976_v25 = vsel %vm3957_vm4, %v3947_v14, %v3975_v22  ;;  %v11147_v18 = vsel %vm3965_vm5, %v3947_v14, %v3982_v59 }
 0x347   :  { %4202 = vst [vmem:[#allocation1 + $0x20] ss:$4 sm:$0xff] %v3960_v37  ;;  %v3912_v29 = vpop.f32.mrf.mxu2  ;;  %v3926_v28 = vpop.f32.mrf.mxu3  ;;  %v3970_v2 = vrot.slane %v11143_v33, 2  ;;  %v3977_v44 = vrot.slane %v3976_v25, 4  ;;  %v3984_v41 = vrot.slane %v11147_v18, 6 }
 0x348   :  { %v3913_v54 = vadd.f32 %v3912_v29, %v3899_v34  ;;  %4394 = vst [vmem:[#allocation1] ss:$4 sm:$0xff] %v3960_v37  ;;  %v4576_v37 = vld [vmem:[#allocation2] sm:$0x7] }
 0x34a   :  { %v3927_v61 = vadd.f32 %v3926_v28, %v3913_v54 }
 0x34c   :  { %v3952_v52 = vrot.slane %v3927_v61, 4 }
 0x34e   :  { %v4204_v36 = vld.sshfl [vmem:[#allocation1 + $0x20] sm:$0xff pattern:$0x73625140]  ;;  %v4205_v12 = vld.sshfl [vmem:[#allocation1 + $0x28] sm:$0xff pattern:$0x73625140]  ;;  %v3989_v62 = vsel %vm3957_vm4, %v3988_v8, %v3952_v52  ;;  %v11154_v27 = vsel %vm3965_vm5, %v3994_v39, %v3952_v52  ;;  %v11157_v49 = vsel %vm3957_vm4, %v3952_v52, %v4001_v4  ;;  %v11160_v1 = vsel %vm3965_vm5, %v3952_v52, %v4008_v30 }
 0x34f   :  { %4207 = vst [vmem:[#allocation1 + $0x20] ss:$4 sm:$0xff] %v3970_v2  ;;  %v4265_v22 = vpack.c.bf16 %v4204_v36, %v11098_v20  ;;  %v4395_v59 = vld.sshfl [vmem:[#allocation1 + $0x10] sm:$0xff pattern:$0x73625140]  ;;  %v4266_v45 = vpack.c.bf16 %v4205_v12, %v4205_v12  ;;  %v4003_v15 = vrot.slane %v11157_v49, 4 }
 0x350   :  { %v4419_v58 = vsel %vm3953_vm0, %v4395_v59, 0.0  ;;  %4399 = vst [vmem:[#allocation1] ss:$4 sm:$0xff] %v3977_v44  ;;  %v3996_v59 = vrot.slane %v11154_v27, 2  ;;  %v4577_v27 = vld [vmem:[#allocation2 + $0x3] sm:$0x7] }
 0x351   :  { %v4297_v51 = vrot.slane %v4265_v22, 3  ;;  %4420 = vadd.xlane.f32.xlu0 %v4419_v58  ;;  %v4298_v42 = vrot.slane %v4266_v45, 6  ;;  %v4299_v13 = vrot.slane %v4266_v45, 1  ;;  %v4578_v45 = vld [vmem:[#allocation2 + $0x6] sm:$0x7] }
 0x353   :  { %v4323_v57 = vsel %vm4124_vm6, %v4265_v22, %v4297_v51  ;;  %v4326_v53 = vsel %vm4128_vm7, %v4298_v42, %v4299_v13  ;;  %v4586_v42 = vunpack.c.l.bf16 %v4578_v45 }
 0x354   :  { %v4327_v8 = vsel %vm3953_vm0, %v4323_v57, %v4326_v53 }
 0x355   :  { %4386 = vst [vmem:[#allocation3] sm:$0x7] %v4327_v8 }
 0x356   :  { %v4209_v39 = vld.sshfl [vmem:[#allocation1 + $0x20] sm:$0xff pattern:$0x73625140]  ;;  %v4210_v4 = vld.sshfl [vmem:[#allocation1 + $0x28] sm:$0xff pattern:$0x73625140] }
 0x357   :  { %4212 = vst [vmem:[#allocation1 + $0x20] ss:$4 sm:$0xff] %v3977_v44  ;;  %v4267_v20 = vpack.c.bf16 %v4209_v39, %v11102_v38  ;;  %v4268_v30 = vpack.c.bf16 %v4210_v4, %v4210_v4  ;;  %v4400_v48 = vld.sshfl [vmem:[#allocation1 + $0x10] sm:$0xff pattern:$0x73625140] }
 0x358   :  { %v4425_v50 = vsel %vm3953_vm0, %v4400_v48, 0.0  ;;  %4403 = vst [vmem:[#allocation1] ss:$4 sm:$0xff] %v3989_v62 }
 0x359   :  { %v4300_v5 = vrot.slane %v4267_v20, 3  ;;  %v4301_v35 = vrot.slane %v4268_v30, 6  ;;  %v4302_v7 = vrot.slane %v4268_v30, 1  ;;  %4426 = vadd.xlane.f32.xlu1 %v4425_v50  ;;  %v4580_v50 = vld [vmem:[#allocation2 + $0xc] sm:$0x7] }
 0x35b   :  { %v4330_v47 = vsel %vm4124_vm6, %v4267_v20, %v4300_v5  ;;  %v4333_v26 = vsel %vm4128_vm7, %v4301_v35, %v4302_v7 }
 0x35c   :  { %v4334_v10 = vsel %vm3953_vm0, %v4330_v47, %v4333_v26  ;;  %v4588_v47 = vunpack.c.l.bf16 %v4580_v50 }
 0x35d   :  { %4387 = vst [vmem:[#allocation3 + $0x3] sm:$0x7] %v4334_v10 }
 0x35e   :  { %v4214_v38 = vld.sshfl [vmem:[#allocation1 + $0x20] sm:$0xff pattern:$0x73625140]  ;;  %v4215_v11 = vld.sshfl [vmem:[#allocation1 + $0x28] sm:$0xff pattern:$0x73625140] }
 0x35f   :  { %4217 = vst [vmem:[#allocation1 + $0x20] ss:$4 sm:$0xff] %v3984_v41  ;;  %v4269_v43 = vpack.c.bf16 %v4214_v38, %v11106_v46  ;;  %v4270_v55 = vpack.c.bf16 %v4215_v11, %v4215_v11  ;;  %v4404_v63 = vld.sshfl [vmem:[#allocation1 + $0x10] sm:$0xff pattern:$0x73625140]  ;;  %v4584_v46 = vunpack.c.l.bf16 %v4576_v37 }
 0x360   :  { %v4431_v21 = vsel %vm3953_vm0, %v4404_v63, 0.0  ;;  %4407 = vst [vmem:[#allocation1] ss:$4 sm:$0xff] %v4003_v15 }
 0x361   :  { %v4303_v60 = vrot.slane %v4269_v43, 3  ;;  %v4304_v40 = vrot.slane %v4270_v55, 6  ;;  %v4305_v23 = vrot.slane %v4270_v55, 1  ;;  %4432 = vadd.xlane.f32.xlu2 %v4431_v21 }
 0x363   :  { %v4337_v14 = vsel %vm4124_vm6, %v4269_v43, %v4303_v60  ;;  %v4340_v19 = vsel %vm4128_vm7, %v4304_v40, %v4305_v23  ;;  %v4582_v23 = vld [vmem:[#allocation2 + $0x12] sm:$0x7] }
 0x364   :  { %v4341_v34 = vsel %vm3953_vm0, %v4337_v14, %v4340_v19 }
 0x365   :  { %4388 = vst [vmem:[#allocation3 + $0x6] sm:$0x7] %v4341_v34 }
 0x366   :  { %v4219_v25 = vld.sshfl [vmem:[#allocation1 + $0x20] sm:$0xff pattern:$0x73625140]  ;;  %v4220_v29 = vld.sshfl [vmem:[#allocation1 + $0x28] sm:$0xff pattern:$0x73625140] }
 0x367   :  { %4222 = vst [vmem:[#allocation1 + $0x20] ss:$4 sm:$0xff] %v3989_v62  ;;  %v4271_v54 = vpack.c.bf16 %v4219_v25, %v11113_v56  ;;  %v4272_v28 = vpack.c.bf16 %v4220_v29, %v4220_v29  ;;  %v11184_v61 = vld.sshfl [vmem:[#allocation1 + $0x10] sm:$0xff pattern:$0x73625140] }
 0x368   :  { %4600 = vst [vmem:[#allocation1] ss:$4 sm:$0xff] %v4584_v46  ;;  %v4437_v18 = vsel %vm3953_vm0, %v11184_v61, 0.0 }
 0x369   :  { %v4306_v52 = vrot.slane %v4271_v54, 3  ;;  %v4307_v36 = vrot.slane %v4272_v28, 6  ;;  %v4308_v12 = vrot.slane %v4272_v28, 1 }
 0x36b   :  { %v4344_v49 = vsel %vm4124_vm6, %v4271_v54, %v4306_v52  ;;  %v4347_v44 = vsel %vm4128_vm7, %v4307_v36, %v4308_v12  ;;  %v4590_v54 = vunpack.c.l.bf16 %v4582_v23 }
 0x36c   :  { %v4348_v22 = vsel %vm3953_vm0, %v4344_v49, %v4347_v44 }
 0x36d   :  { %4389 = vst [vmem:[#allocation3 + $0x9] sm:$0x7] %v4348_v22  ;;  %v4841_v22 = vld [vmem:[#allocation3] sm:$0x7] }
 0x36e   :  { %v4224_v62 = vld.sshfl [vmem:[#allocation1 + $0x20] sm:$0xff pattern:$0x73625140]  ;;  %v4225_v58 = vld.sshfl [vmem:[#allocation1 + $0x28] sm:$0xff pattern:$0x73625140] }
 0x36f   :  { %4227 = vst [vmem:[#allocation1 + $0x20] ss:$4 sm:$0xff] %v3996_v59  ;;  %v4273_v56 = vpack.c.bf16 %v4224_v62, %v11118_v6  ;;  %v4274_v51 = vpack.c.bf16 %v4225_v58, %v4225_v58  ;;  %v11193_v13 = vld.sshfl [vmem:[#allocation1] sm:$0xff pattern:$0x73625140] }
 0x370   :  { %v11195_v57 = vld.sshfl [vmem:[#allocation1 + $0x8] sm:$0xff pattern:$0x73625140]  ;;  %v11197_v53 = vld.sshfl [vmem:[#allocation1 + $0x10] sm:$0xff pattern:$0x73625140] }
 0x371   :  { %v4309_v8 = vrot.slane %v4273_v56, 3  ;;  %v4310_v39 = vrot.slane %v4274_v51, 6  ;;  %v4311_v4 = vrot.slane %v4274_v51, 1  ;;  %4609 = vst [vmem:[#allocation1] ss:$4 sm:$0xff] %v4586_v42 }
 0x373   :  { %v4351_v20 = vsel %vm4124_vm6, %v4273_v56, %v4309_v8  ;;  %v4354_v30 = vsel %vm4128_vm7, %v4310_v39, %v4311_v4  ;;  %v4849_v56 = vunpack.c.l.bf16 %v4841_v22 }
 0x374   :  { %v4355_v48 = vsel %vm3953_vm0, %v4351_v20, %v4354_v30  ;;  %v4843_v20 = vld [vmem:[#allocation3 + $0x6] sm:$0x7] }
 0x375   :  { %4390 = vst [vmem:[#allocation3 + $0xc] sm:$0x7] %v4355_v48  ;;  %v4851_v30 = vunpack.c.l.bf16 %v4843_v20 }
 0x376   :  { %v4229_v6 = vld.sshfl [vmem:[#allocation1 + $0x20] sm:$0xff pattern:$0x73625140]  ;;  %v4230_v5 = vld.sshfl [vmem:[#allocation1 + $0x28] sm:$0xff pattern:$0x73625140] }
 0x377   :  { %4232 = vst [vmem:[#allocation1 + $0x20] ss:$4 sm:$0xff] %v4003_v15  ;;  %v4275_v35 = vpack.c.bf16 %v4229_v6, %v11123_v32  ;;  %v4276_v7 = vpack.c.bf16 %v4230_v5, %v4230_v5  ;;  %v4010_v15 = vrot.slane %v11160_v1, 6 }
 0x378   :  { %v11203_v26 = vld.sshfl [vmem:[#allocation1] sm:$0xff pattern:$0x73625140]  ;;  %v11205_v10 = vld.sshfl [vmem:[#allocation1 + $0x8] sm:$0xff pattern:$0x73625140] }
 0x379   :  { %v11207_v38 = vld.sshfl [vmem:[#allocation1 + $0x10] sm:$0xff pattern:$0x73625140]  ;;  %v4312_v11 = vrot.slane %v4275_v35, 3  ;;  %v4313_v43 = vrot.slane %v4276_v7, 6  ;;  %v4314_v55 = vrot.slane %v4276_v7, 1 }
 0x37a   :  { %4617 = vst [vmem:[#allocation1] ss:$4 sm:$0xff] %v4588_v47 }
 0x37b   :  { %v4358_v63 = vsel %vm4124_vm6, %v4275_v35, %v4312_v11  ;;  %v4361_v21 = vsel %vm4128_vm7, %v4313_v43, %v4314_v55 }
 0x37c   :  { %v4362_v32 = vsel %vm3953_vm0, %v4358_v63, %v4361_v21  ;;  %v4585_v21 = vunpack.c.l.bf16 %v4577_v27 }
 0x37d   :  { %4391 = vst [vmem:[#allocation3 + $0xf] sm:$0x7] %v4362_v32 }
 0x37e   :  { %v4234_v60 = vld.sshfl [vmem:[#allocation1 + $0x20] sm:$0xff pattern:$0x73625140]  ;;  %v4235_v40 = vld.sshfl [vmem:[#allocation1 + $0x28] sm:$0xff pattern:$0x73625140] }
 0x37f   :  { %4237 = vst [vmem:[#allocation1 + $0x20] ss:$4 sm:$0xff] %v4010_v15  ;;  %v4277_v14 = vpack.c.bf16 %v4234_v60, %v11131_v16  ;;  %v4278_v19 = vpack.c.bf16 %v4235_v40, %v4235_v40  ;;  %v12335_v60 = vmov 0  }
 0x380   :  { %9735 = vset.pattern.permute.xlu2 %v12335_v60 }
 0x381   :  { %v4315_v34 = vrot.slane %v4277_v14, 3  ;;  %v4316_v37 = vrot.slane %v4278_v19, 6  ;;  %v4317_v25 = vrot.slane %v4278_v19, 1  ;;  %v11214_v29 = vld.sshfl [vmem:[#allocation1] sm:$0xff pattern:$0x73625140] }
 0x382   :  { %v11216_v46 = vld.sshfl [vmem:[#allocation1 + $0x8] sm:$0xff pattern:$0x73625140]  ;;  %v11218_v28 = vld.sshfl [vmem:[#allocation1 + $0x10] sm:$0xff pattern:$0x73625140] }
 0x383   :  { %v4365_v1 = vsel %vm4124_vm6, %v4277_v14, %v4315_v34  ;;  %v4368_v52 = vsel %vm4128_vm7, %v4316_v37, %v4317_v25  ;;  %4625 = vst [vmem:[#allocation1] ss:$4 sm:$0xff] %v4590_v54 }
 0x384   :  { %v4369_v36 = vsel %vm3953_vm0, %v4365_v1, %v4368_v52  ;;  %v9739_v1 = vld [vmem:[#allocation7] ss:$0 sm:$0xff]  ;;  %v4581_v52 = vld [vmem:[#allocation2 + $0xf] sm:$0x7] }
 0x385   :  { %4392 = vst [vmem:[#allocation3 + $0x12] sm:$0x7] %v4369_v36  ;;  %v4589_v36 = vunpack.c.l.bf16 %v4581_v52 }
 0x386   :  { %v4239_v16 = vld.sshfl [vmem:[#allocation1 + $0x20] sm:$0xff pattern:$0x73625140]  ;;  %v4240_v12 = vld.sshfl [vmem:[#allocation1 + $0x28] sm:$0xff pattern:$0x73625140] }
 0x387   :  { %4397 = vst [vmem:[#allocation1 + $0x20] ss:$4 sm:$0xff] %v3970_v2  ;;  %v4280_v49 = vpack.c.bf16 %v4240_v12, %v4240_v12  ;;  %v4279_v44 = vpack.c.bf16 %v4239_v16, %v11149_v31 }
 0x389   :  { %v4319_v45 = vrot.slane %v4280_v49, 6  ;;  %v4320_v62 = vrot.slane %v4280_v49, 1  ;;  %v4318_v58 = vrot.slane %v4279_v44, 3 }
 0x38a   :  { %v11226_v51 = vld.sshfl [vmem:[#allocation1] sm:$0xff pattern:$0x73625140]  ;;  %v11228_v42 = vld.sshfl [vmem:[#allocation1 + $0x8] sm:$0xff pattern:$0x73625140] }
 0x38b   :  { %v4375_v8 = vsel %vm4128_vm7, %v4319_v45, %v4320_v62  ;;  %v4372_v39 = vsel %vm4124_vm6, %v4279_v44, %v4318_v58  ;;  %v11232_v4 = vld.sshfl [vmem:[#allocation1 + $0x10] sm:$0xff pattern:$0x73625140]  ;;  %v4583_v44 = vld [vmem:[#allocation2 + $0x15] sm:$0x7] }
 0x38c   :  { %v4376_v33 = vsel %vm3953_vm0, %v4372_v39, %v4375_v8  ;;  %4865 = vst [vmem:[#allocation1] ss:$4 sm:$0xff] %v4849_v56  ;;  %v4591_v22 = vunpack.c.l.bf16 %v4583_v44  ;;  %v4842_v56 = vld [vmem:[#allocation3 + $0x3] sm:$0x7] }
 0x38d   :  { %4393 = vst [vmem:[#allocation3 + $0x15] sm:$0x7] %v4376_v33  ;;  %v4850_v33 = vunpack.c.l.bf16 %v4842_v56 }
 0x38e   :  { %v4398_v2 = vld.sshfl [vmem:[#allocation1 + $0x30] sm:$0xff pattern:$0x73625140] }
 0x38f   :  { %v4422_v31 = vsel %vm3953_vm0, %v4398_v2, 0.0  ;;  %4401 = vst [vmem:[#allocation1 + $0x20] ss:$4 sm:$0xff] %v3984_v41  ;;  %v4845_v41 = vld [vmem:[#allocation3 + $0xc] sm:$0x7] }
 0x390   :  { %4423 = vadd.xlane.f32.xlu0 %v4422_v31  ;;  %v4853_v55 = vunpack.c.l.bf16 %v4845_v41  ;;  %v4844_v31 = vld [vmem:[#allocation3 + $0x9] sm:$0x7] }
 0x391   :  { %v4852_v20 = vunpack.c.l.bf16 %v4844_v31 }
 0x393   :  { %v11238_v48 = vld.sshfl [vmem:[#allocation1] sm:$0xff pattern:$0x73625140]  ;;  %v11240_v50 = vld.sshfl [vmem:[#allocation1 + $0x8] sm:$0xff pattern:$0x73625140] }
 0x394   :  { %v11242_v6 = vld.sshfl [vmem:[#allocation1 + $0x10] sm:$0xff pattern:$0x73625140] }
 0x395   :  { %4874 = vst [vmem:[#allocation1] ss:$4 sm:$0xff] %v4851_v30  ;;  %v4848_v27 = vld [vmem:[#allocation3 + $0x15] sm:$0x7] }
 0x396   :  { %v4402_v5 = vld.sshfl [vmem:[#allocation1 + $0x30] sm:$0xff pattern:$0x73625140] }
 0x397   :  { %v4428_v35 = vsel %vm3953_vm0, %v4402_v5, 0.0  ;;  %4405 = vst [vmem:[#allocation1 + $0x20] ss:$4 sm:$0xff] %v3996_v59  ;;  %v4847_v59 = vld [vmem:[#allocation3 + $0x12] sm:$0x7] }
 0x398   :  { %4429 = vadd.xlane.f32.xlu1 %v4428_v35  ;;  %4438 = vadd.xlane.f32.xlu0 %v4437_v18  ;;  %v4855_v23 = vunpack.c.l.bf16 %v4847_v59  ;;  %v4846_v18 = vld [vmem:[#allocation3 + $0xf] sm:$0x7] }
 0x39c   :  { %v11249_v7 = vld.sshfl [vmem:[#allocation1] sm:$0xff pattern:$0x73625140]  ;;  %v11251_v47 = vld.sshfl [vmem:[#allocation1 + $0x8] sm:$0xff pattern:$0x73625140] }
 0x39d   :  { %v11253_v43 = vld.sshfl [vmem:[#allocation1 + $0x10] sm:$0xff pattern:$0x73625140] }
 0x39e   :  { %v4406_v11 = vld.sshfl [vmem:[#allocation1 + $0x30] sm:$0xff pattern:$0x73625140]  ;;  %4882 = vst [vmem:[#allocation1] ss:$4 sm:$0xff] %v4853_v55  ;;  %v4854_v55 = vunpack.c.l.bf16 %v4846_v18 }
 0x39f   :  { %v4434_v63 = vsel %vm3953_vm0, %v4406_v11, 0.0  ;;  %4409 = vst [vmem:[#allocation1 + $0x20] ss:$4 sm:$0xff] %v4010_v15  ;;  %v4579_v15 = vld [vmem:[#allocation2 + $0x9] sm:$0x7] }
 0x3a0   :  { %4435 = vadd.xlane.f32.xlu2 %v4434_v63  ;;  %v4587_v34 = vunpack.c.l.bf16 %v4579_v15 }
 0x3a5   :  { %v11258_v40 = vld.sshfl [vmem:[#allocation1] sm:$0xff pattern:$0x73625140]  ;;  %v11260_v14 = vld.sshfl [vmem:[#allocation1 + $0x8] sm:$0xff pattern:$0x73625140] }
 0x3a6   :  { %v4410_v61 = vld.sshfl [vmem:[#allocation1 + $0x30] sm:$0xff pattern:$0x73625140] }
 0x3a7   :  { %v4440_v32 = vsel %vm3953_vm0, %v4410_v61, 0.0  ;;  %4605 = vst [vmem:[#allocation1 + $0x20] ss:$4 sm:$0xff] %v4585_v21  ;;  %v11262_v19 = vld.sshfl [vmem:[#allocation1 + $0x10] sm:$0xff pattern:$0x73625140]  ;;  %v4856_v61 = vunpack.c.l.bf16 %v4848_v27 }
 0x3a8   :  { %4441 = vadd.xlane.f32.xlu1 %v4440_v32  ;;  %4890 = vst [vmem:[#allocation1] ss:$4 sm:$0xff] %v4855_v23 }
 0x3ae   :  { %v11264_v37 = vld.sshfl [vmem:[#allocation1 + $0x20] sm:$0xff pattern:$0x73625140]  ;;  %v11266_v25 = vld.sshfl [vmem:[#allocation1 + $0x28] sm:$0xff pattern:$0x73625140] }
 0x3af   :  { %v11268_v54 = vld.sshfl [vmem:[#allocation1 + $0x30] sm:$0xff pattern:$0x73625140] }
 0x3b0   :  { %4613 = vst [vmem:[#allocation1 + $0x20] ss:$4 sm:$0xff] %v4587_v34  ;;  %v4451_v34 = vlaneseq }
 0x3b7   :  { %v11270_v16 = vld.sshfl [vmem:[#allocation1 + $0x20] sm:$0xff pattern:$0x73625140]  ;;  %v11272_v12 = vld.sshfl [vmem:[#allocation1 + $0x28] sm:$0xff pattern:$0x73625140] }
 0x3b8   :  { %4482 = vperm.xlu2 %9735, %v9739_v1   ;;  %v11274_v49 = vld.sshfl [vmem:[#allocation1 + $0x30] sm:$0xff pattern:$0x73625140] }
 0x3b9   :  { %4621 = vst [vmem:[#allocation1 + $0x20] ss:$4 sm:$0xff] %v4589_v36  ;;  %v4452_v36 = vand.u32 127, %v4451_v34 }
 0x3c0   :  { %v11276_v45 = vld.sshfl [vmem:[#allocation1 + $0x20] sm:$0xff pattern:$0x73625140]  ;;  %v11278_v62 = vld.sshfl [vmem:[#allocation1 + $0x28] sm:$0xff pattern:$0x73625140] }
 0x3c1   :  { %v11280_v58 = vld.sshfl [vmem:[#allocation1 + $0x30] sm:$0xff pattern:$0x73625140] }
 0x3c2   :  { %4629 = vst [vmem:[#allocation1 + $0x20] ss:$4 sm:$0xff] %v4591_v22 }
 0x3c4   :  { %v4421_v23 = vpop.xlane.xlu0 %4420 }
 0x3c5   :  { %v4453_v56 = vperm.slane %v4421_v23, %v4452_v36 }
 0x3c9   :  { %v11282_v8 = vld.sshfl [vmem:[#allocation1 + $0x20] sm:$0xff pattern:$0x73625140]  ;;  %v11284_v39 = vld.sshfl [vmem:[#allocation1 + $0x28] sm:$0xff pattern:$0x73625140] }
 0x3ca   :  { %v11286_v2 = vld.sshfl [vmem:[#allocation1 + $0x30] sm:$0xff pattern:$0x73625140] }
 0x3cb   :  { %4870 = vst [vmem:[#allocation1 + $0x20] ss:$4 sm:$0xff] %v4850_v33 }
 0x3cc   :  { %v4427_v15 = vpop.xlane.xlu1 %4426 }
 0x3d2   :  { %v11288_v30 = vld.sshfl [vmem:[#allocation1 + $0x20] sm:$0xff pattern:$0x73625140]  ;;  %v11290_v5 = vld.sshfl [vmem:[#allocation1 + $0x28] sm:$0xff pattern:$0x73625140] }
 0x3d3   :  { %v11292_v35 = vld.sshfl [vmem:[#allocation1 + $0x30] sm:$0xff pattern:$0x73625140] }
 0x3d4   :  { %4878 = vst [vmem:[#allocation1 + $0x20] ss:$4 sm:$0xff] %v4852_v20  ;;  %v4433_v1 = vpop.xlane.xlu2 %4432  ;;  %v4455_v20 = vperm.slane %v4427_v15, %v4452_v36 }
 0x3d5   :  { %v4457_v60 = vperm.slane %v4433_v1, %v4452_v36 }
 0x3db   :  { %v11294_v41 = vld.sshfl [vmem:[#allocation1 + $0x20] sm:$0xff pattern:$0x73625140]  ;;  %v11296_v11 = vld.sshfl [vmem:[#allocation1 + $0x28] sm:$0xff pattern:$0x73625140] }
 0x3dc   :  { %v11298_v63 = vld.sshfl [vmem:[#allocation1 + $0x30] sm:$0xff pattern:$0x73625140] }
 0x3dd   :  { %4886 = vst [vmem:[#allocation1 + $0x20] ss:$4 sm:$0xff] %v4854_v55 }
 0x3e4   :  { %v11300_v59 = vld.sshfl [vmem:[#allocation1 + $0x20] sm:$0xff pattern:$0x73625140]  ;;  %v11302_v21 = vld.sshfl [vmem:[#allocation1 + $0x28] sm:$0xff pattern:$0x73625140] }
 0x3e5   :  { %v11304_v32 = vld.sshfl [vmem:[#allocation1 + $0x30] sm:$0xff pattern:$0x73625140] }
 0x3e6   :  { %4894 = vst [vmem:[#allocation1 + $0x20] ss:$4 sm:$0xff] %v4856_v61 }
 0x403   :  { %v4424_v52 = vpop.xlane.xlu0 %4423 }
 0x404   :  { %v4454_v44 = vperm.slane %v4424_v52, %v4452_v36 }
 0x406   :  { %v4462_v33 = vsel %vm4461_vm8, %v4454_v44, %v4453_v56 }
 0x407   :  { %v4463_v55 = vsel %vm4128_vm7, %v4455_v20, %v4462_v33 }
 0x40b   :  { %v4430_v22 = vpop.xlane.xlu1 %4429  ;;  %v4439_v3 = vpop.xlane.xlu0 %4438 }
 0x40c   :  { %v4456_v31 = vperm.slane %v4430_v22, %v4452_v36  ;;  %v4459_v52 = vperm.slane %v4439_v3, %v4452_v36 }
 0x40e   :  { %v4465_v27 = vsel %vm4464_vm9, %v4456_v31, %v4463_v55 }
 0x40f   :  { %v4467_v0 = vsel %vm4466_vm10, %v4457_v60, %v4465_v27 }
 0x413   :  { %v4436_v18 = vpop.xlane.xlu2 %4435 }
 0x414   :  { %v4458_v61 = vperm.slane %v4436_v18, %v4452_v36 }
 0x416   :  { %v4469_v17 = vsel %vm4468_vm11, %v4458_v61, %v4467_v0 }
 0x417   :  { %v4471_v44 = vsel %vm4470_vm12, %v4459_v52, %v4469_v17 }
 0x41b   :  { %v4442_v23 = vpop.xlane.xlu1 %4441  ;;  %v4483_v22 = vpop.permute.xlu2 %4482 }
 0x41c   :  { %v4460_v9 = vperm.slane %v4442_v23, %v4452_v36 }
 0x41e   :  { %v4473_v15 = vsel %vm4472_vm13, %v4460_v9, %v4471_v44  ;;  %v11311_v9 = vshrl.u32 %v4451_v34, 7 }
 0x41f   :  { %4476 = vst.msk [vmem:[#allocation6] sm:$0xff] %vm4475_vm14, %v4473_v15 }
 0x420   :  { %12540 = vst [vmem:[#allocation229_spill] sm:$0xff] %v11311_v9  ;;  %9737 = vset.pattern.permute.xlu1 %v11311_v9  ;;  %9736 = vset.pattern.permute.xlu0 %v11311_v9 }
 0x421   :  { %9738 = vset.pattern.permute.xlu2 %v11311_v9 }
 0x426   :  { %v4477_v56 = vld [vmem:[#allocation6] sm:$0xff] }
 0x427   :  { %v4485_v33 = vadd.f32 %v4483_v22, %v4477_v56 }
 0x429   :  { %v4486_v31 = vsel %vm4475_vm14, %v4485_v33, -inf }
 0x42a   :  { %v4487_v1 = vrot.slane %v4486_v31, 4 }
 0x42c   :  { %v4488_v20 = vmax.f32 %v4486_v31, %v4487_v1 }
 0x42e   :  { %v4489_v18 = vrot.slane %v4488_v20, 2 }
 0x430   :  { %v4490_v60 = vmax.f32 %v4488_v20, %v4489_v18 }
 0x432   :  { %v4491_v0 = vrot.slane %v4490_v60, 1 }
 0x434   :  { %v4492_v55 = vmax.f32 %v4490_v60, %v4491_v0 }
 0x436   :  { %v4493_v3 = vsub.f32 %v4485_v33, %v4492_v55 }
 0x438   :  { %v4494_v27 = vmul.f32 1.442695, %v4493_v3 }
 0x43a   :  { %9740 = vpow2.f32 %v4494_v27 }
 0x440   :  { %v9741_v36 = vpop.eup %9740 }
 0x441   :  { %v4496_v17 = vsel %vm4475_vm14, %v9741_v36, 0.0 }
 0x442   :  { %v4497_v61 = vrot.slane %v4496_v17, 4 }
 0x444   :  { %v4498_v52 = vadd.f32 %v4497_v61, %v4496_v17 }
 0x446   :  { %v4499_v23 = vrot.slane %v4498_v52, 2 }
 0x448   :  { %v4500_v44 = vadd.f32 %v4499_v23, %v4498_v52 }
 0x44a   :  { %v4501_v15 = vrot.slane %v4500_v44, 1 }
 0x44c   :  { %v4502_v22 = vadd.f32 %v4501_v15, %v4500_v44 }
 0x44e   :  { %9742 = vrcp.f32 %v4502_v22  ;;  %v4514_v1 = vand.u32 2147483648, %v4502_v22  ;;  %v4512_v34 = vand.u32 2147483647, %v4502_v22  ;;  %vm4508_vm1 = vweird.f32 %v4502_v22 }
 0x450   :  { %v4515_v60 = vor.u32 1.1754944e-38, %v4514_v1  ;;  %vm4513_vm3 = vcmp.eq.f32.partialorder %v4512_v34, 8.507059e+37 }
 0x454   :  { %v9743_v56 = vpop.eup %9742 }
 0x455   :  { %v4504_v33 = vmul.f32 %v9743_v56, %v4502_v22  ;;  %vm4509_vm15 = vweird.f32 %v9743_v56 }
 0x456   :  { %vm4510_vm2 = vmor %vm4508_vm1, %vm4509_vm15 }
 0x457   :  { %v4505_v31 = vsub.f32 1.0, %v4504_v33  ;;  %v4946_v33 = vld [vmem:[#allocation13] sm:$0x7] }
 0x458   :  { %v11323_v34 = vperm.slane %v4946_v33, 0 }
 0x459   :  { %v4506_v20 = vmul.f32 %v9743_v56, %v4505_v31 }
 0x45b   :  { %v4507_v18 = vadd.f32 %v9743_v56, %v4506_v20 }
 0x45d   :  { %v4511_v0 = vsel %vm4510_vm2, %v9743_v56, %v4507_v18  ;;  %v11325_v18 = vperm.slane %v4946_v33, 1 }
 0x45e   :  { %v4516_v55 = vsel %vm4513_vm3, %v4515_v60, %v4511_v0  ;;  %v11327_v60 = vperm.slane %v4946_v33, 2 }
 0x45f   :  { %v4517_v3 = vmul.f32 %v9741_v36, %v4516_v55  ;;  %v4681_v36 = vld [vmem:[#allocation12] sm:$0x7] }
 0x460   :  { %v11317_v31 = vperm.slane %v4681_v36, 0  ;;  %v11319_v1 = vperm.slane %v4681_v36, 1  ;;  %v11321_v20 = vperm.slane %v4681_v36, 2 }
 0x461   :  { %4518 = vst.msk [vmem:[#allocation6] sm:$0xff] %vm4475_vm14, %v4517_v3 }
 0x468   :  { %v4519_v27 = vld [vmem:[#allocation6] sm:$0xff] }
 0x469   :  { %v4534_v17 = vperm.slane %v4519_v27, 2  ;;  %v4527_v61 = vperm.slane %v4519_v27, 1  ;;  %v4520_v52 = vperm.slane %v4519_v27, 0  ;;  %v4541_v23 = vperm.slane %v4519_v27, 3 }
 0x46a   :  { %v4548_v44 = vperm.slane %v4519_v27, 4  ;;  %v4569_v15 = vperm.slane %v4519_v27, 7  ;;  %v4555_v22 = vperm.slane %v4519_v27, 5  ;;  %v4562_v56 = vperm.slane %v4519_v27, 6 }
 0x46b   :  { %4539 = vperm.xlu2 %9738, %v4534_v17   ;;  %4532 = vperm.xlu1 %9737, %v4527_v61  }
 0x46c   :  { %4525 = vperm.xlu0 %9736, %v4520_v52  }
 0x473   :  { %4546 = vperm.xlu2 %9738, %v4541_v23   ;;  %4553 = vperm.xlu1 %9737, %v4548_v44  }
 0x474   :  { %4574 = vperm.xlu0 %9736, %v4569_v15  }
 0x47b   :  { %4560 = vperm.xlu2 %9738, %v4555_v22   ;;  %4567 = vperm.xlu1 %9737, %v4562_v56  }
 0x4c5   :  { %v4540_v0 = vpop.permute.xlu2 %4539 }
 0x4c6   :  { %v4663_v55 = vmul.f32 %v11203_v26, %v4540_v0  ;;  %v4664_v3 = vmul.f32 %v11205_v10, %v4540_v0  ;;  %v4665_v27 = vmul.f32 %v11207_v38, %v4540_v0  ;;  %v4928_v17 = vmul.f32 %v11249_v7, %v4540_v0 }
 0x4c7   :  { %v4929_v61 = vmul.f32 %v11251_v47, %v4540_v0  ;;  %v4930_v52 = vmul.f32 %v11253_v43, %v4540_v0 }
 0x4c8   :  { %v4695_v23 = vadd.f32 %v11317_v31, %v4663_v55  ;;  %v4696_v44 = vadd.f32 %v11319_v1, %v4664_v3  ;;  %v4697_v15 = vadd.f32 %v11321_v20, %v4665_v27  ;;  %v4960_v22 = vadd.f32 %v11323_v34, %v4928_v17 }
 0x4c9   :  { %v4961_v26 = vadd.f32 %v11325_v18, %v4929_v61  ;;  %v4962_v10 = vadd.f32 %v11327_v60, %v4930_v52 }
 0x4ca   :  { %v4717_v56 = vpack.c.bf16 %v4696_v44, %v4695_v23  ;;  %v4718_v38 = vpack.c.bf16 %v4697_v15, %v4697_v15 }
 0x4cb   :  { %v4982_v36 = vpack.c.bf16 %v4961_v26, %v4960_v22  ;;  %v4983_v7 = vpack.c.bf16 %v4962_v10, %v4962_v10 }
 0x4cc   :  { %v4751_v33 = vrot.slane %v4717_v56, 3  ;;  %v4752_v47 = vrot.slane %v4718_v38, 6  ;;  %v4753_v9 = vrot.slane %v4718_v38, 1 }
 0x4cd   :  { %v5016_v43 = vrot.slane %v4982_v36, 3  ;;  %v5017_v0 = vrot.slane %v4983_v7, 6  ;;  %v5018_v55 = vrot.slane %v4983_v7, 1  ;;  %v4547_v24 = vpop.permute.xlu2 %4546 }
 0x4ce   :  { %v4785_v3 = vsel %vm4124_vm6, %v4717_v56, %v4751_v33  ;;  %v4788_v27 = vsel %vm4128_vm7, %v4752_v47, %v4753_v9  ;;  %v4666_v17 = vmul.f32 %v11270_v16, %v4547_v24  ;;  %v4667_v61 = vmul.f32 %v11272_v12, %v4547_v24 }
 0x4cf   :  { %v4789_v52 = vsel %vm3953_vm0, %v4785_v3, %v4788_v27  ;;  %v5050_v23 = vsel %vm4124_vm6, %v4982_v36, %v5016_v43  ;;  %v5053_v44 = vsel %vm4128_vm7, %v5017_v0, %v5018_v55  ;;  %v4668_v15 = vmul.f32 %v11274_v49, %v4547_v24 }
 0x4d0   :  { %4835 = vst [vmem:[#allocation2 + $0x6] sm:$0x7] %v4789_v52  ;;  %v5054_v22 = vsel %vm3953_vm0, %v5050_v23, %v5053_v44  ;;  %v4698_v26 = vadd.f32 %v11317_v31, %v4666_v17  ;;  %v4699_v10 = vadd.f32 %v11319_v1, %v4667_v61  ;;  %v4931_v9 = vmul.f32 %v11294_v41, %v4547_v24 }
 0x4d1   :  { %5100 = vst [vmem:[#allocation3 + $0x6] sm:$0x7] %v5054_v22  ;;  %v4700_v16 = vadd.f32 %v11321_v20, %v4668_v15  ;;  %v4932_v12 = vmul.f32 %v11296_v11, %v4547_v24  ;;  %v4933_v56 = vmul.f32 %v11298_v63, %v4547_v24 }
 0x4d2   :  { %v4719_v38 = vpack.c.bf16 %v4699_v10, %v4698_v26  ;;  %v4963_v36 = vadd.f32 %v11323_v34, %v4931_v9 }
 0x4d3   :  { %v4720_v49 = vpack.c.bf16 %v4700_v16, %v4700_v16  ;;  %v4964_v7 = vadd.f32 %v11325_v18, %v4932_v12  ;;  %v4965_v33 = vadd.f32 %v11327_v60, %v4933_v56 }
 0x4d4   :  { %v4754_v47 = vrot.slane %v4719_v38, 3 }
 0x4d5   :  { %v4755_v43 = vrot.slane %v4720_v49, 6  ;;  %v4756_v0 = vrot.slane %v4720_v49, 1  ;;  %v4984_v55 = vpack.c.bf16 %v4964_v7, %v4963_v36  ;;  %v4985_v41 = vpack.c.bf16 %v4965_v33, %v4965_v33  ;;  %v4561_v3 = vpop.permute.xlu2 %4560 }
 0x4d6   :  { %v4792_v27 = vsel %vm4124_vm6, %v4719_v38, %v4754_v47  ;;  %v4672_v11 = vmul.f32 %v11276_v45, %v4561_v3  ;;  %v4673_v24 = vmul.f32 %v11278_v62, %v4561_v3  ;;  %v4674_v63 = vmul.f32 %v11280_v58, %v4561_v3 }
 0x4d7   :  { %v4795_v17 = vsel %vm4128_vm7, %v4755_v43, %v4756_v0  ;;  %v5019_v61 = vrot.slane %v4984_v55, 3  ;;  %v5020_v52 = vrot.slane %v4985_v41, 6  ;;  %v5021_v23 = vrot.slane %v4985_v41, 1 }
 0x4d8   :  { %v4796_v44 = vsel %vm3953_vm0, %v4792_v27, %v4795_v17  ;;  %v4704_v15 = vadd.f32 %v11317_v31, %v4672_v11  ;;  %v4705_v22 = vadd.f32 %v11319_v1, %v4673_v24  ;;  %v4706_v26 = vadd.f32 %v11321_v20, %v4674_v63 }
 0x4d9   :  { %4836 = vst [vmem:[#allocation2 + $0x9] sm:$0x7] %v4796_v44  ;;  %v5057_v45 = vsel %vm4124_vm6, %v4984_v55, %v5019_v61  ;;  %v5060_v62 = vsel %vm4128_vm7, %v5020_v52, %v5021_v23  ;;  %v4937_v58 = vmul.f32 %v11300_v59, %v4561_v3  ;;  %v4938_v10 = vmul.f32 %v11302_v21, %v4561_v3 }
 0x4da   :  { %v5061_v9 = vsel %vm3953_vm0, %v5057_v45, %v5060_v62  ;;  %v4723_v16 = vpack.c.bf16 %v4705_v22, %v4704_v15  ;;  %v4724_v12 = vpack.c.bf16 %v4706_v26, %v4706_v26  ;;  %v4939_v56 = vmul.f32 %v11304_v32, %v4561_v3 }
 0x4db   :  { %5101 = vst [vmem:[#allocation3 + $0x9] sm:$0x7] %v5061_v9  ;;  %v4969_v38 = vadd.f32 %v11323_v34, %v4937_v58  ;;  %v4970_v36 = vadd.f32 %v11325_v18, %v4938_v10 }
 0x4dc   :  { %v4760_v49 = vrot.slane %v4723_v16, 3  ;;  %v4761_v7 = vrot.slane %v4724_v12, 6  ;;  %v4762_v33 = vrot.slane %v4724_v12, 1  ;;  %v4971_v47 = vadd.f32 %v11327_v60, %v4939_v56 }
 0x4dd   :  { %v4988_v43 = vpack.c.bf16 %v4970_v36, %v4969_v38  ;;  %v4533_v59 = vpop.permute.xlu1 %4532 }
 0x4de   :  { %v4806_v21 = vsel %vm4124_vm6, %v4723_v16, %v4760_v49  ;;  %v4809_v0 = vsel %vm4128_vm7, %v4761_v7, %v4762_v33  ;;  %v4989_v55 = vpack.c.bf16 %v4971_v47, %v4971_v47  ;;  %v4660_v41 = vmul.f32 %v11264_v37, %v4533_v59  ;;  %v4526_v24 = vpop.permute.xlu0 %4525 }
 0x4df   :  { %v4810_v32 = vsel %vm3953_vm0, %v4806_v21, %v4809_v0  ;;  %v5025_v3 = vrot.slane %v4988_v43, 3  ;;  %v4661_v27 = vmul.f32 %v11266_v25, %v4533_v59  ;;  %v4662_v11 = vmul.f32 %v11268_v54, %v4533_v59 }
 0x4e0   :  { %4838 = vst [vmem:[#allocation2 + $0xf] sm:$0x7] %v4810_v32  ;;  %v5026_v63 = vrot.slane %v4989_v55, 6  ;;  %v5027_v17 = vrot.slane %v4989_v55, 1  ;;  %v4692_v61 = vadd.f32 %v11317_v31, %v4660_v41  ;;  %v4925_v52 = vmul.f32 %v11288_v30, %v4533_v59 }
 0x4e1   :  { %v5071_v23 = vsel %vm4124_vm6, %v4988_v43, %v5025_v3  ;;  %v4693_v44 = vadd.f32 %v11319_v1, %v4661_v27  ;;  %v4694_v37 = vadd.f32 %v11321_v20, %v4662_v11  ;;  %v4926_v15 = vmul.f32 %v11290_v5, %v4533_v59 }
 0x4e2   :  { %v5074_v25 = vsel %vm4128_vm7, %v5026_v63, %v5027_v17  ;;  %v4927_v54 = vmul.f32 %v11292_v35, %v4533_v59  ;;  %v4957_v22 = vadd.f32 %v11323_v34, %v4925_v52  ;;  %v4657_v26 = vmul.f32 %v11193_v13, %v4526_v24 }
 0x4e3   :  { %v5075_v45 = vsel %vm3953_vm0, %v5071_v23, %v5074_v25  ;;  %v4715_v62 = vpack.c.bf16 %v4693_v44, %v4692_v61  ;;  %v4716_v30 = vpack.c.bf16 %v4694_v37, %v4694_v37  ;;  %v4958_v58 = vadd.f32 %v11325_v18, %v4926_v15 }
 0x4e4   :  { %5103 = vst [vmem:[#allocation3 + $0xf] sm:$0x7] %v5075_v45  ;;  %v4959_v10 = vadd.f32 %v11327_v60, %v4927_v54  ;;  %v4658_v9 = vmul.f32 %v11195_v57, %v4526_v24  ;;  %v4659_v5 = vmul.f32 %v11197_v53, %v4526_v24  ;;  %v4689_v16 = vadd.f32 %v11317_v31, %v4657_v26 }
 0x4e5   :  { %v4748_v35 = vrot.slane %v4715_v62, 3  ;;  %v4749_v12 = vrot.slane %v4716_v30, 6  ;;  %v4750_v56 = vrot.slane %v4716_v30, 1  ;;  %v4980_v38 = vpack.c.bf16 %v4958_v58, %v4957_v22  ;;  %v4554_v43 = vpop.permute.xlu1 %4553 }
 0x4e6   :  { %v4981_v13 = vpack.c.bf16 %v4959_v10, %v4959_v10  ;;  %v4690_v36 = vadd.f32 %v11319_v1, %v4658_v9  ;;  %v4691_v49 = vadd.f32 %v11321_v20, %v4659_v5  ;;  %v4922_v7 = vmul.f32 %v11238_v48, %v4526_v24  ;;  %v4575_v30 = vpop.permute.xlu0 %4574 }
 0x4e7   :  { %v4778_v33 = vsel %vm4124_vm6, %v4715_v62, %v4748_v35  ;;  %v4781_v47 = vsel %vm4128_vm7, %v4749_v12, %v4750_v56  ;;  %v5013_v57 = vrot.slane %v4980_v38, 3  ;;  %v4923_v53 = vmul.f32 %v11240_v50, %v4526_v24 }
 0x4e8   :  { %v4782_v59 = vsel %vm3953_vm0, %v4778_v33, %v4781_v47  ;;  %v5014_v21 = vrot.slane %v4981_v13, 6  ;;  %v5015_v0 = vrot.slane %v4981_v13, 1  ;;  %v4713_v55 = vpack.c.bf16 %v4690_v36, %v4689_v16 }
 0x4e9   :  { %4834 = vst [vmem:[#allocation2 + $0x3] sm:$0x7] %v4782_v59  ;;  %v5043_v41 = vsel %vm4124_vm6, %v4980_v38, %v5013_v57  ;;  %v4714_v32 = vpack.c.bf16 %v4691_v49, %v4691_v49  ;;  %v4924_v3 = vmul.f32 %v11242_v6, %v4526_v24  ;;  %v4954_v48 = vadd.f32 %v11323_v34, %v4922_v7  ;;  %v4895_v57 = vld.sshfl [vmem:[#allocation1 + $0x20] sm:$0xff pattern:$0x73625140] }
 0x4ea   :  { %v5046_v27 = vsel %vm4128_vm7, %v5014_v21, %v5015_v0  ;;  %v4745_v11 = vrot.slane %v4713_v55, 3  ;;  %v4955_v63 = vadd.f32 %v11325_v18, %v4923_v53  ;;  %v4669_v50 = vmul.f32 %v11214_v29, %v4554_v43 }
 0x4eb   :  { %v5047_v17 = vsel %vm3953_vm0, %v5043_v41, %v5046_v27  ;;  %v4746_v61 = vrot.slane %v4714_v32, 6  ;;  %v4747_v52 = vrot.slane %v4714_v32, 1  ;;  %v4956_v23 = vadd.f32 %v11327_v60, %v4924_v3 }
 0x4ec   :  { %5099 = vst [vmem:[#allocation3 + $0x3] sm:$0x7] %v5047_v17  ;;  %v4771_v44 = vsel %vm4124_vm6, %v4713_v55, %v4745_v11  ;;  %v4978_v37 = vpack.c.bf16 %v4955_v63, %v4954_v48  ;;  %v4670_v6 = vmul.f32 %v11216_v46, %v4554_v43  ;;  %v4671_v24 = vmul.f32 %v11218_v28, %v4554_v43  ;;  %v4897_v48 = vld.sshfl [vmem:[#allocation1 + $0x30] sm:$0xff pattern:$0x73625140] }
 0x4ed   :  { %v4774_v15 = vsel %vm4128_vm7, %v4746_v61, %v4747_v52  ;;  %v4979_v25 = vpack.c.bf16 %v4956_v23, %v4956_v23  ;;  %v4701_v54 = vadd.f32 %v11317_v31, %v4669_v50  ;;  %v4934_v29 = vmul.f32 %v11258_v40, %v4554_v43  ;;  %v4568_v0 = vpop.permute.xlu1 %4567 }
 0x4ee   :  { %v4775_v22 = vsel %vm3953_vm0, %v4771_v44, %v4774_v15  ;;  %v5010_v26 = vrot.slane %v4978_v37, 3  ;;  %v4702_v45 = vadd.f32 %v11319_v1, %v4670_v6  ;;  %v4703_v62 = vadd.f32 %v11321_v20, %v4671_v24 }
 0x4ef   :  { %4833 = vst [vmem:[#allocation2] sm:$0x7] %v4775_v22  ;;  %v5011_v58 = vrot.slane %v4979_v25, 6  ;;  %v5012_v46 = vrot.slane %v4979_v25, 1  ;;  %v4935_v28 = vmul.f32 %v11260_v14, %v4554_v43  ;;  %v4936_v10 = vmul.f32 %v11262_v19, %v4554_v43 }
 0x4f0   :  { %v5036_v9 = vsel %vm4124_vm6, %v4978_v37, %v5010_v26  ;;  %v4721_v5 = vpack.c.bf16 %v4702_v45, %v4701_v54  ;;  %v4722_v16 = vpack.c.bf16 %v4703_v62, %v4703_v62  ;;  %v4966_v40 = vadd.f32 %v11323_v34, %v4934_v29 }
 0x4f1   :  { %v5039_v35 = vsel %vm4128_vm7, %v5011_v58, %v5012_v46  ;;  %v4967_v12 = vadd.f32 %v11325_v18, %v4935_v28  ;;  %v4968_v56 = vadd.f32 %v11327_v60, %v4936_v10  ;;  %v4678_v38 = vmul.f32 %v11282_v8, %v4575_v30  ;;  %v4896_v8 = vld.sshfl [vmem:[#allocation1 + $0x28] sm:$0xff pattern:$0x73625140] }
 0x4f2   :  { %v5040_v13 = vsel %vm3953_vm0, %v5036_v9, %v5039_v35  ;;  %v4757_v36 = vrot.slane %v4721_v5, 3  ;;  %v4758_v14 = vrot.slane %v4722_v16, 6  ;;  %v4759_v49 = vrot.slane %v4722_v16, 1  ;;  %v4892_v58 = vld.sshfl [vmem:[#allocation1 + $0x8] sm:$0xff pattern:$0x73625140] }
 0x4f3   :  { %5098 = vst [vmem:[#allocation3] sm:$0x7] %v5040_v13  ;;  %v4986_v19 = vpack.c.bf16 %v4967_v12, %v4966_v40  ;;  %v4987_v7 = vpack.c.bf16 %v4968_v56, %v4968_v56  ;;  %v4679_v33 = vmul.f32 %v11284_v39, %v4575_v30  ;;  %v4680_v47 = vmul.f32 %v11286_v2, %v4575_v30  ;;  %v4893_v40 = vld.sshfl [vmem:[#allocation1 + $0x10] sm:$0xff pattern:$0x73625140] }
 0x4f4   :  { %v4799_v53 = vsel %vm4124_vm6, %v4721_v5, %v4757_v36  ;;  %v4802_v43 = vsel %vm4128_vm7, %v4758_v14, %v4759_v49  ;;  %v4710_v59 = vadd.f32 %v11317_v31, %v4678_v38  ;;  %v4943_v21 = vmul.f32 %v4895_v57, %v4575_v30 }
 0x4f5   :  { %v4803_v55 = vsel %vm3953_vm0, %v4799_v53, %v4802_v43  ;;  %v5022_v41 = vrot.slane %v4986_v19, 3  ;;  %v5023_v32 = vrot.slane %v4987_v7, 6  ;;  %v5024_v3 = vrot.slane %v4987_v7, 1 }
 0x4f6   :  { %4837 = vst [vmem:[#allocation2 + $0xc] sm:$0x7] %v4803_v55  ;;  %v4711_v39 = vadd.f32 %v11319_v1, %v4679_v33  ;;  %v4712_v2 = vadd.f32 %v11321_v20, %v4680_v47  ;;  %v4944_v27 = vmul.f32 %v4896_v8, %v4575_v30  ;;  %v4945_v11 = vmul.f32 %v4897_v48, %v4575_v30 }
 0x4f7   :  { %v5064_v63 = vsel %vm4124_vm6, %v4986_v19, %v5022_v41  ;;  %v5067_v50 = vsel %vm4128_vm7, %v5023_v32, %v5024_v3  ;;  %v4975_v17 = vadd.f32 %v11323_v34, %v4943_v21  ;;  %v4675_v61 = vmul.f32 %v11226_v51, %v4568_v0  ;;  %v4891_v51 = vld.sshfl [vmem:[#allocation1] sm:$0xff pattern:$0x73625140] }
 0x4f8   :  { %v5068_v52 = vsel %vm3953_vm0, %v5064_v63, %v5067_v50  ;;  %v4727_v23 = vpack.c.bf16 %v4711_v39, %v4710_v59  ;;  %v4728_v44 = vpack.c.bf16 %v4712_v2, %v4712_v2  ;;  %v4976_v37 = vadd.f32 %v11325_v18, %v4944_v27 }
 0x4f9   :  { %5102 = vst [vmem:[#allocation3 + $0xc] sm:$0x7] %v5068_v52  ;;  %v4977_v6 = vadd.f32 %v11327_v60, %v4945_v11  ;;  %v4676_v24 = vmul.f32 %v11228_v42, %v4568_v0  ;;  %v4677_v15 = vmul.f32 %v11232_v4, %v4568_v0  ;;  %v4707_v25 = vadd.f32 %v11317_v31, %v4675_v61 }
 0x4fa   :  { %v4766_v54 = vrot.slane %v4727_v23, 3  ;;  %v4767_v29 = vrot.slane %v4728_v44, 6  ;;  %v4768_v22 = vrot.slane %v4728_v44, 1  ;;  %v4992_v26 = vpack.c.bf16 %v4976_v37, %v4975_v17 }
 0x4fb   :  { %v4993_v45 = vpack.c.bf16 %v4977_v6, %v4977_v6  ;;  %v4708_v62 = vadd.f32 %v11319_v1, %v4676_v24  ;;  %v4709_v30 = vadd.f32 %v11321_v20, %v4677_v15  ;;  %v4940_v46 = vmul.f32 %v4891_v51, %v4568_v0 }
 0x4fc   :  { %v4820_v28 = vsel %vm4124_vm6, %v4727_v23, %v4766_v54  ;;  %v4823_v42 = vsel %vm4128_vm7, %v4767_v29, %v4768_v22  ;;  %v5031_v10 = vrot.slane %v4992_v26, 3  ;;  %v4941_v4 = vmul.f32 %v4892_v58, %v4568_v0 }
 0x4fd   :  { %v4824_v31 = vsel %vm3953_vm0, %v4820_v28, %v4823_v42  ;;  %v5032_v9 = vrot.slane %v4993_v45, 6  ;;  %v5033_v5 = vrot.slane %v4993_v45, 1  ;;  %v4725_v16 = vpack.c.bf16 %v4708_v62, %v4707_v25 }
 0x4fe   :  { %4840 = vst [vmem:[#allocation2 + $0x15] sm:$0x7] %v4824_v31  ;;  %v5085_v35 = vsel %vm4124_vm6, %v4992_v26, %v5031_v10  ;;  %v4726_v1 = vpack.c.bf16 %v4709_v30, %v4709_v30  ;;  %v4942_v12 = vmul.f32 %v4893_v40, %v4568_v0  ;;  %v4972_v20 = vadd.f32 %v11323_v34, %v4940_v46 }
 0x4ff   :  { %v5088_v56 = vsel %vm4128_vm7, %v5032_v9, %v5033_v5  ;;  %v4763_v38 = vrot.slane %v4725_v16, 3  ;;  %v4973_v13 = vadd.f32 %v11325_v18, %v4941_v4  ;;  %v11469_v0 = vmov 0.0  }
 0x500   :  { %v5089_v36 = vsel %vm3953_vm0, %v5085_v35, %v5088_v56  ;;  %v4764_v14 = vrot.slane %v4726_v1, 6  ;;  %v4765_v49 = vrot.slane %v4726_v1, 1  ;;  %v4974_v19 = vadd.f32 %v11327_v60, %v4942_v12 }
 0x501   :  { %5105 = vst [vmem:[#allocation3 + $0x15] sm:$0x7] %v5089_v36  ;;  %v4813_v7 = vsel %vm4124_vm6, %v4725_v16, %v4763_v38  ;;  %v4990_v33 = vpack.c.bf16 %v4973_v13, %v4972_v20  ;;  %v11467_v60 = vmov 0.0  }
 0x502   :  { %v4816_v47 = vsel %vm4128_vm7, %v4764_v14, %v4765_v49  ;;  %v4991_v57 = vpack.c.bf16 %v4974_v19, %v4974_v19 }
 0x503   :  { %v4817_v34 = vsel %vm3953_vm0, %v4813_v7, %v4816_v47  ;;  %v5028_v53 = vrot.slane %v4990_v33, 3 }
 0x504   :  { %4839 = vst [vmem:[#allocation2 + $0x12] sm:$0x7] %v4817_v34  ;;  %v5029_v43 = vrot.slane %v4991_v57, 6  ;;  %v5030_v59 = vrot.slane %v4991_v57, 1 }
 0x505   :  { %v5078_v18 = vsel %vm4124_vm6, %v4990_v33, %v5028_v53 }
 0x506   :  { %v5081_v8 = vsel %vm4128_vm7, %v5029_v43, %v5030_v59 }
 0x507   :  { %v5082_v21 = vsel %vm3953_vm0, %v5078_v18, %v5081_v8 }
 0x508   :  { %5104 = vst [vmem:[#allocation3 + $0x12] sm:$0x7] %v5082_v21 }
 0x509 LB: > { %v12541_v55 = vld [vmem:[#allocation120_spill] sm:$0xff]  ;;  %v12542_v41 = vld [vmem:[#allocation126_spill] sm:$0xff]  ;;  %v12545_v2 = vld [vmem:[#allocation125_spill] sm:$0xff]  ;;  %s5213_s28 = smul.u32 3, %s10176_s11  ;;  %s5212_s25 = ssub.s32 7, %s10176_s11  ;;  %s10176_s11 = sphi %s11471_s11, %s5209_s11   ;;  %v10172_v0 = vphi %v11469_v0, %v11716_v0   ;;  %v10168_v60 = vphi %v11467_v60, %v5970_v60  }
 0x50a   : > { %v8872_v32 = vor.u32 %v12542_v41, %v12541_v55  ;;  %v12543_v3 = vld [vmem:[#allocation216_spill] sm:$0xff]  ;;  %v12544_v48 = vld [vmem:[#allocation222_spill] sm:$0xff]  ;;  %v12546_v27 = vld [vmem:[#allocation119_spill] sm:$0xff]  ;;  %s5217_s3 = smul.u32 3, %s5212_s25  ;;  %s9638_s0 = sshll.u32 %s10176_s11, 2 }
 0x50b   : > { %v9064_v39 = vor.u32 %v12544_v48, %v12543_v3  ;;  %v8876_v11 = vor.u32 %v12546_v27, %v12545_v2  ;;  %v12547_v63 = vld [vmem:[#allocation221_spill] sm:$0xff]  ;;  %v12548_v50 = vld [vmem:[#allocation215_spill] sm:$0xff]  ;;  %v12549_v61 = vld [vmem:[#allocation108_spill] sm:$0xff]  ;;  %s5214_s29 = scalar_lea.vmem [#allocation2], %s5213_s28  ;;  %s5973_s8 = scalar_lea.vmem [#allocation4], %s9638_s0 }
 0x50c   : > { %v9068_v17 = vor.u32 %v12548_v50, %v12547_v63  ;;  %5703 = vmatpush.bf16.msra.mxu0 %v8872_v32  ;;  %v12550_v52 = vld [vmem:[#allocation114_spill] sm:$0xff]  ;;  %v12551_v44 = vld [vmem:[#allocation204_spill] sm:$0xff]  ;;  %v12553_v24 = vld [vmem:[#allocation113_spill] sm:$0xff]  ;;  %s5218_s4 = scalar_lea.vmem [#allocation3], %s5217_s3  ;;  %s9639_s30 = sshll.u32 %s5212_s25, 2 }
 0x50d   : > { %5716 = vmatpush.bf16.msra.mxu1 %v9064_v39  ;;  %v8848_v23 = vor.u32 %v12550_v52, %v12549_v61  ;;  %v12552_v37 = vld [vmem:[#allocation210_spill] sm:$0xff]  ;;  %5729 = vmatpush.bf16.msra.mxu2 %v8876_v11  ;;  %v12554_v15 = vld [vmem:[#allocation107_spill] sm:$0xff]  ;;  %v12555_v54 = vld [vmem:[#allocation209_spill] sm:$0xff]  ;;  %s5977_s20 = scalar_lea.vmem [#allocation4], %s9639_s30  ;;  %s5209_s11 = sadd.s32 1, %s10176_s11  }
 0x50e   : > { %v9040_v6 = vor.u32 %v12552_v37, %v12551_v44  ;;  %5742 = vmatpush.bf16.msra.mxu3 %v9068_v17  ;;  %v8852_v25 = vor.u32 %v12554_v15, %v12553_v24  ;;  %v12556_v29 = vld [vmem:[#allocation203_spill] sm:$0xff]  ;;  %v12557_v26 = vld [vmem:[#allocation96_spill] sm:$0xff]  ;;  %v12558_v51 = vld [vmem:[#allocation102_spill] sm:$0xff]  ;;  %p5206_p0 = scmp.ge.s32.totalorder %s5209_s11, 8  }
 0x50f   : > { %v9044_v22 = vor.u32 %v12556_v29, %v12555_v54  ;;  %v8824_v45 = vor.u32 %v12558_v51, %v12557_v26  ;;  %v12559_v62 = vld [vmem:[#allocation192_spill] sm:$0xff]  ;;  %v12560_v30 = vld [vmem:[#allocation198_spill] sm:$0xff]  ;;  %v12561_v46 = vld [vmem:[#allocation101_spill] sm:$0xff]  ;;  %s12755_s9 = sld [smem:[#allocation232_spill]] (%p5206_p0)  ;;  %s12251_s15 = smov (%p5206_p0), 1  }
 0x510   : > { %5704 = vmatpush.bf16.msra.mxu0 %v8848_v23  ;;  %v9016_v58 = vor.u32 %v12560_v30, %v12559_v62  ;;  %v12562_v28 = vld [vmem:[#allocation95_spill] sm:$0xff]  ;;  %v12563_v10 = vld [vmem:[#allocation197_spill] sm:$0xff]  ;;  %v12565_v9 = vld [vmem:[#allocation84_spill] sm:$0xff] }
 0x511   : > { %5717 = vmatpush.bf16.msra.mxu1 %v9040_v6  ;;  %5730 = vmatpush.bf16.msra.mxu2 %v8852_v25  ;;  %v8828_v42 = vor.u32 %v12562_v28, %v12561_v46  ;;  %v12564_v4 = vld [vmem:[#allocation191_spill] sm:$0xff]  ;;  %v12566_v5 = vld [vmem:[#allocation90_spill] sm:$0xff]  ;;  %v12567_v40 = vld [vmem:[#allocation180_spill] sm:$0xff] }
 0x512   : > { %5743 = vmatpush.bf16.msra.mxu3 %v9044_v22  ;;  %v9020_v31 = vor.u32 %v12564_v4, %v12563_v10  ;;  %v8800_v16 = vor.u32 %v12566_v5, %v12565_v9  ;;  %v12568_v35 = vld [vmem:[#allocation186_spill] sm:$0xff]  ;;  %v12569_v12 = vld [vmem:[#allocation89_spill] sm:$0xff]  ;;  %v12570_v20 = vld [vmem:[#allocation83_spill] sm:$0xff] }
 0x513   : > { %v8992_v1 = vor.u32 %v12568_v35, %v12567_v40  ;;  %v8804_v56 = vor.u32 %v12570_v20, %v12569_v12  ;;  %v12571_v38 = vld [vmem:[#allocation185_spill] sm:$0xff]  ;;  %v12572_v13 = vld [vmem:[#allocation179_spill] sm:$0xff]  ;;  %v12573_v14 = vld [vmem:[#allocation72_spill] sm:$0xff] }
 0x514   : > { %5705 = vmatpush.bf16.msra.mxu0 %v8824_v45  ;;  %v8996_v36 = vor.u32 %v12572_v13, %v12571_v38  ;;  %v12574_v49 = vld [vmem:[#allocation78_spill] sm:$0xff]  ;;  %v12575_v7 = vld [vmem:[#allocation168_spill] sm:$0xff]  ;;  %v12577_v57 = vld [vmem:[#allocation77_spill] sm:$0xff]  ;;  %v11556_v13 = vpack.c.bf16 %v10172_v0, %v10172_v0 }
 0x515   : > { %5718 = vmatpush.bf16.msra.mxu1 %v9016_v58  ;;  %5731 = vmatpush.bf16.msra.mxu2 %v8828_v42  ;;  %v8776_v19 = vor.u32 %v12574_v49, %v12573_v14  ;;  %v12576_v33 = vld [vmem:[#allocation174_spill] sm:$0xff]  ;;  %v12578_v34 = vld [vmem:[#allocation71_spill] sm:$0xff]  ;;  %v12579_v43 = vld [vmem:[#allocation173_spill] sm:$0xff] }
 0x516   : > { %5744 = vmatpush.bf16.msra.mxu3 %v9020_v31  ;;  %v8968_v47 = vor.u32 %v12576_v33, %v12575_v7  ;;  %v8780_v53 = vor.u32 %v12578_v34, %v12577_v57  ;;  %v12580_v59 = vld [vmem:[#allocation167_spill] sm:$0xff]  ;;  %v12581_v8 = vld [vmem:[#allocation60_spill] sm:$0xff]  ;;  %v12582_v21 = vld [vmem:[#allocation66_spill] sm:$0xff] }
 0x517   : > { %v8972_v18 = vor.u32 %v12580_v59, %v12579_v43  ;;  %v8752_v55 = vor.u32 %v12582_v21, %v12581_v8  ;;  %v12583_v41 = vld [vmem:[#allocation156_spill] sm:$0xff]  ;;  %v12584_v32 = vld [vmem:[#allocation162_spill] sm:$0xff]  ;;  %v12585_v48 = vld [vmem:[#allocation65_spill] sm:$0xff] }
 0x518   : > { %5706 = vmatpush.bf16.msra.mxu0 %v8800_v16  ;;  %v8944_v3 = vor.u32 %v12584_v32, %v12583_v41  ;;  %v12586_v39 = vld [vmem:[#allocation59_spill] sm:$0xff]  ;;  %v12587_v27 = vld [vmem:[#allocation161_spill] sm:$0xff]  ;;  %v12589_v50 = vld [vmem:[#allocation48_spill] sm:$0xff] }
 0x519   : > { %5719 = vmatpush.bf16.msra.mxu1 %v8992_v1  ;;  %5732 = vmatpush.bf16.msra.mxu2 %v8804_v56  ;;  %v8756_v2 = vor.u32 %v12586_v39, %v12585_v48  ;;  %v12588_v11 = vld [vmem:[#allocation155_spill] sm:$0xff]  ;;  %v12590_v17 = vld [vmem:[#allocation54_spill] sm:$0xff]  ;;  %v12591_v52 = vld [vmem:[#allocation144_spill] sm:$0xff] }
 0x51a   : > { %5745 = vmatpush.bf16.msra.mxu3 %v8996_v36  ;;  %v8948_v63 = vor.u32 %v12588_v11, %v12587_v27  ;;  %v8728_v61 = vor.u32 %v12590_v17, %v12589_v50  ;;  %v12592_v23 = vld [vmem:[#allocation150_spill] sm:$0xff]  ;;  %v12593_v37 = vld [vmem:[#allocation53_spill] sm:$0xff]  ;;  %v12594_v6 = vld [vmem:[#allocation47_spill] sm:$0xff]  ;;  %v11560_v36 = vpack.c.bf16 %v10168_v60, %v10168_v60 }
 0x51b   : > { %v8920_v44 = vor.u32 %v12592_v23, %v12591_v52  ;;  %v8732_v24 = vor.u32 %v12594_v6, %v12593_v37  ;;  %v12595_v15 = vld [vmem:[#allocation149_spill] sm:$0xff]  ;;  %v12596_v25 = vld [vmem:[#allocation143_spill] sm:$0xff]  ;;  %v12597_v29 = vld [vmem:[#allocation36_spill] sm:$0xff] }
 0x51c   : > { %5707 = vmatpush.bf16.msra.mxu0 %v8776_v19  ;;  %v8924_v54 = vor.u32 %v12596_v25, %v12595_v15  ;;  %v12598_v22 = vld [vmem:[#allocation42_spill] sm:$0xff]  ;;  %v12599_v51 = vld [vmem:[#allocation132_spill] sm:$0xff]  ;;  %v12601_v30 = vld [vmem:[#allocation41_spill] sm:$0xff] }
 0x51d   : > { %5720 = vmatpush.bf16.msra.mxu1 %v8968_v47  ;;  %5733 = vmatpush.bf16.msra.mxu2 %v8780_v53  ;;  %v8704_v26 = vor.u32 %v12598_v22, %v12597_v29  ;;  %v12600_v45 = vld [vmem:[#allocation138_spill] sm:$0xff]  ;;  %v12602_v58 = vld [vmem:[#allocation35_spill] sm:$0xff]  ;;  %v12603_v28 = vld [vmem:[#allocation137_spill] sm:$0xff] }
 0x51e   : > { %5746 = vmatpush.bf16.msra.mxu3 %v8972_v18  ;;  %v8896_v62 = vor.u32 %v12600_v45, %v12599_v51  ;;  %v8708_v46 = vor.u32 %v12602_v58, %v12601_v30  ;;  %v12604_v42 = vld [vmem:[#allocation131_spill] sm:$0xff]  ;;  %v12605_v4 = vld [vmem:[#allocation122_spill] sm:$0xff]  ;;  %v12606_v31 = vld [vmem:[#allocation128_spill] sm:$0xff] }
 0x51f   : > { %v8900_v10 = vor.u32 %v12604_v42, %v12603_v28  ;;  %v8880_v9 = vor.u32 %v12606_v31, %v12605_v4  ;;  %v12607_v5 = vld [vmem:[#allocation218_spill] sm:$0xff]  ;;  %v12608_v16 = vld [vmem:[#allocation224_spill] sm:$0xff]  ;;  %v12609_v35 = vld [vmem:[#allocation127_spill] sm:$0xff] }
 0x520   : > { %5708 = vmatpush.bf16.msra.mxu0 %v8752_v55  ;;  %v9072_v40 = vor.u32 %v12608_v16, %v12607_v5  ;;  %v12610_v1 = vld [vmem:[#allocation121_spill] sm:$0xff]  ;;  %v12611_v20 = vld [vmem:[#allocation223_spill] sm:$0xff]  ;;  %v12613_v14 = vld [vmem:[#allocation110_spill] sm:$0xff] }
 0x521   : > { %5721 = vmatpush.bf16.msra.mxu1 %v8944_v3  ;;  %5734 = vmatpush.bf16.msra.mxu2 %v8756_v2  ;;  %v8884_v12 = vor.u32 %v12610_v1, %v12609_v35  ;;  %v12612_v56 = vld [vmem:[#allocation217_spill] sm:$0xff]  ;;  %v12614_v49 = vld [vmem:[#allocation116_spill] sm:$0xff]  ;;  %v12615_v7 = vld [vmem:[#allocation206_spill] sm:$0xff] }
 0x522   : > { %5747 = vmatpush.bf16.msra.mxu3 %v8948_v63  ;;  %v9076_v38 = vor.u32 %v12612_v56, %v12611_v20  ;;  %v8856_v19 = vor.u32 %v12614_v49, %v12613_v14  ;;  %v12616_v33 = vld [vmem:[#allocation212_spill] sm:$0xff]  ;;  %v12617_v57 = vld [vmem:[#allocation115_spill] sm:$0xff]  ;;  %v12618_v34 = vld [vmem:[#allocation109_spill] sm:$0xff] }
 0x523   : > { %v9048_v47 = vor.u32 %v12616_v33, %v12615_v7  ;;  %v8860_v53 = vor.u32 %v12618_v34, %v12617_v57  ;;  %v12619_v43 = vld [vmem:[#allocation211_spill] sm:$0xff]  ;;  %v12620_v59 = vld [vmem:[#allocation205_spill] sm:$0xff]  ;;  %v12621_v8 = vld [vmem:[#allocation98_spill] sm:$0xff] }
 0x524   : > { %5709 = vmatpush.bf16.msra.mxu0 %v8728_v61  ;;  %v9052_v18 = vor.u32 %v12620_v59, %v12619_v43  ;;  %v12622_v21 = vld [vmem:[#allocation104_spill] sm:$0xff]  ;;  %v12623_v41 = vld [vmem:[#allocation194_spill] sm:$0xff]  ;;  %v12625_v48 = vld [vmem:[#allocation103_spill] sm:$0xff] }
 0x525   : > { %5722 = vmatpush.bf16.msra.mxu1 %v8920_v44  ;;  %5735 = vmatpush.bf16.msra.mxu2 %v8732_v24  ;;  %v8832_v55 = vor.u32 %v12622_v21, %v12621_v8  ;;  %v12624_v32 = vld [vmem:[#allocation200_spill] sm:$0xff]  ;;  %v12626_v39 = vld [vmem:[#allocation97_spill] sm:$0xff]  ;;  %v12627_v27 = vld [vmem:[#allocation199_spill] sm:$0xff] }
 0x526   : > { %5748 = vmatpush.bf16.msra.mxu3 %v8924_v54  ;;  %v9024_v3 = vor.u32 %v12624_v32, %v12623_v41  ;;  %v8836_v2 = vor.u32 %v12626_v39, %v12625_v48  ;;  %v12628_v11 = vld [vmem:[#allocation193_spill] sm:$0xff]  ;;  %v12629_v50 = vld [vmem:[#allocation86_spill] sm:$0xff]  ;;  %v12630_v17 = vld [vmem:[#allocation92_spill] sm:$0xff] }
 0x527   : > { %v9028_v63 = vor.u32 %v12628_v11, %v12627_v27  ;;  %v8808_v61 = vor.u32 %v12630_v17, %v12629_v50  ;;  %v12631_v52 = vld [vmem:[#allocation182_spill] sm:$0xff]  ;;  %v12632_v23 = vld [vmem:[#allocation188_spill] sm:$0xff]  ;;  %v12633_v37 = vld [vmem:[#allocation91_spill] sm:$0xff] }
 0x528   : > { %5710 = vmatpush.bf16.msra.mxu0 %v8704_v26  ;;  %v9000_v44 = vor.u32 %v12632_v23, %v12631_v52  ;;  %v12634_v6 = vld [vmem:[#allocation85_spill] sm:$0xff]  ;;  %v12635_v15 = vld [vmem:[#allocation187_spill] sm:$0xff]  ;;  %v12637_v29 = vld [vmem:[#allocation74_spill] sm:$0xff] }
 0x529   : > { %5723 = vmatpush.bf16.msra.mxu1 %v8896_v62  ;;  %5736 = vmatpush.bf16.msra.mxu2 %v8708_v46  ;;  %v8812_v24 = vor.u32 %v12634_v6, %v12633_v37  ;;  %v12636_v25 = vld [vmem:[#allocation181_spill] sm:$0xff]  ;;  %v12638_v22 = vld [vmem:[#allocation80_spill] sm:$0xff]  ;;  %v12639_v51 = vld [vmem:[#allocation170_spill] sm:$0xff] }
 0x52a   : > { %5749 = vmatpush.bf16.msra.mxu3 %v8900_v10  ;;  %v9004_v54 = vor.u32 %v12636_v25, %v12635_v15  ;;  %v8784_v26 = vor.u32 %v12638_v22, %v12637_v29  ;;  %v12640_v45 = vld [vmem:[#allocation176_spill] sm:$0xff]  ;;  %v12641_v30 = vld [vmem:[#allocation79_spill] sm:$0xff]  ;;  %v12642_v58 = vld [vmem:[#allocation73_spill] sm:$0xff] }
 0x52b   : > { %5711 = vmatmul.bf16.vlgmr.msra.gmra.mxu0 %v11556_v13  ;;  %v8976_v62 = vor.u32 %v12640_v45, %v12639_v51  ;;  %v8788_v46 = vor.u32 %v12642_v58, %v12641_v30  ;;  %v12643_v28 = vld [vmem:[#allocation175_spill] sm:$0xff]  ;;  %v12644_v42 = vld [vmem:[#allocation169_spill] sm:$0xff]  ;;  %v12645_v4 = vld [vmem:[#allocation62_spill] sm:$0xff] }
 0x52c   : > { %5755 = vmatpush.bf16.msrb.mxu0 %v8880_v9  ;;  %5724 = vmatmul.bf16.vlgmr.msra.gmra.mxu1 %v11560_v36  ;;  %v8980_v10 = vor.u32 %v12644_v42, %v12643_v28  ;;  %v12646_v31 = vld [vmem:[#allocation68_spill] sm:$0xff]  ;;  %v12647_v5 = vld [vmem:[#allocation158_spill] sm:$0xff]  ;;  %v12649_v35 = vld [vmem:[#allocation67_spill] sm:$0xff] }
 0x52d   : > { %5768 = vmatpush.bf16.msrb.mxu1 %v9072_v40  ;;  %5781 = vmatpush.bf16.msrb.mxu2 %v8884_v12  ;;  %v8760_v9 = vor.u32 %v12646_v31, %v12645_v4  ;;  %v12648_v16 = vld [vmem:[#allocation164_spill] sm:$0xff]  ;;  %v12650_v1 = vld [vmem:[#allocation61_spill] sm:$0xff]  ;;  %v12651_v20 = vld [vmem:[#allocation163_spill] sm:$0xff] }
 0x52e   : > { %5794 = vmatpush.bf16.msrb.mxu3 %v9076_v38  ;;  %5737 = vmatmul.bf16.vlgmr.msra.gmra.mxu2 %v11556_v13  ;;  %v8952_v40 = vor.u32 %v12648_v16, %v12647_v5  ;;  %v8764_v12 = vor.u32 %v12650_v1, %v12649_v35  ;;  %v12652_v56 = vld [vmem:[#allocation157_spill] sm:$0xff]  ;;  %v12653_v14 = vld [vmem:[#allocation50_spill] sm:$0xff]  ;;  %v12654_v49 = vld [vmem:[#allocation56_spill] sm:$0xff] }
 0x52f   : > { %5750 = vmatmul.bf16.vlgmr.msra.gmra.mxu3 %v11560_v36  ;;  %v8956_v38 = vor.u32 %v12652_v56, %v12651_v20  ;;  %v12655_v7 = vld [vmem:[#allocation146_spill] sm:$0xff]  ;;  %v12656_v33 = vld [vmem:[#allocation152_spill] sm:$0xff]  ;;  %v12657_v57 = vld [vmem:[#allocation55_spill] sm:$0xff] }
 0x530   : > { %5756 = vmatpush.bf16.msrb.mxu0 %v8856_v19  ;;  %v8736_v19 = vor.u32 %v12654_v49, %v12653_v14  ;;  %v12658_v34 = vld [vmem:[#allocation49_spill] sm:$0xff]  ;;  %v12659_v43 = vld [vmem:[#allocation151_spill] sm:$0xff]  ;;  %v12661_v8 = vld [vmem:[#allocation38_spill] sm:$0xff] }
 0x531   : > { %5769 = vmatpush.bf16.msrb.mxu1 %v9048_v47  ;;  %5782 = vmatpush.bf16.msrb.mxu2 %v8860_v53  ;;  %v8928_v47 = vor.u32 %v12656_v33, %v12655_v7  ;;  %v8740_v53 = vor.u32 %v12658_v34, %v12657_v57  ;;  %v12660_v59 = vld [vmem:[#allocation145_spill] sm:$0xff]  ;;  %v12662_v21 = vld [vmem:[#allocation44_spill] sm:$0xff]  ;;  %v12663_v41 = vld [vmem:[#allocation134_spill] sm:$0xff] }
 0x532   : > { %5795 = vmatpush.bf16.msrb.mxu3 %v9052_v18  ;;  %v8932_v18 = vor.u32 %v12660_v59, %v12659_v43  ;;  %v12664_v32 = vld [vmem:[#allocation140_spill] sm:$0xff]  ;;  %v12665_v48 = vld [vmem:[#allocation43_spill] sm:$0xff]  ;;  %v12666_v39 = vld [vmem:[#allocation37_spill] sm:$0xff] }
 0x533   : > { %v12667_v27 = vld [vmem:[#allocation139_spill] sm:$0xff]  ;;  %v12668_v11 = vld [vmem:[#allocation133_spill] sm:$0xff]  ;;  %v12669_v50 = vld [vmem:[#allocation124_spill] sm:$0xff] }
 0x534   : > { %5757 = vmatpush.bf16.msrb.mxu0 %v8832_v55  ;;  %v8712_v55 = vor.u32 %v12662_v21, %v12661_v8  ;;  %v12670_v17 = vld [vmem:[#allocation130_spill] sm:$0xff]  ;;  %v12671_v52 = vld [vmem:[#allocation220_spill] sm:$0xff]  ;;  %v12673_v37 = vld [vmem:[#allocation129_spill] sm:$0xff] }
 0x535   : > { %5770 = vmatpush.bf16.msrb.mxu1 %v9024_v3  ;;  %5783 = vmatpush.bf16.msrb.mxu2 %v8836_v2  ;;  %v8904_v3 = vor.u32 %v12664_v32, %v12663_v41  ;;  %v8716_v2 = vor.u32 %v12666_v39, %v12665_v48  ;;  %v12672_v23 = vld [vmem:[#allocation226_spill] sm:$0xff]  ;;  %v12674_v6 = vld [vmem:[#allocation123_spill] sm:$0xff]  ;;  %v12675_v15 = vld [vmem:[#allocation225_spill] sm:$0xff] }
 0x536   : > { %5796 = vmatpush.bf16.msrb.mxu3 %v9028_v63  ;;  %v8908_v63 = vor.u32 %v12668_v11, %v12667_v27  ;;  %v12676_v25 = vld [vmem:[#allocation219_spill] sm:$0xff]  ;;  %v12677_v29 = vld [vmem:[#allocation112_spill] sm:$0xff]  ;;  %v12678_v22 = vld [vmem:[#allocation118_spill] sm:$0xff] }
 0x537   : > { %v12679_v51 = vld [vmem:[#allocation208_spill] sm:$0xff]  ;;  %v12680_v45 = vld [vmem:[#allocation214_spill] sm:$0xff]  ;;  %v12681_v30 = vld [vmem:[#allocation117_spill] sm:$0xff] }
 0x538   : > { %5758 = vmatpush.bf16.msrb.mxu0 %v8808_v61  ;;  %v8888_v61 = vor.u32 %v12670_v17, %v12669_v50  ;;  %v12682_v58 = vld [vmem:[#allocation111_spill] sm:$0xff]  ;;  %v12683_v28 = vld [vmem:[#allocation213_spill] sm:$0xff]  ;;  %v12685_v4 = vld [vmem:[#allocation100_spill] sm:$0xff] }
 0x539   : > { %5771 = vmatpush.bf16.msrb.mxu1 %v9000_v44  ;;  %5784 = vmatpush.bf16.msrb.mxu2 %v8812_v24  ;;  %v9080_v44 = vor.u32 %v12672_v23, %v12671_v52  ;;  %v8892_v24 = vor.u32 %v12674_v6, %v12673_v37  ;;  %v12684_v42 = vld [vmem:[#allocation207_spill] sm:$0xff]  ;;  %v12686_v31 = vld [vmem:[#allocation106_spill] sm:$0xff]  ;;  %v12687_v5 = vld [vmem:[#allocation196_spill] sm:$0xff] }
 0x53a   : > { %5797 = vmatpush.bf16.msrb.mxu3 %v9004_v54  ;;  %v9084_v54 = vor.u32 %v12676_v25, %v12675_v15  ;;  %v12688_v16 = vld [vmem:[#allocation202_spill] sm:$0xff]  ;;  %v12689_v35 = vld [vmem:[#allocation105_spill] sm:$0xff]  ;;  %v12690_v1 = vld [vmem:[#allocation99_spill] sm:$0xff] }
 0x53b   : > { %v12691_v20 = vld [vmem:[#allocation201_spill] sm:$0xff]  ;;  %v12692_v56 = vld [vmem:[#allocation195_spill] sm:$0xff]  ;;  %v12693_v14 = vld [vmem:[#allocation88_spill] sm:$0xff] }
 0x53c   : > { %5759 = vmatpush.bf16.msrb.mxu0 %v8784_v26  ;;  %v8864_v26 = vor.u32 %v12678_v22, %v12677_v29  ;;  %v12694_v49 = vld [vmem:[#allocation94_spill] sm:$0xff]  ;;  %v12695_v7 = vld [vmem:[#allocation184_spill] sm:$0xff]  ;;  %v12697_v57 = vld [vmem:[#allocation93_spill] sm:$0xff] }
 0x53d   : > { %5772 = vmatpush.bf16.msrb.mxu1 %v8976_v62  ;;  %5785 = vmatpush.bf16.msrb.mxu2 %v8788_v46  ;;  %v9056_v62 = vor.u32 %v12680_v45, %v12679_v51  ;;  %v8868_v46 = vor.u32 %v12682_v58, %v12681_v30  ;;  %v12696_v33 = vld [vmem:[#allocation190_spill] sm:$0xff]  ;;  %v12698_v34 = vld [vmem:[#allocation87_spill] sm:$0xff]  ;;  %v12699_v43 = vld [vmem:[#allocation189_spill] sm:$0xff] }
 0x53e   : > { %5798 = vmatpush.bf16.msrb.mxu3 %v8980_v10  ;;  %v9060_v10 = vor.u32 %v12684_v42, %v12683_v28  ;;  %v12700_v59 = vld [vmem:[#allocation183_spill] sm:$0xff]  ;;  %v12701_v8 = vld [vmem:[#allocation76_spill] sm:$0xff]  ;;  %v12702_v21 = vld [vmem:[#allocation82_spill] sm:$0xff] }
 0x53f   : > { %v12703_v41 = vld [vmem:[#allocation172_spill] sm:$0xff]  ;;  %v12704_v32 = vld [vmem:[#allocation178_spill] sm:$0xff]  ;;  %v12705_v48 = vld [vmem:[#allocation81_spill] sm:$0xff] }
 0x540   : > { %5760 = vmatpush.bf16.msrb.mxu0 %v8760_v9  ;;  %v8840_v9 = vor.u32 %v12686_v31, %v12685_v4  ;;  %v12706_v39 = vld [vmem:[#allocation75_spill] sm:$0xff]  ;;  %v12707_v27 = vld [vmem:[#allocation177_spill] sm:$0xff]  ;;  %v12709_v50 = vld [vmem:[#allocation64_spill] sm:$0xff] }
 0x541   : > { %5773 = vmatpush.bf16.msrb.mxu1 %v8952_v40  ;;  %5786 = vmatpush.bf16.msrb.mxu2 %v8764_v12  ;;  %v9032_v40 = vor.u32 %v12688_v16, %v12687_v5  ;;  %v8844_v12 = vor.u32 %v12690_v1, %v12689_v35  ;;  %v12708_v11 = vld [vmem:[#allocation171_spill] sm:$0xff]  ;;  %v12710_v17 = vld [vmem:[#allocation70_spill] sm:$0xff]  ;;  %v12711_v52 = vld [vmem:[#allocation160_spill] sm:$0xff] }
 0x542   : > { %5799 = vmatpush.bf16.msrb.mxu3 %v8956_v38  ;;  %v9036_v38 = vor.u32 %v12692_v56, %v12691_v20  ;;  %v12712_v23 = vld [vmem:[#allocation166_spill] sm:$0xff]  ;;  %v12713_v37 = vld [vmem:[#allocation69_spill] sm:$0xff]  ;;  %v12714_v6 = vld [vmem:[#allocation63_spill] sm:$0xff] }
 0x543   : > { %v12715_v15 = vld [vmem:[#allocation165_spill] sm:$0xff]  ;;  %v12716_v25 = vld [vmem:[#allocation159_spill] sm:$0xff]  ;;  %v12717_v29 = vld [vmem:[#allocation52_spill] sm:$0xff] }
 0x544   : > { %5761 = vmatpush.bf16.msrb.mxu0 %v8736_v19  ;;  %v8816_v19 = vor.u32 %v12694_v49, %v12693_v14  ;;  %v12718_v22 = vld [vmem:[#allocation58_spill] sm:$0xff]  ;;  %v12719_v51 = vld [vmem:[#allocation148_spill] sm:$0xff]  ;;  %v12721_v30 = vld [vmem:[#allocation57_spill] sm:$0xff] }
 0x545   : > { %5774 = vmatpush.bf16.msrb.mxu1 %v8928_v47  ;;  %5787 = vmatpush.bf16.msrb.mxu2 %v8740_v53  ;;  %v9008_v47 = vor.u32 %v12696_v33, %v12695_v7  ;;  %v8820_v53 = vor.u32 %v12698_v34, %v12697_v57  ;;  %v12720_v45 = vld [vmem:[#allocation154_spill] sm:$0xff]  ;;  %v12722_v58 = vld [vmem:[#allocation51_spill] sm:$0xff]  ;;  %v12723_v28 = vld [vmem:[#allocation153_spill] sm:$0xff] }
 0x546   : > { %5800 = vmatpush.bf16.msrb.mxu3 %v8932_v18  ;;  %v9012_v18 = vor.u32 %v12700_v59, %v12699_v43  ;;  %v12724_v42 = vld [vmem:[#allocation147_spill] sm:$0xff]  ;;  %v12725_v4 = vld [vmem:[#allocation40_spill] sm:$0xff]  ;;  %v12726_v31 = vld [vmem:[#allocation46_spill] sm:$0xff] }
 0x547   : > { %v12727_v5 = vld [vmem:[#allocation136_spill] sm:$0xff]  ;;  %v12728_v16 = vld [vmem:[#allocation142_spill] sm:$0xff]  ;;  %v12729_v35 = vld [vmem:[#allocation45_spill] sm:$0xff] }
 0x548   : > { %5762 = vmatpush.bf16.msrb.mxu0 %v8712_v55  ;;  %v8792_v55 = vor.u32 %v12702_v21, %v12701_v8  ;;  %v12730_v1 = vld [vmem:[#allocation39_spill] sm:$0xff]  ;;  %v12731_v20 = vld [vmem:[#allocation141_spill] sm:$0xff] }
 0x549   : > { %5775 = vmatpush.bf16.msrb.mxu1 %v8904_v3  ;;  %5788 = vmatpush.bf16.msrb.mxu2 %v8716_v2  ;;  %v8984_v3 = vor.u32 %v12704_v32, %v12703_v41  ;;  %v8796_v2 = vor.u32 %v12706_v39, %v12705_v48  ;;  %v12732_v56 = vld [vmem:[#allocation135_spill] sm:$0xff] }
 0x54a   : > { %5801 = vmatpush.bf16.msrb.mxu3 %v8908_v63  ;;  %v8988_v63 = vor.u32 %v12708_v11, %v12707_v27  ;;  %v5215_v14 = vld [vmem:[%s5214_s29] sm:$0x7] }
 0x54b   : > { %5763 = vmatmul.bf16.vlgmr.msrb.gmra.mxu0 %v11556_v13  ;;  %v11695_v49 = vunpack.c.l.bf16 %v5215_v14 }
 0x54c   : > { %5807 = vmatpush.bf16.msra.mxu0 %v8888_v61  ;;  %5789 = vmatmul.bf16.vlgmr.msrb.gmra.mxu2 %v11556_v13  ;;  %v8768_v61 = vor.u32 %v12710_v17, %v12709_v50 }
 0x54d   : > { %5820 = vmatpush.bf16.msra.mxu1 %v9080_v44  ;;  %5833 = vmatpush.bf16.msra.mxu2 %v8892_v24  ;;  %v8960_v44 = vor.u32 %v12712_v23, %v12711_v52  ;;  %v8772_v24 = vor.u32 %v12714_v6, %v12713_v37  ;;  %v5880_v34 = vrot.slane %v11695_v49, 2  ;;  %v12735_v37 = vld [vmem:[#allocation227_spill] sm:$0xff] }
 0x54e   : > { %5846 = vmatpush.bf16.msra.mxu3 %v9084_v54  ;;  %5776 = vmatmul.bf16.vlgmr.msrb.gmra.mxu1 %v11560_v36  ;;  %v8964_v54 = vor.u32 %v12716_v25, %v12715_v15  ;;  %v5903_v6 = vperm.slane %v12735_v37, 0 }
 0x54f   : > { %5802 = vmatmul.bf16.vlgmr.msrb.gmra.mxu3 %v11560_v36 }
 0x550   : > { %5808 = vmatpush.bf16.msra.mxu0 %v8864_v26  ;;  %v8744_v26 = vor.u32 %v12718_v22, %v12717_v29 }
 0x551   : > { %5821 = vmatpush.bf16.msra.mxu1 %v9056_v62  ;;  %5834 = vmatpush.bf16.msra.mxu2 %v8868_v46  ;;  %v8936_v62 = vor.u32 %v12720_v45, %v12719_v51  ;;  %v8748_v46 = vor.u32 %v12722_v58, %v12721_v30  ;;  %v5907_v58 = vrot.slane %v11695_v49, 4 }
 0x552   : > { %5847 = vmatpush.bf16.msra.mxu3 %v9060_v10  ;;  %v8940_v10 = vor.u32 %v12724_v42, %v12723_v28 }
 0x554   : > { %5809 = vmatpush.bf16.msra.mxu0 %v8840_v9  ;;  %v8720_v9 = vor.u32 %v12726_v31, %v12725_v4 }
 0x555   : > { %5822 = vmatpush.bf16.msra.mxu1 %v9032_v40  ;;  %5835 = vmatpush.bf16.msra.mxu2 %v8844_v12  ;;  %v8912_v40 = vor.u32 %v12728_v16, %v12727_v5  ;;  %v8724_v12 = vor.u32 %v12730_v1, %v12729_v35 }
 0x556   : > { %5848 = vmatpush.bf16.msra.mxu3 %v9036_v38  ;;  %v8916_v38 = vor.u32 %v12732_v56, %v12731_v20 }
 0x558   : > { %5810 = vmatpush.bf16.msra.mxu0 %v8816_v19 }
 0x559   : > { %5823 = vmatpush.bf16.msra.mxu1 %v9008_v47  ;;  %5836 = vmatpush.bf16.msra.mxu2 %v8820_v53 }
 0x55a   : > { %5849 = vmatpush.bf16.msra.mxu3 %v9012_v18 }
 0x55c   : > { %5811 = vmatpush.bf16.msra.mxu0 %v8792_v55 }
 0x55d   : > { %5824 = vmatpush.bf16.msra.mxu1 %v8984_v3  ;;  %5837 = vmatpush.bf16.msra.mxu2 %v8796_v2 }
 0x55e   : > { %5850 = vmatpush.bf16.msra.mxu3 %v8988_v63 }
 0x560   : > { %5812 = vmatpush.bf16.msra.mxu0 %v8768_v61 }
 0x561   : > { %5825 = vmatpush.bf16.msra.mxu1 %v8960_v44  ;;  %5838 = vmatpush.bf16.msra.mxu2 %v8772_v24 }
 0x562   : > { %5851 = vmatpush.bf16.msra.mxu3 %v8964_v54 }
 0x564   : > { %5813 = vmatpush.bf16.msra.mxu0 %v8744_v26  ;;  %v5219_v26 = vld [vmem:[%s5218_s4] sm:$0x7] }
 0x565   : > { %5826 = vmatpush.bf16.msra.mxu1 %v8936_v62  ;;  %5839 = vmatpush.bf16.msra.mxu2 %v8748_v46  ;;  %v11711_v46 = vunpack.c.l.bf16 %v5219_v26 }
 0x566   : > { %5852 = vmatpush.bf16.msra.mxu3 %v8940_v10 }
 0x568   : > { %5814 = vmatpush.bf16.msra.mxu0 %v8720_v9 }
 0x569   : > { %5827 = vmatpush.bf16.msra.mxu1 %v8912_v40  ;;  %5840 = vmatpush.bf16.msra.mxu2 %v8724_v12 }
 0x56a   : > { %5853 = vmatpush.bf16.msra.mxu3 %v8916_v38 }
 0x56b   : > { %5815 = vmatmul.bf16.vlgmr.msra.gmra.mxu0 %v11556_v13 }
 0x56c   : > { %5828 = vmatmul.bf16.vlgmr.msra.gmra.mxu1 %v11560_v36  ;;  %5841 = vmatmul.bf16.vlgmr.msra.gmra.mxu2 %v11556_v13 }
 0x56d   : > { %5854 = vmatmul.bf16.vlgmr.msra.gmra.mxu3 %v11560_v36 }
 0x5a8   : > { %v5712_v19 = vpop.f32.mrf.mxu0 }
 0x5a9   : > { %v5725_v7 = vpop.f32.mrf.mxu1 }
 0x5aa   : > { %v5726_v33 = vadd.f32 %v5725_v7, %v5712_v19 }
 0x5ac   : > { %v5859_v47 = vadd.f32 %v5726_v33, %v11695_v49 }
 0x5ae   : > { %v9085_v57 = vmul.f32 -1.442695, %v5859_v47 }
 0x5b0   : > { %9756 = vpow2.f32 %v9085_v57  ;;  %v5714_v59 = vpop.f32.mrf.mxu0 }
 0x5b1   : > { %v5738_v53 = vpop.f32.mrf.mxu2  ;;  %v5727_v36 = vpop.f32.mrf.mxu1 }
 0x5b2   : > { %v5751_v43 = vpop.f32.mrf.mxu3 }
 0x5b3   : > { %v5752_v13 = vadd.f32 %v5751_v43, %v5738_v53 }
 0x5b5   : > { %v5882_v18 = vadd.f32 %v5880_v34, %v5752_v13  ;;  %v5936_v34 = vrot.slane %v11711_v46, 2 }
 0x5b6   : > { %v9757_v21 = vpop.eup %9756 }
 0x5b7   : > { %v9086_v8 = vmul.f32 -1.442695, %v5882_v18  ;;  %v5863_v55 = vadd.f32 1.0, %v9757_v21 }
 0x5b9   : > { %9758 = vpow2.f32 %v9086_v8  ;;  %v5740_v41 = vpop.f32.mrf.mxu2  ;;  %v5875_v27 = vand.u32 2147483648, %v5863_v55  ;;  %vm5869_vm4 = vweird.f32 %v5863_v55  ;;  %v5873_v63 = vand.u32 2147483647, %v5863_v55 }
 0x5ba   : > { %v5753_v32 = vpop.f32.mrf.mxu3  ;;  %9760 = vrcp.f32 %v5863_v55 }
 0x5bb   : > { %v5876_v52 = vor.u32 1.1754944e-38, %v5875_v27  ;;  %vm5874_vm7 = vcmp.eq.f32.partialorder %v5873_v63, 8.507059e+37 }
 0x5bf   : > { %v9759_v3 = vpop.eup %9758 }
 0x5c0   : > { %v5886_v48 = vadd.f32 1.0, %v9759_v3  ;;  %v9761_v39 = vpop.eup %9760 }
 0x5c1   : > { %v5865_v2 = vmul.f32 %v9761_v39, %v5863_v55  ;;  %vm5870_vm5 = vweird.f32 %v9761_v39 }
 0x5c2   : > { %9762 = vrcp.f32 %v5886_v48  ;;  %vm11702_vm6 = vmor %vm5869_vm4, %vm5870_vm5  ;;  %vm5892_vm9 = vweird.f32 %v5886_v48  ;;  %v5898_v24 = vand.u32 2147483648, %v5886_v48  ;;  %v5896_v51 = vand.u32 2147483647, %v5886_v48 }
 0x5c3   : > { %v5866_v11 = vsub.f32 1.0, %v5865_v2 }
 0x5c4   : > { %v5899_v42 = vor.u32 1.1754944e-38, %v5898_v24  ;;  %vm5897_vm12 = vcmp.eq.f32.partialorder %v5896_v51, 8.507059e+37 }
 0x5c5   : > { %v5867_v50 = vmul.f32 %v9761_v39, %v5866_v11  ;;  %v12736_v11 = vld [vmem:[#allocation228_spill] sm:$0xff] }
 0x5c6   : > { %v5959_v63 = vperm.slane %v12736_v11, 0 }
 0x5c7   : > { %v5868_v44 = vadd.f32 %v9761_v39, %v5867_v50 }
 0x5c8   : > { %v9763_v17 = vpop.eup %9762  ;;  %v5764_v15 = vpop.f32.mrf.mxu0 }
 0x5c9   : > { %v5888_v23 = vmul.f32 %v9763_v17, %v5886_v48  ;;  %vm5893_vm10 = vweird.f32 %v9763_v17  ;;  %v5872_v22 = vsel %vm11702_vm6, %v9761_v39, %v5868_v44 }
 0x5ca   : > { %v5877_v45 = vsel %vm5874_vm7, %v5876_v52, %v5872_v22  ;;  %vm5894_vm11 = vmor %vm5892_vm9, %vm5893_vm10 }
 0x5cb   : > { %v5777_v25 = vpop.f32.mrf.mxu1  ;;  %v5889_v54 = vsub.f32 1.0, %v5888_v23 }
 0x5cc   : > { %v5778_v29 = vadd.f32 %v5777_v25, %v5764_v15  ;;  %v5963_v15 = vrot.slane %v11711_v46, 4 }
 0x5cd   : > { %v5890_v62 = vmul.f32 %v9763_v17, %v5889_v54 }
 0x5ce   : > { %v5905_v30 = vadd.f32 %v5903_v6, %v5778_v29 }
 0x5cf   : > { %v5891_v28 = vadd.f32 %v9763_v17, %v5890_v62  ;;  %v5790_v4 = vpop.f32.mrf.mxu2 }
 0x5d0   : > { %v5906_v10 = vmul.f32 %v5905_v30, %v5877_v45  ;;  %v5766_v35 = vpop.f32.mrf.mxu0 }
 0x5d1   : > { %v5895_v5 = vsel %vm5894_vm11, %v9763_v17, %v5891_v28 }
 0x5d2   : > { %v5803_v31 = vpop.f32.mrf.mxu3  ;;  %v5909_v16 = vadd.f32 %v5907_v58, %v5906_v10  ;;  %v5900_v12 = vsel %vm5897_vm12, %v5899_v42, %v5895_v5 }
 0x5d3   : > { %v5804_v9 = vadd.f32 %v5803_v31, %v5790_v4  ;;  %v5779_v1 = vpop.f32.mrf.mxu1  ;;  %v5911_v56 = vsub.f32 1.0, %v5900_v12  ;;  %v5913_v49 = vmul.f32 %v10172_v0, %v5900_v12 }
 0x5d4   : > { %9764 = vtanh.f32 %v5909_v16 }
 0x5d5   : > { %v5915_v40 = vadd.f32 %v5804_v9, %v11711_v46 }
 0x5d7   : > { %v9087_v20 = vmul.f32 -1.442695, %v5915_v40  ;;  %v5792_v38 = vpop.f32.mrf.mxu2 }
 0x5d9   : > { %9766 = vpow2.f32 %v9087_v20 }
 0x5da   : > { %v5805_v14 = vpop.f32.mrf.mxu3  ;;  %v9765_v19 = vpop.eup %9764 }
 0x5db   : > { %v5912_v7 = vmul.f32 %v9765_v19, %v5911_v56 }
 0x5dd   : > { %v11716_v0 = vadd.f32 %v5913_v49, %v5912_v7  }
 0x5df   : > { %v9767_v33 = vpop.eup %9766  ;;  %5974 = vst [vmem:[%s5973_s8] sm:$0x3] %v11716_v0 }
 0x5e0   : > { %v5919_v47 = vadd.f32 1.0, %v9767_v33 }
 0x5e2   : > { %9768 = vrcp.f32 %v5919_v47  ;;  %vm5925_vm13 = vweird.f32 %v5919_v47  ;;  %v5931_v48 = vand.u32 2147483648, %v5919_v47  ;;  %v5929_v2 = vand.u32 2147483647, %v5919_v47 }
 0x5e4   : > { %v5932_v17 = vor.u32 1.1754944e-38, %v5931_v48  ;;  %vm5930_vm1 = vcmp.eq.f32.partialorder %v5929_v2, 8.507059e+37 }
 0x5e8   : > { %v9769_v57 = vpop.eup %9768  ;;  %v5816_v53 = vpop.f32.mrf.mxu0 }
 0x5e9   : > { %v5829_v43 = vpop.f32.mrf.mxu1  ;;  %v5921_v13 = vmul.f32 %v9769_v57, %v5919_v47  ;;  %vm5926_vm14 = vweird.f32 %v9769_v57 }
 0x5ea   : > { %v5830_v59 = vadd.f32 %v5829_v43, %v5816_v53  ;;  %vm5927_vm15 = vmor %vm5925_vm13, %vm5926_vm14 }
 0x5eb   : > { %v5922_v36 = vsub.f32 1.0, %v5921_v13 }
 0x5ec   : > { %v5938_v18 = vadd.f32 %v5936_v34, %v5830_v59 }
 0x5ed   : > { %v5923_v21 = vmul.f32 %v9769_v57, %v5922_v36 }
 0x5ee   : > { %v9088_v8 = vmul.f32 -1.442695, %v5938_v18 }
 0x5ef   : > { %v5842_v55 = vpop.f32.mrf.mxu2  ;;  %v5924_v39 = vadd.f32 %v9769_v57, %v5923_v21 }
 0x5f0   : > { %9770 = vpow2.f32 %v9088_v8  ;;  %v5855_v41 = vpop.f32.mrf.mxu3  ;;  %v5818_v32 = vpop.f32.mrf.mxu0 }
 0x5f1   : > { %v5831_v3 = vpop.f32.mrf.mxu1  ;;  %v5856_v27 = vadd.f32 %v5855_v41, %v5842_v55  ;;  %v5928_v52 = vsel %vm5927_vm15, %v9769_v57, %v5924_v39 }
 0x5f2   : > { %v5933_v6 = vsel %vm5930_vm1, %v5932_v17, %v5928_v52 }
 0x5f3   : > { %v5961_v37 = vadd.f32 %v5959_v63, %v5856_v27 }
 0x5f5   : > { %v5962_v24 = vmul.f32 %v5961_v37, %v5933_v6 }
 0x5f6   : > { %v9771_v50 = vpop.eup %9770 }
 0x5f7   : > { %v5942_v61 = vadd.f32 1.0, %v9771_v50  ;;  %v5844_v23 = vpop.f32.mrf.mxu2  ;;  %v5965_v29 = vadd.f32 %v5963_v15, %v5962_v24  ;;  %v10206_v15 = vmov (%p5206_p0), 256.0  }
 0x5f8   : > { %v5857_v44 = vpop.f32.mrf.mxu3 }
 0x5f9   : > { %9772 = vrcp.f32 %v5942_v61  ;;  %v5954_v26 = vand.u32 2147483648, %v5942_v61  ;;  %v5952_v45 = vand.u32 2147483647, %v5942_v61  ;;  %vm5948_vm3 = vweird.f32 %v5942_v61 }
 0x5fa   : > { %9774 = vtanh.f32 %v5965_v29 }
 0x5fb   : > { %v5955_v30 = vor.u32 1.1754944e-38, %v5954_v26  ;;  %vm5953_vm5 = vcmp.eq.f32.partialorder %v5952_v45, 8.507059e+37  ;;  %9778 = vrcp.f32 (%p5206_p0), %v10206_v15 }
 0x5ff   : > { %v9773_v25 = vpop.eup %9772 }
 0x600   : > { %v5944_v54 = vmul.f32 %v9773_v25, %v5942_v61  ;;  %vm5949_vm2 = vweird.f32 %v9773_v25  ;;  %v9775_v42 = vpop.eup %9774 }
 0x601   : > { %vm5950_vm4 = vmor %vm5948_vm3, %vm5949_vm2 }
 0x602   : > { %v5945_v22 = vsub.f32 1.0, %v5944_v54 }
 0x604   : > { %v5946_v51 = vmul.f32 %v9773_v25, %v5945_v22 }
 0x606   : > { %v5947_v62 = vadd.f32 %v9773_v25, %v5946_v51  ;;  %v10207_v51 = vmov (%p5206_p0), 269488144  }
 0x607   :  { %v6102_v45 = vunpack.c.l.s4 (%p5206_p0), %v10207_v51 }
 0x608   : > { %v5951_v58 = vsel %vm5950_vm4, %v9773_v25, %v5947_v62  ;;  %v9779_v25 = vpop.eup (%p5206_p0), %9778 }
 0x609   : > { %v5956_v28 = vsel %vm5953_vm5, %v5955_v30, %v5951_v58  ;;  %v6079_v54 = vmul.f32 (%p5206_p0), 256.0, %v9779_v25  ;;  %vm6083_vm6 = vweird.f32 (%p5206_p0), %v9779_v25  ;;  %v11773_v30 = vunpack.c.0.s8 (%p5206_p0), %v6102_v45 }
 0x60a   : > { %v5967_v46 = vsub.f32 1.0, %v5956_v28  ;;  %v5969_v4 = vmul.f32 %v10168_v60, %v5956_v28 }
 0x60b   :  { %v6080_v29 = vsub.f32 (%p5206_p0), 1.0, %v6079_v54 }
 0x60c   : > { %v5968_v10 = vmul.f32 %v9775_v42, %v5967_v46  ;;  %5208 = sbr.rel (!%p5206_p0) target bundleno = 1289 (0x509), region = 206 }
 0x60d   :  { %v6081_v22 = vmul.f32 (%p5206_p0), %v9779_v25, %v6080_v29 }
 0x60e   : > { %v5970_v60 = vadd.f32 %v5969_v4, %v5968_v10  }
 0x60f   :  { %v6082_v26 = vadd.f32 (%p5206_p0), %v9779_v25, %v6081_v22 }
 0x610   : > { %5978 = vst [vmem:[%s5977_s20 + $0x2] sm:$0x3] %v5970_v60 }
 0x611   :  { %v6084_v62 = vsel %vm6083_vm6, %v9779_v25, %v6082_v26 }
 0x617   :  { %v11733_v31 = vld [vmem:[#allocation4] sm:$0xf]  ;;  %v11735_v9 = vld [vmem:[#allocation4 + $0x4] sm:$0xf]  ;;  %v11739_v5 = vld [vmem:[#allocation4 + $0x8] sm:$0xf] }
 0x618   :  { %5997 = vst [vmem:[#allocation1] ss:$4 sm:$0xff] %v11733_v31  ;;  %v11741_v16 = vld [vmem:[#allocation4 + $0xc] sm:$0xf]  ;;  %v11749_v49 = vld [vmem:[#allocation4 + $0x10] sm:$0xf] }
 0x619   :  { %6001 = vst [vmem:[#allocation1 + $0x20] ss:$4 sm:$0xff] %v11735_v9  ;;  %v11751_v19 = vld [vmem:[#allocation4 + $0x14] sm:$0xf]  ;;  %v11759_v36 = vld [vmem:[#allocation4 + $0x18] sm:$0xf] }
 0x61a   :  { %v11761_v8 = vld [vmem:[#allocation4 + $0x1c] sm:$0xf] }
 0x61f   :  { %v5998_v40 = vld.sshfl [vmem:[#allocation1] sm:$0xff pattern:$0x73625140]  ;;  %v5999_v35 = vld.sshfl [vmem:[#allocation1 + $0x8] sm:$0xff pattern:$0x73625140] }
 0x620   :  { %v6038_v1 = vsel %vm3953_vm0, %v5998_v40, 0.0  ;;  %v6039_v0 = vsel %vm3953_vm0, %v5999_v35, 0.0  ;;  %v6002_v12 = vld.sshfl [vmem:[#allocation1 + $0x20] sm:$0xff pattern:$0x73625140] }
 0x621   :  { %v6040_v20 = vadd.f32 %v6039_v0, %v6038_v1  ;;  %v6003_v60 = vld.sshfl [vmem:[#allocation1 + $0x28] sm:$0xff pattern:$0x73625140]  ;;  %6004 = vst [vmem:[#allocation1] ss:$4 sm:$0xff] %v11739_v5  ;;  %v6043_v56 = vsel %vm3953_vm0, %v6002_v12, 0.0 }
 0x622   :  { %6007 = vst [vmem:[#allocation1 + $0x20] ss:$4 sm:$0xff] %v11741_v16  ;;  %v6044_v38 = vsel %vm3953_vm0, %v6003_v60, 0.0 }
 0x623   :  { %6041 = vadd.xlane.f32.xlu0 %v6040_v20  ;;  %v6045_v14 = vadd.f32 %v6044_v38, %v6043_v56 }
 0x628   :  { %v6005_v7 = vld.sshfl [vmem:[#allocation1] sm:$0xff pattern:$0x73625140]  ;;  %v6006_v33 = vld.sshfl [vmem:[#allocation1 + $0x8] sm:$0xff pattern:$0x73625140] }
 0x629   :  { %v6048_v47 = vsel %vm3953_vm0, %v6005_v7, 0.0  ;;  %v6049_v57 = vsel %vm3953_vm0, %v6006_v33, 0.0  ;;  %v6008_v34 = vld.sshfl [vmem:[#allocation1 + $0x20] sm:$0xff pattern:$0x73625140] }
 0x62a   :  { %v6050_v53 = vadd.f32 %v6049_v57, %v6048_v47  ;;  %v6009_v43 = vld.sshfl [vmem:[#allocation1 + $0x28] sm:$0xff pattern:$0x73625140]  ;;  %6010 = vst [vmem:[#allocation1] ss:$4 sm:$0xff] %v11749_v49  ;;  %v6053_v13 = vsel %vm3953_vm0, %v6008_v34, 0.0 }
 0x62b   :  { %6046 = vadd.xlane.f32.xlu0 %v6045_v14  ;;  %6013 = vst [vmem:[#allocation1 + $0x20] ss:$4 sm:$0xff] %v11751_v19  ;;  %v6054_v59 = vsel %vm3953_vm0, %v6009_v43, 0.0 }
 0x62c   :  { %6051 = vadd.xlane.f32.xlu1 %v6050_v53  ;;  %v6055_v18 = vadd.f32 %v6054_v59, %v6053_v13 }
 0x631   :  { %v6011_v21 = vld.sshfl [vmem:[#allocation1] sm:$0xff pattern:$0x73625140]  ;;  %v6012_v55 = vld.sshfl [vmem:[#allocation1 + $0x8] sm:$0xff pattern:$0x73625140] }
 0x632   :  { %v6058_v41 = vsel %vm3953_vm0, %v6011_v21, 0.0  ;;  %v6059_v32 = vsel %vm3953_vm0, %v6012_v55, 0.0  ;;  %6016 = vst [vmem:[#allocation1] ss:$4 sm:$0xff] %v11759_v36 }
 0x633   :  { %v6060_v3 = vadd.f32 %v6059_v32, %v6058_v41  ;;  %v6014_v48 = vld.sshfl [vmem:[#allocation1 + $0x20] sm:$0xff pattern:$0x73625140]  ;;  %v6015_v39 = vld.sshfl [vmem:[#allocation1 + $0x28] sm:$0xff pattern:$0x73625140] }
 0x634   :  { %6056 = vadd.xlane.f32.xlu1 %v6055_v18  ;;  %6019 = vst [vmem:[#allocation1 + $0x20] ss:$4 sm:$0xff] %v11761_v8  ;;  %v6063_v2 = vsel %vm3953_vm0, %v6014_v48, 0.0  ;;  %v6064_v27 = vsel %vm3953_vm0, %v6015_v39, 0.0 }
 0x635   :  { %6061 = vadd.xlane.f32.xlu2 %v6060_v3  ;;  %v6065_v11 = vadd.f32 %v6064_v27, %v6063_v2 }
 0x639   :  { %v6017_v63 = vld.sshfl [vmem:[#allocation1] sm:$0xff pattern:$0x73625140]  ;;  %v6018_v50 = vld.sshfl [vmem:[#allocation1 + $0x8] sm:$0xff pattern:$0x73625140] }
 0x63a   :  { %v6068_v17 = vsel %vm3953_vm0, %v6017_v63, 0.0  ;;  %v6069_v61 = vsel %vm3953_vm0, %v6018_v50, 0.0 }
 0x63b   :  { %v6070_v52 = vadd.f32 %v6069_v61, %v6068_v17  ;;  %v6020_v23 = vld.sshfl [vmem:[#allocation1 + $0x20] sm:$0xff pattern:$0x73625140]  ;;  %v6021_v44 = vld.sshfl [vmem:[#allocation1 + $0x28] sm:$0xff pattern:$0x73625140] }
 0x63c   :  { %v6073_v37 = vsel %vm3953_vm0, %v6020_v23, 0.0  ;;  %v6074_v6 = vsel %vm3953_vm0, %v6021_v44, 0.0 }
 0x63d   :  { %6066 = vadd.xlane.f32.xlu2 %v6065_v11  ;;  %6071 = vadd.xlane.f32.xlu0 %v6070_v52  ;;  %v6075_v24 = vadd.f32 %v6074_v6, %v6073_v37 }
 0x63f   :  { %6076 = vadd.xlane.f32.xlu1 %v6075_v24 }
 0x696   :  { %v6042_v58 = vpop.xlane.xlu0 %6041 }
 0x697   :  { %v6085_v28 = vmul.f32 %v6084_v62, %v6042_v58 }
 0x699   :  { %v6104_v46 = vperm.slane %v6085_v28, %v11773_v30 }
 0x69b   :  { %v11777_v42 = vsub.f32 %v11733_v31, %v6104_v46 }
 0x69d   :  { %v6149_v10 = vmul.f32 %v11777_v42, %v11777_v42 }
 0x69e   :  { %v6047_v4 = vpop.xlane.xlu0 %6046 }
 0x69f   :  { %6165 = vst [vmem:[#allocation1] ss:$4 sm:$0xff] %v6149_v10  ;;  %v6086_v40 = vmul.f32 %v6084_v62, %v6047_v4  ;;  %v6052_v35 = vpop.xlane.xlu1 %6051 }
 0x6a0   :  { %v6087_v1 = vmul.f32 %v6084_v62, %v6052_v35 }
 0x6a1   :  { %v6108_v0 = vperm.slane %v6086_v40, %v11773_v30 }
 0x6a2   :  { %v6112_v12 = vperm.slane %v6087_v1, %v11773_v30 }
 0x6a3   :  { %v11784_v20 = vsub.f32 %v11735_v9, %v6108_v0 }
 0x6a4   :  { %v11787_v60 = vsub.f32 %v11739_v5, %v6112_v12 }
 0x6a5   :  { %v6150_v31 = vmul.f32 %v11784_v20, %v11784_v20 }
 0x6a6   :  { %v6151_v56 = vmul.f32 %v11787_v60, %v11787_v60  ;;  %v6166_v38 = vld.sshfl [vmem:[#allocation1] sm:$0xff pattern:$0x73625140]  ;;  %v6167_v14 = vld.sshfl [vmem:[#allocation1 + $0x8] sm:$0xff pattern:$0x73625140] }
 0x6a7   :  { %6169 = vst [vmem:[#allocation1 + $0x20] ss:$4 sm:$0xff] %v6150_v31  ;;  %v6057_v7 = vpop.xlane.xlu1 %6056  ;;  %v6206_v33 = vsel %vm3953_vm0, %v6166_v38, 0.0  ;;  %v6207_v47 = vsel %vm3953_vm0, %v6167_v14, 0.0 }
 0x6a8   :  { %v6088_v57 = vmul.f32 %v6084_v62, %v6057_v7  ;;  %v6062_v9 = vpop.xlane.xlu2 %6061  ;;  %v6208_v34 = vadd.f32 %v6207_v47, %v6206_v33  ;;  %6172 = vst [vmem:[#allocation1] ss:$4 sm:$0xff] %v6151_v56 }
 0x6a9   :  { %v6089_v5 = vmul.f32 %v6084_v62, %v6062_v9 }
 0x6aa   :  { %v6116_v53 = vperm.slane %v6088_v57, %v11773_v30  ;;  %6209 = vadd.xlane.f32.xlu2 %v6208_v34 }
 0x6ab   :  { %v6120_v43 = vperm.slane %v6089_v5, %v11773_v30 }
 0x6ac   :  { %v11798_v13 = vsub.f32 %v11741_v16, %v6116_v53 }
 0x6ad   :  { %v11801_v59 = vsub.f32 %v11749_v49, %v6120_v43 }
 0x6ae   :  { %v6152_v18 = vmul.f32 %v11798_v13, %v11798_v13  ;;  %v6170_v21 = vld.sshfl [vmem:[#allocation1 + $0x20] sm:$0xff pattern:$0x73625140]  ;;  %v6171_v55 = vld.sshfl [vmem:[#allocation1 + $0x28] sm:$0xff pattern:$0x73625140] }
 0x6af   :  { %v6153_v41 = vmul.f32 %v11801_v59, %v11801_v59  ;;  %v6173_v32 = vld.sshfl [vmem:[#allocation1] sm:$0xff pattern:$0x73625140]  ;;  %v6174_v3 = vld.sshfl [vmem:[#allocation1 + $0x8] sm:$0xff pattern:$0x73625140] }
 0x6b0   :  { %v6067_v48 = vpop.xlane.xlu2 %6066  ;;  %v6072_v39 = vpop.xlane.xlu0 %6071  ;;  %v6216_v2 = vsel %vm3953_vm0, %v6173_v32, 0.0  ;;  %v6217_v16 = vsel %vm3953_vm0, %v6174_v3, 0.0  ;;  %v6211_v27 = vsel %vm3953_vm0, %v6170_v21, 0.0  ;;  %v6212_v49 = vsel %vm3953_vm0, %v6171_v55, 0.0  ;;  %6175 = vst [vmem:[#allocation1 + $0x20] ss:$4 sm:$0xff] %v6152_v18 }
 0x6b1   :  { %v6090_v11 = vmul.f32 %v6084_v62, %v6067_v48  ;;  %v6091_v63 = vmul.f32 %v6084_v62, %v6072_v39  ;;  %v6218_v50 = vadd.f32 %v6217_v16, %v6216_v2  ;;  %6178 = vst [vmem:[#allocation1] ss:$4 sm:$0xff] %v6153_v41  ;;  %v6213_v17 = vadd.f32 %v6212_v49, %v6211_v27  ;;  %v6526_v32 = vld [vmem:[#allocation19] sm:$0x3]  ;;  %v6541_v48 = vld [vmem:[#allocation21] sm:$0x3] }
 0x6b2   :  { %v6077_v61 = vpop.xlane.xlu1 %6076 }
 0x6b3   :  { %v6124_v52 = vperm.slane %v6090_v11, %v11773_v30  ;;  %v6128_v23 = vperm.slane %v6091_v63, %v11773_v30  ;;  %6219 = vadd.xlane.f32.xlu1 %v6218_v50  ;;  %6214 = vadd.xlane.f32.xlu0 %v6213_v17  ;;  %v6092_v44 = vmul.f32 %v6084_v62, %v6077_v61  ;;  %v6529_v11 = vperm.slane %v6526_v32, 1 }
 0x6b4   :  { %v6544_v17 = vperm.slane %v6541_v48, 1 }
 0x6b5   :  { %v11814_v37 = vsub.f32 %v11751_v19, %v6124_v52  ;;  %v11817_v6 = vsub.f32 %v11759_v36, %v6128_v23  ;;  %v6132_v24 = vperm.slane %v6092_v44, %v11773_v30 }
 0x6b7   :  { %v6154_v15 = vmul.f32 %v11814_v37, %v11814_v37  ;;  %v6155_v25 = vmul.f32 %v11817_v6, %v11817_v6  ;;  %v6176_v54 = vld.sshfl [vmem:[#allocation1 + $0x20] sm:$0xff pattern:$0x73625140]  ;;  %v6177_v29 = vld.sshfl [vmem:[#allocation1 + $0x28] sm:$0xff pattern:$0x73625140]  ;;  %v11827_v19 = vsub.f32 %v11761_v8, %v6132_v24 }
 0x6b8   :  { %v6221_v22 = vsel %vm3953_vm0, %v6176_v54, 0.0  ;;  %v6222_v26 = vsel %vm3953_vm0, %v6177_v29, 0.0  ;;  %v6179_v51 = vld.sshfl [vmem:[#allocation1] sm:$0xff pattern:$0x73625140]  ;;  %v6543_v29 = vperm.slane %v6541_v48, 0 }
 0x6b9   :  { %v6223_v36 = vadd.f32 %v6222_v26, %v6221_v22  ;;  %6181 = vst [vmem:[#allocation1 + $0x20] ss:$4 sm:$0xff] %v6154_v15  ;;  %v6180_v45 = vld.sshfl [vmem:[#allocation1 + $0x8] sm:$0xff pattern:$0x73625140]  ;;  %v6226_v62 = vsel %vm3953_vm0, %v6179_v51, 0.0  ;;  %v6156_v46 = vmul.f32 %v11827_v19, %v11827_v19 }
 0x6ba   :  { %v6227_v58 = vsel %vm3953_vm0, %v6180_v45, 0.0  ;;  %6184 = vst [vmem:[#allocation1] ss:$4 sm:$0xff] %v6155_v25  ;;  %v6528_v15 = vperm.slane %v6526_v32, 0  ;;  %v6530_v51 = vrot.slane %v6529_v11, 6  ;;  %v6587_v11 = vld [vmem:[%s12326_s13 + $0xf8] sm:$0xff] }
 0x6bb   :  { %6224 = vadd.xlane.f32.xlu2 %v6223_v36  ;;  %v6228_v28 = vadd.f32 %v6227_v58, %v6226_v62  ;;  %v6545_v36 = vrot.slane %v6544_v17, 6  ;;  %6646 = vmatpush.msra.mxu1 %v6587_v11 }
 0x6bc   :  { %9656 = vmatpush.msra.mxu3 %v6587_v11 }
 0x6bd   :  { %6229 = vadd.xlane.f32.xlu0 %v6228_v28 }
 0x6c0   :  { %v6182_v10 = vld.sshfl [vmem:[#allocation1 + $0x20] sm:$0xff pattern:$0x73625140]  ;;  %v6183_v4 = vld.sshfl [vmem:[#allocation1 + $0x28] sm:$0xff pattern:$0x73625140] }
 0x6c1   :  { %v6231_v40 = vsel %vm3953_vm0, %v6182_v10, 0.0  ;;  %v6232_v8 = vsel %vm3953_vm0, %v6183_v4, 0.0  ;;  %6187 = vst [vmem:[#allocation1 + $0x20] ss:$4 sm:$0xff] %v6156_v46 }
 0x6c2   :  { %v6233_v35 = vadd.f32 %v6232_v8, %v6231_v40  ;;  %v6185_v1 = vld.sshfl [vmem:[#allocation1] sm:$0xff pattern:$0x73625140]  ;;  %v6186_v0 = vld.sshfl [vmem:[#allocation1 + $0x8] sm:$0xff pattern:$0x73625140] }
 0x6c3   :  { %v6236_v12 = vsel %vm3953_vm0, %v6185_v1, 0.0  ;;  %v6237_v31 = vsel %vm3953_vm0, %v6186_v0, 0.0  ;;  %v11860_v1 = vsel %vm3953_vm0, %v6528_v15, %v6530_v51  ;;  %v11863_v0 = vsel %vm3953_vm0, %v6543_v29, %v6545_v36  ;;  %v6570_v15 = vld [vmem:[%s12326_s13 + $0x70] sm:$0xff]  ;;  %v6569_v36 = vld [vmem:[%s12326_s13 + $0x68] sm:$0xff] }
 0x6c4   :  { %6234 = vadd.xlane.f32.xlu1 %v6233_v35  ;;  %v6238_v56 = vadd.f32 %v6237_v31, %v6236_v12 }
 0x6c6   :  { %6239 = vadd.xlane.f32.xlu2 %v6238_v56 }
 0x6c8   :  { %v6188_v38 = vld.sshfl [vmem:[#allocation1 + $0x20] sm:$0xff pattern:$0x73625140]  ;;  %v6189_v14 = vld.sshfl [vmem:[#allocation1 + $0x28] sm:$0xff pattern:$0x73625140] }
 0x6c9   :  { %v6241_v7 = vsel %vm3953_vm0, %v6188_v38, 0.0  ;;  %v6242_v33 = vsel %vm3953_vm0, %v6189_v14, 0.0 }
 0x6ca   :  { %v6243_v47 = vadd.f32 %v6242_v33, %v6241_v7 }
 0x6cc   :  { %6244 = vadd.xlane.f32.xlu0 %v6243_v47 }
 0x71d   :  { %v6210_v57 = vpop.xlane.xlu2 %6209 }
 0x71e   :  { %v6246_v9 = vmul.f32 0.003921569, %v6210_v57 }
 0x720   :  { %9780 = vrsqrt.f32 %v6246_v9  ;;  %vm6261_vm7 = vcmp.eq.f32.partialorder %v6246_v9, inf  ;;  %v6264_v23 = vand.u32 2147483648, %v6246_v9  ;;  %vm6263_vm9 = vcmp.eq.f32.partialorder %v6246_v9, 0.0 }
 0x726   :  { %v9781_v34 = vpop.eup %9780  ;;  %v6220_v5 = vpop.xlane.xlu1 %6219 }
 0x727   :  { %v6215_v53 = vpop.xlane.xlu0 %6214  ;;  %v6255_v43 = vmul.f32 %v9781_v34, %v6246_v9  ;;  %v11839_v18 = vmul.f32 0.003921569, %v6220_v5 }
 0x728   :  { %v11841_v21 = vmul.f32 0.003921569, %v6215_v53 }
 0x729   :  { %v6256_v55 = vmul.f32 %v9781_v34, %v6255_v43  ;;  %9782 = vrsqrt.f32 %v11839_v18  ;;  %vm6285_vm10 = vcmp.eq.f32.partialorder %v11839_v18, inf  ;;  %vm6287_vm11 = vcmp.eq.f32.partialorder %v11839_v18, 0.0 }
 0x72a   :  { %9784 = vrsqrt.f32 %v11841_v21  ;;  %v6288_v7 = vand.u32 2147483648, %v11839_v18  ;;  %vm6273_vm0 = vcmp.eq.f32.partialorder %v11841_v21, inf  ;;  %v6276_v5 = vand.u32 2147483648, %v11841_v21 }
 0x72b   :  { %v6257_v41 = vmul.f32 0.5, %v6256_v55  ;;  %vm6275_vm12 = vcmp.eq.f32.partialorder %v11841_v21, 0.0 }
 0x72d   :  { %v6258_v3 = vsub.f32 1.5, %v6257_v41 }
 0x72e   :  { %v6225_v39 = vpop.xlane.xlu2 %6224 }
 0x72f   :  { %v9783_v2 = vpop.eup %9782  ;;  %v6259_v16 = vmul.f32 %v9781_v34, %v6258_v3  ;;  %v11845_v27 = vmul.f32 0.003921569, %v6225_v39 }
 0x730   :  { %v9785_v49 = vpop.eup %9784  ;;  %v6279_v63 = vmul.f32 %v9783_v2, %v11839_v18  ;;  %v6230_v50 = vpop.xlane.xlu0 %6229 }
 0x731   :  { %v6260_v61 = vmul.f32 %v6259_v16, %v6246_v9  ;;  %v6267_v52 = vmul.f32 %v9785_v49, %v11841_v21  ;;  %9786 = vrsqrt.f32 %v11845_v27  ;;  %v11850_v24 = vmul.f32 0.003921569, %v6230_v50 }
 0x732   :  { %v6280_v44 = vmul.f32 %v9783_v2, %v6279_v63  ;;  %vm6297_vm13 = vcmp.eq.f32.partialorder %v11845_v27, inf  ;;  %vm6299_vm14 = vcmp.eq.f32.partialorder %v11845_v27, 0.0 }
 0x733   :  { %v6262_v25 = vsel %vm6261_vm7, %v6246_v9, %v6260_v61  ;;  %v6268_v54 = vmul.f32 %v9785_v49, %v6267_v52  ;;  %9788 = vrsqrt.f32 %v11850_v24  ;;  %vm6309_vm15 = vcmp.eq.f32.partialorder %v11850_v24, inf }
 0x734   :  { %v6265_v22 = vsel %vm6263_vm9, %v6264_v23, %v6262_v25  ;;  %v6281_v26 = vmul.f32 0.5, %v6280_v44  ;;  %v6300_v44 = vand.u32 2147483648, %v11845_v27  ;;  %v6586_v25 = vld [vmem:[%s12326_s13 + $0xf0] sm:$0xff]  ;;  %vm6311_vm2 = vcmp.eq.f32.partialorder %v11850_v24, 0.0 }
 0x735   :  { %v6350_v45 = vmax.f32 %v6265_v22, 1e-06  ;;  %v6269_v62 = vmul.f32 0.5, %v6268_v54  ;;  %6647 = vmatpush.msra.mxu1 %v6586_v25  ;;  %9657 = vmatpush.msra.mxu3 %v6586_v25 }
 0x736   :  { %v6282_v58 = vsub.f32 1.5, %v6281_v26 }
 0x737   :  { %v9787_v28 = vpop.eup %9786  ;;  %v11854_v46 = vperm.slane %v6350_v45, %v11773_v30  ;;  %v6270_v10 = vsub.f32 1.5, %v6269_v62  ;;  %v6235_v4 = vpop.xlane.xlu1 %6234  ;;  %v6585_v45 = vld [vmem:[%s12326_s13 + $0xe8] sm:$0xff] }
 0x738   :  { %v6283_v40 = vmul.f32 %v9783_v2, %v6282_v58  ;;  %v6291_v8 = vmul.f32 %v9787_v28, %v11845_v27  ;;  %v11857_v35 = vmul.f32 0.003921569, %v6235_v4  ;;  %6648 = vmatpush.msra.mxu1 %v6585_v45  ;;  %9658 = vmatpush.msra.mxu3 %v6585_v45  ;;  %v6564_v45 = vld [vmem:[%s12326_s13 + $0x40] sm:$0xff] }
 0x739   :  { %9790 = vrcp.f32 %v11854_v46  ;;  %v9789_v12 = vpop.eup %9788  ;;  %v6271_v56 = vmul.f32 %v9785_v49, %v6270_v10  ;;  %v6240_v14 = vpop.xlane.xlu2 %6239  ;;  %v6415_v63 = vand.u32 2147483647, %v11854_v46  ;;  %v6417_v23 = vand.u32 2147483648, %v11854_v46  ;;  %v6580_v58 = vld [vmem:[%s12326_s13 + $0xc0] sm:$0xff] }
 0x73a   :  { %v6284_v31 = vmul.f32 %v6283_v40, %v11839_v18  ;;  %v6292_v38 = vmul.f32 %v9787_v28, %v6291_v8  ;;  %9792 = vrsqrt.f32 %v11857_v35  ;;  %v6303_v33 = vmul.f32 %v9789_v12, %v11850_v24 }
 0x73b   :  { %v6272_v57 = vmul.f32 %v6271_v56, %v11841_v21  ;;  %v11876_v43 = vmul.f32 0.003921569, %v6240_v14  ;;  %vm6411_vm3 = vweird.f32 %v11854_v46  ;;  %vm11928_vm4 = vcmp.eq.f32.partialorder %v6415_v63, 8.507059e+37 }
 0x73c   :  { %v6286_v47 = vsel %vm6285_vm10, %v11839_v18, %v6284_v31  ;;  %v6293_v9 = vmul.f32 0.5, %v6292_v38  ;;  %v6304_v53 = vmul.f32 %v9789_v12, %v6303_v33  ;;  %v6418_v4 = vor.u32 1.1754944e-38, %v6417_v23  ;;  %v6565_v23 = vld [vmem:[%s12326_s13 + $0x48] sm:$0xff] }
 0x73d   :  { %v6289_v34 = vsel %vm6287_vm11, %v6288_v7, %v6286_v47  ;;  %v6274_v41 = vsel %vm6273_vm0, %v11841_v21, %v6272_v57  ;;  %9794 = vrsqrt.f32 %v11876_v43  ;;  %v6571_v21 = vld [vmem:[%s12326_s13 + $0x78] sm:$0xff]  ;;  %vm6321_vm9 = vcmp.eq.f32.partialorder %v11857_v35, inf }
 0x73e   :  { %v6352_v55 = vmax.f32 %v6289_v34, 1e-06  ;;  %v6294_v32 = vsub.f32 1.5, %v6293_v9  ;;  %v6277_v18 = vsel %vm6275_vm12, %v6276_v5, %v6274_v41  ;;  %v6305_v48 = vmul.f32 0.5, %v6304_v53  ;;  %6623 = vmatpush.msra.mxu0 %v6571_v21  ;;  %9640 = vmatpush.msra.mxu2 %v6571_v21  ;;  %v6567_v34 = vld [vmem:[%s12326_s13 + $0x58] sm:$0xff]  ;;  %v6582_v21 = vld [vmem:[%s12326_s13 + $0xd0] sm:$0xff] }
 0x73f   :  { %v11880_v3 = vpop.eup %9790  ;;  %v6351_v49 = vmax.f32 %v6277_v18, 1e-06  ;;  %v6583_v5 = vld [vmem:[%s12326_s13 + $0xd8] sm:$0xff]  ;;  %vm6323_vm10 = vcmp.eq.f32.partialorder %v11857_v35, 0.0  ;;  %vm6333_vm0 = vcmp.eq.f32.partialorder %v11876_v43, inf }
 0x740   :  { %v11884_v39 = vpop.eup %9792  ;;  %v6407_v2 = vmul.f32 %v11880_v3, %v11854_v46  ;;  %v11889_v16 = vperm.slane %v6352_v55, %v11773_v30  ;;  %v6295_v50 = vmul.f32 %v9787_v28, %v6294_v32  ;;  %v6306_v17 = vsub.f32 1.5, %v6305_v48  ;;  %6624 = vmatpush.msra.mxu0 %v6570_v15  ;;  %9641 = vmatpush.msra.mxu2 %v6570_v15  ;;  %v6568_v46 = vld [vmem:[%s12326_s13 + $0x60] sm:$0xff] }
 0x741   :  { %v6315_v61 = vmul.f32 %v11884_v39, %v11857_v35  ;;  %v11911_v54 = vperm.slane %v6351_v49, %v11773_v30  ;;  %vm6412_vm1 = vweird.f32 %v11880_v3  ;;  %v6312_v28 = vand.u32 2147483648, %v11850_v24  ;;  %v6566_v49 = vld [vmem:[%s12326_s13 + $0x50] sm:$0xff] }
 0x742   :  { %v6408_v52 = vsub.f32 1.0, %v6407_v2  ;;  %9796 = vrcp.f32 %v11889_v16  ;;  %v6296_v29 = vmul.f32 %v6295_v50, %v11845_v27  ;;  %v6307_v22 = vmul.f32 %v9789_v12, %v6306_v17  ;;  %6625 = vmatpush.msra.mxu0 %v6569_v36  ;;  %v6584_v12 = vld [vmem:[%s12326_s13 + $0xe0] sm:$0xff]  ;;  %9642 = vmatpush.msra.mxu2 %v6569_v36  ;;  %vm11947_vm5 = vmor %vm6411_vm3, %vm6412_vm1  ;;  %v6245_v2 = vpop.xlane.xlu0 %6244 }
 0x743   :  { %v6316_v51 = vmul.f32 %v11884_v39, %v6315_v61  ;;  %v11925_v62 = vpop.eup %9794  ;;  %9798 = vrcp.f32 %v11911_v54  ;;  %v6445_v56 = vand.u32 2147483647, %v11889_v16  ;;  %6649 = vmatpush.msra.mxu1 %v6584_v12  ;;  %9659 = vmatpush.msra.mxu3 %v6584_v12  ;;  %vm6441_vm6 = vweird.f32 %v11889_v16 }
 0x744   :  { %v6409_v26 = vmul.f32 %v11880_v3, %v6408_v52  ;;  %v6298_v40 = vsel %vm6297_vm13, %v11845_v27, %v6296_v29  ;;  %v6308_v8 = vmul.f32 %v6307_v22, %v11850_v24  ;;  %v6327_v7 = vmul.f32 %v11925_v62, %v11876_v43  ;;  %6626 = vmatpush.msra.mxu0 %v6568_v46 }
 0x745   :  { %v6301_v38 = vsel %vm6299_vm14, %v6300_v44, %v6298_v40  ;;  %v6317_v14 = vmul.f32 0.5, %v6316_v51  ;;  %v6324_v27 = vand.u32 2147483648, %v11857_v35  ;;  %9643 = vmatpush.msra.mxu2 %v6568_v46  ;;  %6650 = vmatpush.msra.mxu1 %v6583_v5  ;;  %vm11990_vm7 = vcmp.eq.f32.partialorder %v6445_v56, 8.507059e+37  ;;  %v6581_v44 = vld [vmem:[%s12326_s13 + $0xc8] sm:$0xff]  ;;  %v6563_v46 = vld [vmem:[%s12326_s13 + $0x38] sm:$0xff] }
 0x746   :  { %v6410_v10 = vadd.f32 %v11880_v3, %v6409_v26  ;;  %v6353_v57 = vmax.f32 %v6301_v38, 1e-06  ;;  %v6310_v9 = vsel %vm6309_vm15, %v11850_v24, %v6308_v8  ;;  %6627 = vmatpush.msra.mxu0 %v6567_v34  ;;  %9660 = vmatpush.msra.mxu3 %v6583_v5  ;;  %v6447_v63 = vand.u32 2147483648, %v11889_v16 }
 0x747   :  { %v6313_v41 = vsel %vm6311_vm2, %v6312_v28, %v6310_v9  ;;  %v6318_v48 = vsub.f32 1.5, %v6317_v14  ;;  %9644 = vmatpush.msra.mxu2 %v6567_v34  ;;  %v6328_v50 = vmul.f32 %v11925_v62, %v6327_v7  ;;  %6651 = vmatpush.msra.mxu1 %v6582_v21  ;;  %v6336_v52 = vand.u32 2147483648, %v11876_v43  ;;  %v6578_v9 = vld [vmem:[%s12326_s13 + $0xb0] sm:$0xff] }
 0x748   :  { %v11956_v33 = vpop.eup %9796  ;;  %v6414_v47 = vsel %vm11947_vm5, %v11880_v3, %v6410_v10  ;;  %v11980_v3 = vperm.slane %v6353_v57, %v11773_v30  ;;  %v6354_v18 = vmax.f32 %v6313_v41, 1e-06  ;;  %6628 = vmatpush.msra.mxu0 %v6566_v49  ;;  %9661 = vmatpush.msra.mxu3 %v6582_v21  ;;  %v6430_v25 = vand.u32 2147483647, %v11911_v54 }
 0x749   :  { %v6419_v53 = vsel %vm11928_vm4, %v6418_v4, %v6414_v47  ;;  %v6437_v55 = vmul.f32 %v11956_v33, %v11889_v16  ;;  %v11988_v24 = vpop.eup %9798  ;;  %9645 = vmatpush.msra.mxu2 %v6566_v49  ;;  %vm6442_vm11 = vweird.f32 %v11956_v33  ;;  %v12012_v29 = vmul.f32 0.003921569, %v6245_v2  ;;  %6652 = vmatpush.msra.mxu1 %v6581_v44  ;;  %v6579_v16 = vld [vmem:[%s12326_s13 + $0xb8] sm:$0xff] }
 0x74a   :  { %v6420_v32 = vmul.f32 %v6419_v53, %v11777_v42  ;;  %v6422_v61 = vmul.f32 %v11988_v24, %v11911_v54  ;;  %9800 = vrcp.f32 %v11980_v3  ;;  %6629 = vmatpush.msra.mxu0 %v6565_v23  ;;  %v12016_v51 = vperm.slane %v6354_v18, %v11773_v30  ;;  %9662 = vmatpush.msra.mxu3 %v6581_v44  ;;  %vm12032_vm12 = vmor %vm6441_vm6, %vm6442_vm11  ;;  %v6561_v18 = vld [vmem:[%s12326_s13 + $0x28] sm:$0xff] }
 0x74b   :  { %v6438_v11 = vsub.f32 1.0, %v6437_v55  ;;  %v6319_v36 = vmul.f32 %v11884_v39, %v6318_v48  ;;  %9646 = vmatpush.msra.mxu2 %v6565_v23  ;;  %v6448_v10 = vor.u32 1.1754944e-38, %v6447_v63  ;;  %v6432_v4 = vand.u32 2147483648, %v11911_v54  ;;  %6653 = vmatpush.msra.mxu1 %v6580_v58  ;;  %v6577_v48 = vld [vmem:[%s12326_s13 + $0xa8] sm:$0xff] }
 0x74c   :  { %v6533_v17 = vmul.f32 %v11860_v1, %v6420_v32  ;;  %v6423_v26 = vsub.f32 1.0, %v6422_v61  ;;  %v6329_v40 = vmul.f32 0.5, %v6328_v50  ;;  %6630 = vmatpush.msra.mxu0 %v6564_v45  ;;  %vm6426_vm13 = vweird.f32 %v11911_v54  ;;  %9663 = vmatpush.msra.mxu3 %v6580_v58 }
 0x74d   :  { %v6439_v15 = vmul.f32 %v11956_v33, %v6438_v11  ;;  %vm6427_vm14 = vweird.f32 %v11988_v24  ;;  %9802 = vrcp.f32 %v12016_v51  ;;  %vm6335_vm15 = vcmp.eq.f32.partialorder %v11876_v43, 0.0  ;;  %9647 = vmatpush.msra.mxu2 %v6564_v45  ;;  %6654 = vmatpush.msra.mxu1 %v6579_v16 }
 0x74e   :  { %v6548_v22 = vadd.f32 %v11863_v0, %v6533_v17  ;;  %v6424_v8 = vmul.f32 %v11988_v24, %v6423_v26  ;;  %vm12050_vm1 = vcmp.eq.f32.partialorder %v6430_v25, 8.507059e+37  ;;  %v6320_v56 = vmul.f32 %v6319_v36, %v11857_v35  ;;  %6631 = vmatpush.msra.mxu0 %v6563_v46  ;;  %9664 = vmatpush.msra.mxu3 %v6579_v16  ;;  %vm12073_vm2 = vmor %vm6426_vm13, %vm6427_vm14  ;;  %v6560_v17 = vld [vmem:[%s12326_s13 + $0x20] sm:$0xff]  ;;  %v6559_v26 = vld [vmem:[%s12326_s13 + $0x18] sm:$0xff] }
 0x74f   :  { %v6440_v28 = vadd.f32 %v11956_v33, %v6439_v15  ;;  %v6330_v38 = vsub.f32 1.5, %v6329_v40  ;;  %v6460_v57 = vand.u32 2147483647, %v11980_v3  ;;  %9804 = vrsqrt.f32 %v12012_v29  ;;  %9648 = vmatpush.msra.mxu2 %v6563_v46  ;;  %6655 = vmatpush.msra.mxu1 %v6578_v9  ;;  %v6575_v36 = vld [vmem:[%s12326_s13 + $0x98] sm:$0xff] }
 0x750   :  { %6600 = vst [vmem:[#allocation1] ss:$4 sm:$0xff] %v6548_v22  ;;  %v12055_v14 = vpop.eup %9800  ;;  %v6425_v47 = vadd.f32 %v11988_v24, %v6424_v8  ;;  %v6433_v53 = vor.u32 1.1754944e-38, %v6432_v4  ;;  %vm6456_vm3 = vweird.f32 %v11980_v3  ;;  %v6462_v41 = vand.u32 2147483648, %v11980_v3  ;;  %9665 = vmatpush.msra.mxu3 %v6578_v9  ;;  %v6556_v9 = vld [vmem:[%s12326_s13] sm:$0xff] }
 0x751   :  { %v6444_v12 = vsel %vm12032_vm12, %v11956_v33, %v6440_v28  ;;  %v6562_v33 = vld [vmem:[%s12326_s13 + $0x30] sm:$0xff]  ;;  %v6452_v55 = vmul.f32 %v12055_v14, %v11980_v3  ;;  %v6322_v54 = vsel %vm6321_vm9, %v11857_v35, %v6320_v56  ;;  %v6331_v32 = vmul.f32 %v11925_v62, %v6330_v38  ;;  %6656 = vmatpush.msra.mxu1 %v6577_v48  ;;  %v6576_v35 = vld [vmem:[%s12326_s13 + $0xa0] sm:$0xff]  ;;  %v6557_v56 = vld [vmem:[%s12326_s13 + $0x8] sm:$0xff] }
 0x752   :  { %v6449_v7 = vsel %vm11990_vm7, %v6448_v10, %v6444_v12  ;;  %6632 = vmatpush.msra.mxu0 %v6562_v33  ;;  %9649 = vmatpush.msra.mxu2 %v6562_v33  ;;  %v6325_v62 = vsel %vm6323_vm10, %v6324_v27, %v6322_v54  ;;  %vm12104_vm4 = vcmp.eq.f32.partialorder %v6460_v57, 8.507059e+37  ;;  %vm6457_vm5 = vweird.f32 %v12055_v14  ;;  %v6573_v38 = vld [vmem:[%s12326_s13 + $0x88] sm:$0xff] }
 0x753   :  { %v6450_v34 = vmul.f32 %v6449_v7, %v11787_v60  ;;  %v6429_v60 = vsel %vm12073_vm2, %v11988_v24, %v6425_v47  ;;  %v6453_v21 = vsub.f32 1.0, %v6452_v55  ;;  %v12101_v24 = vpop.eup %9802  ;;  %v6355_v63 = vmax.f32 %v6325_v62, 1e-06  ;;  %9666 = vmatpush.msra.mxu3 %v6577_v48  ;;  %6657 = vmatpush.msra.mxu1 %v6576_v35  ;;  %vm12147_vm6 = vmor %vm6456_vm3, %vm6457_vm5 }
 0x754   :  { %v6434_v49 = vsel %vm12050_vm1, %v6433_v53, %v6429_v60  ;;  %6633 = vmatpush.msra.mxu0 %v6561_v18  ;;  %v6332_v50 = vmul.f32 %v6331_v32, %v11876_v43  ;;  %9650 = vmatpush.msra.mxu2 %v6561_v18  ;;  %v6467_v61 = vmul.f32 %v12101_v24, %v12016_v51  ;;  %v6463_v15 = vor.u32 1.1754944e-38, %v6462_v41 }
 0x755   :  { %v6535_v2 = vmul.f32 %v11860_v1, %v6450_v34  ;;  %v6435_v11 = vmul.f32 %v6434_v49, %v11784_v20  ;;  %v6454_v20 = vmul.f32 %v12055_v14, %v6453_v21  ;;  %v12120_v23 = vpop.eup %9804  ;;  %v12124_v25 = vperm.slane %v6355_v63, %v11773_v30  ;;  %9667 = vmatpush.msra.mxu3 %v6576_v35 }
 0x756   :  { %6634 = vmatpush.msra.mxu0 %v6560_v17  ;;  %v6334_v22 = vsel %vm6333_vm0, %v11876_v43, %v6332_v50  ;;  %9651 = vmatpush.msra.mxu2 %v6560_v17  ;;  %v6468_v58 = vsub.f32 1.0, %v6467_v61  ;;  %v6339_v10 = vmul.f32 %v12120_v23, %v12012_v29  ;;  %v6475_v39 = vand.u32 2147483647, %v12016_v51  ;;  %v6558_v43 = vld [vmem:[%s12326_s13 + $0x10] sm:$0xff] }
 0x757   :  { %v6550_v27 = vadd.f32 %v11863_v0, %v6535_v2  ;;  %v6534_v44 = vmul.f32 %v11860_v1, %v6435_v11  ;;  %v6455_v45 = vadd.f32 %v12055_v14, %v6454_v20  ;;  %v6337_v28 = vsel %vm6335_vm15, %v6336_v52, %v6334_v22  ;;  %6658 = vmatpush.msra.mxu1 %v6575_v36  ;;  %v6574_v52 = vld [vmem:[%s12326_s13 + $0x90] sm:$0xff] }
 0x758   :  { %6635 = vmatpush.msra.mxu0 %v6559_v26  ;;  %v6477_v8 = vand.u32 2147483648, %v12016_v51  ;;  %9806 = vrcp.f32 %v12124_v25  ;;  %9652 = vmatpush.msra.mxu2 %v6559_v26  ;;  %v6469_v46 = vmul.f32 %v12101_v24, %v6468_v58  ;;  %vm6472_vm7 = vweird.f32 %v12101_v24 }
 0x759   :  { %6604 = vst [vmem:[#allocation1 + $0x2] ss:$4 sm:$0xff] %v6550_v27  ;;  %v6549_v4 = vadd.f32 %v11863_v0, %v6534_v44  ;;  %v6459_v3 = vsel %vm12147_vm6, %v12055_v14, %v6455_v45  ;;  %v6356_v16 = vmax.f32 %v6337_v28, 1e-06  ;;  %9668 = vmatpush.msra.mxu3 %v6575_v36  ;;  %v6340_v31 = vmul.f32 %v12120_v23, %v6339_v10 }
 0x75a   :  { %6636 = vmatpush.msra.mxu0 %v6558_v43  ;;  %v6464_v12 = vsel %vm12104_vm4, %v6463_v15, %v6459_v3  ;;  %6659 = vmatpush.msra.mxu1 %v6574_v52  ;;  %v6470_v7 = vadd.f32 %v12101_v24, %v6469_v46  ;;  %vm6471_vm9 = vweird.f32 %v12016_v51  ;;  %v6478_v57 = vor.u32 1.1754944e-38, %v6477_v8 }
 0x75b   :  { %6602 = vst [vmem:[#allocation1 + $0x1] ss:$4 sm:$0xff] %v6549_v4  ;;  %9653 = vmatpush.msra.mxu2 %v6558_v43  ;;  %v6465_v14 = vmul.f32 %v6464_v12, %v11798_v13  ;;  %v12178_v47 = vperm.slane %v6356_v16, %v11773_v30  ;;  %9669 = vmatpush.msra.mxu3 %v6574_v52  ;;  %vm6473_vm10 = vmor %vm6471_vm9, %vm6472_vm7  ;;  %v6341_v33 = vmul.f32 0.5, %v6340_v31  ;;  %v6572_v13 = vld [vmem:[%s12326_s13 + $0x80] sm:$0xff]  ;;  %vm6476_vm11 = vcmp.eq.f32.partialorder %v6475_v39, 8.507059e+37 }
 0x75c   :  { %6637 = vmatpush.msra.mxu0 %v6557_v56  ;;  %6660 = vmatpush.msra.mxu1 %v6573_v38  ;;  %v6474_v34 = vsel %vm6473_vm10, %v12101_v24, %v6470_v7  ;;  %v6492_v2 = vand.u32 2147483648, %v12124_v25  ;;  %vm6345_vm0 = vcmp.eq.f32.partialorder %v12012_v29, inf  ;;  %v6348_v21 = vand.u32 2147483648, %v12012_v29 }
 0x75d   :  { %9654 = vmatpush.msra.mxu2 %v6557_v56  ;;  %v6536_v51 = vmul.f32 %v11860_v1, %v6465_v14  ;;  %9808 = vrcp.f32 %v12178_v47  ;;  %9670 = vmatpush.msra.mxu3 %v6573_v38  ;;  %v6479_v53 = vsel %vm6476_vm11, %v6478_v57, %v6474_v34  ;;  %v6342_v55 = vsub.f32 1.5, %v6341_v33 }
 0x75e   :  { %6638 = vmatpush.msra.mxu0 %v6556_v9  ;;  %v9807_v5 = vpop.eup %9806  ;;  %6661 = vmatpush.msra.mxu1 %v6572_v13  ;;  %v6480_v41 = vmul.f32 %v6479_v53, %v11801_v59  ;;  %v6490_v11 = vand.u32 2147483647, %v12124_v25  ;;  %vm6347_vm13 = vcmp.eq.f32.partialorder %v12012_v29, 0.0  ;;  %vm6486_vm14 = vweird.f32 %v12124_v25  ;;  %v9777_v53 = vld [vmem:[#allocation24] ss:$0 sm:$0xff] }
 0x75f   :  { %9655 = vmatpush.msra.mxu2 %v6556_v9  ;;  %v6551_v60 = vadd.f32 %v11863_v0, %v6536_v51  ;;  %v6482_v54 = vmul.f32 %v9807_v5, %v12124_v25  ;;  %9671 = vmatpush.msra.mxu3 %v6572_v13  ;;  %v6343_v32 = vmul.f32 %v12120_v23, %v6342_v55  ;;  %vm6487_vm12 = vweird.f32 %v9807_v5  ;;  %v9776_v9 = vld [vmem:[#allocation22] ss:$0 sm:$0xff] }
 0x760   :  { %v6537_v18 = vmul.f32 %v11860_v1, %v6480_v41  ;;  %vm6488_vm15 = vmor %vm6486_vm14, %vm6487_vm12  ;;  %v6493_v35 = vor.u32 1.1754944e-38, %v6492_v2  ;;  %vm6491_vm1 = vcmp.eq.f32.partialorder %v6490_v11, 8.507059e+37  ;;  %v6505_v23 = vand.u32 2147483647, %v12178_v47  ;;  %v12228_v41 = vld [vmem:[#allocation27] sm:$0xff] }
 0x761   :  { %6606 = vst [vmem:[#allocation1 + $0x3] ss:$4 sm:$0xff] %v6551_v60  ;;  %v6483_v48 = vsub.f32 1.0, %v6482_v54  ;;  %v6344_v49 = vmul.f32 %v6343_v32, %v12012_v29  ;;  %v6507_v44 = vand.u32 2147483648, %v12178_v47  ;;  %vm6501_vm3 = vweird.f32 %v12178_v47  ;;  %v12230_v54 = vld [vmem:[#allocation27 + $0x8] sm:$0xff] }
 0x762   :  { %v6552_v59 = vadd.f32 %v11863_v0, %v6537_v18  ;;  %vm6506_vm5 = vcmp.eq.f32.partialorder %v6505_v23, 8.507059e+37  ;;  %vm6684_vm11 = vcmask 164864   ;;  %v12753_v33 = vmov 0   ;;  %v12232_v32 = vld [vmem:[#allocation27 + $0x10] sm:$0x1f]  ;;  %v12754_v18 = vld [vmem:[#allocation229_spill] sm:$0xff] }
 0x763   :  { %v9809_v62 = vpop.eup %9808  ;;  %v6484_v24 = vmul.f32 %v9807_v5, %v6483_v48  ;;  %v6346_v63 = vsel %vm6345_vm0, %v12012_v29, %v6344_v49  ;;  %v6508_v28 = vor.u32 1.1754944e-38, %v6507_v44  ;;  %6707 = vst.msk [vmem:[%s12332_s19] sm:$0x3] %vm6684_vm11, %v12753_v33  ;;  %v12235_v48 = vadd.s32 8, %v12754_v18  ;;  %v12243_v49 = vld [vmem:[%s12755_s9] sm:$0x3] }
 0x764   :  { %v6497_v42 = vmul.f32 %v9809_v62, %v12178_v47  ;;  %6608 = vst [vmem:[#allocation1 + $0x20] ss:$4 sm:$0xff] %v6552_v59  ;;  %v6349_v17 = vsel %vm6347_vm13, %v6348_v21, %v6346_v63  ;;  %vm6502_vm2 = vweird.f32 %v9809_v62  ;;  %v12238_v2 = vadd.s32 16, %v12754_v18 }
 0x765   :  { %v6485_v50 = vadd.f32 %v9807_v5, %v6484_v24  ;;  %v6357_v20 = vmax.f32 %v6349_v17, 1e-06  ;;  %vm6503_vm4 = vmor %vm6501_vm3, %vm6502_vm2 }
 0x766   :  { %v6498_v27 = vsub.f32 1.0, %v6497_v42 }
 0x767   :  { %v6489_v61 = vsel %vm6488_vm15, %v9807_v5, %v6485_v50  ;;  %v6397_v29 = vperm.slane %v6357_v20, %v11773_v30 }
 0x768   :  { %v6494_v15 = vsel %vm6491_vm1, %v6493_v35, %v6489_v61  ;;  %v6499_v22 = vmul.f32 %v9809_v62, %v6498_v27  ;;  %v6615_v26 = vld.sshfl [vmem:[#allocation1] sm:$0xff pattern:$0x73625140]  ;;  %v6616_v36 = vld.sshfl [vmem:[#allocation1 + $0x8] sm:$0xff pattern:$0x73625140] }
 0x769   :  { %v6495_v25 = vmul.f32 %v6494_v15, %v11814_v37  ;;  %6639 = vmatmul.f32.vlgmr.msra.gmra.mxu0 %v6615_v26  ;;  %6662 = vmatmul.f32.vlgmr.msra.gmra.mxu1 %v6616_v36  ;;  %9810 = vrcp.f32 %v6397_v29  ;;  %v6522_v3 = vand.u32 2147483648, %v6397_v29  ;;  %v6520_v16 = vand.u32 2147483647, %v6397_v29 }
 0x76a   :  { %v6500_v45 = vadd.f32 %v9809_v62, %v6499_v22  ;;  %vm6516_vm7 = vweird.f32 %v6397_v29 }
 0x76b   :  { %v6538_v58 = vmul.f32 %v11860_v1, %v6495_v25  ;;  %v6523_v31 = vor.u32 1.1754944e-38, %v6522_v3  ;;  %vm6521_vm10 = vcmp.eq.f32.partialorder %v6520_v16, 8.507059e+37 }
 0x76c   :  { %v6504_v10 = vsel %vm6503_vm4, %v9809_v62, %v6500_v45 }
 0x76d   :  { %v6553_v4 = vadd.f32 %v11863_v0, %v6538_v58  ;;  %v6509_v40 = vsel %vm6506_vm5, %v6508_v28, %v6504_v10 }
 0x76e   :  { %v6510_v30 = vmul.f32 %v6509_v40, %v11817_v6 }
 0x76f   :  { %6610 = vst [vmem:[#allocation1 + $0x21] ss:$4 sm:$0xff] %v6553_v4  ;;  %v9811_v39 = vpop.eup %9810 }
 0x770   :  { %v6539_v37 = vmul.f32 %v11860_v1, %v6510_v30  ;;  %v6512_v8 = vmul.f32 %v9811_v39, %v6397_v29  ;;  %vm6517_vm6 = vweird.f32 %v9811_v39 }
 0x771   :  { %vm6518_vm9 = vmor %vm6516_vm7, %vm6517_vm6 }
 0x772   :  { %v6554_v43 = vadd.f32 %v11863_v0, %v6539_v37  ;;  %v6513_v52 = vsub.f32 1.0, %v6512_v8 }
 0x774   :  { %6612 = vst [vmem:[#allocation1 + $0x22] ss:$4 sm:$0xff] %v6554_v43  ;;  %v6514_v46 = vmul.f32 %v9811_v39, %v6513_v52 }
 0x776   :  { %v6515_v12 = vadd.f32 %v9811_v39, %v6514_v46 }
 0x778   :  { %v6519_v56 = vsel %vm6518_vm9, %v9811_v39, %v6515_v12 }
 0x779   :  { %v6524_v6 = vsel %vm6521_vm10, %v6523_v31, %v6519_v56 }
 0x77a   :  { %v6525_v38 = vmul.f32 %v6524_v6, %v11827_v19 }
 0x77c   :  { %v6540_v14 = vmul.f32 %v11860_v1, %v6525_v38 }
 0x77e   :  { %v6555_v7 = vadd.f32 %v11863_v0, %v6540_v14 }
 0x780   :  { %6614 = vst [vmem:[#allocation1 + $0x23] ss:$4 sm:$0xff] %v6555_v7 }
 0x787   :  { %v6617_v47 = vld.sshfl [vmem:[#allocation1 + $0x20] sm:$0xff pattern:$0x73625140]  ;;  %v6618_v57 = vld.sshfl [vmem:[#allocation1 + $0x28] sm:$0xff pattern:$0x73625140] }
 0x788   :  { %6642 = vmatmul.f32.vlgmr.msra.gmra.mxu2 %v6617_v47  ;;  %6665 = vmatmul.f32.vlgmr.msra.gmra.mxu3 %v6618_v57 }
 0x7e6   :  { %v6640_v13 = vpop.f32.mrf.mxu0  ;;  %v6663_v19 = vpop.f32.mrf.mxu1 }
 0x7e7   :  { %v6641_v51 = vadd.f32 %v9776_v9, %v6640_v13 }
 0x7e9   :  { %v6664_v34 = vadd.f32 %v6663_v19, %v6641_v51 }
 0x7eb   :  { %v6671_v1 = vrot.slane %v6664_v34, 2  ;;  %v6672_v5 = vrot.slane %v6664_v34, 4  ;;  %v6673_v0 = vrot.slane %v6664_v34, 6  ;;  %6685 = vst.msk [vmem:[#allocation5] sm:$0x3] %vm6684_vm11, %v6664_v34 }
 0x7ed   :  { %6686 = vst.msk [vmem:[#allocation5 + $0x2] sm:$0x3] %vm6684_vm11, %v6671_v1 }
 0x7ee   :  { %6687 = vst.msk [vmem:[#allocation5 + $0x4] sm:$0x3] %vm6684_vm11, %v6672_v5 }
 0x7ef   :  { %6688 = vst.msk [vmem:[#allocation5 + $0x6] sm:$0x3] %vm6684_vm11, %v6673_v0 }
 0x7f2   :  { %v6702_v55 = vld [vmem:[#allocation5] sm:$0x3] }
 0x7f3   :  { %v6706_v60 = vadd.f32 %v9777_v53, %v6702_v55  }
 0x80b   :  { %v6643_v21 = vpop.f32.mrf.mxu2  ;;  %v6666_v59 = vpop.f32.mrf.mxu3 }
 0x80c   :  { %v6644_v62 = vadd.f32 %v9776_v9, %v6643_v21 }
 0x80e   :  { %v6667_v24 = vadd.f32 %v6666_v59, %v6644_v62 }
 0x810   :  { %v6674_v11 = vrot.slane %v6667_v24, 2  ;;  %v6675_v42 = vrot.slane %v6667_v24, 4  ;;  %v6676_v63 = vrot.slane %v6667_v24, 6  ;;  %6689 = vst.msk [vmem:[#allocation5 + $0x8] sm:$0x3] %vm6684_vm11, %v6667_v24 }
 0x812   :  { %6690 = vst.msk [vmem:[#allocation5 + $0xa] sm:$0x3] %vm6684_vm11, %v6674_v11 }
 0x813   :  { %6691 = vst.msk [vmem:[#allocation5 + $0xc] sm:$0x3] %vm6684_vm11, %v6675_v42 }
 0x814   :  { %6692 = vst.msk [vmem:[#allocation5 + $0xe] sm:$0x3] %vm6684_vm11, %v6676_v63 }
 0x815 LB: > { %v12756_v50 = vld [vmem:[#allocation229_spill] sm:$0xff]  ;;  %9816 = vset.pattern.permute.xlu2 %v12235_v48  ;;  %v6737_v17 = vperm.slane %v10180_v60, 1  ;;  %v6718_v35 = vperm.slane %v10180_v60, 0  ;;  %v6845_v27 = vstv %s10184_s15  ;;  %v10208_v20 = vmov 0   ;;  %s9093_s17 = sshll.u32 %s10184_s15, 1  ;;  %s6713_s15 = sadd.s32 1, %s10184_s15   ;;  %s10184_s15 = sphi %s12251_s15, %s6713_s15   ;;  %v10180_v60 = vphi %v6706_v60, %v12757_v60  }
 0x816   : > { %9814 = vset.pattern.permute.xlu1 %v12756_v50  ;;  %9812 = vset.pattern.permute.xlu0 %v12756_v50  ;;  %vm6846_vm0 = vcmp.lt.s32.totalorder %v6845_v27, %v12243_v49  ;;  %s6716_s5 = scalar_lea.vmem [#allocation5], %s9093_s17  ;;  %vm6774_vm12 = vcmask 171008   ;;  %vm6777_vm13 = vcmask 167936   ;;  %s6843_s27 = scalar_lea.vmem %s12332_s19, %s9093_s17 }
 0x817   : > { %v6847_v61 = vsel %vm6846_vm0, 1, %v10208_v20  ;;  %p6710_p1 = scmp.ge.s32.totalorder %s6713_s15, 8  }
 0x81b   : > { %v6717_v44 = vld [vmem:[%s6716_s5] sm:$0x3] }
 0x81c   : > { %v6763_v29 = vrot.slane %v6717_v44, 1  ;;  %v6764_v45 = vperm.slane %v6717_v44, 0 }
 0x81d   : > { %6729 = vperm.xlu2 %9816, %v6718_v35  }
 0x81e   : > { %6742 = vperm.xlu1 %9814, %v6737_v17   ;;  %6723 = vperm.xlu0 %9812, %v6718_v35   ;;  %v6765_v36 = vperm.slane %v6763_v29, 0 }
 0x825   : > { %6748 = vperm.xlu2 %9816, %v6737_v17  }
 0x826   : > { %9815 = vset.pattern.permute.xlu1 %v12238_v2  ;;  %9813 = vset.pattern.permute.xlu0 %v12238_v2 }
 0x82e   : > { %6754 = vperm.xlu1 %9815, %v6737_v17   ;;  %6735 = vperm.xlu0 %9813, %v6718_v35  }
 0x836   : > { %9817 = vset.pattern.permute.xlu1 %v10208_v20  ;;  %9818 = vset.pattern.permute.xlu0 %v10208_v20 }
 0x837   : > { %6849 = vperm.xlu1 %9817, %v6847_v61  }
 0x877   : > { %v6730_v23 = vpop.permute.xlu2 %6729 }
 0x878   : > { %v6757_v28 = vadd.f32 %v6730_v23, %v12230_v54 }
 0x87a   : > { %v6769_v43 = vadd.f32 %v6764_v45, %v6757_v28 }
 0x87c   : > { %v6776_v14 = vsel %vm6774_vm12, %v6769_v43, -inf }
 0x87f   : > { %v6749_v26 = vpop.permute.xlu2 %6748 }
 0x880   : > { %v6760_v10 = vadd.f32 %v6749_v26, %v12230_v54 }
 0x882   : > { %v6772_v52 = vadd.f32 %v6765_v36, %v6760_v10 }
 0x884   : > { %v6788_v7 = vsel %vm6774_vm12, %v6772_v52, -inf }
 0x890   : > { %v6743_v15 = vpop.permute.xlu1 %6742  ;;  %v6724_v22 = vpop.permute.xlu0 %6723 }
 0x891   : > { %v6759_v25 = vadd.f32 %v6743_v15, %v12228_v41  ;;  %v6756_v58 = vadd.f32 %v6724_v22, %v12228_v41 }
 0x893   : > { %v6771_v30 = vadd.f32 %v6765_v36, %v6759_v25  ;;  %v6768_v39 = vadd.f32 %v6764_v45, %v6756_v58 }
 0x895   : > { %v6787_v16 = vsel %vm6774_vm12, %v6771_v30, -inf  ;;  %v6775_v12 = vsel %vm6774_vm12, %v6768_v39, -inf }
 0x8a0   : > { %v6755_v4 = vpop.permute.xlu1 %6754  ;;  %v6736_v40 = vpop.permute.xlu0 %6735 }
 0x8a1   : > { %v6761_v37 = vadd.f32 %v6755_v4, %v12232_v32  ;;  %v6758_v8 = vadd.f32 %v6736_v40, %v12232_v32 }
 0x8a3   : > { %v6773_v3 = vadd.f32 %v6765_v36, %v6761_v37  ;;  %v6770_v46 = vadd.f32 %v6764_v45, %v6758_v8 }
 0x8a5   : > { %v6789_v31 = vsel %vm6777_vm13, %v6773_v3, -inf  ;;  %v6778_v56 = vsel %vm6777_vm13, %v6770_v46, -inf }
 0x8a6   : > { %v6790_v6 = vmax.f32 %v6787_v16, %v6789_v31  ;;  %v6779_v38 = vmax.f32 %v6775_v12, %v6778_v56 }
 0x8a8   : > { %v6791_v47 = vmax.f32 %v6790_v6, %v6788_v7  ;;  %v6780_v57 = vmax.f32 %v6779_v38, %v6776_v14 }
 0x8a9   : > { %v6850_v21 = vpop.permute.xlu1 %6849 }
 0x8aa   : > { %v6792_v33 = vrot.slane %v6791_v47, 4  ;;  %v6781_v9 = vrot.slane %v6780_v57, 4  ;;  %vm6851_vm5 = vcmp.eq.s32.totalorder %v6850_v21, 1 }
 0x8ac   : > { %v6793_v13 = vmax.f32 %v6791_v47, %v6792_v33  ;;  %v6782_v51 = vmax.f32 %v6780_v57, %v6781_v9 }
 0x8ae   : > { %v6794_v19 = vrot.slane %v6793_v13, 2  ;;  %v6783_v34 = vrot.slane %v6782_v51, 2 }
 0x8b0   : > { %v6795_v1 = vmax.f32 %v6793_v13, %v6794_v19  ;;  %v6784_v5 = vmax.f32 %v6782_v51, %v6783_v34 }
 0x8b2   : > { %v6796_v0 = vrot.slane %v6795_v1, 1  ;;  %v6785_v53 = vrot.slane %v6784_v5, 1 }
 0x8b4   : > { %v6797_v55 = vmax.f32 %v6795_v1, %v6796_v0  ;;  %v6786_v18 = vmax.f32 %v6784_v5, %v6785_v53 }
 0x8b6   : > { %vm6801_vm14 = vcmp.eq.f32.partialorder %v6771_v30, %v6797_v55  ;;  %vm6802_vm15 = vcmp.eq.f32.partialorder %v6772_v52, %v6797_v55  ;;  %vm6803_vm1 = vcmp.eq.f32.partialorder %v6773_v3, %v6797_v55  ;;  %vm6798_vm2 = vcmp.eq.f32.partialorder %v6768_v39, %v6786_v18 }
 0x8b7   : > { %v6807_v62 = vsel %vm6801_vm14, %v12756_v50, 21  ;;  %v6808_v59 = vsel %vm6802_vm15, %v12235_v48, 21  ;;  %v6809_v24 = vsel %vm6803_vm1, %v12238_v2, 21  ;;  %vm6799_vm3 = vcmp.eq.f32.partialorder %v6769_v43, %v6786_v18  ;;  %v9819_v43 = vld [vmem:[#allocation25] ss:$0 sm:$0xff] (%p6710_p1) }
 0x8b8   : > { %v6826_v11 = vsel %vm6774_vm12, %v6807_v62, 2147483647  ;;  %v6828_v42 = vsel %vm6777_vm13, %v6809_v24, 2147483647  ;;  %vm6800_vm4 = vcmp.eq.f32.partialorder %v6770_v46, %v6786_v18  ;;  %v6804_v63 = vsel %vm6798_vm2, %v12756_v50, 21 }
 0x8b9   : > { %vm6829_vm6 = vcmp.lt.s32.totalorder %v6826_v11, %v6828_v42  ;;  %v6805_v17 = vsel %vm6799_vm3, %v12235_v48, 21  ;;  %v6806_v35 = vsel %vm6800_vm4, %v12238_v2, 21  ;;  %v6827_v27 = vsel %vm6774_vm12, %v6808_v59, 2147483647 }
 0x8ba   : > { %v6830_v20 = vsel %vm6829_vm6, %v6826_v11, %v6828_v42  ;;  %v6810_v61 = vsel %vm6774_vm12, %v6804_v63, 2147483647  ;;  %v6812_v23 = vsel %vm6777_vm13, %v6806_v35, 2147483647  ;;  %v6854_v44 = vsel %vm4461_vm8, %v6797_v55, %v6786_v18 }
 0x8bb   : > { %vm6831_vm7 = vcmp.lt.s32.totalorder %v6830_v20, %v6827_v27  ;;  %vm6813_vm9 = vcmp.lt.s32.totalorder %v6810_v61, %v6812_v23  ;;  %v6811_v22 = vsel %vm6774_vm12, %v6805_v17, 2147483647  ;;  %v6856_v50 = vsel %vm6851_vm5, %v6854_v44, %v10180_v60  }
 0x8bc   : > { %v6832_v15 = vsel %vm6831_vm7, %v6830_v20, %v6827_v27  ;;  %v6814_v29 = vsel %vm6813_vm9, %v6810_v61, %v6812_v23  ;;  %v6861_v52 = vadd.f32 (%p6710_p1), %v9819_v43, %v6856_v50 }
 0x8bd   : > { %v6833_v26 = vrot.slane %v6832_v15, 4  ;;  %vm6815_vm10 = vcmp.lt.s32.totalorder %v6814_v29, %v6811_v22 }
 0x8be   : > { %v6816_v36 = vsel %vm6815_vm10, %v6814_v29, %v6811_v22  ;;  %6862 = vst.msk [vmem:[%s12331_s18] sm:$0x3] (%p6710_p1), %vm6684_vm11, %v6861_v52 }
 0x8bf   : > { %vm6834_vm0 = vcmp.lt.s32.totalorder %v6832_v15, %v6833_v26  ;;  %v6817_v25 = vrot.slane %v6816_v36, 4 }
 0x8c0   : > { %v6835_v45 = vsel %vm6834_vm0, %v6832_v15, %v6833_v26 }
 0x8c1   : > { %v6836_v58 = vrot.slane %v6835_v45, 2  ;;  %vm6818_vm14 = vcmp.lt.s32.totalorder %v6816_v36, %v6817_v25 }
 0x8c2   : > { %v6819_v28 = vsel %vm6818_vm14, %v6816_v36, %v6817_v25 }
 0x8c3   : > { %vm6837_vm13 = vcmp.lt.s32.totalorder %v6835_v45, %v6836_v58  ;;  %v6820_v10 = vrot.slane %v6819_v28, 2 }
 0x8c4   : > { %v6838_v4 = vsel %vm6837_vm13, %v6835_v45, %v6836_v58 }
 0x8c5   : > { %v6839_v40 = vrot.slane %v6838_v4, 1  ;;  %vm6821_vm15 = vcmp.lt.s32.totalorder %v6819_v28, %v6820_v10 }
 0x8c6   : > { %v6822_v30 = vsel %vm6821_vm15, %v6819_v28, %v6820_v10 }
 0x8c7   : > { %vm6840_vm12 = vcmp.lt.s32.totalorder %v6838_v4, %v6839_v40  ;;  %v6823_v39 = vrot.slane %v6822_v30, 1 }
 0x8c8   : > { %v6841_v37 = vsel %vm6840_vm12, %v6838_v4, %v6839_v40  ;;  %6712 = sbr.rel (!%p6710_p1) target bundleno = 2069 (0x815), region = 217 }
 0x8c9   : > { %vm6824_vm1 = vcmp.lt.s32.totalorder %v6822_v30, %v6823_v39 }
 0x8ca   : > { %v6825_v60 = vsel %vm6824_vm1, %v6822_v30, %v6823_v39 }
 0x8cb   : > { %v6842_v8 = vsel %vm4461_vm8, %v6841_v37, %v6825_v60  ;;  %v12757_v60 = vmov %v6856_v50 }
 0x8cc   : > { %6844 = vst.msk [vmem:[%s6843_s27] sm:$0x3] %vm6684_vm11, %v6842_v8 }
 0x8cd   :  { %6871 = vsyncpa [#allocation9], 1 }
 0x8ce   :  { %6872 = vsyncpa [#allocation11], 1 }
 0x8cf   :  { %6873 = vsyncpa [#allocation14], 1 }
 0x8d0   :  { %6874 = vsyncpa [#allocation17], 1 }
 0x8d1   :  { %6875 = vsyncpa [#allocation20], 1 }
 0x8d2   :  { %6876 = vsyncpa [#allocation23], 1 }
 0x8d3   :  { %6877 = vsyncpa [#allocation26], 1 }

</bundles_post_ra>
